<compile_context>
chip_gen: v6e
topology: v6e:2x2x1
jax: 0.10.0
libtpu: 0.0.40
codegen_flags: <defaults>
</compile_context>

<pallas_src>
import jax
import jax.numpy as jnp
from jax import lax
from jax.experimental import pallas as pl
from jax.experimental.pallas import tpu as pltpu


# Architectural constants of the PyTorch module.
C_IN, C_MID, C_OUT = 128, 32, 256
KH1, KW1, PH1, PW1 = 3, 3, 1, 1
KH2, KW2, PH2, PW2, DH2, DW2 = 12, 4, 6, 2, 2, 1   # DW2 == 1 is assumed by the packing


def _round_up(x, m):
    return (x + m - 1) // m * m


def _make_kernel(H, W, H2, W2p):
    """Build the fused conv->silu->conv->silu kernel for a given spatial size."""
    M1 = H * W                      # conv1 matmul rows
    M2 = H2 * W2p                   # conv2 matmul rows (W padded to mult. of 8)
    KWC1 = KW1 * C_IN               # 384
    K1 = KH1 * KWC1                 # 1152  (conv1 contraction depth)
    KWC2 = KW2 * C_MID              # 128
    K2 = KH2 * KWC2                 # 1536  (conv2 contraction depth)
    HA = H + 2 * PH2                # rows of the kw-packed conv2 im2col

    def kernel(x_ref, w1_ref, b1_ref, w2_ref, b2_ref, o_ref,
               c1_ref, a2_ref, c2_ref):
        f32, bf16 = jnp.float32, jnp.bfloat16

        # ---------------- conv1: build (H, W, 9*C_IN) im2col in VMEM ----------
        x = x_ref[...]                                          # (H, W, 128) f32
        zc = jnp.zeros((H, 1, C_IN), f32)
        left = jnp.concatenate([zc, x[:, :W - 1, :]], axis=1)   # x_pad[., w+0, .]
        right = jnp.concatenate([x[:, 1:, :], zc], axis=1)      # x_pad[., w+2, .]
        row_k = jnp.concatenate([left, x, right], axis=-1).astype(bf16)  # (H,W,384)
        zrow = jnp.zeros((1, W, KWC1), bf16)

        # kh = 0 tap: padded rows shifted down by one (top halo row is zero)
        c1_ref[0:1, :, 0:KWC1] = zrow
        c1_ref[1:H, :, 0:KWC1] = row_k[:H - 1]
        # kh = 1 tap: aligned with the output rows
        c1_ref[:, :, KWC1:2 * KWC1] = row_k
        # kh = 2 tap: shifted up by one (bottom halo row is zero)
        c1_ref[:H - 1, :, 2 * KWC1:K1] = row_k[1:]
        c1_ref[H - 1:H, :, 2 * KWC1:K1] = zrow

        # One MXU dot for conv1 (K = 1152); bias folded in; SiLU fused.
        v1 = jnp.dot(c1_ref[...].reshape(M1, K1), w1_ref[...],
                     preferred_element_type=f32) + b1_ref[...]
        v3 = (v1 * jax.nn.sigmoid(v1)).reshape(H, W, C_MID)     # SiLU, stays in VMEM

        # ------------- conv2: kw-packed, W2p-wide, H-padded im2col ------------
        zl = jnp.zeros((H, PW2, C_MID), f32)
        zr = jnp.zeros((H, W2p - W - PW2, C_MID), f32)
        v3w = jnp.concatenate([zl, v3, zr], axis=1)             # (H, W2p, 32)
        chunks = [v3w]
        for kw in range(1, KW2):                                # W taps into lanes
            zt = jnp.zeros((H, kw, C_MID), f32)
            chunks.append(jnp.concatenate([v3w[:, kw:, :], zt], axis=1))
        rows2 = jnp.concatenate(chunks, axis=-1)                # (H, W2p, 128)

        # zero only the H halo rows; the interior rows are fully overwritten
        zhalo = jnp.zeros((PH2, W2p, KWC2), bf16)
        a2_ref[0:PH2, :, :] = zhalo
        a2_ref[PH2 + H:HA, :, :] = zhalo
        a2_ref[PH2:PH2 + H, :, :] = rows2.astype(bf16)

        # pack the 12 dilated kh taps into the contraction (aligned copies only)
        for kh in range(KH2):
            c2_ref[:, :, kh * KWC2:(kh + 1) * KWC2] = \
                a2_ref[DH2 * kh:DH2 * kh + H2, :, :]

        # One MXU dot for conv2 (K = 1536); bias folded in; SiLU fused.
        v4 = jnp.dot(c2_ref[...].reshape(M2, K2), w2_ref[...],
                     preferred_element_type=f32) + b2_ref[...]
        v6 = v4 * jax.nn.sigmoid(v4)
        # padded (H2, W2p, 256) output -> dense sublane/lane stores
        o_ref[...] = v6.reshape(H2, W2p, C_OUT)

    scratch = [
        pltpu.VMEM((H, W, K1), jnp.bfloat16),       # conv1 im2col   (~576 KiB)
        pltpu.VMEM((HA, W2p, KWC2), jnp.bfloat16),  # kw-packed v3   (~172 KiB)
        pltpu.VMEM((H2, W2p, K2), jnp.bfloat16),    # conv2 im2col   (~432 KiB)
    ]
    return kernel, scratch


def _fused_forward(x_hwc, w1p, b1r, w2p, b2r):
    """Run the fused kernel; returns the (H2, W2, C_OUT) HWC output."""
    H, W, _ = x_hwc.shape
    assert H % 8 == 0 and W % 8 == 0, "spatial dims assumed multiples of 8"
    H2 = H + 2 * PH2 - DH2 * (KH2 - 1)
    W2 = W + 2 * PW2 - DW2 * (KW2 - 1)
    W2p = _round_up(W2, 8)

    kernel, scratch = _make_kernel(H, W, H2, W2p)
    out_pad = pl.pallas_call(
        kernel,
        out_shape=jax.ShapeDtypeStruct((H2, W2p, C_OUT), jnp.float32),
        grid=(1,),
        in_specs=[
            pl.BlockSpec((H, W, C_IN), lambda i: (0, 0, 0)),
            pl.BlockSpec(w1p.shape, lambda i: (0, 0)),
            pl.BlockSpec(b1r.shape, lambda i: (0, 0)),
            pl.BlockSpec(w2p.shape, lambda i: (0, 0)),
            pl.BlockSpec(b2r.shape, lambda i: (0, 0)),
        ],
        out_specs=pl.BlockSpec((H2, W2p, C_OUT), lambda i: (0, 0, 0)),
        scratch_shapes=scratch,
        compiler_params=pltpu.CompilerParams(
            dimension_semantics=("arbitrary",)),
    )(x_hwc, w1p, b1r, w2p, b2r)
    # W2p -> W2 slice happens in XLA so the kernel's stores stay dense.
    return out_pad[:, :W2, :]


def prepare_params(w1, b1, w2, b2):
    """One-time weight repacking (hoisted out of the per-call forward)."""
    # lane order of the conv1 LHS is kh*KW1*C_IN + kw*C_IN + c
    w1p = jnp.transpose(w1, (2, 3, 1, 0)).reshape(KH1 * KW1 * C_IN, C_MID)
    # lane order of the conv2 LHS is kh*KW2*C_MID + kw*C_MID + c
    w2p = jnp.transpose(w2, (2, 3, 1, 0)).reshape(KH2 * KW2 * C_MID, C_OUT)
    return (w1p.astype(jnp.bfloat16),
            b1.reshape(1, C_MID).astype(jnp.float32),
            w2p.astype(jnp.bfloat16),
            b2.reshape(1, C_OUT).astype(jnp.float32))


@jax.jit
def model_forward(x_nchw, w1p, b1r, w2p, b2r):
    x_hwc = jnp.transpose(x_nchw[0], (1, 2, 0)).astype(jnp.float32)   # (H, W, C_IN)
    out_hwc = _fused_forward(x_hwc, w1p, b1r, w2p, b2r)
    return jnp.transpose(out_hwc, (2, 0, 1))[None]                    # NCHW


def _reference_forward(x1, w1, b1, w2, b2, cast_bf16):
    """Pure-JAX (lax.conv) reference.  cast_bf16=True mirrors the kernel's
    bf16 matmul operands / f32 accumulation exactly."""
    cast = (lambda a: a.astype(jnp.bfloat16)) if cast_bf16 else (lambda a: a)
    dn1 = lax.conv_dimension_numbers(x1.shape, w1.shape, ("NCHW", "OIHW", "NCHW"))
    v1 = lax.conv_general_dilated(
        cast(x1), cast(w1), window_strides=(1, 1), padding=((1, 1), (1, 1)),
        rhs_dilation=(1, 1), dimension_numbers=dn1,
        preferred_element_type=jnp.float32) + b1[None, :, None, None]
    v3 = v1 * jax.nn.sigmoid(v1)
    dn2 = lax.conv_dimension_numbers(v3.shape, w2.shape, ("NCHW", "OIHW", "NCHW"))
    v4 = lax.conv_general_dilated(
        cast(v3), cast(w2), window_strides=(1, 1), padding=((6, 6), (2, 2)),
        rhs_dilation=(2, 1), dimension_numbers=dn2,
        preferred_element_type=jnp.float32) + b2[None, :, None, None]
    return v4 * jax.nn.sigmoid(v4)


if __name__ == "__main__":
    key = jax.random.PRNGKey(0)
    k1, k2, k3, k4, k5 = jax.random.split(key, 5)

    # Small spatial size for the test; channel counts (128 -> 32 -> 256) and
    # kernel shapes are architectural and kept from the module definition.
    x1 = jax.random.normal(k1, (1, 128, 16, 16), jnp.float32)
    w1 = jax.random.normal(k2, (32, 128, 3, 3), jnp.float32) * 0.05
    b1 = jax.random.normal(k3, (32,), jnp.float32) * 0.05
    w2 = jax.random.normal(k4, (256, 32, 12, 4), jnp.float32) * 0.05
    b2 = jax.random.normal(k5, (256,), jnp.float32) * 0.05

    params = prepare_params(w1, b1, w2, b2)            # one-time packing
    out = jax.block_until_ready(model_forward(x1, *params))
    assert out.shape == (1, 256, 6, 17), out.shape

    # Tight check vs. a reference using the same bf16 operands / f32 accumulate.
    ref16 = _reference_forward(x1, w1, b1, w2, b2, cast_bf16=True)
    assert jnp.allclose(out, ref16, rtol=1e-2, atol=1e-2), \
        float(jnp.max(jnp.abs(out - ref16)))

    # Sanity check vs. the full-f32 PyTorch-equivalent reference.
    ref32 = _reference_forward(x1, w1, b1, w2, b2, cast_bf16=False)
    max_err = float(jnp.max(jnp.abs(out - ref32)))
    assert max_err <= 3e-2 * float(jnp.max(jnp.abs(ref32))) + 1e-3, max_err

    print("KERNEL_OK")
</pallas_src>

<mosaic_0001>
module attributes {stable_mosaic.version = 11 : i64} {
  func.func @kernel(%arg0: i32, %arg1: memref<16x16x128xf32, #tpu.memory_space<vmem>>, %arg2: memref<1152x32xbf16, #tpu.memory_space<vmem>>, %arg3: memref<1x32xf32, #tpu.memory_space<vmem>>, %arg4: memref<1536x256xbf16, #tpu.memory_space<vmem>>, %arg5: memref<1x256xf32, #tpu.memory_space<vmem>>, %arg6: memref<6x24x256xf32, #tpu.memory_space<vmem>>, %arg7: memref<16x16x1152xbf16, #tpu.memory_space<vmem>>, %arg8: memref<28x24x128xbf16, #tpu.memory_space<vmem>>, %arg9: memref<6x24x1536xbf16, #tpu.memory_space<vmem>>) attributes {dimension_semantics = [#tpu.dimension_semantics<arbitrary>], iteration_bounds = array<i64: 1>, scalar_prefetch = 0 : i64, scratch_operands = 3 : i64, tpu.core_type = #tpu.core_type<tc>, window_params = [{pipeline_mode = #tpu.pipeline_mode<synchronous>, transform_indices = @transform_0, window_bounds = array<i64: 16, 16, 128>}, {pipeline_mode = #tpu.pipeline_mode<synchronous>, transform_indices = @transform_1, window_bounds = array<i64: 1152, 32>}, {pipeline_mode = #tpu.pipeline_mode<synchronous>, transform_indices = @transform_2, window_bounds = array<i64: 1, 32>}, {pipeline_mode = #tpu.pipeline_mode<synchronous>, transform_indices = @transform_3, window_bounds = array<i64: 1536, 256>}, {pipeline_mode = #tpu.pipeline_mode<synchronous>, transform_indices = @transform_4, window_bounds = array<i64: 1, 256>}, {pipeline_mode = #tpu.pipeline_mode<synchronous>, transform_indices = @transform_5, window_bounds = array<i64: 6, 24, 256>}]} {
    %c0 = arith.constant 0 : index
    %c0_0 = arith.constant 0 : index
    %c0_1 = arith.constant 0 : index
    %0 = vector.load %arg1[%c0, %c0_0, %c0_1] : memref<16x16x128xf32, #tpu.memory_space<vmem>>, vector<16x16x128xf32>
    %cst = arith.constant 0.000000e+00 : f32
    %1 = vector.broadcast %cst : f32 to vector<16x1x128xf32>
    %2 = vector.extract_strided_slice %0 {offsets = [0, 0, 0], sizes = [16, 15, 128], strides = [1, 1, 1]} : vector<16x16x128xf32> to vector<16x15x128xf32>
    %3 = tpu.concatenate %1, %2 in 1 : vector<16x1x128xf32>, vector<16x15x128xf32> -> vector<16x16x128xf32>
    %4 = vector.extract_strided_slice %0 {offsets = [0, 1, 0], sizes = [16, 15, 128], strides = [1, 1, 1]} : vector<16x16x128xf32> to vector<16x15x128xf32>
    %5 = tpu.concatenate %4, %1 in 1 : vector<16x15x128xf32>, vector<16x1x128xf32> -> vector<16x16x128xf32>
    %6 = tpu.concatenate %3, %0, %5 in 2 : vector<16x16x128xf32>, vector<16x16x128xf32>, vector<16x16x128xf32> -> vector<16x16x384xf32>
    %7 = arith.truncf %6 : vector<16x16x384xf32> to vector<16x16x384xbf16>
    %cst_2 = arith.constant 0.000000e+00 : bf16
    %8 = vector.broadcast %cst_2 : bf16 to vector<1x16x384xbf16>
    %c0_3 = arith.constant 0 : index
    %c0_4 = arith.constant 0 : index
    %c0_5 = arith.constant 0 : index
    %9 = vector.load %arg7[%c0_3, %c0_4, %c0_5] : memref<16x16x1152xbf16, #tpu.memory_space<vmem>>, vector<1x16x384xbf16>
    tpu.vector_store %arg7[%c0_3, %c0_4, %c0_5], %8 {strides = array<i32>} : memref<16x16x1152xbf16, #tpu.memory_space<vmem>>, vector<1x16x384xbf16>,
    %10 = vector.extract_strided_slice %7 {offsets = [0, 0, 0], sizes = [15, 16, 384], strides = [1, 1, 1]} : vector<16x16x384xbf16> to vector<15x16x384xbf16>
    %c1 = arith.constant 1 : index
    %c0_6 = arith.constant 0 : index
    %c0_7 = arith.constant 0 : index
    %11 = vector.load %arg7[%c1, %c0_6, %c0_7] : memref<16x16x1152xbf16, #tpu.memory_space<vmem>>, vector<15x16x384xbf16>
    tpu.vector_store %arg7[%c1, %c0_6, %c0_7], %10 {strides = array<i32>} : memref<16x16x1152xbf16, #tpu.memory_space<vmem>>, vector<15x16x384xbf16>,
    %c0_8 = arith.constant 0 : index
    %c0_9 = arith.constant 0 : index
    %c384 = arith.constant 384 : index
    %12 = vector.load %arg7[%c0_8, %c0_9, %c384] : memref<16x16x1152xbf16, #tpu.memory_space<vmem>>, vector<16x16x384xbf16>
    tpu.vector_store %arg7[%c0_8, %c0_9, %c384], %7 {strides = array<i32>} : memref<16x16x1152xbf16, #tpu.memory_space<vmem>>, vector<16x16x384xbf16>,
    %13 = vector.extract_strided_slice %7 {offsets = [1, 0, 0], sizes = [15, 16, 384], strides = [1, 1, 1]} : vector<16x16x384xbf16> to vector<15x16x384xbf16>
    %c0_10 = arith.constant 0 : index
    %c0_11 = arith.constant 0 : index
    %c768 = arith.constant 768 : index
    %14 = vector.load %arg7[%c0_10, %c0_11, %c768] : memref<16x16x1152xbf16, #tpu.memory_space<vmem>>, vector<15x16x384xbf16>
    tpu.vector_store %arg7[%c0_10, %c0_11, %c768], %13 {strides = array<i32>} : memref<16x16x1152xbf16, #tpu.memory_space<vmem>>, vector<15x16x384xbf16>,
    %c15 = arith.constant 15 : index
    %c0_12 = arith.constant 0 : index
    %c768_13 = arith.constant 768 : index
    %15 = vector.load %arg7[%c15, %c0_12, %c768_13] : memref<16x16x1152xbf16, #tpu.memory_space<vmem>>, vector<1x16x384xbf16>
    tpu.vector_store %arg7[%c15, %c0_12, %c768_13], %8 {strides = array<i32>} : memref<16x16x1152xbf16, #tpu.memory_space<vmem>>, vector<1x16x384xbf16>,
    %c0_14 = arith.constant 0 : index
    %c0_15 = arith.constant 0 : index
    %c0_16 = arith.constant 0 : index
    %16 = vector.load %arg7[%c0_14, %c0_15, %c0_16] : memref<16x16x1152xbf16, #tpu.memory_space<vmem>>, vector<16x16x1152xbf16>
    %17 = vector.shape_cast %16 : vector<16x16x1152xbf16> to vector<256x1152xbf16>
    %c0_17 = arith.constant 0 : index
    %c0_18 = arith.constant 0 : index
    %18 = vector.load %arg2[%c0_17, %c0_18] : memref<1152x32xbf16, #tpu.memory_space<vmem>>, vector<1152x32xbf16>
    %cst_19 = arith.constant dense<0.000000e+00> : vector<256x32xf32>
    %19 = tpu.matmul %17, %18, %cst_19 {dimension_numbers = #tpu.dot_dimension_numbers<[1], [0], [0], [1], [0, 0, 1, 1], [], []>} : vector<256x1152xbf16>, vector<1152x32xbf16>, vector<256x32xf32> -> vector<256x32xf32>
    %c0_20 = arith.constant 0 : index
    %c0_21 = arith.constant 0 : index
    %20 = vector.load %arg3[%c0_20, %c0_21] : memref<1x32xf32, #tpu.memory_space<vmem>>, vector<1x32xf32>
    %21 = vector.broadcast %20 : vector<1x32xf32> to vector<256x32xf32>
    %22 = arith.addf %19, %21 : vector<256x32xf32>
    %23 = arith.negf %22 : vector<256x32xf32>
    %24 = math.exp %23 : vector<256x32xf32>
    %cst_22 = arith.constant 1.000000e+00 : f32
    %25 = vector.broadcast %cst_22 : f32 to vector<256x32xf32>
    %26 = arith.addf %25, %24 : vector<256x32xf32>
    %27 = arith.divf %25, %26 : vector<256x32xf32>
    %28 = arith.mulf %22, %27 : vector<256x32xf32>
    %29 = vector.shape_cast %28 : vector<256x32xf32> to vector<16x16x32xf32>
    %cst_23 = arith.constant 0.000000e+00 : f32
    %30 = vector.broadcast %cst_23 : f32 to vector<16x2x32xf32>
    %cst_24 = arith.constant 0.000000e+00 : f32
    %31 = vector.broadcast %cst_24 : f32 to vector<16x6x32xf32>
    %32 = tpu.concatenate %30, %29, %31 in 1 : vector<16x2x32xf32>, vector<16x16x32xf32>, vector<16x6x32xf32> -> vector<16x24x32xf32>
    %cst_25 = arith.constant 0.000000e+00 : f32
    %33 = vector.broadcast %cst_25 : f32 to vector<16x1x32xf32>
    %34 = vector.extract_strided_slice %32 {offsets = [0, 1, 0], sizes = [16, 23, 32], strides = [1, 1, 1]} : vector<16x24x32xf32> to vector<16x23x32xf32>
    %35 = tpu.concatenate %34, %33 in 1 : vector<16x23x32xf32>, vector<16x1x32xf32> -> vector<16x24x32xf32>
    %cst_26 = arith.constant 0.000000e+00 : f32
    %36 = vector.broadcast %cst_26 : f32 to vector<16x2x32xf32>
    %37 = vector.extract_strided_slice %32 {offsets = [0, 2, 0], sizes = [16, 22, 32], strides = [1, 1, 1]} : vector<16x24x32xf32> to vector<16x22x32xf32>
    %38 = tpu.concatenate %37, %36 in 1 : vector<16x22x32xf32>, vector<16x2x32xf32> -> vector<16x24x32xf32>
    %cst_27 = arith.constant 0.000000e+00 : f32
    %39 = vector.broadcast %cst_27 : f32 to vector<16x3x32xf32>
    %40 = vector.extract_strided_slice %32 {offsets = [0, 3, 0], sizes = [16, 21, 32], strides = [1, 1, 1]} : vector<16x24x32xf32> to vector<16x21x32xf32>
    %41 = tpu.concatenate %40, %39 in 1 : vector<16x21x32xf32>, vector<16x3x32xf32> -> vector<16x24x32xf32>
    %42 = tpu.concatenate %32, %35, %38, %41 in 2 : vector<16x24x32xf32>, vector<16x24x32xf32>, vector<16x24x32xf32>, vector<16x24x32xf32> -> vector<16x24x128xf32>
    %cst_28 = arith.constant 0.000000e+00 : bf16
    %43 = vector.broadcast %cst_28 : bf16 to vector<6x24x128xbf16>
    %c0_29 = arith.constant 0 : index
    %c0_30 = arith.constant 0 : index
    %c0_31 = arith.constant 0 : index
    %44 = vector.load %arg8[%c0_29, %c0_30, %c0_31] : memref<28x24x128xbf16, #tpu.memory_space<vmem>>, vector<6x24x128xbf16>
    tpu.vector_store %arg8[%c0_29, %c0_30, %c0_31], %43 {strides = array<i32>} : memref<28x24x128xbf16, #tpu.memory_space<vmem>>, vector<6x24x128xbf16>,
    %c22 = arith.constant 22 : index
    %c0_32 = arith.constant 0 : index
    %c0_33 = arith.constant 0 : index
    %45 = vector.load %arg8[%c22, %c0_32, %c0_33] : memref<28x24x128xbf16, #tpu.memory_space<vmem>>, vector<6x24x128xbf16>
    tpu.vector_store %arg8[%c22, %c0_32, %c0_33], %43 {strides = array<i32>} : memref<28x24x128xbf16, #tpu.memory_space<vmem>>, vector<6x24x128xbf16>,
    %46 = arith.truncf %42 : vector<16x24x128xf32> to vector<16x24x128xbf16>
    %c6 = arith.constant 6 : index
    %c0_34 = arith.constant 0 : index
    %c0_35 = arith.constant 0 : index
    %47 = vector.load %arg8[%c6, %c0_34, %c0_35] : memref<28x24x128xbf16, #tpu.memory_space<vmem>>, vector<16x24x128xbf16>
    tpu.vector_store %arg8[%c6, %c0_34, %c0_35], %46 {strides = array<i32>} : memref<28x24x128xbf16, #tpu.memory_space<vmem>>, vector<16x24x128xbf16>,
    %c0_36 = arith.constant 0 : index
    %c0_37 = arith.constant 0 : index
    %c0_38 = arith.constant 0 : index
    %48 = vector.load %arg8[%c0_36, %c0_37, %c0_38] : memref<28x24x128xbf16, #tpu.memory_space<vmem>>, vector<6x24x128xbf16>
    %c0_39 = arith.constant 0 : index
    %c0_40 = arith.constant 0 : index
    %c0_41 = arith.constant 0 : index
    %49 = vector.load %arg9[%c0_39, %c0_40, %c0_41] : memref<6x24x1536xbf16, #tpu.memory_space<vmem>>, vector<6x24x128xbf16>
    tpu.vector_store %arg9[%c0_39, %c0_40, %c0_41], %48 {strides = array<i32>} : memref<6x24x1536xbf16, #tpu.memory_space<vmem>>, vector<6x24x128xbf16>,
    %c2 = arith.constant 2 : index
    %c0_42 = arith.constant 0 : index
    %c0_43 = arith.constant 0 : index
    %50 = vector.load %arg8[%c2, %c0_42, %c0_43] : memref<28x24x128xbf16, #tpu.memory_space<vmem>>, vector<6x24x128xbf16>
    %c0_44 = arith.constant 0 : index
    %c0_45 = arith.constant 0 : index
    %c128 = arith.constant 128 : index
    %51 = vector.load %arg9[%c0_44, %c0_45, %c128] : memref<6x24x1536xbf16, #tpu.memory_space<vmem>>, vector<6x24x128xbf16>
    tpu.vector_store %arg9[%c0_44, %c0_45, %c128], %50 {strides = array<i32>} : memref<6x24x1536xbf16, #tpu.memory_space<vmem>>, vector<6x24x128xbf16>,
    %c4 = arith.constant 4 : index
    %c0_46 = arith.constant 0 : index
    %c0_47 = arith.constant 0 : index
    %52 = vector.load %arg8[%c4, %c0_46, %c0_47] : memref<28x24x128xbf16, #tpu.memory_space<vmem>>, vector<6x24x128xbf16>
    %c0_48 = arith.constant 0 : index
    %c0_49 = arith.constant 0 : index
    %c256 = arith.constant 256 : index
    %53 = vector.load %arg9[%c0_48, %c0_49, %c256] : memref<6x24x1536xbf16, #tpu.memory_space<vmem>>, vector<6x24x128xbf16>
    tpu.vector_store %arg9[%c0_48, %c0_49, %c256], %52 {strides = array<i32>} : memref<6x24x1536xbf16, #tpu.memory_space<vmem>>, vector<6x24x128xbf16>,
    %c6_50 = arith.constant 6 : index
    %c0_51 = arith.constant 0 : index
    %c0_52 = arith.constant 0 : index
    %54 = vector.load %arg8[%c6_50, %c0_51, %c0_52] : memref<28x24x128xbf16, #tpu.memory_space<vmem>>, vector<6x24x128xbf16>
    %c0_53 = arith.constant 0 : index
    %c0_54 = arith.constant 0 : index
    %c384_55 = arith.constant 384 : index
    %55 = vector.load %arg9[%c0_53, %c0_54, %c384_55] : memref<6x24x1536xbf16, #tpu.memory_space<vmem>>, vector<6x24x128xbf16>
    tpu.vector_store %arg9[%c0_53, %c0_54, %c384_55], %54 {strides = array<i32>} : memref<6x24x1536xbf16, #tpu.memory_space<vmem>>, vector<6x24x128xbf16>,
    %c8 = arith.constant 8 : index
    %c0_56 = arith.constant 0 : index
    %c0_57 = arith.constant 0 : index
    %56 = vector.load %arg8[%c8, %c0_56, %c0_57] : memref<28x24x128xbf16, #tpu.memory_space<vmem>>, vector<6x24x128xbf16>
    %c0_58 = arith.constant 0 : index
    %c0_59 = arith.constant 0 : index
    %c512 = arith.constant 512 : index
    %57 = vector.load %arg9[%c0_58, %c0_59, %c512] : memref<6x24x1536xbf16, #tpu.memory_space<vmem>>, vector<6x24x128xbf16>
    tpu.vector_store %arg9[%c0_58, %c0_59, %c512], %56 {strides = array<i32>} : memref<6x24x1536xbf16, #tpu.memory_space<vmem>>, vector<6x24x128xbf16>,
    %c10 = arith.constant 10 : index
    %c0_60 = arith.constant 0 : index
    %c0_61 = arith.constant 0 : index
    %58 = vector.load %arg8[%c10, %c0_60, %c0_61] : memref<28x24x128xbf16, #tpu.memory_space<vmem>>, vector<6x24x128xbf16>
    %c0_62 = arith.constant 0 : index
    %c0_63 = arith.constant 0 : index
    %c640 = arith.constant 640 : index
    %59 = vector.load %arg9[%c0_62, %c0_63, %c640] : memref<6x24x1536xbf16, #tpu.memory_space<vmem>>, vector<6x24x128xbf16>
    tpu.vector_store %arg9[%c0_62, %c0_63, %c640], %58 {strides = array<i32>} : memref<6x24x1536xbf16, #tpu.memory_space<vmem>>, vector<6x24x128xbf16>,
    %c12 = arith.constant 12 : index
    %c0_64 = arith.constant 0 : index
    %c0_65 = arith.constant 0 : index
    %60 = vector.load %arg8[%c12, %c0_64, %c0_65] : memref<28x24x128xbf16, #tpu.memory_space<vmem>>, vector<6x24x128xbf16>
    %c0_66 = arith.constant 0 : index
    %c0_67 = arith.constant 0 : index
    %c768_68 = arith.constant 768 : index
    %61 = vector.load %arg9[%c0_66, %c0_67, %c768_68] : memref<6x24x1536xbf16, #tpu.memory_space<vmem>>, vector<6x24x128xbf16>
    tpu.vector_store %arg9[%c0_66, %c0_67, %c768_68], %60 {strides = array<i32>} : memref<6x24x1536xbf16, #tpu.memory_space<vmem>>, vector<6x24x128xbf16>,
    %c14 = arith.constant 14 : index
    %c0_69 = arith.constant 0 : index
    %c0_70 = arith.constant 0 : index
    %62 = vector.load %arg8[%c14, %c0_69, %c0_70] : memref<28x24x128xbf16, #tpu.memory_space<vmem>>, vector<6x24x128xbf16>
    %c0_71 = arith.constant 0 : index
    %c0_72 = arith.constant 0 : index
    %c896 = arith.constant 896 : index
    %63 = vector.load %arg9[%c0_71, %c0_72, %c896] : memref<6x24x1536xbf16, #tpu.memory_space<vmem>>, vector<6x24x128xbf16>
    tpu.vector_store %arg9[%c0_71, %c0_72, %c896], %62 {strides = array<i32>} : memref<6x24x1536xbf16, #tpu.memory_space<vmem>>, vector<6x24x128xbf16>,
    %c16 = arith.constant 16 : index
    %c0_73 = arith.constant 0 : index
    %c0_74 = arith.constant 0 : index
    %64 = vector.load %arg8[%c16, %c0_73, %c0_74] : memref<28x24x128xbf16, #tpu.memory_space<vmem>>, vector<6x24x128xbf16>
    %c0_75 = arith.constant 0 : index
    %c0_76 = arith.constant 0 : index
    %c1024 = arith.constant 1024 : index
    %65 = vector.load %arg9[%c0_75, %c0_76, %c1024] : memref<6x24x1536xbf16, #tpu.memory_space<vmem>>, vector<6x24x128xbf16>
    tpu.vector_store %arg9[%c0_75, %c0_76, %c1024], %64 {strides = array<i32>} : memref<6x24x1536xbf16, #tpu.memory_space<vmem>>, vector<6x24x128xbf16>,
    %c18 = arith.constant 18 : index
    %c0_77 = arith.constant 0 : index
    %c0_78 = arith.constant 0 : index
    %66 = vector.load %arg8[%c18, %c0_77, %c0_78] : memref<28x24x128xbf16, #tpu.memory_space<vmem>>, vector<6x24x128xbf16>
    %c0_79 = arith.constant 0 : index
    %c0_80 = arith.constant 0 : index
    %c1152 = arith.constant 1152 : index
    %67 = vector.load %arg9[%c0_79, %c0_80, %c1152] : memref<6x24x1536xbf16, #tpu.memory_space<vmem>>, vector<6x24x128xbf16>
    tpu.vector_store %arg9[%c0_79, %c0_80, %c1152], %66 {strides = array<i32>} : memref<6x24x1536xbf16, #tpu.memory_space<vmem>>, vector<6x24x128xbf16>,
    %c20 = arith.constant 20 : index
    %c0_81 = arith.constant 0 : index
    %c0_82 = arith.constant 0 : index
    %68 = vector.load %arg8[%c20, %c0_81, %c0_82] : memref<28x24x128xbf16, #tpu.memory_space<vmem>>, vector<6x24x128xbf16>
    %c0_83 = arith.constant 0 : index
    %c0_84 = arith.constant 0 : index
    %c1280 = arith.constant 1280 : index
    %69 = vector.load %arg9[%c0_83, %c0_84, %c1280] : memref<6x24x1536xbf16, #tpu.memory_space<vmem>>, vector<6x24x128xbf16>
    tpu.vector_store %arg9[%c0_83, %c0_84, %c1280], %68 {strides = array<i32>} : memref<6x24x1536xbf16, #tpu.memory_space<vmem>>, vector<6x24x128xbf16>,
    %c22_85 = arith.constant 22 : index
    %c0_86 = arith.constant 0 : index
    %c0_87 = arith.constant 0 : index
    %70 = vector.load %arg8[%c22_85, %c0_86, %c0_87] : memref<28x24x128xbf16, #tpu.memory_space<vmem>>, vector<6x24x128xbf16>
    %c0_88 = arith.constant 0 : index
    %c0_89 = arith.constant 0 : index
    %c1408 = arith.constant 1408 : index
    %71 = vector.load %arg9[%c0_88, %c0_89, %c1408] : memref<6x24x1536xbf16, #tpu.memory_space<vmem>>, vector<6x24x128xbf16>
    tpu.vector_store %arg9[%c0_88, %c0_89, %c1408], %70 {strides = array<i32>} : memref<6x24x1536xbf16, #tpu.memory_space<vmem>>, vector<6x24x128xbf16>,
    %c0_90 = arith.constant 0 : index
    %c0_91 = arith.constant 0 : index
    %c0_92 = arith.constant 0 : index
    %72 = vector.load %arg9[%c0_90, %c0_91, %c0_92] : memref<6x24x1536xbf16, #tpu.memory_space<vmem>>, vector<6x24x1536xbf16>
    %73 = vector.shape_cast %72 : vector<6x24x1536xbf16> to vector<144x1536xbf16>
    %c0_93 = arith.constant 0 : index
    %c0_94 = arith.constant 0 : index
    %74 = vector.load %arg4[%c0_93, %c0_94] : memref<1536x256xbf16, #tpu.memory_space<vmem>>, vector<1536x256xbf16>
    %cst_95 = arith.constant dense<0.000000e+00> : vector<144x256xf32>
    %75 = tpu.matmul %73, %74, %cst_95 {dimension_numbers = #tpu.dot_dimension_numbers<[1], [0], [0], [1], [0, 0, 1, 1], [], []>} : vector<144x1536xbf16>, vector<1536x256xbf16>, vector<144x256xf32> -> vector<144x256xf32>
    %c0_96 = arith.constant 0 : index
    %c0_97 = arith.constant 0 : index
    %76 = vector.load %arg5[%c0_96, %c0_97] : memref<1x256xf32, #tpu.memory_space<vmem>>, vector<1x256xf32>
    %77 = vector.broadcast %76 : vector<1x256xf32> to vector<144x256xf32>
    %78 = arith.addf %75, %77 : vector<144x256xf32>
    %79 = arith.negf %78 : vector<144x256xf32>
    %80 = math.exp %79 : vector<144x256xf32>
    %cst_98 = arith.constant 1.000000e+00 : f32
    %81 = vector.broadcast %cst_98 : f32 to vector<144x256xf32>
    %82 = arith.addf %81, %80 : vector<144x256xf32>
    %83 = arith.divf %81, %82 : vector<144x256xf32>
    %84 = arith.mulf %78, %83 : vector<144x256xf32>
    %85 = vector.shape_cast %84 : vector<144x256xf32> to vector<6x24x256xf32>
    %c0_99 = arith.constant 0 : index
    %c0_100 = arith.constant 0 : index
    %c0_101 = arith.constant 0 : index
    %86 = vector.load %arg6[%c0_99, %c0_100, %c0_101] : memref<6x24x256xf32, #tpu.memory_space<vmem>>, vector<6x24x256xf32>
    tpu.vector_store %arg6[%c0_99, %c0_100, %c0_101], %85 {strides = array<i32>} : memref<6x24x256xf32, #tpu.memory_space<vmem>>, vector<6x24x256xf32>,
    return
  }
  func.func @transform_0(%arg0: i32) -> (i32, i32, i32) {
    %c0_i32 = arith.constant 0 : i32
    %c0_i32_0 = arith.constant 0 : i32
    %c0_i32_1 = arith.constant 0 : i32
    %c0_i32_2 = arith.constant 0 : i32
    return %c0_i32, %c0_i32_0, %c0_i32_1 : i32, i32, i32
  }
  func.func @transform_1(%arg0: i32) -> (i32, i32) {
    %c0_i32 = arith.constant 0 : i32
    %c0_i32_0 = arith.constant 0 : i32
    %c0_i32_1 = arith.constant 0 : i32
    return %c0_i32, %c0_i32_0 : i32, i32
  }
  func.func @transform_2(%arg0: i32) -> (i32, i32) {
    %c0_i32 = arith.constant 0 : i32
    %c0_i32_0 = arith.constant 0 : i32
    %c0_i32_1 = arith.constant 0 : i32
    return %c0_i32, %c0_i32_0 : i32, i32
  }
  func.func @transform_3(%arg0: i32) -> (i32, i32) {
    %c0_i32 = arith.constant 0 : i32
    %c0_i32_0 = arith.constant 0 : i32
    %c0_i32_1 = arith.constant 0 : i32
    return %c0_i32, %c0_i32_0 : i32, i32
  }
  func.func @transform_4(%arg0: i32) -> (i32, i32) {
    %c0_i32 = arith.constant 0 : i32
    %c0_i32_0 = arith.constant 0 : i32
    %c0_i32_1 = arith.constant 0 : i32
    return %c0_i32, %c0_i32_0 : i32, i32
  }
  func.func @transform_5(%arg0: i32) -> (i32, i32, i32) {
    %c0_i32 = arith.constant 0 : i32
    %c0_i32_0 = arith.constant 0 : i32
    %c0_i32_1 = arith.constant 0 : i32
    %c0_i32_2 = arith.constant 0 : i32
    return %c0_i32, %c0_i32_0, %c0_i32_1 : i32, i32, i32
  }
}

</mosaic_0001>

<bundles_post_ra>
// kernel: model_forward.1
= control target key start
LH: loop header
LB: loop body
LE: loop exit
PB: predicated region body
PF: predicated region fallthrough
CT: control target
= control target key end

     0   :  { %10 = vsyncpa [#allocation6], 0  ;;  %s10973_s18 = smov [#allocation5]   ;;  %s14166_s0 = inlined_call_operand.vmem [shape: f32[16,16,128], index: 0, kind: input, shape index: {}]   ;;  %s14167_s1 = inlined_call_operand.vmem [shape: bf16[1152,32], index: 1, kind: input, shape index: {}]   ;;  %s14168_s2 = inlined_call_operand.vmem [shape: f32[1,32], index: 2, kind: input, shape index: {}]   ;;  %s14169_s3 = inlined_call_operand.hbm [shape: bf16[1536,256], index: 3, kind: input, shape index: {}]   ;;  %s14170_s4 = inlined_call_operand.vmem [shape: f32[1,256], index: 4, kind: input, shape index: {}]   ;;  %s14171_s5 = inlined_call_operand.vmem [shape: f32[6,24,256], index: 5, kind: output, shape index: {}]  }
   0x1   :  { %s22_s19 = sshll.u32 %s10973_s18, 4  ;;  %s23_s19 = int_to_ptr.vmem [resolvable:$true] %s22_s19 }
   0x2   :  { %s10959_s20 = scalar_lea.vmem %s23_s19, 24576  ;;  %p10964_p1 = scmp.lt.s32.totalorder %s23_s19, %s23_s19 }
   0x3   :  { %p10960_p0 = scmp.ne.s32.totalorder %s23_s19, %s10959_s20  ;;  %p10965_p2 = scmp.lt.s32.totalorder %s10959_s20, %s10959_s20 }
   0x5   :  { %p10966_p3 = por %p10965_p2, %p10964_p1 }
   0x7   :  { %p10967_p4 = pnand %p10966_p3, %p10960_p0 }
   0x9   :  { %10970 = shalt.err (!%p10967_p4)
}
   0xa   :  { %s10974_s21 = smov 128   ;;  %s10975_s22 = smov 8  }
   0xb   :  { %28 = dma.hbm_to_vmem [thread:$0]  %s14169_s3, 24576, %s23_s19, [#allocation6], %s10974_s21, %s10974_s21, %s10975_s22  }
   0xc   :  { %10971 = dma.done.wait [#allocation6], 24576  }
   0xd   :  { %10972 = vsyncadd [#allocation6], 4294942720  ;;  %v10976_v0 = vmov 0   ;;  %v9906_v2 = vld [vmem:[%s14167_s1 + $0x78] sm:$0xff]   ;;  %v9908_v4 = vld [vmem:[%s14167_s1 + $0x70] sm:$0xff]   ;;  %vm99_vm0 = vcmask 1040384  }
   0xe   :  { %341 = vst [vmem:[#allocation2] sm:$0xff] %v10976_v0  ;;  %v8117_v1 = vcombine.high %v10976_v0, %v10976_v0  ;;  %342 = vst [vmem:[#allocation2 + $0x8] sm:$0xf] %v10976_v0  ;;  %v9907_v3 = vld [vmem:[%s14167_s1 + $0x38] sm:$0xff]   ;;  %9003 = vmatprep.subr.bf16.mxu0 %v9906_v2  ;;  %9523 = vmatprep.subr.bf16.mxu1 %v9906_v2  ;;  %v9909_v5 = vld [vmem:[%s14167_s1 + $0x30] sm:$0xff]   ;;  %vm196_vm1 = vcmask 1046528   ;;  %v8116_v55 = vcombine.low %v10976_v0, %v10976_v0 }
   0xf   :  { %344 = vst [vmem:[#allocation2 + $0x2c] sm:$0xf] %v10976_v0  ;;  %804 = vst [vmem:[#allocation2 + $0x458] sm:$0xf] %v10976_v0  ;;  %9004 = vmatpush3.bf16.msra.mxu0 %v9907_v3  ;;  %9531 = vmatpush3.bf16.msra.mxu1 %v9907_v3  ;;  %v9910_v6 = vld [vmem:[%s14167_s1 + $0x68] sm:$0xff]   ;;  %v9912_v8 = vld [vmem:[%s14167_s1 + $0x60] sm:$0xff]  }
  0x10   :  { %806 = vst [vmem:[#allocation2 + $0x47c] sm:$0xf] %v10976_v0  ;;  %4473 = vst [vmem:[#allocation3] sm:$0xf] %v10976_v0  ;;  %2318 = vmatprep.mubr.bf16.mxu0 %v8117_v1  ;;  %9005 = vmatprep.subr.bf16.mxu0 %v9908_v4  ;;  %v9911_v7 = vld [vmem:[%s14167_s1 + $0x28] sm:$0xff]   ;;  %v9913_v9 = vld [vmem:[%s14167_s1 + $0x20] sm:$0xff]  }
  0x11   :  { %4474 = vst [vmem:[#allocation3 + $0x4] sm:$0xf] %v10976_v0  ;;  %4475 = vst [vmem:[#allocation3 + $0x8] sm:$0xf] %v10976_v0  ;;  %9524 = vmatprep.subr.bf16.mxu1 %v9908_v4  ;;  %v9914_v10 = vld [vmem:[%s14167_s1 + $0x58] sm:$0xff]   ;;  %v9916_v12 = vld [vmem:[%s14167_s1 + $0x50] sm:$0xff]  }
  0x12   :  { %4476 = vst [vmem:[#allocation3 + $0xc] sm:$0xf] %v10976_v0  ;;  %4477 = vst [vmem:[#allocation3 + $0x10] sm:$0xf] %v10976_v0  ;;  %v9915_v11 = vld [vmem:[%s14167_s1 + $0x18] sm:$0xff]   ;;  %v57_v13 = vld [vmem:[%s14166_s0 + $0xb0] sm:$0xff] }
  0x13   :  { %4478 = vst [vmem:[#allocation3 + $0x14] sm:$0xf] %v10976_v0  ;;  %4479 = vst [vmem:[#allocation3 + $0x18] sm:$0xf] %v10976_v0  ;;  %9006 = vmatpush3.bf16.msra.mxu0 %v9909_v5  ;;  %9532 = vmatpush3.bf16.msra.mxu1 %v9909_v5  ;;  %v58_v14 = vld [vmem:[%s14166_s0 + $0xb8] sm:$0xff]  ;;  %v11096_v15 = vrot.slane %v57_v13, 7 }
  0x14   :  { %4480 = vst [vmem:[#allocation3 + $0x1c] sm:$0xf] %v10976_v0  ;;  %4481 = vst [vmem:[#allocation3 + $0x20] sm:$0xf] %v10976_v0  ;;  %9007 = vmatprep.subr.bf16.mxu0 %v9910_v6  ;;  %9525 = vmatprep.subr.bf16.mxu1 %v9910_v6  ;;  %v134_v16 = vrot.slane %v58_v14, 7  ;;  %v230_v17 = vrot.slane %v57_v13, 1  ;;  %v10855_v27 = vpack.c.bf16 %v58_v14, %v57_v13 }
  0x15   :  { %4482 = vst [vmem:[#allocation3 + $0x24] sm:$0xf] %v10976_v0  ;;  %4483 = vst [vmem:[#allocation3 + $0x28] sm:$0xf] %v10976_v0  ;;  %v231_v18 = vrot.slane %v58_v14, 1  ;;  %v9917_v19 = vld [vmem:[%s14167_s1 + $0x10] sm:$0xff]  }
  0x16   :  { %4484 = vst [vmem:[#allocation3 + $0x2c] sm:$0xf] %v10976_v0  ;;  %4485 = vst [vmem:[#allocation3 + $0x30] sm:$0xf] %v10976_v0  ;;  %v11103_v20 = vsel %vm99_vm0, %v11096_v15, %v134_v16  ;;  %v191_v21 = vsel %vm99_vm0, 0.0, %v11096_v15  ;;  %v9918_v22 = vld [vmem:[%s14167_s1 + $0x48] sm:$0xff]   ;;  %2414 = vmatprep.mubr.bf16.mxu1 %v10855_v27 }
  0x17   :  { %4486 = vst [vmem:[#allocation3 + $0x34] sm:$0xf] %v10976_v0  ;;  %4487 = vst [vmem:[#allocation3 + $0x38] sm:$0xf] %v10976_v0  ;;  %9008 = vmatpush3.bf16.msra.mxu0 %v9911_v7  ;;  %9533 = vmatpush3.bf16.msra.mxu1 %v9911_v7  ;;  %v8792_v23 = vpack.c.bf16 %v57_v13, %v191_v21  ;;  %v8794_v24 = vpack.c.bf16 %v58_v14, %v11103_v20  ;;  %v288_v26 = vsel %vm196_vm1, %v231_v18, 0.0  ;;  %v9919_v30 = vld [vmem:[%s14167_s1 + $0x8] sm:$0xff]  }
  0x18   :  { %4488 = vst [vmem:[#allocation3 + $0x3c] sm:$0xf] %v10976_v0  ;;  %4489 = vst [vmem:[#allocation3 + $0x40] sm:$0xf] %v10976_v0  ;;  %9009 = vmatprep.subr.bf16.mxu0 %v9912_v8  ;;  %9526 = vmatprep.subr.bf16.mxu1 %v9912_v8  ;;  %v232_v25 = vsel %vm196_vm1, %v230_v17, %v231_v18  ;;  %v8795_v29 = vpack.c.bf16 %v288_v26, %v288_v26  ;;  %v11119_v31 = vld [vmem:[%s14166_s0] sm:$0xff]  ;;  %v11124_v32 = vld [vmem:[%s14166_s0 + $0x8] sm:$0xff] }
  0x19   :  { %4490 = vst [vmem:[#allocation3 + $0x44] sm:$0xf] %v10976_v0  ;;  %4492 = vst [vmem:[#allocation3 + $0x108] sm:$0xf] %v10976_v0  ;;  %v8793_v28 = vpack.c.bf16 %v232_v25, %v232_v25  ;;  %v9920_v33 = vld [vmem:[%s14167_s1 + $0x40] sm:$0xff]   ;;  %v11130_v34 = vrot.slane %v11119_v31, 7  ;;  %v10857_v58 = vpack.c.bf16 %v11124_v32, %v11119_v31  ;;  %v10862_v13 = vpack.c.bf16 %v11103_v20, %v11096_v15 }
  0x1a   :  { %4493 = vst [vmem:[#allocation3 + $0x10c] sm:$0xf] %v10976_v0  ;;  %4494 = vst [vmem:[#allocation3 + $0x110] sm:$0xf] %v10976_v0  ;;  %v101_v35 = vrot.slane %v11124_v32, 7  ;;  %v11136_v36 = vld [vmem:[%s14166_s0 + $0xc0] sm:$0xff] }
  0x1b   :  { %4495 = vst [vmem:[#allocation3 + $0x114] sm:$0xf] %v10976_v0  ;;  %4496 = vst [vmem:[#allocation3 + $0x118] sm:$0xf] %v10976_v0  ;;  %9010 = vmatpush3.bf16.msra.mxu0 %v9913_v9  ;;  %9534 = vmatpush3.bf16.msra.mxu1 %v9913_v9  ;;  %v11141_v37 = vld [vmem:[%s14166_s0 + $0xc8] sm:$0xff]  ;;  %v9921_v38 = vld [vmem:[%s14167_s1] sm:$0xff]  }
  0x1c   :  { %4497 = vst [vmem:[#allocation3 + $0x11c] sm:$0xf] %v10976_v0  ;;  %4498 = vst [vmem:[#allocation3 + $0x120] sm:$0xf] %v10976_v0  ;;  %9011 = vmatprep.subr.bf16.mxu0 %v9914_v10  ;;  %9527 = vmatprep.subr.bf16.mxu1 %v9914_v10  ;;  %v11147_v39 = vrot.slane %v11136_v36, 7  ;;  %v137_v40 = vrot.slane %v11141_v37, 7  ;;  %v11155_v42 = vsel %vm99_vm0, %v11130_v34, %v101_v35 }
  0x1d   :  { %4499 = vst [vmem:[#allocation3 + $0x124] sm:$0xf] %v10976_v0  ;;  %4500 = vst [vmem:[#allocation3 + $0x128] sm:$0xf] %v10976_v0  ;;  %v9922_v41 = vld [vmem:[%s14167_s1 + $0xf8] sm:$0xff]   ;;  %v180_v43 = vsel %vm99_vm0, 0.0, %v11130_v34  ;;  %v8750_v47 = vpack.c.bf16 %v11124_v32, %v11155_v42  ;;  %v10859_v1 = vpack.c.bf16 %v11141_v37, %v11136_v36 }
  0x1e   :  { %4501 = vst [vmem:[#allocation3 + $0x12c] sm:$0xf] %v10976_v0  ;;  %4502 = vst [vmem:[#allocation3 + $0x130] sm:$0xf] %v10976_v0  ;;  %v197_v44 = vrot.slane %v11119_v31, 1  ;;  %v9923_v45 = vld [vmem:[%s14167_s1 + $0x178] sm:$0xff]   ;;  %v8748_v46 = vpack.c.bf16 %v11119_v31, %v180_v43  ;;  %v11168_v48 = vsel %vm99_vm0, %v11147_v39, %v137_v40 }
  0x1f   :  { %4503 = vst [vmem:[#allocation3 + $0x134] sm:$0xf] %v10976_v0  ;;  %4504 = vst [vmem:[#allocation3 + $0x138] sm:$0xf] %v10976_v0  ;;  %9012 = vmatpush3.bf16.msra.mxu0 %v9915_v11  ;;  %9535 = vmatpush3.bf16.msra.mxu1 %v9915_v11  ;;  %v192_v49 = vsel %vm99_vm0, 0.0, %v11147_v39  ;;  %v8798_v51 = vpack.c.bf16 %v11141_v37, %v11168_v48  ;;  %v9924_v52 = vld [vmem:[%s14167_s1 + $0xb8] sm:$0xff]  }
  0x20   :  { %4505 = vst [vmem:[#allocation3 + $0x13c] sm:$0xf] %v10976_v0  ;;  %4506 = vst [vmem:[#allocation3 + $0x140] sm:$0xf] %v10976_v0  ;;  %9013 = vmatprep.subr.bf16.mxu0 %v9916_v12  ;;  %9528 = vmatprep.subr.bf16.mxu1 %v9916_v12  ;;  %v8796_v50 = vpack.c.bf16 %v11136_v36, %v192_v49  ;;  %v9925_v53 = vld [vmem:[%s14167_s1 + $0x138] sm:$0xff]   ;;  %v198_v54 = vrot.slane %v11124_v32, 1 }
  0x21   :  { %4507 = vst [vmem:[#allocation3 + $0x144] sm:$0xf] %v10976_v0  ;;  %4508 = vst [vmem:[#allocation3 + $0x148] sm:$0xf] %v10976_v0  ;;  %v233_v56 = vrot.slane %v11136_v36, 1  ;;  %v234_v57 = vrot.slane %v11141_v37, 1 }
  0x22   :  { %4509 = vst [vmem:[#allocation3 + $0x14c] sm:$0xf] %v10976_v0  ;;  %722 = vst [vmem:[#allocation2 + $0x324] sm:$0xff] %v8792_v23  ;;  %v11191_v59 = vld [vmem:[%s14166_s0 + $0x10] sm:$0xff]  ;;  %v11196_v60 = vld [vmem:[%s14166_s0 + $0x18] sm:$0xff]  ;;  %v199_v62 = vsel %vm196_vm1, %v197_v44, %v198_v54  ;;  %v277_v63 = vsel %vm196_vm1, %v198_v54, 0.0 }
  0x23   :  { %724 = vst [vmem:[#allocation2 + $0x348] sm:$0xff] %v8794_v24  ;;  %782 = vst [vmem:[#allocation2 + $0x2e8] sm:$0xff] %v8792_v23  ;;  %9014 = vmatpush3.bf16.msra.mxu0 %v9917_v19  ;;  %9536 = vmatpush3.bf16.msra.mxu1 %v9917_v19  ;;  %v11201_v61 = vld [vmem:[%s14166_s0 + $0xd0] sm:$0xff]  ;;  %v11214_v3 = vrot.slane %v11191_v59, 7  ;;  %v104_v4 = vrot.slane %v11196_v60, 7  ;;  %v11220_v5 = vld [vmem:[%s14166_s0 + $0xd8] sm:$0xff]  ;;  %v8749_v10 = vpack.c.bf16 %v199_v62, %v199_v62 }
  0x24   :  { %784 = vst [vmem:[#allocation2 + $0x30c] sm:$0xff] %v8794_v24  ;;  %9015 = vmatprep.subr.bf16.mxu0 %v9918_v22  ;;  %9529 = vmatprep.subr.bf16.mxu1 %v9918_v22  ;;  %646 = vst [vmem:[#allocation2 + $0x368] sm:$0xf] %v8793_v28  ;;  %v9926_v0 = vld [vmem:[%s14167_s1 + $0xf0] sm:$0xff]   ;;  %v11223_v6 = vrot.slane %v11201_v61, 7  ;;  %v200_v8 = vrot.slane %v11191_v59, 1  ;;  %v8751_v11 = vpack.c.bf16 %v277_v63, %v277_v63 }
  0x25   :  { %648 = vst [vmem:[#allocation2 + $0x38c] sm:$0xf] %v8795_v29  ;;  %723 = vst [vmem:[#allocation2 + $0x32c] sm:$0xf] %v8793_v28  ;;  %v9931_v2 = vld [vmem:[%s14167_s1 + $0x170] sm:$0xff]   ;;  %v140_v9 = vrot.slane %v11220_v5, 7  ;;  %v11241_v14 = vsel %vm99_vm0, %v11214_v3, %v104_v4  ;;  %v235_v18 = vsel %vm196_vm1, %v233_v56, %v234_v57 }
  0x26   :  { %725 = vst [vmem:[#allocation2 + $0x350] sm:$0xf] %v8795_v29  ;;  %783 = vst [vmem:[#allocation2 + $0x2f0] sm:$0xf] %v8793_v28  ;;  %v9927_v7 = vld [vmem:[%s14167_s1 + $0xb0] sm:$0xff]   ;;  %vm10977_vm3 = vmmov 1   ;;  %v8754_v20 = vpack.c.bf16 %v11196_v60, %v11241_v14  ;;  %v8797_v26 = vpack.c.bf16 %v235_v18, %v235_v18 }
  0x27   :  { %785 = vst [vmem:[#allocation2 + $0x314] sm:$0xf] %v8795_v29  ;;  %9016 = vmatpush3.bf16.msra.mxu0 %v9919_v30  ;;  %9537 = vmatpush3.bf16.msra.mxu1 %v9919_v30  ;;  %678 = vst [vmem:[#allocation2 + $0xc] sm:$0xff] %v8748_v46  ;;  %v181_v16 = vsel %vm99_vm0, 0.0, %v11214_v3  ;;  %v193_v17 = vsel %vm99_vm0, 0.0, %v11223_v6  ;;  %v9933_v15 = vld [vmem:[%s14167_s1 + $0x130] sm:$0xff]   ;;  %v11256_v21 = vsel %vm99_vm0, %v11223_v6, %v140_v9 }
  0x28   :  { %9017 = vmatprep.subr.bf16.mxu0 %v9920_v33  ;;  %9530 = vmatprep.subr.bf16.mxu1 %v9920_v33  ;;  %680 = vst [vmem:[#allocation2 + $0x30] sm:$0xff] %v8750_v47  ;;  %726 = vst [vmem:[#allocation2 + $0x36c] sm:$0xff] %v8796_v50  ;;  %v8752_v19 = vpack.c.bf16 %v11191_v59, %v181_v16  ;;  %v201_v22 = vrot.slane %v11196_v60, 1  ;;  %v9928_v23 = vld [vmem:[%s14167_s1 + $0xe8] sm:$0xff]   ;;  %v8800_v24 = vpack.c.bf16 %v11201_v61, %v193_v17  ;;  %v11269_v28 = vld [vmem:[%s14166_s0 + $0x20] sm:$0xff]  ;;  %vm3347_vm5 = vcmask 1041408  }
  0x29   :  { %728 = vst [vmem:[#allocation2 + $0x390] sm:$0xff] %v8798_v51  ;;  %786 = vst [vmem:[#allocation2 + $0x330] sm:$0xff] %v8796_v50  ;;  %v8802_v25 = vpack.c.bf16 %v11220_v5, %v11256_v21  ;;  %v236_v27 = vrot.slane %v11201_v61, 1  ;;  %v11274_v29 = vld [vmem:[%s14166_s0 + $0x28] sm:$0xff]  ;;  %v289_v32 = vsel %vm196_vm1, %v234_v57, 0.0  ;;  %v10865_v33 = vpack.c.bf16 %v11196_v60, %v11191_v59  ;;  %v11288_v37 = vld [vmem:[%s14166_s0 + $0xe0] sm:$0xff] }
  0x2a   :  { %788 = vst [vmem:[#allocation2 + $0x354] sm:$0xff] %v8798_v51  ;;  %vm10860_vm2 = vmneg %vm99_vm0  ;;  %v202_v30 = vsel %vm196_vm1, %v200_v8, %v201_v22  ;;  %v278_v31 = vsel %vm196_vm1, %v201_v22, 0.0  ;;  %v11282_v35 = vrot.slane %v11269_v28, 7  ;;  %v107_v36 = vrot.slane %v11274_v29, 7  ;;  %v9929_v40 = vld [vmem:[%s14167_s1 + $0xa8] sm:$0xff]   ;;  %v9930_v46 = vld [vmem:[%s14167_s1 + $0xe0] sm:$0xff]  }
  0x2b   :  { %9018 = vmatpush3.bf16.msra.mxu0 %v9921_v38  ;;  %9538 = vmatpush3.bf16.msra.mxu1 %v9921_v38  ;;  %vm11231_vm4 = vmpackc.low %vm10977_vm3, %vm10860_vm2  ;;  %602 = vst [vmem:[#allocation2 + $0x50] sm:$0xf] %v8749_v10  ;;  %v11293_v38 = vld [vmem:[%s14166_s0 + $0xe8] sm:$0xff]  ;;  %v203_v43 = vrot.slane %v11269_v28, 1  ;;  %v11302_v44 = vrot.slane %v11288_v37, 7  ;;  %v8753_v50 = vpack.c.bf16 %v202_v30, %v202_v30  ;;  %v8755_v51 = vpack.c.bf16 %v278_v31, %v278_v31  ;;  %v9932_v59 = vld [vmem:[%s14167_s1 + $0xa0] sm:$0xff]  }
  0x2c   :  { %9115 = vmatprep.subr.bf16.mxu1 %v9922_v41  ;;  %9227 = vmatprep.subr.bf16.mxu0 %v9923_v45  ;;  %604 = vst [vmem:[#allocation2 + $0x74] sm:$0xf] %v8751_v11  ;;  %679 = vst [vmem:[#allocation2 + $0x14] sm:$0xf] %v8749_v10  ;;  %v10866_v41 = vpack.c.bf16 %v11220_v5, %v11201_v61  ;;  %v143_v45 = vrot.slane %v11293_v38, 7  ;;  %v11310_v47 = vsel %vm99_vm0, %v11282_v35, %v107_v36  ;;  %v9939_v56 = vld [vmem:[%s14167_s1 + $0x168] sm:$0xff]  }
  0x2d   :  { %681 = vst [vmem:[#allocation2 + $0x38] sm:$0xf] %v8751_v11  ;;  %682 = vst [vmem:[#allocation2 + $0x54] sm:$0xff] %v8752_v19  ;;  %v182_v49 = vsel %vm99_vm0, 0.0, %v11282_v35  ;;  %v10869_v57 = vpack.c.bf16 %v11155_v42, %v11130_v34  ;;  %v204_v34 = vrot.slane %v11274_v29, 1  ;;  %v9941_v42 = vld [vmem:[%s14167_s1 + $0x128] sm:$0xff]   ;;  %v10877_v18 = vpack.c.bf16 %v11274_v29, %v11269_v28 }
  0x2e   :  { %2319 = vmatmul.mubr.bf16.vlgmr.msra.gmra.mxu0 %v8116_v55  ;;  %10863 = vmatmul.mubr.msk.bf16.vlgmr.msra.gmra.mxu1 %vm11231_vm4, %v10862_v13  ;;  %684 = vst [vmem:[#allocation2 + $0x78] sm:$0xff] %v8754_v20  ;;  %742 = vst [vmem:[#allocation2 + $0x18] sm:$0xff] %v8752_v19  ;;  %v11319_v54 = vsel %vm99_vm0, %v11302_v44, %v143_v45  ;;  %v194_v55 = vsel %vm99_vm0, 0.0, %v11302_v44  ;;  %v9934_v63 = vld [vmem:[%s14167_s1 + $0xd8] sm:$0xff]   ;;  %v9947_v13 = vld [vmem:[%s14167_s1 + $0x160] sm:$0xff]   ;;  %v10881_v31 = vpack.c.bf16 %v11241_v14, %v11214_v3  ;;  %vm3733_vm6 = vcmask 1044480  }
  0x2f   :  { %9116 = vmatpush3.bf16.msra.mxu1 %v9924_v52  ;;  %9228 = vmatpush3.bf16.msra.mxu0 %v9925_v53  ;;  %744 = vst [vmem:[#allocation2 + $0x3c] sm:$0xff] %v8754_v20  ;;  %730 = vst [vmem:[#allocation2 + $0x3b4] sm:$0xff] %v8800_v24  ;;  %v8756_v52 = vpack.c.bf16 %v11269_v28, %v182_v49  ;;  %v8758_v53 = vpack.c.bf16 %v11274_v29, %v11310_v47  ;;  %v11358_v4 = vld [vmem:[%s14166_s0 + $0x38] sm:$0xff]  ;;  %v9936_v17 = vld [vmem:[%s14167_s1 + $0xd0] sm:$0xff]   ;;  %v240_v3 = vrot.slane %v11293_v38, 1  ;;  %vm3620_vm7 = vcmask 1045504  }
  0x30   :  { %9117 = vmatprep.subr.bf16.mxu1 %v9926_v0  ;;  %2326 = vmatprep.mubr.bf16.mxu0 %v10857_v58  ;;  %732 = vst [vmem:[#allocation2 + $0x3d8] sm:$0xff] %v8802_v25  ;;  %790 = vst [vmem:[#allocation2 + $0x378] sm:$0xff] %v8800_v24  ;;  %v10873_v58 = vpack.c.bf16 %v11168_v48, %v11147_v39  ;;  %v8804_v60 = vpack.c.bf16 %v11288_v37, %v194_v55  ;;  %v237_v48 = vrot.slane %v11220_v5, 1  ;;  %v9935_v61 = vld [vmem:[%s14167_s1 + $0x98] sm:$0xff]   ;;  %v9948_v24 = vld [vmem:[%s14167_s1 + $0x120] sm:$0xff]   ;;  %s10979_s3 = smov 32  }
  0x31   :  { %2422 = vmatprep.mubr.bf16.mxu1 %v10859_v1  ;;  %9229 = vmatprep.subr.bf16.mxu0 %v9931_v2  ;;  %792 = vst [vmem:[#allocation2 + $0x39c] sm:$0xff] %v8802_v25  ;;  %650 = vst [vmem:[#allocation2 + $0x3b0] sm:$0xf] %v8797_v26  ;;  %v8806_v62 = vpack.c.bf16 %v11293_v38, %v11319_v54  ;;  %v8799_v39 = vpack.c.bf16 %v289_v32, %v289_v32  ;;  %v279_v1 = vsel %vm196_vm1, %v204_v34, 0.0  ;;  %v11353_v2 = vld [vmem:[%s14166_s0 + $0x30] sm:$0xff]  ;;  %v11398_v28 = vld [vmem:[%s14166_s0 + $0x40] sm:$0xff] }
  0x32   :  { %727 = vst [vmem:[#allocation2 + $0x374] sm:$0xf] %v8797_v26  ;;  %787 = vst [vmem:[#allocation2 + $0x338] sm:$0xf] %v8797_v26  ;;  %v205_v0 = vsel %vm196_vm1, %v203_v43, %v204_v34  ;;  %v238_v8 = vsel %vm196_vm1, %v236_v27, %v237_v48  ;;  %v290_v9 = vsel %vm196_vm1, %v237_v48, 0.0  ;;  %v11365_v10 = vrot.slane %v11353_v2, 7 }
  0x33   :  { %9118 = vmatpush3.bf16.msra.mxu1 %v9927_v7  ;;  %9230 = vmatpush3.bf16.msra.mxu0 %v9933_v15  ;;  %606 = vst [vmem:[#allocation2 + $0x98] sm:$0xf] %v8753_v50  ;;  %608 = vst [vmem:[#allocation2 + $0xbc] sm:$0xf] %v8755_v51  ;;  %v8757_v5 = vpack.c.bf16 %v205_v0, %v205_v0  ;;  %v8759_v7 = vpack.c.bf16 %v279_v1, %v279_v1  ;;  %v110_v11 = vrot.slane %v11358_v4, 7  ;;  %v11403_v29 = vld [vmem:[%s14166_s0 + $0x48] sm:$0xff] }
  0x34   :  { %9119 = vmatprep.subr.bf16.mxu1 %v9928_v23  ;;  %683 = vst [vmem:[#allocation2 + $0x5c] sm:$0xf] %v8753_v50  ;;  %685 = vst [vmem:[#allocation2 + $0x80] sm:$0xf] %v8755_v51  ;;  %9231 = vmatprep.subr.bf16.mxu0 %v9939_v56  ;;  %v8801_v16 = vpack.c.bf16 %v238_v8, %v238_v8  ;;  %v206_v15 = vrot.slane %v11353_v2, 1  ;;  %v8803_v19 = vpack.c.bf16 %v290_v9, %v290_v9  ;;  %v9938_v14 = vld [vmem:[%s14167_s1 + $0xc8] sm:$0xff]  }
  0x35   :  { %743 = vst [vmem:[#allocation2 + $0x20] sm:$0xf] %v8753_v50  ;;  %745 = vst [vmem:[#allocation2 + $0x44] sm:$0xf] %v8755_v51  ;;  %v10878_v20 = vpack.c.bf16 %v11293_v38, %v11288_v37  ;;  %v11384_v22 = vsel %vm99_vm0, %v11365_v10, %v110_v11  ;;  %v183_v23 = vsel %vm99_vm0, 0.0, %v11365_v10  ;;  %v239_v25 = vrot.slane %v11288_v37, 1 }
  0x36   :  { %10870 = vmatmul.mubr.msk.bf16.gmra.mxu0 %vm11231_vm4, %v10869_v57  ;;  %10874 = vmatmul.mubr.msk.bf16.gmra.mxu1 %vm11231_vm4, %v10873_v58  ;;  %686 = vst [vmem:[#allocation2 + $0x9c] sm:$0xff] %v8756_v52  ;;  %688 = vst [vmem:[#allocation2 + $0xc0] sm:$0xff] %v8758_v53  ;;  %v8760_v26 = vpack.c.bf16 %v11353_v2, %v183_v23  ;;  %v8762_v27 = vpack.c.bf16 %v11358_v4, %v11384_v22  ;;  %v207_v30 = vrot.slane %v11358_v4, 1  ;;  %v11421_v37 = vld [vmem:[%s14166_s0 + $0x50] sm:$0xff]  ;;  %v9955_v49 = vld [vmem:[%s14167_s1 + $0x158] sm:$0xff]   ;;  %s10980_s25 = smov 64  }
  0x37   :  { %9120 = vmatpush3.bf16.msra.mxu1 %v9929_v40  ;;  %2334 = vmatprep.mubr.bf16.mxu0 %v10865_v33  ;;  %746 = vst [vmem:[#allocation2 + $0x60] sm:$0xff] %v8756_v52  ;;  %748 = vst [vmem:[#allocation2 + $0x84] sm:$0xff] %v8758_v53  ;;  %v10885_v32 = vpack.c.bf16 %v11256_v21, %v11223_v6  ;;  %v11415_v33 = vrot.slane %v11398_v28, 7  ;;  %v113_v36 = vrot.slane %v11403_v29, 7  ;;  %v9937_v6 = vld [vmem:[%s14167_s1 + $0x90] sm:$0xff]   ;;  %v11433_v21 = vld [vmem:[%s14166_s0 + $0x58] sm:$0xff] }
  0x38   :  { %9121 = vmatprep.subr.bf16.mxu1 %v9930_v46  ;;  %2430 = vmatprep.mubr.bf16.mxu1 %v10866_v41  ;;  %734 = vst [vmem:[#allocation2 + $0x3fc] sm:$0xff] %v8804_v60  ;;  %736 = vst [vmem:[#allocation2 + $0x420] sm:$0xff] %v8806_v62  ;;  %v11436_v40 = vrot.slane %v11421_v37, 7  ;;  %v208_v41 = vsel %vm196_vm1, %v206_v15, %v207_v30  ;;  %v116_v46 = vrot.slane %v11433_v21, 7  ;;  %v9940_v50 = vld [vmem:[%s14167_s1 + $0x88] sm:$0xff]   ;;  %v9956_v55 = vld [vmem:[%s14167_s1 + $0x118] sm:$0xff]  }
  0x39   :  { %794 = vst [vmem:[#allocation2 + $0x3c0] sm:$0xff] %v8804_v60  ;;  %796 = vst [vmem:[#allocation2 + $0x3e4] sm:$0xff] %v8806_v62  ;;  %9232 = vmatpush3.bf16.msra.mxu0 %v9941_v42  ;;  %v11441_v43 = vsel %vm99_vm0, %v11415_v33, %v113_v36  ;;  %v184_v45 = vsel %vm99_vm0, 0.0, %v11415_v33  ;;  %v8761_v56 = vpack.c.bf16 %v208_v41, %v208_v41  ;;  %v9942_v57 = vld [vmem:[%s14167_s1 + $0xc0] sm:$0xff]   ;;  %v9946_v58 = vld [vmem:[#allocation2 + $0xc] ss:$36 sps:$4 sm:$0xff]  }
  0x3a   :  { %652 = vst [vmem:[#allocation2 + $0x3d4] sm:$0xf] %v8799_v39  ;;  %729 = vst [vmem:[#allocation2 + $0x398] sm:$0xf] %v8799_v39  ;;  %9233 = vmatprep.subr.bf16.mxu0 %v9947_v13  ;;  %v8764_v51 = vpack.c.bf16 %v11398_v28, %v184_v45  ;;  %v8766_v52 = vpack.c.bf16 %v11403_v29, %v11441_v43  ;;  %v185_v53 = vsel %vm99_vm0, 0.0, %v11436_v40  ;;  %v11478_v42 = vld [vmem:[%s14166_s0 + $0x60] sm:$0xff] }
  0x3b   :  { %789 = vst [vmem:[#allocation2 + $0x35c] sm:$0xf] %v8799_v39  ;;  %9122 = vmatpush3.bf16.msra.mxu1 %v9932_v59  ;;  %610 = vst [vmem:[#allocation2 + $0xe0] sm:$0xf] %v8757_v5  ;;  %v11465_v59 = vsel %vm99_vm0, %v11436_v40, %v116_v46  ;;  %v8768_v60 = vpack.c.bf16 %v11421_v37, %v185_v53  ;;  %v241_v62 = vsel %vm196_vm1, %v239_v25, %v240_v3  ;;  %v11483_v48 = vld [vmem:[%s14166_s0 + $0x68] sm:$0xff]  ;;  %v11536_v23 = vld [vmem:[%s14166_s0 + $0x80] sm:$0xff] }
  0x3c   :  { %612 = vst [vmem:[#allocation2 + $0x104] sm:$0xf] %v8759_v7  ;;  %747 = vst [vmem:[#allocation2 + $0x68] sm:$0xf] %v8757_v5  ;;  %9123 = vmatprep.subr.bf16.mxu1 %v9934_v63  ;;  %v10889_v34 = vpack.c.bf16 %v11358_v4, %v11353_v2  ;;  %v8770_v39 = vpack.c.bf16 %v11433_v21, %v11465_v59  ;;  %v280_v63 = vsel %vm196_vm1, %v207_v30, 0.0  ;;  %v209_v0 = vrot.slane %v11398_v28, 1 }
  0x3d   :  { %749 = vst [vmem:[#allocation2 + $0x8c] sm:$0xf] %v8759_v7  ;;  %687 = vst [vmem:[#allocation2 + $0xa4] sm:$0xf] %v8757_v5  ;;  %9234 = vmatpush3.bf16.msra.mxu0 %v9948_v24  ;;  %v11488_v1 = vrot.slane %v11478_v42, 7  ;;  %v119_v2 = vrot.slane %v11483_v48, 7  ;;  %v8763_v5 = vpack.c.bf16 %v280_v63, %v280_v63  ;;  %v10892_v8 = vpack.c.bf16 %v11310_v47, %v11282_v35 }
  0x3e   :  { %689 = vst [vmem:[#allocation2 + $0xc8] sm:$0xf] %v8759_v7  ;;  %654 = vst [vmem:[#allocation2 + $0x3f8] sm:$0xf] %v8801_v16  ;;  %10882 = vmatmul.mubr.msk.bf16.gmra.mxu0 %vm11231_vm4, %v10881_v31  ;;  %10886 = vmatmul.mubr.msk.bf16.gmra.mxu1 %vm11231_vm4, %v10885_v32  ;;  %v9960_v4 = vld [vmem:[%s14167_s1 + $0x150] sm:$0xff]   ;;  %v8805_v7 = vpack.c.bf16 %v241_v62, %v241_v62  ;;  %v10896_v9 = vpack.c.bf16 %v11319_v54, %v11302_v44  ;;  %v210_v35 = vrot.slane %v11403_v29, 1 }
  0x3f   :  { %731 = vst [vmem:[#allocation2 + $0x3bc] sm:$0xf] %v8801_v16  ;;  %791 = vst [vmem:[#allocation2 + $0x380] sm:$0xf] %v8801_v16  ;;  %9124 = vmatpush3.bf16.msra.mxu1 %v9935_v61  ;;  %2342 = vmatprep.mubr.bf16.mxu0 %v10877_v18  ;;  %v11504_v11 = vsel %vm99_vm0, %v11488_v1, %v119_v2  ;;  %v186_v13 = vsel %vm99_vm0, 0.0, %v11488_v1  ;;  %v9943_v44 = vld [vmem:[%s14167_s1 + $0x80] sm:$0xff]   ;;  %v10899_v30 = vpack.c.bf16 %v11403_v29, %v11398_v28 }
  0x40   :  { %656 = vst [vmem:[#allocation2 + $0x41c] sm:$0xf] %v8803_v19  ;;  %733 = vst [vmem:[#allocation2 + $0x3e0] sm:$0xf] %v8803_v19  ;;  %9125 = vmatprep.subr.bf16.mxu1 %v9936_v17  ;;  %2438 = vmatprep.mubr.bf16.mxu1 %v10878_v20  ;;  %v212_v47 = vrot.slane %v11421_v37, 1  ;;  %v215_v54 = vrot.slane %v11478_v42, 1  ;;  %v8772_v16 = vpack.c.bf16 %v11478_v42, %v186_v13 }
  0x41   :  { %793 = vst [vmem:[#allocation2 + $0x3a4] sm:$0xf] %v8803_v19  ;;  %690 = vst [vmem:[#allocation2 + $0xe4] sm:$0xff] %v8760_v26  ;;  %9235 = vmatprep.subr.bf16.mxu0 %v9955_v49  ;;  %v8774_v61 = vpack.c.bf16 %v11483_v48, %v11504_v11  ;;  %v9961_v17 = vld [vmem:[%s14167_s1 + $0x110] sm:$0xff]   ;;  %v9944_v15 = vld [vmem:[#allocation2 + $0x8] ss:$36 sps:$4 sm:$0xff]   ;;  %v211_v25 = vsel %vm196_vm1, %v209_v0, %v210_v35  ;;  %v10902_v63 = vpack.c.bf16 %v11384_v22, %v11365_v10 }
  0x42   :  { %692 = vst [vmem:[#allocation2 + $0x108] sm:$0xff] %v8762_v27  ;;  %750 = vst [vmem:[#allocation2 + $0xa8] sm:$0xff] %v8760_v26  ;;  %9236 = vmatpush3.bf16.msra.mxu0 %v9956_v55  ;;  %v11523_v18 = vld [vmem:[%s14166_s0 + $0x70] sm:$0xff]  ;;  %v11528_v19 = vld [vmem:[%s14166_s0 + $0x78] sm:$0xff]  ;;  %v281_v26 = vsel %vm196_vm1, %v210_v35, 0.0  ;;  %v11550_v36 = vrot.slane %v11536_v23, 7  ;;  %v8765_v41 = vpack.c.bf16 %v211_v25, %v211_v25  ;;  %v10914_v38 = vpack.c.bf16 %v11465_v59, %v11436_v40 }
  0x43   :  { %752 = vst [vmem:[#allocation2 + $0xcc] sm:$0xff] %v8762_v27  ;;  %9126 = vmatpush3.bf16.msra.mxu1 %v9937_v6  ;;  %694 = vst [vmem:[#allocation2 + $0x12c] sm:$0xff] %v8764_v51  ;;  %v11531_v20 = vrot.slane %v11523_v18, 7  ;;  %v11541_v24 = vld [vmem:[%s14166_s0 + $0x88] sm:$0xff]  ;;  %v213_v27 = vrot.slane %v11433_v21, 1  ;;  %9237 = vmatprep.subr.bf16.mxu0 %v9960_v4  ;;  %v122_v32 = vrot.slane %v11528_v19, 7  ;;  %v10920_v40 = vpack.c.bf16 %v11504_v11, %v11488_v1 }
  0x44   :  { %696 = vst [vmem:[#allocation2 + $0x150] sm:$0xff] %v8766_v52  ;;  %754 = vst [vmem:[#allocation2 + $0xf0] sm:$0xff] %v8764_v51  ;;  %9127 = vmatprep.subr.bf16.mxu1 %v9938_v14  ;;  %v9949_v31 = vld [vmem:[#allocation2 + $0x54] ss:$36 sps:$4 sm:$0xff]   ;;  %v125_v14 = vrot.slane %v11541_v24, 7  ;;  %v9968_v28 = vld [vmem:[%s14167_s1 + $0x148] sm:$0xff]   ;;  %v8767_v51 = vpack.c.bf16 %v281_v26, %v281_v26 }
  0x45   :  { %756 = vst [vmem:[#allocation2 + $0x114] sm:$0xff] %v8766_v52  ;;  %614 = vst [vmem:[#allocation2 + $0x128] sm:$0xf] %v8761_v56  ;;  %v187_v6 = vsel %vm99_vm0, 0.0, %v11531_v20  ;;  %v9969_v29 = vld [vmem:[%s14167_s1 + $0x108] sm:$0xff]   ;;  %v216_v45 = vrot.slane %v11483_v48, 1  ;;  %v11564_v46 = vsel %vm99_vm0, %v11531_v20, %v122_v32 }
  0x46   :  { %691 = vst [vmem:[#allocation2 + $0xec] sm:$0xf] %v8761_v56  ;;  %751 = vst [vmem:[#allocation2 + $0xb0] sm:$0xf] %v8761_v56  ;;  %10893 = vmatmul.mubr.msk.bf16.gmra.mxu0 %vm11231_vm4, %v10892_v8  ;;  %10897 = vmatmul.mubr.msk.bf16.gmra.mxu1 %vm11231_vm4, %v10896_v9  ;;  %v8776_v49 = vpack.c.bf16 %v11523_v18, %v187_v6  ;;  %v11572_v52 = vld [vmem:[%s14166_s0 + $0x90] sm:$0xff]  ;;  %v8778_v53 = vpack.c.bf16 %v11528_v19, %v11564_v46  ;;  %v221_v0 = vrot.slane %v11536_v23, 1 }
  0x47   :  { %698 = vst [vmem:[#allocation2 + $0x174] sm:$0xff] %v8768_v60  ;;  %758 = vst [vmem:[#allocation2 + $0x138] sm:$0xff] %v8768_v60  ;;  %9128 = vmatpush3.bf16.msra.mxu1 %v9940_v50  ;;  %2350 = vmatprep.mubr.bf16.mxu0 %v10889_v34  ;;  %v188_v50 = vsel %vm99_vm0, 0.0, %v11550_v36  ;;  %v11578_v55 = vsel %vm99_vm0, %v11550_v36, %v125_v14  ;;  %v218_v60 = vrot.slane %v11523_v18, 1  ;;  %v9973_v4 = vld [vmem:[%s14167_s1 + $0x1f8] sm:$0xff]   ;;  %v9975_v8 = vld [vmem:[%s14167_s1 + $0x140] sm:$0xff]  }
  0x48   :  { %700 = vst [vmem:[#allocation2 + $0x198] sm:$0xff] %v8770_v39  ;;  %760 = vst [vmem:[#allocation2 + $0x15c] sm:$0xff] %v8770_v39  ;;  %9129 = vmatprep.subr.bf16.mxu1 %v9942_v57  ;;  %2479 = vmatprep.mubr.bf16.mxu1 %v9946_v58  ;;  %v8780_v56 = vpack.c.bf16 %v11536_v23, %v188_v50  ;;  %v11584_v57 = vld [vmem:[%s14166_s0 + $0x98] sm:$0xff]  ;;  %v11587_v58 = vrot.slane %v11572_v52, 7  ;;  %v8782_v62 = vpack.c.bf16 %v11541_v24, %v11578_v55  ;;  %v9951_v9 = vld [vmem:[#allocation2 + $0x50] ss:$36 sps:$4 sm:$0xff]  }
  0x49   :  { %616 = vst [vmem:[#allocation2 + $0x14c] sm:$0xf] %v8763_v5  ;;  %693 = vst [vmem:[#allocation2 + $0x110] sm:$0xf] %v8763_v5  ;;  %9238 = vmatpush3.bf16.msra.mxu0 %v9961_v17  ;;  %v128_v34 = vrot.slane %v11584_v57, 7  ;;  %v214_v39 = vsel %vm196_vm1, %v212_v47, %v213_v27  ;;  %v9974_v10 = vld [vmem:[%s14167_s1 + $0x1b8] sm:$0xff]   ;;  %v217_v22 = vsel %vm196_vm1, %v215_v54, %v216_v45 }
  0x4a   :  { %753 = vst [vmem:[#allocation2 + $0xd4] sm:$0xf] %v8763_v5  ;;  %658 = vst [vmem:[#allocation2 + $0x440] sm:$0xf] %v8805_v7  ;;  %9239 = vmatprep.subr.bf16.mxu0 %v9968_v28  ;;  %v189_v2 = vsel %vm99_vm0, 0.0, %v11587_v58  ;;  %v9976_v54 = vld [vmem:[%s14167_s1 + $0x100] sm:$0xff]   ;;  %v10926_v1 = vpack.c.bf16 %v11564_v46, %v11531_v20 }
  0x4b   :  { %735 = vst [vmem:[#allocation2 + $0x404] sm:$0xf] %v8805_v7  ;;  %795 = vst [vmem:[#allocation2 + $0x3c8] sm:$0xf] %v8805_v7  ;;  %9130 = vmatpush3.bf16.msra.mxu1 %v9943_v44  ;;  %v11612_v5 = vsel %vm99_vm0, %v11587_v58, %v128_v34  ;;  %v282_v7 = vsel %vm196_vm1, %v213_v27, 0.0  ;;  %v8784_v13 = vpack.c.bf16 %v11572_v52, %v189_v2  ;;  %v283_v17 = vsel %vm196_vm1, %v216_v45, 0.0 }
  0x4c   :  { %702 = vst [vmem:[#allocation2 + $0x1bc] sm:$0xff] %v8772_v16  ;;  %704 = vst [vmem:[#allocation2 + $0x1e0] sm:$0xff] %v8774_v61  ;;  %v8786_v35 = vpack.c.bf16 %v11584_v57, %v11612_v5  ;;  %v8769_v44 = vpack.c.bf16 %v214_v39, %v214_v39  ;;  %v8771_v47 = vpack.c.bf16 %v282_v7, %v282_v7  ;;  %9339 = vmatprep.subr.bf16.mxu1 %v9973_v4  ;;  %v9952_v6 = vld [vmem:[#allocation2 + $0x9c] ss:$36 sps:$4 sm:$0xff]   ;;  %v10034_v46 = vld [vmem:[%s14167_s1 + $0x1d0] sm:$0xff]   ;;  %vm4326_vm8 = vcmask 261120  }
  0x4d   :  { %762 = vst [vmem:[#allocation2 + $0x180] sm:$0xff] %v8772_v16  ;;  %764 = vst [vmem:[#allocation2 + $0x1a4] sm:$0xff] %v8774_v61  ;;  %9240 = vmatpush3.bf16.msra.mxu0 %v9969_v29  ;;  %v11627_v16 = vld [vmem:[%s14166_s0 + $0xa0] sm:$0xff]  ;;  %v11632_v61 = vld [vmem:[%s14166_s0 + $0xa8] sm:$0xff]  ;;  %v219_v25 = vrot.slane %v11528_v19, 1  ;;  %v222_v26 = vrot.slane %v11541_v24, 1  ;;  %v10905_v27 = vpack.c.bf16 %v11433_v21, %v11421_v37  ;;  %v8775_v21 = vpack.c.bf16 %v283_v17, %v283_v17 }
  0x4e   :  { %618 = vst [vmem:[#allocation2 + $0x170] sm:$0xf] %v8765_v41  ;;  %695 = vst [vmem:[#allocation2 + $0x134] sm:$0xf] %v8765_v41  ;;  %10903 = vmatmul.mubr.msk.bf16.gmra.mxu0 %vm11231_vm4, %v10902_v63  ;;  %2480 = vmatmul.mubr.bf16.vlgmr.msra.gmra.mxu1 %v9944_v15  ;;  %v8773_v15 = vpack.c.bf16 %v217_v22, %v217_v22  ;;  %v131_v32 = vrot.slane %v11632_v61, 7  ;;  %v227_v37 = vrot.slane %v11627_v16, 1 }
  0x4f   :  { %755 = vst [vmem:[#allocation2 + $0xf8] sm:$0xf] %v8765_v41  ;;  %706 = vst [vmem:[#allocation2 + $0x204] sm:$0xff] %v8776_v49  ;;  %2358 = vmatprep.mubr.bf16.mxu0 %v10899_v30  ;;  %2487 = vmatprep.mubr.bf16.mxu1 %v9949_v31  ;;  %v224_v30 = vrot.slane %v11572_v52, 1  ;;  %v11641_v31 = vrot.slane %v11627_v16, 7  ;;  %v220_v14 = vsel %vm196_vm1, %v218_v60, %v219_v25  ;;  %v284_v41 = vsel %vm196_vm1, %v219_v25, 0.0 }
  0x50   :  { %766 = vst [vmem:[#allocation2 + $0x1c8] sm:$0xff] %v8776_v49  ;;  %620 = vst [vmem:[#allocation2 + $0x194] sm:$0xf] %v8767_v51  ;;  %9241 = vmatprep.subr.bf16.mxu0 %v9975_v8  ;;  %9340 = vmatpush3.bf16.msra.mxu1 %v9974_v10  ;;  %v11652_v28 = vld [vmem:[%s14167_s1 + $0x238] sm:$0xff]   ;;  %v8777_v49 = vpack.c.bf16 %v220_v14, %v220_v14  ;;  %v8779_v50 = vpack.c.bf16 %v284_v41, %v284_v41  ;;  %v285_v34 = vsel %vm196_vm1, %v222_v26, 0.0  ;;  %vm4375_vm9 = vcmask 523264  }
  0x51   :  { %697 = vst [vmem:[#allocation2 + $0x158] sm:$0xf] %v8767_v51  ;;  %757 = vst [vmem:[#allocation2 + $0x11c] sm:$0xf] %v8767_v51  ;;  %9242 = vmatpush3.bf16.msra.mxu0 %v9976_v54  ;;  %v11656_v29 = vsel %vm99_vm0, %v11641_v31, %v131_v32  ;;  %v190_v45 = vsel %vm99_vm0, 0.0, %v11641_v31  ;;  %v10908_v60 = vpack.c.bf16 %v11441_v43, %v11415_v33  ;;  %v9988_v33 = vld [vmem:[%s14167_s1 + $0x1b0] sm:$0xff]  }
  0x52   :  { %708 = vst [vmem:[#allocation2 + $0x228] sm:$0xff] %v8778_v53  ;;  %768 = vst [vmem:[#allocation2 + $0x1ec] sm:$0xff] %v8778_v53  ;;  %v8788_v51 = vpack.c.bf16 %v11627_v16, %v190_v45  ;;  %v8790_v53 = vpack.c.bf16 %v11632_v61, %v11656_v29  ;;  %9475 = vmatprep.subr.bf16.mxu0 %v11652_v28  ;;  %v8783_v43 = vpack.c.bf16 %v285_v34, %v285_v34  ;;  %v9954_v22 = vld [vmem:[#allocation2 + $0x98] ss:$36 sps:$4 sm:$0xff]   ;;  %v9962_v25 = vld [vmem:[#allocation2 + $0x12c] ss:$36 sps:$4 sm:$0xff]  }
  0x53   :  { %710 = vst [vmem:[#allocation2 + $0x24c] sm:$0xff] %v8780_v56  ;;  %770 = vst [vmem:[#allocation2 + $0x210] sm:$0xff] %v8780_v56  ;;  %v223_v56 = vsel %vm196_vm1, %v221_v0, %v222_v26  ;;  %v225_v63 = vrot.slane %v11584_v57, 1  ;;  %v228_v0 = vrot.slane %v11632_v61, 1  ;;  %v291_v10 = vsel %vm196_vm1, %v240_v3, 0.0  ;;  %v10033_v20 = vld [vmem:[%s14167_s1 + $0x198] sm:$0xff]  }
  0x54   :  { %712 = vst [vmem:[#allocation2 + $0x270] sm:$0xff] %v8782_v62  ;;  %772 = vst [vmem:[#allocation2 + $0x234] sm:$0xff] %v8782_v62  ;;  %v9987_v62 = vld [vmem:[%s14167_s1 + $0x1f0] sm:$0xff]   ;;  %v8781_v39 = vpack.c.bf16 %v223_v56, %v223_v56  ;;  %v8807_v17 = vpack.c.bf16 %v291_v10, %v291_v10  ;;  %v9959_v3 = vld [vmem:[#allocation2 + $0xe0] ss:$36 sps:$4 sm:$0xff]   ;;  %v10932_v32 = vpack.c.bf16 %v11578_v55, %v11550_v36  ;;  %vm4424_vm10 = vcmask 785408  }
  0x55   :  { %714 = vst [vmem:[#allocation2 + $0x294] sm:$0xff] %v8784_v13  ;;  %716 = vst [vmem:[#allocation2 + $0x2b8] sm:$0xff] %v8786_v35  ;;  %9341 = vmatprep.subr.bf16.mxu1 %v9987_v62  ;;  %v226_v2 = vsel %vm196_vm1, %v224_v30, %v225_v63  ;;  %v286_v4 = vsel %vm196_vm1, %v225_v63, 0.0  ;;  %v9964_v59 = vld [vmem:[#allocation2 + $0x128] ss:$36 sps:$4 sm:$0xff]   ;;  %v10035_v55 = vld [vmem:[%s14167_s1 + $0x190] sm:$0xff]  }
  0x56   :  { %774 = vst [vmem:[#allocation2 + $0x258] sm:$0xff] %v8784_v13  ;;  %776 = vst [vmem:[#allocation2 + $0x27c] sm:$0xff] %v8786_v35  ;;  %10909 = vmatmul.mubr.msk.bf16.gmra.mxu0 %vm11231_vm4, %v10908_v60  ;;  %2488 = vmatmul.mubr.bf16.gmra.mxu1 %v9951_v9  ;;  %v8785_v7 = vpack.c.bf16 %v226_v2, %v226_v2  ;;  %v8787_v8 = vpack.c.bf16 %v286_v4, %v286_v4  ;;  %v287_v13 = vsel %vm196_vm1, %v228_v0, 0.0  ;;  %v9965_v26 = vld [vmem:[#allocation2 + $0x174] ss:$36 sps:$4 sm:$0xff]   ;;  %v10042_v45 = vld [vmem:[%s14167_s1 + $0x1c8] sm:$0xff]  }
  0x57   :  { %622 = vst [vmem:[#allocation2 + $0x1b8] sm:$0xf] %v8769_v44  ;;  %624 = vst [vmem:[#allocation2 + $0x1dc] sm:$0xf] %v8771_v47  ;;  %2366 = vmatprep.mubr.bf16.mxu0 %v10905_v27  ;;  %2495 = vmatprep.mubr.bf16.mxu1 %v9952_v6  ;;  %v229_v9 = vsel %vm196_vm1, %v227_v37, %v228_v0  ;;  %v10911_v35 = vpack.c.bf16 %v11483_v48, %v11478_v42  ;;  %v10002_v42 = vld [vmem:[%s14167_s1 + $0x1e8] sm:$0xff]   ;;  %v10044_v62 = vld [vmem:[%s14167_s1 + $0x1c0] sm:$0xff]  }
  0x58   :  { %699 = vst [vmem:[#allocation2 + $0x17c] sm:$0xf] %v8769_v44  ;;  %701 = vst [vmem:[#allocation2 + $0x1a0] sm:$0xf] %v8771_v47  ;;  %9342 = vmatpush3.bf16.msra.mxu1 %v9988_v33  ;;  %v8791_v54 = vpack.c.bf16 %v287_v13, %v287_v13  ;;  %v10003_v48 = vld [vmem:[%s14167_s1 + $0x1a8] sm:$0xff]   ;;  %v10923_v27 = vpack.c.bf16 %v11541_v24, %v11536_v23  ;;  %v10031_v23 = vld [vmem:[%s14167_s1 + $0x1d8] sm:$0xff]   ;;  %v10929_v24 = vpack.c.bf16 %v11584_v57, %v11572_v52 }
  0x59   :  { %759 = vst [vmem:[#allocation2 + $0x140] sm:$0xf] %v8769_v44  ;;  %761 = vst [vmem:[#allocation2 + $0x164] sm:$0xf] %v8771_v47  ;;  %v9957_v44 = vld [vmem:[#allocation2 + $0xe4] ss:$36 sps:$4 sm:$0xff]   ;;  %v8789_v47 = vpack.c.bf16 %v229_v9, %v229_v9  ;;  %9343 = vmatprep.subr.bf16.mxu1 %v10002_v42  ;;  %v10943_v0 = vpack.c.bf16 %v11656_v29, %v11641_v31 }
  0x5a   :  { %626 = vst [vmem:[#allocation2 + $0x200] sm:$0xf] %v8773_v15  ;;  %703 = vst [vmem:[#allocation2 + $0x1c4] sm:$0xf] %v8773_v15  ;;  %v9967_v11 = vld [vmem:[#allocation2 + $0x170] ss:$36 sps:$4 sm:$0xff]  }
  0x5b   :  { %763 = vst [vmem:[#allocation2 + $0x188] sm:$0xf] %v8773_v15  ;;  %628 = vst [vmem:[#allocation2 + $0x224] sm:$0xf] %v8775_v21  ;;  %v10917_v15 = vpack.c.bf16 %v11528_v19, %v11523_v18  ;;  %v10017_v18 = vld [vmem:[%s14167_s1 + $0x1e0] sm:$0xff]   ;;  %v11737_v52 = vld [vmem:[%s14166_s0 + $0xf0] sm:$0xff] }
  0x5c   :  { %705 = vst [vmem:[#allocation2 + $0x1e8] sm:$0xf] %v8775_v21  ;;  %765 = vst [vmem:[#allocation2 + $0x1ac] sm:$0xf] %v8775_v21  ;;  %9344 = vmatpush3.bf16.msra.mxu1 %v10003_v48  ;;  %v10018_v19 = vld [vmem:[%s14167_s1 + $0x1a0] sm:$0xff]   ;;  %v11742_v57 = vld [vmem:[%s14166_s0 + $0xf8] sm:$0xff] }
  0x5d   :  { %630 = vst [vmem:[#allocation2 + $0x248] sm:$0xf] %v8777_v49  ;;  %632 = vst [vmem:[#allocation2 + $0x26c] sm:$0xf] %v8779_v50  ;;  %9345 = vmatprep.subr.bf16.mxu1 %v10017_v18  ;;  %v9970_v30 = vld [vmem:[#allocation2 + $0x1bc] ss:$36 sps:$4 sm:$0xff]  }
  0x5e   :  { %707 = vst [vmem:[#allocation2 + $0x20c] sm:$0xf] %v8777_v49  ;;  %709 = vst [vmem:[#allocation2 + $0x230] sm:$0xf] %v8779_v50  ;;  %10915 = vmatmul.mubr.msk.bf16.gmra.mxu0 %vm11231_vm4, %v10914_v38  ;;  %2496 = vmatmul.mubr.bf16.gmra.mxu1 %v9954_v22  ;;  %v11745_v6 = vrot.slane %v11737_v52, 7  ;;  %v146_v37 = vrot.slane %v11742_v57, 7 }
  0x5f   :  { %767 = vst [vmem:[#allocation2 + $0x1d0] sm:$0xf] %v8777_v49  ;;  %769 = vst [vmem:[#allocation2 + $0x1f4] sm:$0xf] %v8779_v50  ;;  %2374 = vmatprep.mubr.bf16.mxu0 %v10911_v35  ;;  %2503 = vmatprep.mubr.bf16.mxu1 %v9957_v44  ;;  %v9972_v36 = vld [vmem:[#allocation2 + $0x1b8] ss:$36 sps:$4 sm:$0xff]  }
  0x60   :  { %718 = vst [vmem:[#allocation2 + $0x2dc] sm:$0xff] %v8788_v51  ;;  %720 = vst [vmem:[#allocation2 + $0x300] sm:$0xff] %v8790_v53  ;;  %9346 = vmatpush3.bf16.msra.mxu1 %v10018_v19  ;;  %v242_v21 = vrot.slane %v11737_v52, 1  ;;  %v9977_v14 = vld [vmem:[#allocation2 + $0x204] ss:$36 sps:$4 sm:$0xff]   ;;  %v195_v41 = vsel %vm99_vm0, 0.0, %v11745_v6  ;;  %v11759_v49 = vsel %vm99_vm0, %v11745_v6, %v146_v37 }
  0x61   :  { %778 = vst [vmem:[#allocation2 + $0x2a0] sm:$0xff] %v8788_v51  ;;  %780 = vst [vmem:[#allocation2 + $0x2c4] sm:$0xff] %v8790_v53  ;;  %9347 = vmatprep.subr.bf16.mxu1 %v10031_v23  ;;  %v8808_v50 = vpack.c.bf16 %v11737_v52, %v195_v41  ;;  %v10935_v51 = vpack.c.bf16 %v11632_v61, %v11627_v16  ;;  %v8810_v53 = vpack.c.bf16 %v11742_v57, %v11759_v49  ;;  %v10043_v60 = vld [vmem:[%s14167_s1 + $0x188] sm:$0xff]   ;;  %v9982_v2 = vld [vmem:[#allocation2 + $0x10] ss:$36 sps:$4 sm:$0xff]  }
  0x62   :  { %634 = vst [vmem:[#allocation2 + $0x290] sm:$0xf] %v8781_v39  ;;  %711 = vst [vmem:[#allocation2 + $0x254] sm:$0xf] %v8781_v39  ;;  %v243_v56 = vrot.slane %v11742_v57, 1  ;;  %v10938_v61 = vpack.c.bf16 %v11612_v5, %v11587_v58  ;;  %v10016_v31 = vld [vmem:[%s14167_s1 + $0x228] sm:$0xff]  }
  0x63   :  { %771 = vst [vmem:[#allocation2 + $0x218] sm:$0xf] %v8781_v39  ;;  %636 = vst [vmem:[#allocation2 + $0x2b4] sm:$0xf] %v8783_v43  ;;  %v9979_v63 = vld [vmem:[#allocation2 + $0x200] ss:$36 sps:$4 sm:$0xff]  }
  0x64   :  { %713 = vst [vmem:[#allocation2 + $0x278] sm:$0xf] %v8783_v43  ;;  %773 = vst [vmem:[#allocation2 + $0x23c] sm:$0xf] %v8783_v43  ;;  %9348 = vmatpush3.bf16.msra.mxu1 %v10033_v20  ;;  %v244_v34 = vsel %vm196_vm1, %v242_v21, %v243_v56  ;;  %v292_v16 = vsel %vm196_vm1, %v243_v56, 0.0  ;;  %v10045_v43 = vld [vmem:[%s14167_s1 + $0x180] sm:$0xff]  }
  0x65   :  { %638 = vst [vmem:[#allocation2 + $0x2d8] sm:$0xf] %v8785_v7  ;;  %640 = vst [vmem:[#allocation2 + $0x2fc] sm:$0xf] %v8787_v8  ;;  %9349 = vmatprep.subr.bf16.mxu1 %v10034_v46  ;;  %v8809_v39 = vpack.c.bf16 %v244_v34, %v244_v34  ;;  %v8811_v33 = vpack.c.bf16 %v292_v16, %v292_v16  ;;  %v9980_v58 = vld [vmem:[#allocation2 + $0x24c] ss:$36 sps:$4 sm:$0xff]  }
  0x66   :  { %715 = vst [vmem:[#allocation2 + $0x29c] sm:$0xf] %v8785_v7  ;;  %717 = vst [vmem:[#allocation2 + $0x2c0] sm:$0xf] %v8787_v8  ;;  %10921 = vmatmul.mubr.msk.bf16.gmra.mxu0 %vm11231_vm4, %v10920_v40  ;;  %2504 = vmatmul.mubr.bf16.gmra.mxu1 %v9959_v3  ;;  %v9984_v5 = vld [vmem:[#allocation2 + $0x14] ss:$36 sps:$4 sm:$0xff]  }
  0x67   :  { %775 = vst [vmem:[#allocation2 + $0x260] sm:$0xf] %v8785_v7  ;;  %777 = vst [vmem:[#allocation2 + $0x284] sm:$0xf] %v8787_v8  ;;  %2382 = vmatprep.mubr.bf16.mxu0 %v10917_v15  ;;  %2511 = vmatprep.mubr.bf16.mxu1 %v9962_v25  ;;  %v9985_v4 = vld [vmem:[#allocation2 + $0x248] ss:$36 sps:$4 sm:$0xff]  }
  0x68   :  { %642 = vst [vmem:[#allocation2 + $0x320] sm:$0xf] %v8789_v47  ;;  %644 = vst [vmem:[#allocation2 + $0x344] sm:$0xf] %v8791_v54  ;;  %9350 = vmatpush3.bf16.msra.mxu1 %v10035_v55  ;;  %v9989_v10 = vld [vmem:[#allocation2 + $0x294] ss:$36 sps:$4 sm:$0xff]  }
  0x69   :  { %719 = vst [vmem:[#allocation2 + $0x2e4] sm:$0xf] %v8789_v47  ;;  %721 = vst [vmem:[#allocation2 + $0x308] sm:$0xf] %v8791_v54  ;;  %9351 = vmatprep.subr.bf16.mxu1 %v10042_v45  ;;  %v9991_v22 = vld [vmem:[#allocation2 + $0x5c] ss:$36 sps:$4 sm:$0xff]  }
  0x6a   :  { %779 = vst [vmem:[#allocation2 + $0x2a8] sm:$0xf] %v8789_v47  ;;  %781 = vst [vmem:[#allocation2 + $0x2cc] sm:$0xf] %v8791_v54  ;;  %v10001_v7 = vld [vmem:[%s14167_s1 + $0x230] sm:$0xff]   ;;  %v10032_v35 = vld [vmem:[%s14167_s1 + $0x220] sm:$0xff]  }
  0x6b   :  { %660 = vst [vmem:[#allocation2 + $0x464] sm:$0xf] %v8807_v17  ;;  %737 = vst [vmem:[#allocation2 + $0x428] sm:$0xf] %v8807_v17  ;;  %v9994_v29 = vld [vmem:[#allocation2 + $0x58] ss:$36 sps:$4 sm:$0xff]  }
  0x6c   :  { %797 = vst [vmem:[#allocation2 + $0x3ec] sm:$0xf] %v8807_v17  ;;  %738 = vst [vmem:[#allocation2 + $0x444] sm:$0xff] %v8808_v50  ;;  %9352 = vmatpush3.bf16.msra.mxu1 %v10043_v60  ;;  %v9993_v8 = vld [vmem:[#allocation2 + $0x290] ss:$36 sps:$4 sm:$0xff]   ;;  %v10052_v47 = vld [vmem:[%s14167_s1 + $0x218] sm:$0xff]  }
  0x6d   :  { %740 = vst [vmem:[#allocation2 + $0x468] sm:$0xff] %v8810_v53  ;;  %739 = vst [vmem:[#allocation2 + $0x44c] sm:$0xf] %v8809_v39  ;;  %9353 = vmatprep.subr.bf16.mxu1 %v10044_v62  ;;  %v9995_v9 = vld [vmem:[#allocation2 + $0x2dc] ss:$36 sps:$4 sm:$0xff]   ;;  %v10065_v38 = vld [vmem:[%s14167_s1 + $0x210] sm:$0xff]  }
  0x6e   :  { %10927 = vmatmul.mubr.msk.bf16.gmra.mxu0 %vm11231_vm4, %v10926_v1  ;;  %2512 = vmatmul.mubr.bf16.gmra.mxu1 %v9964_v59  ;;  %741 = vst [vmem:[#allocation2 + $0x470] sm:$0xf] %v8811_v33  ;;  %799 = vst [vmem:[#allocation2 + $0x410] sm:$0xf] %v8809_v39  ;;  %v9997_v13 = vld [vmem:[#allocation2 + $0xa4] ss:$36 sps:$4 sm:$0xff]  }
  0x6f   :  { %2390 = vmatprep.mubr.bf16.mxu0 %v10923_v27  ;;  %2519 = vmatprep.mubr.bf16.mxu1 %v9965_v26  ;;  %801 = vst [vmem:[#allocation2 + $0x434] sm:$0xf] %v8811_v33  ;;  %v10000_v44 = vld [vmem:[#allocation2 + $0xa0] ss:$36 sps:$4 sm:$0xff]   ;;  %v10006_v17 = vld [vmem:[#allocation2 + $0xec] ss:$36 sps:$4 sm:$0xff]  }
  0x70   :  { %9354 = vmatpush3.bf16.msra.mxu1 %v10045_v43  ;;  %v10004_v54 = vld [vmem:[#allocation2 + $0x324] ss:$36 sps:$4 sm:$0xff]   ;;  %v10010_v15 = vld [vmem:[#allocation2 + $0x36c] ss:$36 sps:$4 sm:$0xff]   ;;  %v10012_v25 = vld [vmem:[#allocation2 + $0x134] ss:$36 sps:$4 sm:$0xff]  }
  0x71   :  { %v10008_v3 = vld [vmem:[#allocation2 + $0x320] ss:$36 sps:$4 sm:$0xff]   ;;  %v10009_v42 = vld [vmem:[#allocation2 + $0xe8] ss:$36 sps:$4 sm:$0xff]   ;;  %v10015_v26 = vld [vmem:[#allocation2 + $0x130] ss:$36 sps:$4 sm:$0xff]  }
  0x72   :  { %v10078_v48 = vld [vmem:[%s14167_s1 + $0x208] sm:$0xff]   ;;  %v10091_v40 = vld [vmem:[%s14167_s1 + $0x200] sm:$0xff]   ;;  %v10019_v27 = vld [vmem:[#allocation2 + $0x3b4] ss:$36 sps:$4 sm:$0xff]  }
  0x73   :  { %v10014_v59 = vld [vmem:[#allocation2 + $0x368] ss:$36 sps:$4 sm:$0xff]   ;;  %v10021_v18 = vld [vmem:[#allocation2 + $0x17c] ss:$36 sps:$4 sm:$0xff]   ;;  %v10023_v19 = vld [vmem:[#allocation2 + $0x3b0] ss:$36 sps:$4 sm:$0xff]  }
  0x74   :  { %v10024_v1 = vld [vmem:[#allocation2 + $0x178] ss:$36 sps:$4 sm:$0xff]   ;;  %v10027_v23 = vld [vmem:[#allocation2 + $0x1c4] ss:$36 sps:$4 sm:$0xff]   ;;  %v10038_v20 = vld [vmem:[#allocation2 + $0x20c] ss:$36 sps:$4 sm:$0xff]  }
  0x75   :  { %v10036_v46 = vld [vmem:[#allocation2 + $0x444] ss:$36 sps:$4 sm:$0xff]   ;;  %v10046_v37 = vld [vmem:[#allocation2 + $0x254] ss:$36 sps:$4 sm:$0xff]   ;;  %v10050_v21 = vld [vmem:[#allocation2 + $0x1c] ss:$36 sps:$4 sm:$0xff]  }
  0x76   :  { %10933 = vmatmul.mubr.msk.bf16.gmra.mxu0 %vm11231_vm4, %v10932_v32  ;;  %2520 = vmatmul.mubr.bf16.gmra.mxu1 %v9967_v11  ;;  %v10025_v11 = vld [vmem:[#allocation2 + $0x3fc] ss:$36 sps:$4 sm:$0xff]   ;;  %v10945_v32 = vpack.c.bf16 %v11742_v57, %v11737_v52  ;;  %v10041_v55 = vld [vmem:[#allocation2 + $0x208] ss:$36 sps:$4 sm:$0xff]   ;;  %v10051_v41 = vld [vmem:[#allocation2 + $0x250] ss:$36 sps:$4 sm:$0xff]  }
  0x77   :  { %2398 = vmatprep.mubr.bf16.mxu0 %v10929_v24  ;;  %2527 = vmatprep.mubr.bf16.mxu1 %v9970_v30  ;;  %v10029_v24 = vld [vmem:[#allocation2 + $0x3f8] ss:$36 sps:$4 sm:$0xff]   ;;  %v10030_v30 = vld [vmem:[#allocation2 + $0x1c0] ss:$36 sps:$4 sm:$0xff]   ;;  %v10061_v60 = vld [vmem:[#allocation2 + $0xac] ss:$36 sps:$4 sm:$0xff]  }
  0x78   :  { %v10053_v45 = vld [vmem:[#allocation2 + $0x29c] ss:$36 sps:$4 sm:$0xff]   ;;  %v10055_v50 = vld [vmem:[#allocation2 + $0x64] ss:$36 sps:$4 sm:$0xff]   ;;  %v10066_v16 = vld [vmem:[#allocation2 + $0x32c] ss:$36 sps:$4 sm:$0xff]  }
  0x79   :  { %v10058_v53 = vld [vmem:[#allocation2 + $0x60] ss:$36 sps:$4 sm:$0xff]   ;;  %v10064_v34 = vld [vmem:[#allocation2 + $0xa8] ss:$36 sps:$4 sm:$0xff]   ;;  %v10071_v33 = vld [vmem:[#allocation2 + $0xf0] ss:$36 sps:$4 sm:$0xff]  }
  0x7a   :  { %v10059_v56 = vld [vmem:[#allocation2 + $0x2e4] ss:$36 sps:$4 sm:$0xff]   ;;  %v10072_v43 = vld [vmem:[#allocation2 + $0x374] ss:$36 sps:$4 sm:$0xff]  }
  0x7b   :  { %v10063_v62 = vld [vmem:[#allocation2 + $0x2e0] ss:$36 sps:$4 sm:$0xff]   ;;  %v10070_v39 = vld [vmem:[#allocation2 + $0x328] ss:$36 sps:$4 sm:$0xff]  }
  0x7e   :  { %10939 = vmatmul.mubr.msk.bf16.gmra.mxu0 %vm11231_vm4, %v10938_v61  ;;  %2528 = vmatmul.mubr.bf16.gmra.mxu1 %v9972_v36  ;;  %v10040_v36 = vld [vmem:[#allocation2 + $0x440] ss:$36 sps:$4 sm:$0xff]   ;;  %v10068_v61 = vld [vmem:[#allocation2 + $0xf4] ss:$36 sps:$4 sm:$0xff]  }
  0x7f   :  { %2406 = vmatprep.mubr.bf16.mxu0 %v10935_v51  ;;  %2535 = vmatprep.mubr.bf16.mxu1 %v9977_v14  ;;  %v10048_v14 = vld [vmem:[#allocation2 + $0x18] ss:$36 sps:$4 sm:$0xff]  }
  0x80   :  { %v10057_v51 = vld [vmem:[#allocation2 + $0x298] ss:$36 sps:$4 sm:$0xff]  }
  0x86   :  { %10944 = vmatmul.mubr.msk.bf16.gmra.mxu0 %vm11231_vm4, %v10943_v0  ;;  %2536 = vmatmul.mubr.bf16.gmra.mxu1 %v9979_v63  ;;  %v10074_v63 = vld [vmem:[#allocation2 + $0x13c] ss:$36 sps:$4 sm:$0xff]  }
  0x87   :  { %2543 = vmatprep.mubr.bf16.mxu1 %v9980_v58  ;;  %2640 = vmatprep.mubr.bf16.mxu0 %v9984_v5  ;;  %v10076_v58 = vld [vmem:[#allocation2 + $0x370] ss:$36 sps:$4 sm:$0xff]   ;;  %v10077_v5 = vld [vmem:[#allocation2 + $0x138] ss:$36 sps:$4 sm:$0xff]  }
  0x88   :  { %v10079_v0 = vld [vmem:[#allocation2 + $0x3bc] ss:$36 sps:$4 sm:$0xff]  }
  0x8e   :  { %2544 = vmatmul.mubr.bf16.gmra.mxu1 %v9985_v4  ;;  %2641 = vmatmul.mubr.bf16.vlgmr.msra.gmra.mxu0 %v9982_v2  ;;  %v10081_v2 = vld [vmem:[#allocation2 + $0x184] ss:$36 sps:$4 sm:$0xff]  }
  0x8f   :  { %9476 = vmatpush3.bf16.msra.mxu0 %v11652_v28  ;;  %2551 = vmatprep.mubr.bf16.mxu1 %v9989_v10  ;;  %v9999_v28 = vld [vmem:[#allocation2 + $0x2d8] ss:$36 sps:$4 sm:$0xff]  }
  0x90   :  { %2648 = vmatprep.mubr.bf16.mxu0 %v9991_v22  ;;  %9477 = vmatprep.subr.bf16.mxu0 %v10001_v7 }
  0x93   :  { %9478 = vmatpush3.bf16.msra.mxu0 %v10001_v7 }
  0x94   :  { %9479 = vmatprep.subr.bf16.mxu0 %v10016_v31 }
  0x96   :  { %2552 = vmatmul.mubr.bf16.gmra.mxu1 %v9993_v8  ;;  %2649 = vmatmul.mubr.bf16.gmra.mxu0 %v9994_v29 }
  0x97   :  { %2559 = vmatprep.mubr.bf16.mxu1 %v9995_v9  ;;  %2656 = vmatprep.mubr.bf16.mxu0 %v9997_v13  ;;  %v10083_v13 = vld [vmem:[#allocation2 + $0x3b8] ss:$36 sps:$4 sm:$0xff]  }
  0x98   :  { %9480 = vmatpush3.bf16.msra.mxu0 %v10016_v31 }
  0x99   :  { %9481 = vmatprep.subr.bf16.mxu0 %v10032_v35 }
  0x9c   :  { %9482 = vmatpush3.bf16.msra.mxu0 %v10032_v35  ;;  %v10084_v35 = vld [vmem:[#allocation2 + $0x180] ss:$36 sps:$4 sm:$0xff]  }
  0x9d   :  { %9483 = vmatprep.subr.bf16.mxu0 %v10052_v47 }
  0x9e   :  { %2560 = vmatmul.mubr.bf16.gmra.mxu1 %v9999_v28  ;;  %2657 = vmatmul.mubr.bf16.gmra.mxu0 %v10000_v44  ;;  %v10085_v28 = vld [vmem:[#allocation2 + $0x404] ss:$36 sps:$4 sm:$0xff]   ;;  %v10087_v44 = vld [vmem:[#allocation2 + $0x1cc] ss:$36 sps:$4 sm:$0xff]  }
  0x9f   :  { %2567 = vmatprep.mubr.bf16.mxu1 %v10004_v54  ;;  %2664 = vmatprep.mubr.bf16.mxu0 %v10006_v17 }
  0xa0   :  { %9484 = vmatpush3.bf16.msra.mxu0 %v10052_v47 }
  0xa1   :  { %9485 = vmatprep.subr.bf16.mxu0 %v10065_v38 }
  0xa4   :  { %9486 = vmatpush3.bf16.msra.mxu0 %v10065_v38 }
  0xa5   :  { %9487 = vmatprep.subr.bf16.mxu0 %v10078_v48 }
  0xa6   :  { %2568 = vmatmul.mubr.bf16.gmra.mxu1 %v10008_v3  ;;  %2665 = vmatmul.mubr.bf16.gmra.mxu0 %v10009_v42 }
  0xa7   :  { %2575 = vmatprep.mubr.bf16.mxu1 %v10010_v15  ;;  %2672 = vmatprep.mubr.bf16.mxu0 %v10012_v25 }
  0xa8   :  { %9488 = vmatpush3.bf16.msra.mxu0 %v10078_v48 }
  0xa9   :  { %9489 = vmatprep.subr.bf16.mxu0 %v10091_v40 }
  0xac   :  { %9490 = vmatpush3.bf16.msra.mxu0 %v10091_v40 }
  0xae   :  { %2576 = vmatmul.mubr.bf16.gmra.mxu1 %v10014_v59  ;;  %2673 = vmatmul.mubr.bf16.gmra.mxu0 %v10015_v26 }
  0xaf   :  { %2583 = vmatprep.mubr.bf16.mxu1 %v10019_v27  ;;  %2680 = vmatprep.mubr.bf16.mxu0 %v10021_v18  ;;  %v10089_v27 = vld [vmem:[#allocation2 + $0x400] ss:$36 sps:$4 sm:$0xff]   ;;  %v10090_v18 = vld [vmem:[#allocation2 + $0x1c8] ss:$36 sps:$4 sm:$0xff]  }
  0xb6   :  { %2584 = vmatmul.mubr.bf16.gmra.mxu1 %v10023_v19  ;;  %2681 = vmatmul.mubr.bf16.gmra.mxu0 %v10024_v1  ;;  %v10092_v19 = vld [vmem:[#allocation2 + $0x44c] ss:$36 sps:$4 sm:$0xff]   ;;  %v10094_v1 = vld [vmem:[#allocation2 + $0x214] ss:$36 sps:$4 sm:$0xff]  }
  0xb7   :  { %2591 = vmatprep.mubr.bf16.mxu1 %v10025_v11  ;;  %2688 = vmatprep.mubr.bf16.mxu0 %v10027_v23 }
  0xbe   :  { %2592 = vmatmul.mubr.bf16.gmra.mxu1 %v10029_v24  ;;  %2689 = vmatmul.mubr.bf16.gmra.mxu0 %v10030_v30 }
  0xbf   :  { %2599 = vmatprep.mubr.bf16.mxu1 %v10036_v46  ;;  %2696 = vmatprep.mubr.bf16.mxu0 %v10038_v20 }
  0xc6   :  { %2600 = vmatmul.mubr.bf16.gmra.mxu1 %v10040_v36  ;;  %2697 = vmatmul.mubr.bf16.gmra.mxu0 %v10041_v55 }
  0xc7   :  { %2704 = vmatprep.mubr.bf16.mxu0 %v10046_v37  ;;  %2801 = vmatprep.mubr.bf16.mxu1 %v10050_v21 }
  0xce   :  { %2705 = vmatmul.mubr.bf16.gmra.mxu0 %v10051_v41  ;;  %2802 = vmatmul.mubr.bf16.vlgmr.msra.gmra.mxu1 %v10048_v14 }
  0xcf   :  { %2712 = vmatprep.mubr.bf16.mxu0 %v10053_v45  ;;  %2809 = vmatprep.mubr.bf16.mxu1 %v10055_v50  ;;  %v10096_v45 = vld [vmem:[#allocation2 + $0x448] ss:$36 sps:$4 sm:$0xff]   ;;  %v10097_v50 = vld [vmem:[#allocation2 + $0x210] ss:$36 sps:$4 sm:$0xff]  }
  0xd6   :  { %2713 = vmatmul.mubr.bf16.gmra.mxu0 %v10057_v51  ;;  %2810 = vmatmul.mubr.bf16.gmra.mxu1 %v10058_v53  ;;  %v10100_v51 = vld [vmem:[#allocation2 + $0x25c] ss:$36 sps:$4 sm:$0xff]  }
  0xd7   :  { %2720 = vmatprep.mubr.bf16.mxu0 %v10059_v56  ;;  %2817 = vmatprep.mubr.bf16.mxu1 %v10061_v60  ;;  %v10101_v53 = vld [vmem:[#allocation2 + $0x20] ss:$36 sps:$4 sm:$0xff]  }
  0xde   :  { %2721 = vmatmul.mubr.bf16.gmra.mxu0 %v10063_v62  ;;  %2818 = vmatmul.mubr.bf16.gmra.mxu1 %v10064_v34 }
  0xdf   :  { %2728 = vmatprep.mubr.bf16.mxu0 %v10066_v16  ;;  %2825 = vmatprep.mubr.bf16.mxu1 %v10068_v61 }
  0xe6   :  { %2729 = vmatmul.mubr.bf16.gmra.mxu0 %v10070_v39  ;;  %2826 = vmatmul.mubr.bf16.gmra.mxu1 %v10071_v33 }
  0xe7   :  { %2736 = vmatprep.mubr.bf16.mxu0 %v10072_v43  ;;  %2833 = vmatprep.mubr.bf16.mxu1 %v10074_v63 }
  0xee   :  { %v9019_v4 = vpop.f32.mrf.mxu0  ;;  %v9091_v10 = vpop.f32.mrf.mxu1  ;;  %2737 = vmatmul.mubr.bf16.gmra.mxu0 %v10076_v58  ;;  %2834 = vmatmul.mubr.bf16.gmra.mxu1 %v10077_v5 }
  0xef   :  { %2744 = vmatprep.mubr.bf16.mxu0 %v10079_v0  ;;  %2841 = vmatprep.mubr.bf16.mxu1 %v10081_v2  ;;  %v10098_v0 = vld [vmem:[#allocation2 + $0x258] ss:$36 sps:$4 sm:$0xff]   ;;  %v10102_v2 = vld [vmem:[#allocation2 + $0x68] ss:$36 sps:$4 sm:$0xff]  }
  0xf0   :  { %v9020_v22 = vpop.f32.mrf.mxu0  ;;  %v9092_v7 = vpop.f32.mrf.mxu1 }
  0xf1   :  { %v11810_v31 = vadd.f32 %v9020_v22, %v9019_v4  ;;  %v11812_v29 = vadd.f32 %v9092_v7, %v9091_v10  ;;  %v10105_v4 = vld [vmem:[#allocation2 + $0x2a4] ss:$36 sps:$4 sm:$0xff]   ;;  %v10106_v10 = vld [vmem:[#allocation2 + $0xb0] ss:$36 sps:$4 sm:$0xff]  }
  0xf2   :  { %v9022_v8 = vpop.f32.mrf.mxu0  ;;  %v9094_v9 = vpop.f32.mrf.mxu1 }
  0xf4   :  { %v9023_v47 = vpop.f32.mrf.mxu0  ;;  %v9095_v54 = vpop.f32.mrf.mxu1 }
  0xf5   :  { %v11814_v17 = vadd.f32 %v9023_v47, %v9022_v8  ;;  %v11816_v38 = vadd.f32 %v9095_v54, %v9094_v9 }
  0xf6   :  { %v9025_v3 = vpop.f32.mrf.mxu0  ;;  %v9097_v42 = vpop.f32.mrf.mxu1  ;;  %2745 = vmatmul.mubr.bf16.gmra.mxu0 %v10083_v13  ;;  %2842 = vmatmul.mubr.bf16.gmra.mxu1 %v10084_v35  ;;  %v11845_v13 = vld [vmem:[%s14168_s2] ss:$0 sm:$0xff]  ;;  %s10978_s2 = smov 96  }
  0xf7   :  { %2752 = vmatprep.mubr.bf16.mxu0 %v10085_v28  ;;  %2849 = vmatprep.mubr.bf16.mxu1 %v10087_v44  ;;  %v2321_v54 = vadd.f32 %v11810_v31, %v11845_v13 }
  0xf8   :  { %v9026_v48 = vpop.f32.mrf.mxu0  ;;  %v9098_v15 = vpop.f32.mrf.mxu1 }
  0xf9   :  { %v11818_v25 = vadd.f32 %v9026_v48, %v9025_v3  ;;  %v11820_v40 = vadd.f32 %v9098_v15, %v9097_v42 }
  0xfa   :  { %v9028_v59 = vpop.f32.mrf.mxu0  ;;  %v9100_v26 = vpop.f32.mrf.mxu1 }
  0xfc   :  { %v9029_v11 = vpop.f32.mrf.mxu0  ;;  %v9101_v23 = vpop.f32.mrf.mxu1 }
  0xfd   :  { %v11822_v24 = vadd.f32 %v9029_v11, %v9028_v59  ;;  %v11824_v30 = vadd.f32 %v9101_v23, %v9100_v26  ;;  %v10103_v59 = vld [vmem:[#allocation2 + $0x2a0] ss:$36 sps:$4 sm:$0xff]   ;;  %v10107_v26 = vld [vmem:[#allocation2 + $0xf8] ss:$36 sps:$4 sm:$0xff]   ;;  %v2324_v23 = vadd.f32 %v11814_v17, %v11845_v13 }
  0xfe   :  { %v9031_v20 = vpop.f32.mrf.mxu0  ;;  %v9103_v46 = vpop.f32.mrf.mxu1  ;;  %2753 = vmatmul.mubr.bf16.gmra.mxu0 %v10089_v27  ;;  %2850 = vmatmul.mubr.bf16.gmra.mxu1 %v10090_v18  ;;  %v10110_v18 = vld [vmem:[#allocation2 + $0x2ec] ss:$36 sps:$4 sm:$0xff]  }
  0xff   :  { %2760 = vmatprep.mubr.bf16.mxu0 %v10092_v19  ;;  %2857 = vmatprep.mubr.bf16.mxu1 %v10094_v1  ;;  %v10111_v19 = vld [vmem:[#allocation2 + $0x140] ss:$36 sps:$4 sm:$0xff]  }
 0x100   :  { %v9032_v36 = vpop.f32.mrf.mxu0  ;;  %v9104_v55 = vpop.f32.mrf.mxu1 }
 0x101   :  { %v11826_v37 = vadd.f32 %v9032_v36, %v9031_v20  ;;  %v11828_v21 = vadd.f32 %v9104_v55, %v9103_v46 }
 0x102   :  { %v9034_v14 = vpop.f32.mrf.mxu0  ;;  %v9106_v41 = vpop.f32.mrf.mxu1 }
 0x104   :  { %v9035_v56 = vpop.f32.mrf.mxu0  ;;  %v9107_v60 = vpop.f32.mrf.mxu1 }
 0x105   :  { %v11830_v62 = vadd.f32 %v9035_v56, %v9034_v14  ;;  %v11832_v34 = vadd.f32 %v9107_v60, %v9106_v41  ;;  %v10108_v56 = vld [vmem:[#allocation2 + $0x2e8] ss:$36 sps:$4 sm:$0xff]  }
 0x106   :  { %v9037_v16 = vpop.f32.mrf.mxu0  ;;  %v9109_v61 = vpop.f32.mrf.mxu1  ;;  %2761 = vmatmul.mubr.bf16.gmra.mxu0 %v10096_v45  ;;  %2858 = vmatmul.mubr.bf16.gmra.mxu1 %v10097_v50  ;;  %v2329_v45 = vadd.f32 %v11818_v25, %v11845_v13  ;;  %v10112_v60 = vld [vmem:[#allocation2 + $0x188] ss:$36 sps:$4 sm:$0xff]  }
 0x107   :  { %2865 = vmatprep.mubr.bf16.mxu1 %v10100_v51  ;;  %9491 = vmatprep.mubr.bf16.mxu0 %v10101_v53 }
 0x108   :  { %v9038_v39 = vpop.f32.mrf.mxu0  ;;  %v9110_v33 = vpop.f32.mrf.mxu1 }
 0x109   :  { %v11834_v43 = vadd.f32 %v9038_v39, %v9037_v16  ;;  %v11836_v63 = vadd.f32 %v9110_v33, %v9109_v61  ;;  %v10115_v61 = vld [vmem:[#allocation2 + $0x334] ss:$36 sps:$4 sm:$0xff]  }
 0x10a   :  { %v9040_v58 = vpop.f32.mrf.mxu0  ;;  %v9112_v5 = vpop.f32.mrf.mxu1  ;;  %v10116_v39 = vld [vmem:[#allocation2 + $0x1d0] ss:$36 sps:$4 sm:$0xff]  }
 0x10c   :  { %v9041_v22 = vpop.f32.mrf.mxu0  ;;  %v9113_v7 = vpop.f32.mrf.mxu1 }
 0x10d   :  { %v11838_v8 = vadd.f32 %v9041_v22, %v9040_v58  ;;  %v11840_v9 = vadd.f32 %v9113_v7, %v9112_v5  ;;  %v2332_v5 = vadd.f32 %v11822_v24, %v11845_v13 }
 0x10e   :  { %v9043_v35 = vpop.f32.mrf.mxu0  ;;  %v9131_v28 = vpop.f32.mrf.mxu1  ;;  %2866 = vmatmul.mubr.bf16.gmra.mxu1 %v10098_v0  ;;  %9492 = vmatmul.mubr.bf16.vlgmr.msra.gmra.mxu0 %v10102_v2 }
 0x10f   :  { %2873 = vmatprep.mubr.bf16.mxu1 %v10105_v4  ;;  %9495 = vmatprep.mubr.bf16.mxu0 %v10106_v10 }
 0x110   :  { %v9044_v44 = vpop.f32.mrf.mxu0  ;;  %v9132_v47 = vpop.f32.mrf.mxu1 }
 0x111   :  { %v11849_v3 = vadd.f32 %v9044_v44, %v9043_v35  ;;  %v9133_v42 = vadd.f32 %v9132_v47, %v9131_v28  ;;  %v2337_v35 = vadd.f32 %v11826_v37, %v11845_v13 }
 0x112   :  { %v9046_v48 = vpop.f32.mrf.mxu0  ;;  %v9134_v15 = vpop.f32.mrf.mxu1 }
 0x113   :  { %v11851_v27 = vadd.f32 %v9133_v42, %v2321_v54  ;;  %v10113_v54 = vld [vmem:[#allocation2 + $0x330] ss:$36 sps:$4 sm:$0xff]   ;;  %v10117_v42 = vld [vmem:[#allocation2 + $0x218] ss:$36 sps:$4 sm:$0xff]  }
 0x114   :  { %v9047_v1 = vpop.f32.mrf.mxu0  ;;  %v9135_v11 = vpop.f32.mrf.mxu1 }
 0x115   :  { %v11855_v20 = vadd.f32 %v9047_v1, %v9046_v48  ;;  %v9136_v46 = vadd.f32 %v9135_v11, %v9134_v15  ;;  %v10120_v15 = vld [vmem:[#allocation2 + $0x37c] ss:$36 sps:$4 sm:$0xff]  }
 0x116   :  { %v9049_v31 = vpop.f32.mrf.mxu0  ;;  %v9137_v36 = vpop.f32.mrf.mxu1  ;;  %2874 = vmatmul.mubr.bf16.gmra.mxu1 %v10103_v59  ;;  %9496 = vmatmul.mubr.bf16.gmra.mxu0 %v10107_v26  ;;  %v10121_v59 = vld [vmem:[#allocation2 + $0x260] ss:$36 sps:$4 sm:$0xff]  }
 0x117   :  { %v11857_v55 = vadd.f32 %v9136_v46, %v2324_v23  ;;  %2881 = vmatprep.mubr.bf16.mxu1 %v10110_v18  ;;  %9499 = vmatprep.mubr.bf16.mxu0 %v10111_v19  ;;  %v2340_v19 = vadd.f32 %v11830_v62, %v11845_v13 }
 0x118   :  { %v9050_v14 = vpop.f32.mrf.mxu0  ;;  %v9138_v41 = vpop.f32.mrf.mxu1 }
 0x119   :  { %v11861_v50 = vadd.f32 %v9050_v14, %v9049_v31  ;;  %v9139_v51 = vadd.f32 %v9138_v41, %v9137_v36  ;;  %v2345_v14 = vadd.f32 %v11834_v43, %v11845_v13 }
 0x11a   :  { %v9052_v17 = vpop.f32.mrf.mxu0  ;;  %v9140_v53 = vpop.f32.mrf.mxu1 }
 0x11b   :  { %v11863_v16 = vadd.f32 %v9139_v51, %v2329_v45 }
 0x11c   :  { %v9053_v33 = vpop.f32.mrf.mxu0  ;;  %v9141_v58 = vpop.f32.mrf.mxu1 }
 0x11d   :  { %v11867_v0 = vadd.f32 %v9053_v33, %v9052_v17  ;;  %v9142_v2 = vadd.f32 %v9141_v58, %v9140_v53  ;;  %v10118_v17 = vld [vmem:[#allocation2 + $0x378] ss:$36 sps:$4 sm:$0xff]   ;;  %v10122_v53 = vld [vmem:[#allocation2 + $0x2a8] ss:$36 sps:$4 sm:$0xff]   ;;  %v2348_v58 = vadd.f32 %v11838_v8, %v11845_v13 }
 0x11e   :  { %v9055_v25 = vpop.f32.mrf.mxu0  ;;  %v9143_v4 = vpop.f32.mrf.mxu1  ;;  %2882 = vmatmul.mubr.bf16.gmra.mxu1 %v10108_v56  ;;  %9500 = vmatmul.mubr.bf16.gmra.mxu0 %v10112_v60  ;;  %v10125_v60 = vld [vmem:[#allocation2 + $0x3c4] ss:$36 sps:$4 sm:$0xff]  }
 0x11f   :  { %v11869_v10 = vadd.f32 %v9142_v2, %v2332_v5  ;;  %2889 = vmatprep.mubr.bf16.mxu1 %v10115_v61  ;;  %9503 = vmatprep.mubr.bf16.mxu0 %v10116_v39  ;;  %v10126_v61 = vld [vmem:[#allocation2 + $0x2f0] ss:$36 sps:$4 sm:$0xff]  }
 0x120   :  { %v9056_v22 = vpop.f32.mrf.mxu0  ;;  %v9144_v7 = vpop.f32.mrf.mxu1 }
 0x121   :  { %v11873_v28 = vadd.f32 %v9056_v22, %v9055_v25  ;;  %v9145_v44 = vadd.f32 %v9144_v7, %v9143_v4 }
 0x122   :  { %v9058_v24 = vpop.f32.mrf.mxu0  ;;  %v9146_v47 = vpop.f32.mrf.mxu1 }
 0x123   :  { %v11875_v48 = vadd.f32 %v9145_v44, %v2337_v35  ;;  %v2353_v35 = vadd.f32 %v11849_v3, %v11845_v13 }
 0x124   :  { %v9059_v26 = vpop.f32.mrf.mxu0  ;;  %v9147_v18 = vpop.f32.mrf.mxu1 }
 0x125   :  { %v11879_v1 = vadd.f32 %v9059_v26, %v9058_v24  ;;  %v9148_v11 = vadd.f32 %v9147_v18, %v9146_v47 }
 0x126   :  { %v9061_v37 = vpop.f32.mrf.mxu0  ;;  %v9149_v23 = vpop.f32.mrf.mxu1  ;;  %2890 = vmatmul.mubr.bf16.gmra.mxu1 %v10113_v54  ;;  %9504 = vmatmul.mubr.bf16.gmra.mxu0 %v10117_v42  ;;  %v10123_v54 = vld [vmem:[#allocation2 + $0x3c0] ss:$36 sps:$4 sm:$0xff]   ;;  %v10127_v42 = vld [vmem:[#allocation2 + $0x338] ss:$36 sps:$4 sm:$0xff]  }
 0x127   :  { %v11881_v46 = vadd.f32 %v9148_v11, %v2340_v19  ;;  %2897 = vmatprep.mubr.bf16.mxu1 %v10120_v15  ;;  %9507 = vmatprep.mubr.bf16.mxu0 %v10121_v59  ;;  %v10128_v59 = vld [vmem:[#allocation2 + $0x380] ss:$36 sps:$4 sm:$0xff]   ;;  %v2356_v19 = vadd.f32 %v11855_v20, %v11845_v13 }
 0x128   :  { %v9062_v31 = vpop.f32.mrf.mxu0  ;;  %v9150_v36 = vpop.f32.mrf.mxu1 }
 0x129   :  { %v11885_v41 = vadd.f32 %v9062_v31, %v9061_v37  ;;  %v9151_v45 = vadd.f32 %v9150_v36, %v9149_v23 }
 0x12a   :  { %v9064_v62 = vpop.f32.mrf.mxu0  ;;  %v9152_v51 = vpop.f32.mrf.mxu1 }
 0x12b   :  { %v11887_v56 = vadd.f32 %v9151_v45, %v2345_v14  ;;  %v2361_v14 = vadd.f32 %v11861_v50, %v11845_v13 }
 0x12c   :  { %v9065_v39 = vpop.f32.mrf.mxu0  ;;  %v9153_v33 = vpop.f32.mrf.mxu1 }
 0x12d   :  { %v11891_v5 = vadd.f32 %v9065_v39, %v9064_v62  ;;  %v9154_v2 = vadd.f32 %v9153_v33, %v9152_v51  ;;  %v10130_v39 = vld [vmem:[#allocation2 + $0x410] ss:$36 sps:$4 sm:$0xff]  }
 0x12e   :  { %v9067_v43 = vpop.f32.mrf.mxu0  ;;  %v9155_v25 = vpop.f32.mrf.mxu1  ;;  %2898 = vmatmul.mubr.bf16.gmra.mxu1 %v10118_v17  ;;  %9508 = vmatmul.mubr.bf16.gmra.mxu0 %v10122_v53  ;;  %v10129_v17 = vld [vmem:[#allocation2 + $0x3c8] ss:$36 sps:$4 sm:$0xff]  }
 0x12f   :  { %v11893_v4 = vadd.f32 %v9154_v2, %v2348_v58  ;;  %2905 = vmatprep.mubr.bf16.mxu1 %v10125_v60  ;;  %9511 = vmatprep.mubr.bf16.mxu0 %v10126_v61  ;;  %v10854_v60 = vld [vmem:[#allocation2] sm:$0xff]  ;;  %v10949_v2 = vpack.c.bf16 %v11759_v49, %v11745_v6  ;;  %v10131_v49 = vld [vmem:[#allocation2 + $0x458] ss:$36 sps:$4 sm:$0xff]  }
 0x130   :  { %v9068_v22 = vpop.f32.mrf.mxu0  ;;  %v9156_v7 = vpop.f32.mrf.mxu1  ;;  %v8258_v61 = vcombine.high %v10854_v60, %v10854_v60  ;;  %v8257_v6 = vcombine.low %v10854_v60, %v10854_v60 }
 0x131   :  { %v11897_v44 = vadd.f32 %v9068_v22, %v9067_v43  ;;  %v9157_v24 = vadd.f32 %v9156_v7, %v9155_v25  ;;  %v2369_v7 = vadd.f32 %v11873_v28, %v11845_v13 }
 0x132   :  { %v11899_v8 = vpop.f32.mrf.mxu0  ;;  %v9158_v47 = vpop.f32.mrf.mxu1 }
 0x133   :  { %v11901_v15 = vadd.f32 %v9157_v24, %v2353_v35 }
 0x134   :  { %v11903_v26 = vpop.f32.mrf.mxu0  ;;  %v9159_v18 = vpop.f32.mrf.mxu1 }
 0x135   :  { %v9160_v11 = vadd.f32 %v9159_v18, %v9158_v47 }
 0x136   :  { %v9073_v37 = vpop.f32.mrf.mxu0  ;;  %v9161_v3 = vpop.f32.mrf.mxu1  ;;  %2906 = vmatmul.mubr.bf16.gmra.mxu1 %v10123_v54  ;;  %9512 = vmatmul.mubr.bf16.gmra.mxu0 %v10127_v42 }
 0x137   :  { %v11907_v23 = vadd.f32 %v9160_v11, %v2356_v19  ;;  %2913 = vmatprep.mubr.bf16.mxu1 %v10945_v32  ;;  %9515 = vmatprep.mubr.bf16.mxu0 %v10128_v59  ;;  %v2364_v32 = vadd.f32 %v11867_v0, %v11845_v13  ;;  %v2372_v59 = vadd.f32 %v11879_v1, %v11845_v13 }
 0x138   :  { %v9074_v31 = vpop.f32.mrf.mxu0  ;;  %v9162_v36 = vpop.f32.mrf.mxu1 }
 0x139   :  { %v11914_v45 = vadd.f32 %v9074_v31, %v9073_v37  ;;  %v9163_v20 = vadd.f32 %v9162_v36, %v9161_v3  ;;  %v2377_v31 = vadd.f32 %v11885_v41, %v11845_v13 }
 0x13a   :  { %v11916_v62 = vpop.f32.mrf.mxu0  ;;  %v9164_v51 = vpop.f32.mrf.mxu1 }
 0x13b   :  { %v11918_v53 = vadd.f32 %v9163_v20, %v2361_v14 }
 0x13c   :  { %v11920_v52 = vpop.f32.mrf.mxu0  ;;  %v9165_v57 = vpop.f32.mrf.mxu1 }
 0x13d   :  { %v9166_v33 = vadd.f32 %v9165_v57, %v9164_v51 }
 0x13e   :  { %v9079_v50 = vpop.f32.mrf.mxu0  ;;  %v9167_v58 = vpop.f32.mrf.mxu1  ;;  %10950 = vmatmul.mubr.msk.bf16.gmra.mxu1 %vm11231_vm4, %v10949_v2  ;;  %9516 = vmatmul.mubr.bf16.gmra.mxu0 %v10129_v17  ;;  %v9072_v2 = vadd.f32 %v11903_v26, %v11899_v8 }
 0x13f   :  { %v11928_v43 = vadd.f32 %v9166_v33, %v2364_v32  ;;  %2921 = vmatprep.mubr.bf16.mxu1 %v8258_v61  ;;  %9519 = vmatprep.mubr.bf16.mxu0 %v10130_v39  ;;  %v2380_v61 = vadd.f32 %v11891_v5, %v11845_v13 }
 0x140   :  { %v9080_v25 = vpop.f32.mrf.mxu0  ;;  %v9168_v22 = vpop.f32.mrf.mxu1 }
 0x141   :  { %v11932_v0 = vadd.f32 %v9080_v25, %v9079_v50  ;;  %v9169_v35 = vadd.f32 %v9168_v22, %v9167_v58  ;;  %v2385_v58 = vadd.f32 %v11897_v44, %v11845_v13 }
 0x142   :  { %v11934_v24 = vpop.f32.mrf.mxu0  ;;  %v9170_v47 = vpop.f32.mrf.mxu1 }
 0x143   :  { %v11936_v12 = vadd.f32 %v9169_v35, %v2369_v7 }
 0x144   :  { %v11938_v54 = vpop.f32.mrf.mxu0  ;;  %v9171_v42 = vpop.f32.mrf.mxu1 }
 0x145   :  { %v9172_v18 = vadd.f32 %v9171_v42, %v9170_v47  ;;  %v2388_v42 = vadd.f32 %v9072_v2, %v11845_v13 }
 0x146   :  { %v9085_v19 = vpop.f32.mrf.mxu0  ;;  %v9173_v11 = vpop.f32.mrf.mxu1  ;;  %2922 = vmatmul.mubr.bf16.gmra.mxu1 %v8257_v6  ;;  %9520 = vmatmul.mubr.bf16.gmra.mxu0 %v10131_v49 }
 0x147   :  { %v11942_v28 = vadd.f32 %v9172_v18, %v2372_v59 }
 0x148   :  { %v9086_v37 = vpop.f32.mrf.mxu0  ;;  %v9174_v3 = vpop.f32.mrf.mxu1 }
 0x149   :  { %v11946_v36 = vadd.f32 %v9086_v37, %v9085_v19  ;;  %v9175_v14 = vadd.f32 %v9174_v3, %v9173_v11  ;;  %v2393_v3 = vadd.f32 %v11914_v45, %v11845_v13 }
 0x14a   :  { %v11948_v20 = vpop.f32.mrf.mxu0  ;;  %v9176_v51 = vpop.f32.mrf.mxu1 }
 0x14b   :  { %v11950_v17 = vadd.f32 %v9175_v14, %v2377_v31 }
 0x14c   :  { %v11952_v1 = vpop.f32.mrf.mxu0  ;;  %v9177_v60 = vpop.f32.mrf.mxu1 }
 0x14d   :  { %v9178_v39 = vadd.f32 %v9177_v60, %v9176_v51 }
 0x14e   :  { %v9179_v57 = vpop.f32.mrf.mxu1  ;;  %v9243_v32 = vpop.f32.mrf.mxu0 }
 0x14f   :  { %v11956_v33 = vadd.f32 %v9178_v39, %v2380_v61 }
 0x150   :  { %v9180_v41 = vpop.f32.mrf.mxu1  ;;  %v9244_v50 = vpop.f32.mrf.mxu0 }
 0x151   :  { %v9181_v25 = vadd.f32 %v9180_v41, %v9179_v57  ;;  %v9245_v22 = vadd.f32 %v9244_v50, %v9243_v32 }
 0x152   :  { %v9182_v7 = vpop.f32.mrf.mxu1  ;;  %v9246_v35 = vpop.f32.mrf.mxu0 }
 0x153   :  { %v11962_v47 = vadd.f32 %v9181_v25, %v2385_v58  ;;  %v11965_v5 = vadd.f32 %v9245_v22, %v11851_v27  ;;  %v9078_v27 = vadd.f32 %v11920_v52, %v11916_v62  ;;  %v2401_v22 = vadd.f32 %v11932_v0, %v11845_v13 }
 0x154   :  { %v9183_v6 = vpop.f32.mrf.mxu1  ;;  %v9247_v49 = vpop.f32.mrf.mxu0 }
 0x155   :  { %v9184_v59 = vadd.f32 %v9183_v6, %v9182_v7  ;;  %v9248_v18 = vadd.f32 %v9247_v49, %v9246_v35  ;;  %v2396_v32 = vadd.f32 %v9078_v27, %v11845_v13 }
 0x156   :  { %v9185_v19 = vpop.f32.mrf.mxu1  ;;  %v9249_v44 = vpop.f32.mrf.mxu0 }
 0x157   :  { %v11968_v11 = vadd.f32 %v9184_v59, %v2388_v42  ;;  %v11971_v8 = vadd.f32 %v9248_v18, %v11857_v55 }
 0x158   :  { %v9186_v26 = vpop.f32.mrf.mxu1  ;;  %v9250_v37 = vpop.f32.mrf.mxu0 }
 0x159   :  { %v9187_v31 = vadd.f32 %v9186_v26, %v9185_v19  ;;  %v9251_v14 = vadd.f32 %v9250_v37, %v9249_v44 }
 0x15a   :  { %v9188_v51 = vpop.f32.mrf.mxu1  ;;  %v9252_v60 = vpop.f32.mrf.mxu0 }
 0x15b   :  { %v11977_v61 = vadd.f32 %v9187_v31, %v2393_v3  ;;  %v11980_v39 = vadd.f32 %v9251_v14, %v11863_v16  ;;  %v9084_v16 = vadd.f32 %v11938_v54, %v11934_v24  ;;  %v2409_v31 = vadd.f32 %v11946_v36, %v11845_v13 }
 0x15c   :  { %v9189_v57 = vpop.f32.mrf.mxu1  ;;  %v9253_v55 = vpop.f32.mrf.mxu0 }
 0x15d   :  { %v9190_v41 = vadd.f32 %v9189_v57, %v9188_v51  ;;  %v9254_v50 = vadd.f32 %v9253_v55, %v9252_v60  ;;  %v2404_v19 = vadd.f32 %v9084_v16, %v11845_v13  ;;  %v2417_v16 = vadd.f32 %v11812_v29, %v11845_v13 }
 0x15e   :  { %v9191_v58 = vpop.f32.mrf.mxu1  ;;  %v9255_v45 = vpop.f32.mrf.mxu0 }
 0x15f   :  { %v11983_v2 = vadd.f32 %v9190_v41, %v2396_v32  ;;  %v11986_v62 = vadd.f32 %v9254_v50, %v11869_v10 }
 0x160   :  { %v9192_v52 = vpop.f32.mrf.mxu1  ;;  %v9256_v25 = vpop.f32.mrf.mxu0 }
 0x161   :  { %v9193_v7 = vadd.f32 %v9192_v52, %v9191_v58  ;;  %v9257_v35 = vadd.f32 %v9256_v25, %v9255_v45 }
 0x162   :  { %v9194_v6 = vpop.f32.mrf.mxu1  ;;  %v9258_v49 = vpop.f32.mrf.mxu0 }
 0x163   :  { %v11992_v42 = vadd.f32 %v9193_v7, %v2401_v22  ;;  %v11995_v59 = vadd.f32 %v9257_v35, %v11875_v48  ;;  %v9090_v48 = vadd.f32 %v11952_v1, %v11948_v20 }
 0x164   :  { %v9195_v18 = vpop.f32.mrf.mxu1  ;;  %v9259_v10 = vpop.f32.mrf.mxu0 }
 0x165   :  { %v9196_v44 = vadd.f32 %v9195_v18, %v9194_v6  ;;  %v9260_v26 = vadd.f32 %v9259_v10, %v9258_v49  ;;  %v2412_v50 = vadd.f32 %v9090_v48, %v11845_v13 }
 0x166   :  { %v9197_v37 = vpop.f32.mrf.mxu1  ;;  %v9261_v0 = vpop.f32.mrf.mxu0 }
 0x167   :  { %v11998_v3 = vadd.f32 %v9196_v44, %v2404_v19  ;;  %v12001_v24 = vadd.f32 %v9260_v26, %v11881_v46 }
 0x168   :  { %v9198_v54 = vpop.f32.mrf.mxu1  ;;  %v9262_v27 = vpop.f32.mrf.mxu0 }
 0x169   :  { %v9199_v14 = vadd.f32 %v9198_v54, %v9197_v37  ;;  %v9263_v51 = vadd.f32 %v9262_v27, %v9261_v0 }
 0x16a   :  { %v9200_v60 = vpop.f32.mrf.mxu1  ;;  %v9264_v57 = vpop.f32.mrf.mxu0 }
 0x16b   :  { %v12007_v55 = vadd.f32 %v9199_v14, %v2409_v31  ;;  %v12010_v32 = vadd.f32 %v9263_v51, %v11887_v56 }
 0x16c   :  { %v9201_v41 = vpop.f32.mrf.mxu1  ;;  %v9265_v46 = vpop.f32.mrf.mxu0 }
 0x16d   :  { %v9202_v58 = vadd.f32 %v9201_v41, %v9200_v60  ;;  %v9266_v45 = vadd.f32 %v9265_v46, %v9264_v57 }
 0x16e   :  { %v9203_v52 = vpop.f32.mrf.mxu1  ;;  %v9267_v36 = vpop.f32.mrf.mxu0 }
 0x16f   :  { %v12013_v25 = vadd.f32 %v9202_v58, %v2412_v50  ;;  %v12016_v20 = vadd.f32 %v9266_v45, %v11893_v4  ;;  %v2420_v4 = vadd.f32 %v11816_v38, %v11845_v13 }
 0x170   :  { %v9204_v1 = vpop.f32.mrf.mxu1  ;;  %v9268_v22 = vpop.f32.mrf.mxu0 }
 0x171   :  { %v9205_v56 = vadd.f32 %v9204_v1, %v9203_v52  ;;  %v9269_v7 = vadd.f32 %v9268_v22, %v9267_v36 }
 0x172   :  { %v9206_v35 = vpop.f32.mrf.mxu1  ;;  %v9270_v6 = vpop.f32.mrf.mxu0 }
 0x173   :  { %v12020_v49 = vadd.f32 %v9205_v56, %v2417_v16  ;;  %v12023_v18 = vadd.f32 %v9269_v7, %v11901_v15  ;;  %v2425_v15 = vadd.f32 %v11820_v40, %v11845_v13 }
 0x174   :  { %v9207_v10 = vpop.f32.mrf.mxu1  ;;  %v9271_v19 = vpop.f32.mrf.mxu0 }
 0x175   :  { %v9208_v44 = vadd.f32 %v9207_v10, %v9206_v35  ;;  %v9272_v26 = vadd.f32 %v9271_v19, %v9270_v6 }
 0x176   :  { %v9209_v37 = vpop.f32.mrf.mxu1  ;;  %v9273_v0 = vpop.f32.mrf.mxu0 }
 0x177   :  { %v12027_v54 = vadd.f32 %v9208_v44, %v2420_v4  ;;  %v12030_v29 = vadd.f32 %v9272_v26, %v11907_v23  ;;  %v2428_v23 = vadd.f32 %v11824_v30, %v11845_v13 }
 0x178   :  { %v9210_v27 = vpop.f32.mrf.mxu1  ;;  %v9274_v31 = vpop.f32.mrf.mxu0 }
 0x179   :  { %v9211_v48 = vadd.f32 %v9210_v27, %v9209_v37  ;;  %v9275_v14 = vadd.f32 %v9274_v31, %v9273_v0 }
 0x17a   :  { %v9212_v51 = vpop.f32.mrf.mxu1  ;;  %v9276_v60 = vpop.f32.mrf.mxu0 }
 0x17b   :  { %v12034_v57 = vadd.f32 %v9211_v48, %v2425_v15  ;;  %v12037_v38 = vadd.f32 %v9275_v14, %v11918_v53  ;;  %v2433_v53 = vadd.f32 %v11828_v21, %v11845_v13 }
 0x17c   :  { %v9213_v41 = vpop.f32.mrf.mxu1  ;;  %v9277_v46 = vpop.f32.mrf.mxu0 }
 0x17d   :  { %v9214_v50 = vadd.f32 %v9213_v41, %v9212_v51  ;;  %v9278_v58 = vadd.f32 %v9277_v46, %v9276_v60 }
 0x17e   :  { %v9215_v45 = vpop.f32.mrf.mxu1  ;;  %v9279_v52 = vpop.f32.mrf.mxu0 }
 0x17f   :  { %v12041_v36 = vadd.f32 %v9214_v50, %v2428_v23  ;;  %v12044_v40 = vadd.f32 %v9278_v58, %v11928_v43  ;;  %v2436_v43 = vadd.f32 %v11832_v34, %v11845_v13 }
 0x180   :  { %v9216_v1 = vpop.f32.mrf.mxu1  ;;  %v9280_v22 = vpop.f32.mrf.mxu0 }
 0x181   :  { %v9217_v16 = vadd.f32 %v9216_v1, %v9215_v45  ;;  %v9281_v56 = vadd.f32 %v9280_v22, %v9279_v52 }
 0x182   :  { %v9218_v7 = vpop.f32.mrf.mxu1  ;;  %v9282_v35 = vpop.f32.mrf.mxu0 }
 0x183   :  { %v12048_v6 = vadd.f32 %v9217_v16, %v2433_v53  ;;  %v12051_v30 = vadd.f32 %v9281_v56, %v11936_v12  ;;  %v2441_v12 = vadd.f32 %v11836_v63, %v11845_v13 }
 0x184   :  { %v9219_v10 = vpop.f32.mrf.mxu1  ;;  %v9283_v19 = vpop.f32.mrf.mxu0 }
 0x185   :  { %v9220_v4 = vadd.f32 %v9219_v10, %v9218_v7  ;;  %v9284_v44 = vadd.f32 %v9283_v19, %v9282_v35 }
 0x186   :  { %v9221_v26 = vpop.f32.mrf.mxu1  ;;  %v9285_v37 = vpop.f32.mrf.mxu0 }
 0x187   :  { %v12055_v0 = vadd.f32 %v9220_v4, %v2436_v43  ;;  %v12058_v21 = vadd.f32 %v9284_v44, %v11942_v28  ;;  %v2444_v28 = vadd.f32 %v11840_v9, %v11845_v13 }
 0x188   :  { %v9222_v27 = vpop.f32.mrf.mxu1  ;;  %v9286_v31 = vpop.f32.mrf.mxu0 }
 0x189   :  { %v9223_v15 = vadd.f32 %v9222_v27, %v9221_v26  ;;  %v9287_v48 = vadd.f32 %v9286_v31, %v9285_v37 }
 0x18a   :  { %v9224_v14 = vpop.f32.mrf.mxu1  ;;  %v9288_v51 = vpop.f32.mrf.mxu0 }
 0x18b   :  { %v12062_v60 = vadd.f32 %v9223_v15, %v2441_v12  ;;  %v12065_v34 = vadd.f32 %v9287_v48, %v11950_v17 }
 0x18c   :  { %v9225_v41 = vpop.f32.mrf.mxu1  ;;  %v9289_v46 = vpop.f32.mrf.mxu0 }
 0x18d   :  { %v9226_v23 = vadd.f32 %v9225_v41, %v9224_v14  ;;  %v9290_v50 = vadd.f32 %v9289_v46, %v9288_v51 }
 0x18e   :  { %v9291_v58 = vpop.f32.mrf.mxu0  ;;  %v12069_v45 = vpop.f32.mrf.mxu1 }
 0x18f   :  { %v12071_v63 = vadd.f32 %v9226_v23, %v2444_v28  ;;  %v12074_v52 = vadd.f32 %v9290_v50, %v11956_v33 }
 0x190   :  { %v9292_v1 = vpop.f32.mrf.mxu0  ;;  %v12076_v22 = vpop.f32.mrf.mxu1 }
 0x191   :  { %v9293_v17 = vadd.f32 %v9292_v1, %v9291_v58 }
 0x192   :  { %v9294_v53 = vpop.f32.mrf.mxu0  ;;  %v12078_v16 = vpop.f32.mrf.mxu1 }
 0x193   :  { %v12081_v56 = vadd.f32 %v9293_v17, %v11962_v47 }
 0x194   :  { %v9295_v9 = vpop.f32.mrf.mxu0  ;;  %v12083_v13 = vpop.f32.mrf.mxu1 }
 0x195   :  { %v9296_v7 = vadd.f32 %v9295_v9, %v9294_v53 }
 0x196   :  { %v9297_v35 = vpop.f32.mrf.mxu0  ;;  %v12085_v10 = vpop.f32.mrf.mxu1 }
 0x197   :  { %v12088_v33 = vadd.f32 %v9296_v7, %v11968_v11 }
 0x198   :  { %v9298_v19 = vpop.f32.mrf.mxu0  ;;  %v12090_v43 = vpop.f32.mrf.mxu1 }
 0x199   :  { %14221 = vst [vmem:[#allocation8_spill] sm:$0xff] %v12088_v33  ;;  %v9299_v4 = vadd.f32 %v9298_v19, %v9297_v35 }
 0x19a   :  { %v9300_v44 = vpop.f32.mrf.mxu0  ;;  %v12092_v26 = vpop.f32.mrf.mxu1 }
 0x19b   :  { %v12095_v47 = vadd.f32 %v9299_v4, %v11977_v61 }
 0x19c   :  { %v9301_v37 = vpop.f32.mrf.mxu0  ;;  %v12097_v27 = vpop.f32.mrf.mxu1 }
 0x19d   :  { %v9302_v31 = vadd.f32 %v9301_v37, %v9300_v44 }
 0x19e   :  { %v9303_v12 = vpop.f32.mrf.mxu0  ;;  %v12099_v15 = vpop.f32.mrf.mxu1 }
 0x19f   :  { %v12102_v11 = vadd.f32 %v9302_v31, %v11983_v2 }
 0x1a0   :  { %v9304_v48 = vpop.f32.mrf.mxu0  ;;  %v12104_v14 = vpop.f32.mrf.mxu1 }
 0x1a1   :  { %v9305_v51 = vadd.f32 %v9304_v48, %v9303_v12 }
 0x1a2   :  { %v9306_v41 = vpop.f32.mrf.mxu0  ;;  %v12106_v46 = vpop.f32.mrf.mxu1 }
 0x1a3   :  { %v12109_v61 = vadd.f32 %v9305_v51, %v11992_v42 }
 0x1a4   :  { %v9307_v28 = vpop.f32.mrf.mxu0  ;;  %v12111_v23 = vpop.f32.mrf.mxu1 }
 0x1a5   :  { %14222 = vst [vmem:[#allocation9_spill] sm:$0xff] %v12109_v61  ;;  %v9308_v50 = vadd.f32 %v9307_v28, %v9306_v41 }
 0x1a6   :  { %v9309_v58 = vpop.f32.mrf.mxu0  ;;  %v12113_v1 = vpop.f32.mrf.mxu1 }
 0x1a7   :  { %v12116_v2 = vadd.f32 %v9308_v50, %v11998_v3 }
 0x1a8   :  { %v9310_v17 = vpop.f32.mrf.mxu0  ;;  %v12118_v53 = vpop.f32.mrf.mxu1 }
 0x1a9   :  { %14223 = vst [vmem:[#allocation10_spill] sm:$0xff] %v12116_v2  ;;  %v9311_v9 = vadd.f32 %v9310_v17, %v9309_v58 }
 0x1aa   :  { %v9312_v7 = vpop.f32.mrf.mxu0  ;;  %v12120_v35 = vpop.f32.mrf.mxu1 }
 0x1ab   :  { %v12123_v42 = vadd.f32 %v9311_v9, %v12007_v55 }
 0x1ac   :  { %v9313_v19 = vpop.f32.mrf.mxu0  ;;  %v12125_v4 = vpop.f32.mrf.mxu1 }
 0x1ad   :  { %14224 = vst [vmem:[#allocation11_spill] sm:$0xff] %v12123_v42  ;;  %v9314_v44 = vadd.f32 %v9313_v19, %v9312_v7 }
 0x1ae   :  { %v9315_v37 = vpop.f32.mrf.mxu0  ;;  %v12127_v31 = vpop.f32.mrf.mxu1 }
 0x1af   :  { %v12130_v3 = vadd.f32 %v9314_v44, %v12013_v25 }
 0x1b0   :  { %v9316_v12 = vpop.f32.mrf.mxu0  ;;  %v12132_v48 = vpop.f32.mrf.mxu1 }
 0x1b1   :  { %14225 = vst [vmem:[#allocation12_spill] sm:$0xff] %v12130_v3  ;;  %v9317_v51 = vadd.f32 %v9316_v12, %v9315_v37 }
 0x1b2   :  { %v9318_v41 = vpop.f32.mrf.mxu0  ;;  %v12134_v28 = vpop.f32.mrf.mxu1 }
 0x1b3   :  { %v12137_v55 = vadd.f32 %v9317_v51, %v12020_v49 }
 0x1b4   :  { %v9319_v50 = vpop.f32.mrf.mxu0  ;;  %v12139_v58 = vpop.f32.mrf.mxu1 }
 0x1b5   :  { %14226 = vst [vmem:[#allocation13_spill] sm:$0xff] %v12137_v55  ;;  %v9320_v17 = vadd.f32 %v9319_v50, %v9318_v41 }
 0x1b6   :  { %v9321_v9 = vpop.f32.mrf.mxu0  ;;  %v12141_v7 = vpop.f32.mrf.mxu1 }
 0x1b7   :  { %v12144_v25 = vadd.f32 %v9320_v17, %v12027_v54 }
 0x1b8   :  { %v9322_v19 = vpop.f32.mrf.mxu0  ;;  %v12146_v44 = vpop.f32.mrf.mxu1 }
 0x1b9   :  { %14227 = vst [vmem:[#allocation14_spill] sm:$0xff] %v12144_v25  ;;  %v9323_v37 = vadd.f32 %v9322_v19, %v9321_v9 }
 0x1ba   :  { %v9324_v12 = vpop.f32.mrf.mxu0  ;;  %v12148_v2 = vpop.f32.mrf.mxu1 }
 0x1bb   :  { %v12151_v49 = vadd.f32 %v9323_v37, %v12034_v57 }
 0x1bc   :  { %v9325_v51 = vpop.f32.mrf.mxu0  ;;  %v12153_v55 = vpop.f32.mrf.mxu1 }
 0x1bd   :  { %14228 = vst [vmem:[#allocation15_spill] sm:$0xff] %v12151_v49  ;;  %v9326_v41 = vadd.f32 %v9325_v51, %v9324_v12 }
 0x1be   :  { %v9327_v50 = vpop.f32.mrf.mxu0  ;;  %v12155_v3 = vpop.f32.mrf.mxu1 }
 0x1bf   :  { %v12158_v54 = vadd.f32 %v9326_v41, %v12041_v36 }
 0x1c0   :  { %v9328_v17 = vpop.f32.mrf.mxu0  ;;  %v12160_v25 = vpop.f32.mrf.mxu1 }
 0x1c1   :  { %14229 = vst [vmem:[#allocation16_spill] sm:$0xff] %v12158_v54  ;;  %v9329_v9 = vadd.f32 %v9328_v17, %v9327_v50  ;;  %v9363_v50 = vadd.f32 %v12090_v43, %v12085_v10 }
 0x1c2   :  { %v9330_v19 = vpop.f32.mrf.mxu0  ;;  %v12162_v61 = vpop.f32.mrf.mxu1 }
 0x1c3   :  { %v12165_v57 = vadd.f32 %v9329_v9, %v12048_v6  ;;  %v9357_v9 = vadd.f32 %v12076_v22, %v12069_v45 }
 0x1c4   :  { %v9331_v37 = vpop.f32.mrf.mxu0  ;;  %v12167_v49 = vpop.f32.mrf.mxu1 }
 0x1c5   :  { %14230 = vst [vmem:[#allocation17_spill] sm:$0xff] %v12165_v57  ;;  %v9332_v12 = vadd.f32 %v9331_v37, %v9330_v19  ;;  %v2804_v22 = vadd.f32 %v9357_v9, %v11965_v5 }
 0x1c6   :  { %v9333_v51 = vpop.f32.mrf.mxu0  ;;  %v12169_v42 = vpop.f32.mrf.mxu1 }
 0x1c7   :  { %v12172_v36 = vadd.f32 %v9332_v12, %v12055_v0  ;;  %v9366_v0 = vadd.f32 %v12097_v27, %v12092_v26 }
 0x1c8   :  { %v9334_v41 = vpop.f32.mrf.mxu0  ;;  %v12174_v54 = vpop.f32.mrf.mxu1 }
 0x1c9   :  { %14231 = vst [vmem:[#allocation18_spill] sm:$0xff] %v12172_v36  ;;  %v9335_v17 = vadd.f32 %v9334_v41, %v9333_v51  ;;  %v2812_v36 = vadd.f32 %v9363_v50, %v11980_v39  ;;  %v9360_v51 = vadd.f32 %v12083_v13, %v12078_v16  ;;  %v2815_v27 = vadd.f32 %v9366_v0, %v11986_v62 }
 0x1ca   :  { %v9336_v33 = vpop.f32.mrf.mxu0  ;;  %v12178_v6 = vpop.f32.mrf.mxu1 }
 0x1cb   :  { %v12183_v19 = vadd.f32 %v9335_v17, %v12062_v60  ;;  %v2807_v50 = vadd.f32 %v9360_v51, %v11971_v8  ;;  %v10132_v8 = vld [vmem:[#allocation5 + $0x70] ss:$8 sps:$4 sm:$0xff]  }
 0x1cc   :  { %v9337_v37 = vpop.f32.mrf.mxu0  ;;  %v12185_v57 = vpop.f32.mrf.mxu1 }
 0x1cd   :  { %v9338_v12 = vadd.f32 %v9337_v37, %v9336_v33  ;;  %v9375_v33 = vadd.f32 %v12118_v53, %v12113_v1  ;;  %v9378_v1 = vadd.f32 %v12125_v4, %v12120_v35  ;;  %v10134_v37 = vld [vmem:[#allocation5 + $0x74] ss:$8 sps:$4 sm:$0xff]   ;;  %v9372_v35 = vadd.f32 %v12111_v23, %v12106_v46  ;;  %v10135_v46 = vld [vmem:[#allocation5 + $0x60] ss:$8 sps:$4 sm:$0xff]   ;;  %v10137_v23 = vld [vmem:[#allocation5 + $0x64] ss:$8 sps:$4 sm:$0xff]  }
 0x1ce   :  { %v12190_v10 = vpop.f32.mrf.mxu1  ;;  %v9493_v43 = vpop.f32.mrf.mxu0  ;;  %7020 = vmatprep.subr.bf16.mxu1 %v10134_v37 }
 0x1cf   :  { %v12195_v45 = vadd.f32 %v9338_v12, %v12071_v63  ;;  %v12197_v60 = vadd.f32 %v9493_v43, %v2812_v36  ;;  %v9369_v63 = vadd.f32 %v12104_v14, %v12099_v15  ;;  %v2828_v14 = vadd.f32 %v9375_v33, %v12010_v32  ;;  %7021 = vmatpush1.bf16.msra.mxu1 %v10132_v8 }
 0x1d0   :  { %v12200_v41 = vpop.f32.mrf.mxu1  ;;  %v2964_v17 = vpop.f32.mrf.mxu0  ;;  %v2831_v32 = vadd.f32 %v9378_v1, %v12016_v20  ;;  %v9387_v33 = vadd.f32 %v12146_v44, %v12141_v7  ;;  %v2823_v20 = vadd.f32 %v9372_v35, %v12001_v24  ;;  %7022 = vmatprep.subr.bf16.mxu1 %v10137_v23  ;;  %v9381_v7 = vadd.f32 %v12132_v48, %v12127_v31  ;;  %v10143_v24 = vld [vmem:[#allocation5 + $0x44] ss:$8 sps:$4 sm:$0xff]   ;;  %v10146_v23 = vld [vmem:[#allocation5 + $0x34] ss:$8 sps:$4 sm:$0xff]  }
 0x1d1   :  { %v8334_v39 = vmul.f32 -1.442695, %v12197_v60  ;;  %v12205_v26 = vadd.f32 %v2964_v17, %v2804_v22  ;;  %v2820_v43 = vadd.f32 %v9369_v63, %v11995_v59  ;;  %v9390_v44 = vadd.f32 %v12153_v55, %v12148_v2 }
 0x1d2   :  { %v12210_v16 = vpop.f32.mrf.mxu1  ;;  %v9494_v13 = vpop.f32.mrf.mxu0  ;;  %v9384_v8 = vadd.f32 %v12139_v58, %v12134_v28 }
 0x1d3   :  { %10582 = vpow2.f32 %v8334_v39  ;;  %v8332_v5 = vmul.f32 -1.442695, %v12205_v26  ;;  %v12213_v36 = vadd.f32 %v9494_v13, %v2815_v27  ;;  %v10140_v13 = vld [vmem:[#allocation5 + $0x54] ss:$8 sps:$4 sm:$0xff]   ;;  %7023 = vmatpush1.bf16.msra.mxu1 %v10135_v46 }
 0x1d4   :  { %v12218_v53 = vpop.f32.mrf.mxu1  ;;  %v2967_v9 = vpop.f32.mrf.mxu0  ;;  %7024 = vmatprep.subr.bf16.mxu1 %v10140_v13 }
 0x1d5   :  { %10584 = vpow2.f32 %v8332_v5  ;;  %v8335_v62 = vmul.f32 -1.442695, %v12213_v36  ;;  %v12221_v15 = vadd.f32 %v2967_v9, %v2807_v50 }
 0x1d6   :  { %v12224_v0 = vpop.f32.mrf.mxu1  ;;  %v9497_v12 = vpop.f32.mrf.mxu0 }
 0x1d7   :  { %10586 = vpow2.f32 %v8335_v62  ;;  %v8333_v4 = vmul.f32 -1.442695, %v12221_v15  ;;  %v12230_v51 = vadd.f32 %v9497_v12, %v2828_v14  ;;  %v10138_v62 = vld [vmem:[#allocation5 + $0x50] ss:$8 sps:$4 sm:$0xff]   ;;  %v2844_v12 = vadd.f32 %v9387_v33, %v12037_v38 }
 0x1d8   :  { %v12232_v22 = vpop.f32.mrf.mxu1  ;;  %v2980_v17 = vpop.f32.mrf.mxu0  ;;  %v2847_v38 = vadd.f32 %v9390_v44, %v12044_v40  ;;  %7025 = vmatpush1.bf16.msra.mxu1 %v10138_v62  ;;  %v9399_v33 = vadd.f32 %v12174_v54, %v12169_v42  ;;  %v9393_v40 = vadd.f32 %v12160_v25, %v12155_v3  ;;  %v9402_v54 = vadd.f32 %v12185_v57, %v12178_v6  ;;  %v10144_v62 = vld [vmem:[#allocation5 + $0x30] ss:$8 sps:$4 sm:$0xff]  }
 0x1d9   :  { %10588 = vpow2.f32 %v8333_v4  ;;  %v8338_v59 = vmul.f32 -1.442695, %v12230_v51  ;;  %v12238_v39 = vadd.f32 %v2980_v17, %v2820_v43  ;;  %v2836_v4 = vadd.f32 %v9381_v7, %v12023_v18  ;;  %7026 = vmatprep.subr.bf16.mxu1 %v10143_v24 }
 0x1da   :  { %v12240_v27 = vpop.f32.mrf.mxu1  ;;  %v9498_v63 = vpop.f32.mrf.mxu0  ;;  %v2839_v44 = vadd.f32 %v9384_v8, %v12030_v29 }
 0x1db   :  { %10590 = vpow2.f32 %v8338_v59  ;;  %v8336_v5 = vmul.f32 -1.442695, %v12238_v39  ;;  %v12243_v50 = vadd.f32 %v9498_v63, %v2831_v32  ;;  %v10141_v32 = vld [vmem:[#allocation5 + $0x40] ss:$8 sps:$4 sm:$0xff]  }
 0x1dc   :  { %v12250_v1 = vpop.f32.mrf.mxu1  ;;  %v2983_v9 = vpop.f32.mrf.mxu0  ;;  %7027 = vmatpush1.bf16.msra.mxu1 %v10141_v32  ;;  %v2863_v32 = vadd.f32 %v9402_v54, %v12074_v52 }
 0x1dd   :  { %10592 = vpow2.f32 %v8336_v5  ;;  %v8339_v14 = vmul.f32 -1.442695, %v12243_v50  ;;  %v12253_v37 = vadd.f32 %v2983_v9, %v2823_v20  ;;  %7028 = vmatprep.subr.bf16.mxu1 %v10146_v23  ;;  %v10152_v23 = vld [vmem:[#allocation5 + $0x14] ss:$8 sps:$4 sm:$0xff]  }
 0x1de   :  { %v12256_v43 = vpop.f32.mrf.mxu1  ;;  %v9501_v31 = vpop.f32.mrf.mxu0 }
 0x1df   :  { %10594 = vpow2.f32 %v8339_v14  ;;  %v8337_v2 = vmul.f32 -1.442695, %v12253_v37  ;;  %v12259_v48 = vadd.f32 %v9501_v31, %v2844_v12  ;;  %v2860_v14 = vadd.f32 %v9399_v33, %v12065_v34  ;;  %v10149_v12 = vld [vmem:[#allocation5 + $0x24] ss:$8 sps:$4 sm:$0xff]   ;;  %v10147_v33 = vld [vmem:[#allocation5 + $0x20] ss:$8 sps:$4 sm:$0xff]  }
 0x1e0   :  { %v10583_v55 = vpop.eup %10582  ;;  %v12263_v35 = vpop.f32.mrf.mxu1  ;;  %7029 = vmatpush1.bf16.msra.mxu1 %v10144_v62 }
 0x1e1   :  { %v2996_v17 = vpop.f32.mrf.mxu0  ;;  %v3189_v59 = vadd.f32 1.0, %v10583_v55  ;;  %10596 = vpow2.f32 %v8337_v2  ;;  %v8342_v46 = vmul.f32 -1.442695, %v12259_v48  ;;  %v2852_v55 = vadd.f32 %v9393_v40, %v12051_v30  ;;  %7030 = vmatprep.subr.bf16.mxu1 %v10149_v12 }
 0x1e2   :  { %v10585_v63 = vpop.eup %10584  ;;  %v12270_v28 = vadd.f32 %v2996_v17, %v2836_v4  ;;  %v12272_v58 = vpop.f32.mrf.mxu1  ;;  %v9396_v4 = vadd.f32 %v12167_v49, %v12162_v61 }
 0x1e3   :  { %v9502_v18 = vpop.f32.mrf.mxu0  ;;  %10598 = vrcp.f32 %v3189_v59  ;;  %v3187_v13 = vadd.f32 1.0, %v10585_v63 }
 0x1e4   :  { %v12276_v5 = vadd.f32 %v9502_v18, %v2847_v38  ;;  %v10587_v42 = vpop.eup %10586  ;;  %10600 = vpow2.f32 %v8342_v46  ;;  %v8340_v20 = vmul.f32 -1.442695, %v12270_v28  ;;  %v12281_v7 = vpop.f32.mrf.mxu1  ;;  %v9411_v46 = vadd.f32 %v12232_v22, %v12224_v0  ;;  %7031 = vmatpush1.bf16.msra.mxu1 %v10147_v33 }
 0x1e5   :  { %v2999_v9 = vpop.f32.mrf.mxu0  ;;  %10602 = vrcp.f32 %v3187_v13  ;;  %v3190_v3 = vadd.f32 1.0, %v10587_v42  ;;  %v9405_v42 = vadd.f32 %v12200_v41, %v12190_v10  ;;  %v2855_v54 = vadd.f32 %v9396_v4, %v12058_v21  ;;  %7032 = vmatprep.subr.bf16.mxu1 %v10152_v23  ;;  %v10153_v4 = vld [vmem:[#allocation5] ss:$8 sps:$4 sm:$0xff]  }
 0x1e6   :  { %v8343_v25 = vmul.f32 -1.442695, %v12276_v5  ;;  %v10589_v24 = vpop.eup %10588  ;;  %10604 = vpow2.f32 %v8340_v20  ;;  %v12286_v57 = vadd.f32 %v2999_v9, %v2839_v44  ;;  %v12288_v6 = vpop.f32.mrf.mxu1  ;;  %v10150_v44 = vld [vmem:[#allocation5 + $0x10] ss:$8 sps:$4 sm:$0xff]  }
 0x1e7   :  { %v9505_v31 = vpop.f32.mrf.mxu0  ;;  %10606 = vrcp.f32 %v3190_v3  ;;  %v3188_v29 = vadd.f32 1.0, %v10589_v24  ;;  %v2876_v3 = vadd.f32 %v9411_v46, %v12095_v47  ;;  %v2868_v47 = vadd.f32 %v9405_v42, %v12081_v56 }
 0x1e8   :  { %v12290_v2 = vadd.f32 %v9505_v31, %v2860_v14  ;;  %v10591_v8 = vpop.eup %10590  ;;  %10608 = vpow2.f32 %v8343_v25  ;;  %v8341_v34 = vmul.f32 -1.442695, %v12286_v57  ;;  %v12296_v17 = vpop.f32.mrf.mxu1  ;;  %v10155_v25 = vld [vmem:[#allocation5 + $0x4] ss:$8 sps:$4 sm:$0xff]   ;;  %7033 = vmatpush1.bf16.msra.mxu1 %v10150_v44 }
 0x1e9   :  { %v3012_v38 = vpop.f32.mrf.mxu0  ;;  %10610 = vrcp.f32 %v3188_v29  ;;  %v3193_v59 = vadd.f32 1.0, %v10591_v8  ;;  %7034 = vmatprep.subr.bf16.mxu1 %v10155_v25 }
 0x1ea   :  { %v8346_v30 = vmul.f32 -1.442695, %v12290_v2  ;;  %v10593_v61 = vpop.eup %10592  ;;  %10612 = vpow2.f32 %v8341_v34  ;;  %v12302_v49 = vadd.f32 %v3012_v38, %v2852_v55  ;;  %v12304_v63 = vpop.f32.mrf.mxu1 }
 0x1eb   :  { %v9506_v18 = vpop.f32.mrf.mxu0  ;;  %10614 = vrcp.f32 %v3193_v59  ;;  %v3191_v52 = vadd.f32 1.0, %v10593_v61 }
 0x1ec   :  { %v12306_v40 = vadd.f32 %v9506_v18, %v2863_v32  ;;  %v10595_v13 = vpop.eup %10594  ;;  %10616 = vpow2.f32 %v8346_v30  ;;  %v8344_v0 = vmul.f32 -1.442695, %v12302_v49  ;;  %v12311_v22 = vpop.f32.mrf.mxu1  ;;  %v10158_v32 = vld [vmem:[#allocation5 + $0xf4] ss:$8 sps:$4 sm:$0xff]   ;;  %7035 = vmatpush1.bf16.msra.mxu1 %v10153_v4  ;;  %v10171_v4 = vld [vmem:[#allocation5 + $0x170] ss:$8 sps:$4 sm:$0xff]  }
 0x1ed   :  { %v3015_v20 = vpop.f32.mrf.mxu0  ;;  %10618 = vrcp.f32 %v3191_v52  ;;  %v3194_v9 = vadd.f32 1.0, %v10595_v13  ;;  %v9414_v52 = vadd.f32 %v12250_v1, %v12240_v27  ;;  %7036 = vmatprep.subr.bf16.mxu1 %v10158_v32  ;;  %v9408_v1 = vadd.f32 %v12218_v53, %v12210_v16 }
 0x1ee   :  { %v8347_v62 = vmul.f32 -1.442695, %v12306_v40  ;;  %v10597_v14 = vpop.eup %10596  ;;  %10620 = vpow2.f32 %v8344_v0  ;;  %v12316_v10 = vadd.f32 %v3015_v20, %v2855_v54  ;;  %v12318_v41 = vpop.f32.mrf.mxu1  ;;  %v10156_v54 = vld [vmem:[#allocation5 + $0xf0] ss:$8 sps:$4 sm:$0xff]  }
 0x1ef   :  { %v9509_v12 = vpop.f32.mrf.mxu0  ;;  %10622 = vrcp.f32 %v3194_v9  ;;  %v3192_v21 = vadd.f32 1.0, %v10597_v14 }
 0x1f0   :  { %v12320_v24 = vadd.f32 %v9509_v12, %v2876_v3  ;;  %v10599_v31 = vpop.eup %10598  ;;  %10624 = vpow2.f32 %v8347_v62  ;;  %v8345_v29 = vmul.f32 -1.442695, %v12316_v10  ;;  %v12323_v55 = vpop.f32.mrf.mxu1  ;;  %v10161_v62 = vld [vmem:[#allocation5 + $0xe4] ss:$8 sps:$4 sm:$0xff]   ;;  %7037 = vmatpush2.bf16.msra.mxu1 %v10156_v54  ;;  %v9417_v54 = vadd.f32 %v12263_v35, %v12256_v43 }
 0x1f1   :  { %v3028_v8 = vpop.f32.mrf.mxu0  ;;  %v10601_v34 = vpop.eup %10600  ;;  %10626 = vrcp.f32 %v3192_v21  ;;  %v12328_v59 = vmul.f32 %v10599_v31, %v12197_v60  ;;  %v10159_v21 = vld [vmem:[#allocation5 + $0xe0] ss:$8 sps:$4 sm:$0xff]   ;;  %7038 = vmatprep.subr.bf16.mxu1 %v10161_v62  ;;  %v10167_v35 = vld [vmem:[#allocation5 + $0xc4] ss:$8 sps:$4 sm:$0xff]  }
 0x1f2   :  { %v8350_v38 = vmul.f32 -1.442695, %v12320_v24  ;;  %v10603_v33 = vpop.eup %10602  ;;  %v3197_v46 = vadd.f32 1.0, %v10601_v34  ;;  %10628 = vpow2.f32 %v8345_v29  ;;  %v12330_v30 = vadd.f32 %v3028_v8, %v2868_v47  ;;  %v12332_v23 = vpop.f32.mrf.mxu1  ;;  %v10173_v34 = vld [vmem:[#allocation5 + $0x174] ss:$8 sps:$4 sm:$0xff]  }
 0x1f3   :  { %v9510_v56 = vpop.f32.mrf.mxu0  ;;  %v10605_v61 = vpop.eup %10604  ;;  %v12340_v44 = vmul.f32 %v10603_v33, %v12205_v26  ;;  %v3351_v27 = vrot.slane %v12328_v59, 6  ;;  %v9423_v47 = vadd.f32 %v12296_v17, %v12288_v6  ;;  %v2879_v8 = vadd.f32 %v9414_v52, %v12102_v11  ;;  %v10164_v11 = vld [vmem:[#allocation5 + $0xd4] ss:$8 sps:$4 sm:$0xff]   ;;  %7143 = vmatprep.subr.bf16.mxu0 %v10173_v34 }
 0x1f4   :  { %10630 = vpow2.f32 %v8350_v38  ;;  %v10607_v18 = vpop.eup %10606  ;;  %v3195_v13 = vadd.f32 1.0, %v10605_v61  ;;  %v8348_v42 = vmul.f32 -1.442695, %v12330_v30  ;;  %v12337_v0 = vpop.f32.mrf.mxu1  ;;  %v14233_v61 = vld [vmem:[#allocation8_spill] sm:$0xff]  ;;  %7144 = vmatpush1.bf16.msra.mxu0 %v10171_v4  ;;  %7039 = vmatpush2.bf16.msra.mxu1 %v10159_v21 }
 0x1f5   :  { %v3031_v60 = vpop.f32.mrf.mxu0  ;;  %v10609_v20 = vpop.eup %10608  ;;  %v12343_v9 = vmul.f32 %v10607_v18, %v12213_v36  ;;  %10632 = vrcp.f32 %v3197_v46  ;;  %v3348_v38 = vrot.slane %v12340_v44, 6  ;;  %v12368_v46 = vadd.f32 %v9510_v56, %v2879_v8  ;;  %v10177_v56 = vld [vmem:[#allocation5 + $0x160] ss:$8 sps:$4 sm:$0xff]   ;;  %7040 = vmatprep.subr.bf16.mxu1 %v10164_v11 }
 0x1f6   :  { %v10611_v3 = vpop.eup %10610  ;;  %10634 = vrcp.f32 %v3195_v13  ;;  %v3198_v36 = vadd.f32 1.0, %v10609_v20  ;;  %v12355_v16 = vpop.f32.mrf.mxu1  ;;  %v2871_v18 = vadd.f32 %v9408_v1, %v14233_v61  ;;  %v10179_v20 = vld [vmem:[#allocation5 + $0x164] ss:$8 sps:$4 sm:$0xff]   ;;  %v10165_v61 = vld [vmem:[#allocation5 + $0xc0] ss:$8 sps:$4 sm:$0xff]  }
 0x1f7   :  { %v9513_v25 = vpop.f32.mrf.mxu0  ;;  %v10613_v14 = vpop.eup %10612  ;;  %v14182_v12 = vrot.slane %v12343_v9, 6  ;;  %v12350_v26 = vmul.f32 %v10611_v3, %v12221_v15  ;;  %10636 = vpow2.f32 %v8348_v42  ;;  %7145 = vmatprep.subr.bf16.mxu0 %v10179_v20  ;;  %v8351_v21 = vmul.f32 -1.442695, %v12368_v46  ;;  %v10183_v20 = vld [vmem:[#allocation5 + $0x150] ss:$8 sps:$4 sm:$0xff]  }
 0x1f8   :  { %v10615_v31 = vpop.eup %10614  ;;  %v3196_v29 = vadd.f32 1.0, %v10613_v14  ;;  %10638 = vrcp.f32 %v3198_v36  ;;  %v12383_v1 = vadd.f32 %v3031_v60, %v2871_v18  ;;  %v14235_v14 = vld [vmem:[#allocation11_spill] sm:$0xff]  ;;  %v12386_v8 = vpop.f32.mrf.mxu1  ;;  %7146 = vmatpush1.bf16.msra.mxu0 %v10177_v56 }
 0x1f9   :  { %v12357_v53 = vpop.f32.mrf.mxu0  ;;  %v10617_v15 = vpop.eup %10616  ;;  %v12365_v32 = vsel %vm3347_vm5, %v3351_v27, %v14182_v12  ;;  %v3349_v6 = vrot.slane %v12350_v26, 6  ;;  %v12379_v42 = vmul.f32 %v10615_v31, %v12230_v51  ;;  %v2892_v36 = vadd.f32 %v9423_v47, %v14235_v14 }
 0x1fa   :  { %14232 = vst [vmem:[#allocation19_spill] sm:$0xff] %v12365_v32  ;;  %v10619_v17 = vpop.eup %10618  ;;  %v3201_v33 = vadd.f32 1.0, %v10617_v15  ;;  %10640 = vrcp.f32 %v3196_v29  ;;  %v10162_v15 = vld [vmem:[#allocation5 + $0xd0] ss:$8 sps:$4 sm:$0xff]   ;;  %v9420_v29 = vadd.f32 %v12281_v7, %v12272_v58  ;;  %v9426_v47 = vadd.f32 %v12311_v22, %v12304_v63  ;;  %v14236_v63 = vld [vmem:[#allocation9_spill] sm:$0xff] }
 0x1fb   :  { %v10621_v52 = vpop.eup %10620  ;;  %v12376_v13 = vsel %vm3347_vm5, %v3348_v38, %v3349_v6  ;;  %v9514_v34 = vpop.f32.mrf.mxu0  ;;  %v12389_v31 = vmul.f32 %v10619_v17, %v12238_v39  ;;  %v12399_v4 = vadd.f32 %v9513_v25, %v2892_v36  ;;  %v14173_v17 = vrot.slane %v12379_v42, 6  ;;  %7041 = vmatpush2.bf16.msra.mxu1 %v10162_v15  ;;  %v14238_v15 = vld [vmem:[#allocation12_spill] sm:$0xff] }
 0x1fc   :  { %14234 = vst [vmem:[#allocation8_spill] sm:$0xff] %v12376_v13  ;;  %v10623_v62 = vpop.eup %10622  ;;  %v3199_v3 = vadd.f32 1.0, %v10621_v52  ;;  %10642 = vrcp.f32 %v3201_v33  ;;  %v8349_v7 = vmul.f32 -1.442695, %v12383_v1  ;;  %v2884_v22 = vadd.f32 %v9417_v54, %v14236_v63  ;;  %v12408_v25 = vpop.f32.mrf.mxu1  ;;  %7042 = vmatprep.subr.bf16.mxu1 %v10167_v35  ;;  %v10185_v54 = vld [vmem:[#allocation5 + $0x154] ss:$8 sps:$4 sm:$0xff]  }
 0x1fd   :  { %v10625_v51 = vpop.eup %10624  ;;  %v12392_v43 = vmul.f32 %v10623_v62, %v12243_v50  ;;  %v3047_v52 = vpop.f32.mrf.mxu0  ;;  %v14175_v62 = vrot.slane %v12389_v31, 6  ;;  %v8354_v36 = vmul.f32 -1.442695, %v12399_v4  ;;  %v14240_v35 = vld [vmem:[#allocation10_spill] sm:$0xff]  ;;  %7147 = vmatprep.subr.bf16.mxu0 %v10185_v54  ;;  %v12511_v59 = vsel %vm3347_vm5, %v3349_v6, 0.0 }
 0x1fe   :  { %v10627_v60 = vpop.eup %10626  ;;  %v3202_v33 = vadd.f32 1.0, %v10625_v51  ;;  %10644 = vrcp.f32 %v3199_v3  ;;  %v10170_v3 = vld [vmem:[#allocation5 + $0xb4] ss:$8 sps:$4 sm:$0xff]   ;;  %v2895_v51 = vadd.f32 %v9426_v47, %v14238_v15  ;;  %v2887_v63 = vadd.f32 %v9420_v29, %v14240_v35  ;;  %v12434_v47 = vpop.f32.mrf.mxu1  ;;  %7148 = vmatpush1.bf16.msra.mxu0 %v10183_v20 }
 0x1ff   :  { %v10629_v39 = vpop.eup %10628  ;;  %v14172_v50 = vrot.slane %v12392_v43, 6  ;;  %v12404_v11 = vmul.f32 %v10627_v60, %v12253_v37  ;;  %v9517_v15 = vpop.f32.mrf.mxu0  ;;  %7043 = vmatpush2.bf16.msra.mxu1 %v10165_v61  ;;  %v4767_v61 = vld [vmem:[#allocation3] sm:$0xf] }
 0x200   :  { %v3200_v58 = vadd.f32 1.0, %v10629_v39  ;;  %10646 = vrcp.f32 %v3202_v33  ;;  %v12429_v33 = vadd.f32 %v12357_v53, %v2884_v22  ;;  %v9429_v53 = vadd.f32 %v12323_v55, %v12318_v41  ;;  %7044 = vmatprep.subr.bf16.mxu1 %v10170_v3  ;;  %v10176_v22 = vld [vmem:[#allocation5 + $0xa4] ss:$8 sps:$4 sm:$0xff]   ;;  %v4768_v41 = vld [vmem:[#allocation3 + $0x4] sm:$0xf] }
 0x201   :  { %v10631_v18 = vpop.eup %10630  ;;  %v12416_v37 = vsel %vm3347_vm5, %v14173_v17, %v14172_v50  ;;  %v14174_v56 = vrot.slane %v12404_v11, 6  ;;  %v12432_v50 = vadd.f32 %v9514_v34, %v2895_v51  ;;  %v10168_v17 = vld [vmem:[#allocation5 + $0xb0] ss:$8 sps:$4 sm:$0xff]   ;;  %4785 = vst [vmem:[#allocation4] sm:$0xf] %v4767_v61  ;;  %v14241_v51 = vld [vmem:[#allocation13_spill] sm:$0xff] }
 0x202   :  { %14237 = vst [vmem:[#allocation11_spill] sm:$0xff] %v12416_v37  ;;  %10648 = vrcp.f32 %v3200_v58  ;;  %v3205_v14 = vadd.f32 1.0, %v10631_v18  ;;  %v10633_v60 = vpop.eup %10632  ;;  %v10191_v18 = vld [vmem:[#allocation5 + $0x144] ss:$8 sps:$4 sm:$0xff]   ;;  %v8352_v29 = vmul.f32 -1.442695, %v12429_v33 }
 0x203   :  { %v12426_v39 = vsel %vm3347_vm5, %v14175_v62, %v14174_v56  ;;  %10650 = vpow2.f32 %v8351_v21  ;;  %v10635_v58 = vpop.eup %10634  ;;  %v10189_v56 = vld [vmem:[#allocation5 + $0x140] ss:$8 sps:$4 sm:$0xff]   ;;  %v12439_v21 = vadd.f32 %v3047_v52, %v2887_v63  ;;  %7149 = vmatprep.subr.bf16.mxu0 %v10191_v18  ;;  %v12442_v34 = vmul.f32 %v10633_v60, %v12259_v48  ;;  %v12453_v48 = vpop.f32.mrf.mxu1  ;;  %7045 = vmatpush2.bf16.msra.mxu1 %v10168_v17  ;;  %v10182_v60 = vld [vmem:[#allocation5 + $0x94] ss:$8 sps:$4 sm:$0xff]   ;;  %v10195_v18 = vld [vmem:[#allocation5 + $0x130] ss:$8 sps:$4 sm:$0xff]  }
 0x204   :  { %14239 = vst [vmem:[#allocation9_spill] sm:$0xff] %v12426_v39  ;;  %10652 = vrcp.f32 %v3205_v14  ;;  %v10637_v62 = vpop.eup %10636  ;;  %v9435_v14 = vadd.f32 %v12386_v8, %v12355_v16  ;;  %v12447_v55 = vmul.f32 %v10635_v58, %v12270_v28  ;;  %v8355_v52 = vmul.f32 -1.442695, %v12432_v50  ;;  %v10174_v3 = vld [vmem:[#allocation5 + $0xa0] ss:$8 sps:$4 sm:$0xff]   ;;  %7150 = vmatpush1.bf16.msra.mxu0 %v10189_v56  ;;  %7046 = vmatprep.subr.bf16.mxu1 %v10176_v22  ;;  %v14242_v58 = vld [vmem:[#allocation15_spill] sm:$0xff] }
 0x205   :  { %10654 = vpow2.f32 %v8349_v7  ;;  %v3203_v54 = vadd.f32 1.0, %v10637_v62  ;;  %v10639_v20 = vpop.eup %10638  ;;  %v3060_v62 = vpop.f32.mrf.mxu0  ;;  %4786 = vst [vmem:[#allocation4 + $0x30] sm:$0xf] %v4768_v41  ;;  %v8353_v8 = vmul.f32 -1.442695, %v12439_v21  ;;  %v2900_v28 = vadd.f32 %v9429_v53, %v14241_v51 }
 0x206   :  { %10656 = vpow2.f32 %v8354_v36  ;;  %v12450_v7 = vmul.f32 %v10639_v20, %v12276_v5  ;;  %v4804_v36 = vld [vmem:[#allocation3 + $0x18] sm:$0xf]  ;;  %v14176_v35 = vrot.slane %v12442_v34, 6  ;;  %v4805_v56 = vld [vmem:[#allocation3 + $0x1c] sm:$0xf]  ;;  %v14178_v61 = vrot.slane %v12447_v55, 6  ;;  %v12474_v41 = vpop.f32.mrf.mxu1 }
 0x207   :  { %10658 = vpow2.f32 %v8352_v29  ;;  %v10641_v16 = vpop.eup %10640  ;;  %4822 = vst [vmem:[#allocation4 + $0x4] sm:$0xf] %v4804_v36  ;;  %v2908_v29 = vadd.f32 %v9435_v14, %v14242_v58  ;;  %4823 = vst [vmem:[#allocation4 + $0x34] sm:$0xf] %v4805_v56  ;;  %v10197_v53 = vld [vmem:[#allocation5 + $0x134] ss:$8 sps:$4 sm:$0xff]   ;;  %7047 = vmatpush2.bf16.msra.mxu1 %v10174_v3 }
 0x208   :  { %10660 = vrcp.f32 %v3203_v54  ;;  %v14181_v63 = vrot.slane %v12450_v7, 6  ;;  %v12460_v17 = vmul.f32 %v10641_v16, %v12286_v57  ;;  %v12463_v54 = vadd.f32 %v3060_v62, %v2900_v28  ;;  %v10200_v22 = vld [vmem:[#allocation5 + $0x124] ss:$8 sps:$4 sm:$0xff]   ;;  %v10180_v14 = vld [vmem:[#allocation5 + $0x90] ss:$8 sps:$4 sm:$0xff]   ;;  %7048 = vmatprep.subr.bf16.mxu1 %v10182_v60  ;;  %7151 = vmatprep.subr.bf16.mxu0 %v10197_v53  ;;  %v12506_v53 = vpop.f32.mrf.mxu1 }
 0x209   :  { %v10643_v5 = vpop.eup %10642  ;;  %10662 = vpow2.f32 %v8355_v52  ;;  %v12479_v36 = vadd.f32 %v9517_v15, %v2908_v29  ;;  %7152 = vmatpush1.bf16.msra.mxu0 %v10195_v18  ;;  %v10198_v3 = vld [vmem:[#allocation5 + $0x120] ss:$8 sps:$4 sm:$0xff]   ;;  %v4769_v56 = vld [vmem:[#allocation3 + $0x8] sm:$0xf]  ;;  %v4770_v60 = vld [vmem:[#allocation3 + $0xc] sm:$0xf] }
 0x20a   :  { %10664 = vpow2.f32 %v8353_v8  ;;  %v12471_v57 = vsel %vm3347_vm5, %v14176_v35, %v14181_v63  ;;  %v14177_v20 = vrot.slane %v12460_v17, 6  ;;  %v12477_v62 = vmul.f32 %v10643_v5, %v12290_v2  ;;  %v10188_v8 = vld [vmem:[#allocation5 + $0x84] ss:$8 sps:$4 sm:$0xff]   ;;  %7153 = vmatprep.subr.bf16.mxu0 %v10200_v22  ;;  %4787 = vst [vmem:[#allocation4 + $0x60] sm:$0xf] %v4769_v56 }
 0x20b   :  { %v10645_v52 = vpop.eup %10644  ;;  %v8356_v16 = vmul.f32 -1.442695, %v12463_v54  ;;  %v8358_v5 = vmul.f32 -1.442695, %v12479_v36  ;;  %v12496_v29 = vsel %vm3347_vm5, 0.0, %v3351_v27  ;;  %v12501_v18 = vsel %vm3347_vm5, 0.0, %v3348_v38  ;;  %7049 = vmatpush2.bf16.msra.mxu1 %v10180_v14 }
 0x20c   :  { %14243 = vst [vmem:[#allocation12_spill] sm:$0xff] %v12477_v62  ;;  %v12487_v28 = vsel %vm3347_vm5, %v14178_v61, %v14177_v20  ;;  %14244 = vst [vmem:[#allocation10_spill] sm:$0xff] %v12501_v18  ;;  %v10186_v22 = vld [vmem:[#allocation5 + $0x80] ss:$8 sps:$4 sm:$0xff]   ;;  %v14179_v27 = vrot.slane %v12477_v62, 6  ;;  %v3735_v38 = vrot.slane %v12376_v13, 3  ;;  %7050 = vmatprep.subr.bf16.mxu1 %v10188_v8  ;;  %v12531_v61 = vpop.f32.mrf.mxu1 }
 0x20d   :  { %v10647_v51 = vpop.eup %10646  ;;  %10666 = vpow2.f32 %v8356_v16  ;;  %4788 = vst [vmem:[#allocation4 + $0x90] sm:$0xf] %v4770_v60  ;;  %v10192_v56 = vld [vmem:[#allocation4] ss:$48 sps:$4 sm:$0xff]   ;;  %7154 = vmatpush1.bf16.msra.mxu0 %v10198_v3  ;;  %v3734_v35 = vrot.slane %v12501_v18, 3 }
 0x20e   :  { %v12490_v15 = vmul.f32 %v10647_v51, %v12306_v40  ;;  %v12504_v40 = vmul.f32 %v10645_v52, %v12302_v49  ;;  %v4806_v49 = vld [vmem:[#allocation3 + $0x20] sm:$0xf]  ;;  %10668 = vpow2.f32 %v8358_v5  ;;  %v10194_v60 = vld [vmem:[#allocation4 + $0x4] ss:$48 sps:$4 sm:$0xff]   ;;  %v9445_v62 = vpop.f32.mrf.mxu1 }
 0x20f   :  { %v10649_v2 = vpop.eup %10648  ;;  %4824 = vst [vmem:[#allocation4 + $0x64] sm:$0xf] %v4806_v49  ;;  %v4807_v20 = vld [vmem:[#allocation3 + $0x24] sm:$0xf]  ;;  %v12529_v49 = vpop.f32.mrf.mxu0  ;;  %7051 = vmatpush2.bf16.msra.mxu1 %v10186_v22  ;;  %7052 = vmatprep.mubr.bf16.mxu1 %v10194_v60  ;;  %v9438_v22 = vadd.f32 %v12434_v47, %v12408_v25  ;;  %v10209_v60 = vld [vmem:[#allocation5 + $0x104] ss:$8 sps:$4 sm:$0xff]   ;;  %v9432_v47 = vadd.f32 %v12337_v0, %v12332_v23 }
 0x210   :  { %v10651_v58 = vpop.eup %10650  ;;  %v14180_v44 = vrot.slane %v12490_v15, 6  ;;  %v12517_v51 = vmul.f32 %v10649_v2, %v12316_v10  ;;  %v10204_v10 = vld [vmem:[#allocation5 + $0x110] ss:$8 sps:$4 sm:$0xff]   ;;  %v14184_v5 = vrot.slane %v12504_v40, 6  ;;  %4825 = vst [vmem:[#allocation4 + $0x94] sm:$0xf] %v4807_v20  ;;  %v3736_v20 = vsel %vm3733_vm6, %v3734_v35, %v3735_v38 }
 0x211   :  { %v10653_v16 = vpop.eup %10652  ;;  %v3206_v14 = vadd.f32 1.0, %v10651_v58  ;;  %v3063_v12 = vpop.f32.mrf.mxu0  ;;  %v3621_v23 = vrot.slane %v12501_v18, 2  ;;  %v3508_v0 = vrot.slane %v12501_v18, 1 }
 0x212   :  { %v10655_v52 = vpop.eup %10654  ;;  %v12524_v6 = vsel %vm3347_vm5, %v14179_v27, %v14180_v44  ;;  %v14183_v58 = vrot.slane %v12517_v51, 6  ;;  %v10206_v27 = vld [vmem:[#allocation5 + $0x114] ss:$8 sps:$4 sm:$0xff]   ;;  %v12548_v44 = vmul.f32 %v10653_v16, %v12320_v24  ;;  %7053 = vmatmul.mubr.bf16.vlgmr.msra.gmra.mxu1 %v10192_v56  ;;  %v4808_v24 = vld [vmem:[#allocation3 + $0x28] sm:$0xf] }
 0x213   :  { %v10657_v26 = vpop.eup %10656  ;;  %v3204_v8 = vadd.f32 1.0, %v10655_v52  ;;  %10670 = vrcp.f32 %v3206_v14  ;;  %7155 = vmatprep.subr.bf16.mxu0 %v10206_v27  ;;  %v14245_v27 = vrot.slane %v12511_v59, 3  ;;  %v4809_v16 = vld [vmem:[#allocation3 + $0x2c] sm:$0xf]  ;;  %4826 = vst [vmem:[#allocation4 + $0xc4] sm:$0xf] %v4808_v24 }
 0x214   :  { %v10659_v2 = vpop.eup %10658  ;;  %v3209_v3 = vadd.f32 1.0, %v10657_v26  ;;  %v12540_v14 = vsel %vm3347_vm5, %v14184_v5, %v14183_v58  ;;  %v4771_v26 = vld [vmem:[#allocation3 + $0x10] sm:$0xf]  ;;  %7156 = vmatpush1.bf16.msra.mxu0 %v10204_v10  ;;  %v4772_v5 = vld [vmem:[#allocation3 + $0x14] sm:$0xf]  ;;  %v14247_v24 = vld [vmem:[#allocation14_spill] sm:$0xff] }
 0x215   :  { %10672 = vrcp.f32 %v3204_v8  ;;  %v3207_v52 = vadd.f32 1.0, %v10659_v2  ;;  %v10661_v63 = vpop.eup %10660  ;;  %v10207_v58 = vld [vmem:[#allocation5 + $0x100] ss:$8 sps:$4 sm:$0xff]   ;;  %4789 = vst [vmem:[#allocation4 + $0xc0] sm:$0xf] %v4771_v26  ;;  %v3738_v2 = vsel %vm3733_vm6, %v3735_v38, %v14245_v27  ;;  %7157 = vmatprep.subr.bf16.mxu0 %v10209_v60  ;;  %v3511_v26 = vrot.slane %v12511_v59, 1 }
 0x216   :  { %v10663_v8 = vpop.eup %10662  ;;  %10674 = vrcp.f32 %v3209_v3  ;;  %4790 = vst [vmem:[#allocation4 + $0xf0] sm:$0xf] %v4772_v5  ;;  %v9556_v10 = vpack.i.bf16 %v3738_v2, %v3736_v20  ;;  %v3509_v3 = vrot.slane %v12376_v13, 1  ;;  %4827 = vst [vmem:[#allocation4 + $0xf4] sm:$0xf] %v4809_v16  ;;  %v14246_v38 = vld [vmem:[#allocation16_spill] sm:$0xff]  ;;  %v12562_v60 = vmul.f32 %v10661_v63, %v12330_v30  ;;  %v9521_v63 = vpop.f32.mrf.mxu0 }
 0x217   :  { %v10665_v25 = vpop.eup %10664  ;;  %10676 = vrcp.f32 %v3207_v52  ;;  %v3210_v35 = vadd.f32 1.0, %v10663_v8  ;;  %v2911_v52 = vadd.f32 %v9438_v22, %v14246_v38  ;;  %v10215_v8 = vld [vmem:[#allocation5 + $0x1f4] ss:$8 sps:$4 sm:$0xff]   ;;  %v9441_v20 = vadd.f32 %v12474_v41, %v12453_v48  ;;  %v10201_v2 = vld [vmem:[#allocation4 + $0x60] ss:$48 sps:$4 sm:$0xff]   ;;  %v9446_v16 = vpop.f32.mrf.mxu1 }
 0x218   :  { %v3208_v56 = vadd.f32 1.0, %v10665_v25  ;;  %9557 = vrot.lane.b32.xlu1 %v9556_v10, %s10978_s2  ;;  %7158 = vmatpush1.bf16.msra.mxu0 %v10207_v58  ;;  %v3512_v22 = vsel %vm196_vm1, %v3509_v3, %v3511_v26  ;;  %v2903_v30 = vadd.f32 %v9432_v47, %v14247_v24  ;;  %v10213_v38 = vld [vmem:[#allocation5 + $0x1f0] ss:$8 sps:$4 sm:$0xff]   ;;  %v3622_v10 = vrot.slane %v12376_v13, 2  ;;  %v10218_v5 = vld [vmem:[#allocation5 + $0x1e4] ss:$8 sps:$4 sm:$0xff]   ;;  %v3076_v13 = vpop.f32.mrf.mxu0 }
 0x219   :  { %10678 = vrcp.f32 %v3210_v35  ;;  %v3510_v35 = vsel %vm196_vm1, %v3508_v0, %v3509_v3  ;;  %v12570_v27 = vadd.f32 %v12529_v49, %v2911_v52  ;;  %7159 = vmatprep.subr.bf16.mxu0 %v10215_v8  ;;  %v3624_v58 = vrot.slane %v12511_v59, 2  ;;  %v10216_v52 = vld [vmem:[#allocation5 + $0x1e0] ss:$8 sps:$4 sm:$0xff]  }
 0x21a   :  { %10680 = vrcp.f32 %v3208_v56  ;;  %v10667_v25 = vpop.eup %10666  ;;  %v10203_v56 = vld [vmem:[#allocation4 + $0x64] ss:$48 sps:$4 sm:$0xff]   ;;  %v9546_v41 = vpack.i.bf16 %v3512_v22, %v3510_v35  ;;  %v12576_v3 = vadd.f32 %v3063_v12, %v2903_v30  ;;  %v3604_v47 = vsel %vm196_vm1, %v3511_v26, 0.0  ;;  %v4773_v24 = vld [vmem:[#allocation3 + $0x18] sm:$0xf] }
 0x21b   :  { %v3211_v48 = vadd.f32 1.0, %v10667_v25  ;;  %v8359_v0 = vmul.f32 -1.442695, %v12570_v27  ;;  %7062 = vmatprep.mubr.bf16.mxu1 %v10203_v56  ;;  %v10669_v18 = vpop.eup %10668  ;;  %v3623_v8 = vsel %vm3620_vm7, %v3621_v23, %v3622_v10  ;;  %v3625_v25 = vsel %vm3620_vm7, %v3622_v10, %v3624_v58  ;;  %v4774_v22 = vld [vmem:[#allocation3 + $0x1c] sm:$0xf] }
 0x21c   :  { %9547 = vrot.lane.b32.xlu0 %v9546_v41, %s10979_s3  ;;  %v9447_v35 = vadd.f32 %v9446_v16, %v9445_v62  ;;  %7063 = vmatmul.mubr.bf16.gmra.mxu1 %v10201_v2  ;;  %4791 = vst [vmem:[#allocation4 + $0x120] sm:$0xf] %v4773_v24  ;;  %v4810_v12 = vld [vmem:[#allocation3 + $0x30] sm:$0xf]  ;;  %v4811_v30 = vld [vmem:[#allocation3 + $0x34] sm:$0xf]  ;;  %v9551_v56 = vpack.i.bf16 %v3625_v25, %v3623_v8 }
 0x21d   :  { %v3213_v49 = vadd.f32 1.0, %v10669_v18  ;;  %10682 = vpow2.f32 %v8359_v0  ;;  %v8357_v26 = vmul.f32 -1.442695, %v12576_v3  ;;  %7160 = vmatpush2.bf16.msra.mxu0 %v10213_v38  ;;  %4792 = vst [vmem:[#allocation4 + $0x150] sm:$0xf] %v4774_v22  ;;  %v14248_v23 = vrot.slane %v12365_v32, 1 }
 0x21e   :  { %4828 = vst [vmem:[#allocation4 + $0x124] sm:$0xf] %v4810_v12  ;;  %4829 = vst [vmem:[#allocation4 + $0x154] sm:$0xf] %v4811_v30  ;;  %v14249_v62 = vrot.slane %v12496_v29, 1  ;;  %v2924_v16 = vadd.f32 %v9447_v35, %v12183_v19  ;;  %v14250_v10 = vld [vmem:[#allocation17_spill] sm:$0xff]  ;;  %7161 = vmatprep.subr.bf16.mxu0 %v10218_v5  ;;  %10684 = vrcp.f32 %v3211_v48  ;;  %v9448_v12 = vpop.f32.mrf.mxu1 }
 0x21f   :  { %v2916_v18 = vadd.f32 %v9441_v20, %v14250_v10  ;;  %v3627_v0 = vrot.slane %v12365_v32, 2  ;;  %v10212_v24 = vld [vmem:[#allocation4 + $0xc4] ss:$48 sps:$4 sm:$0xff]   ;;  %v3717_v22 = vsel %vm3620_vm7, %v3624_v58, 0.0  ;;  %10686 = vpow2.f32 %v8357_v26  ;;  %v10210_v20 = vld [vmem:[#allocation4 + $0xc0] ss:$48 sps:$4 sm:$0xff]  }
 0x220   :  { %v10671_v41 = vpop.eup %10670  ;;  %v3515_v2 = vsel %vm196_vm1, %v14249_v62, %v14248_v23  ;;  %v10224_v30 = vld [vmem:[#allocation5 + $0x1d4] ss:$8 sps:$4 sm:$0xff]   ;;  %9552 = vrot.lane.b32.xlu0 %v9551_v56, %s10980_s25  ;;  %v12600_v19 = vadd.f32 %v9521_v63, %v2924_v16  ;;  %7072 = vmatprep.mubr.bf16.mxu1 %v10212_v24  ;;  %v14190_v58 = vrot.slane %v12562_v60, 6  ;;  %10688 = vrcp.f32 %v3213_v49  ;;  %v10222_v26 = vld [vmem:[#allocation5 + $0x1d0] ss:$8 sps:$4 sm:$0xff]  }
 0x221   :  { %v12593_v38 = vmul.f32 %v10671_v41, %v12368_v46  ;;  %v9561_v25 = vpack.i.bf16 %v3515_v2, %v3604_v47  ;;  %v12602_v5 = vadd.f32 %v3076_v13, %v2916_v18  ;;  %v10225_v46 = vld [vmem:[#allocation5 + $0x270] ss:$8 sps:$4 sm:$0xff]   ;;  %v10227_v48 = vld [vmem:[#allocation5 + $0x274] ss:$8 sps:$4 sm:$0xff]   ;;  %7162 = vmatpush2.bf16.msra.mxu0 %v10216_v52  ;;  %v14251_v41 = vrot.slane %v12496_v29, 2 }
 0x222   :  { %v10673_v8 = vpop.eup %10672  ;;  %v8362_v56 = vmul.f32 -1.442695, %v12600_v19  ;;  %v14252_v2 = vrot.slane %v12511_v59, 3  ;;  %7163 = vmatprep.subr.bf16.mxu0 %v10224_v30  ;;  %7266 = vmatprep.subr.bf16.mxu1 %v10227_v48  ;;  %v10230_v16 = vld [vmem:[#allocation5 + $0x1c4] ss:$8 sps:$4 sm:$0xff]   ;;  %v14253_v52 = vrot.slane %v12548_v44, 6 }
 0x223   :  { %v12597_v23 = vmul.f32 %v10673_v8, %v12383_v1  ;;  %v10675_v47 = vpop.eup %10674  ;;  %v14194_v35 = vrot.slane %v12593_v38, 6  ;;  %9562 = vrot.lane.b32.xlu1 %v9561_v25, %s10979_s3  ;;  %v3740_v1 = vrot.slane %v12365_v32, 3  ;;  %v3628_v62 = vsel %vm3620_vm7, %v14251_v41, %v3627_v0  ;;  %v9449_v25 = vpop.f32.mrf.mxu1  ;;  %7267 = vmatpush1.bf16.msra.mxu1 %v10225_v46 }
 0x224   :  { %v10677_v63 = vpop.eup %10676  ;;  %v3830_v49 = vsel %vm3733_vm6, %v14252_v2, 0.0  ;;  %v12626_v18 = vmul.f32 %v10675_v47, %v12399_v4  ;;  %v8360_v24 = vmul.f32 -1.442695, %v12602_v5  ;;  %v9566_v8 = vpack.i.bf16 %v3628_v62, %v3717_v22  ;;  %7073 = vmatmul.mubr.bf16.gmra.mxu1 %v10210_v20 }
 0x225   :  { %v14191_v13 = vrot.slane %v12597_v23, 6  ;;  %v12623_v10 = vsel %vm3347_vm5, %v14253_v52, %v14194_v35  ;;  %v12637_v48 = vmul.f32 %v10677_v63, %v12429_v33  ;;  %v14254_v4 = vrot.slane %v12343_v9, 6  ;;  %v9522_v63 = vpop.f32.mrf.mxu0  ;;  %v10221_v62 = vld [vmem:[#allocation4 + $0x124] ss:$48 sps:$4 sm:$0xff]   ;;  %7164 = vmatpush2.bf16.msra.mxu0 %v10222_v26  ;;  %v10228_v9 = vld [vmem:[#allocation5 + $0x1c0] ss:$8 sps:$4 sm:$0xff]  }
 0x226   :  { %v10679_v41 = vpop.eup %10678  ;;  %v9444_v46 = vadd.f32 %v12531_v61, %v12506_v53  ;;  %9567 = vrot.lane.b32.xlu0 %v9566_v8, %s10980_s25  ;;  %v14255_v33 = vrot.slane %v12496_v29, 3  ;;  %10690 = vpow2.f32 %v8362_v56  ;;  %7165 = vmatprep.subr.bf16.mxu0 %v10230_v16  ;;  %v14189_v61 = vrot.slane %v12626_v18, 6  ;;  %v4775_v26 = vld [vmem:[#allocation3 + $0x20] sm:$0xf]  ;;  %v4812_v16 = vld [vmem:[#allocation3 + $0x38] sm:$0xf] }
 0x227   :  { %v12634_v30 = vsel %vm3347_vm5, %v14190_v58, %v14191_v13  ;;  %v10681_v2 = vpop.eup %10680  ;;  %v12642_v47 = vsel %vm3347_vm5, %v14254_v4, 0.0  ;;  %v12645_v22 = vmul.f32 %v10679_v41, %v12432_v50  ;;  %v9450_v41 = vadd.f32 %v9449_v25, %v9448_v12  ;;  %7082 = vmatprep.mubr.bf16.mxu1 %v10221_v62  ;;  %v10219_v4 = vld [vmem:[#allocation4 + $0x120] ss:$48 sps:$4 sm:$0xff]   ;;  %v3079_v56 = vpop.f32.mrf.mxu0  ;;  %4793 = vst [vmem:[#allocation4 + $0x180] sm:$0xf] %v4775_v26 }
 0x228   :  { %v3741_v20 = vsel %vm3733_vm6, %v14255_v33, %v3740_v1  ;;  %v12656_v52 = vmul.f32 %v10681_v2, %v12439_v21  ;;  %10692 = vpow2.f32 %v8360_v24  ;;  %v14192_v53 = vrot.slane %v12637_v48, 6  ;;  %4830 = vst [vmem:[#allocation4 + $0x184] sm:$0xf] %v4812_v16 }
 0x229   :  { %v9571_v50 = vpack.i.bf16 %v3741_v20, %v3830_v49  ;;  %v14188_v8 = vrot.slane %v12645_v22, 6  ;;  %v2927_v21 = vadd.f32 %v9450_v41, %v12195_v45  ;;  %v3516_v12 = vrot.slane %v12642_v47, 1  ;;  %7166 = vmatpush2.bf16.msra.mxu0 %v10228_v9  ;;  %v4776_v49 = vld [vmem:[#allocation3 + $0x24] sm:$0xf]  ;;  %v10234_v41 = vld [vmem:[#allocation5 + $0x260] ss:$8 sps:$4 sm:$0xff]  }
 0x22a   :  { %v14193_v33 = vrot.slane %v12656_v52, 6  ;;  %v10683_v24 = vpop.eup %10682  ;;  %v14256_v25 = vrot.slane %v12379_v42, 6  ;;  %v14258_v45 = vld [vmem:[#allocation18_spill] sm:$0xff]  ;;  %v3629_v9 = vrot.slane %v12642_v47, 2  ;;  %4794 = vst [vmem:[#allocation4 + $0x1b0] sm:$0xf] %v4776_v49 }
 0x22b   :  { %9572 = vrot.lane.b32.xlu1 %v9571_v50, %s10978_s2  ;;  %v12675_v20 = vsel %vm3347_vm5, %v14189_v61, %v14188_v8  ;;  %v2919_v62 = vadd.f32 %v9444_v46, %v14258_v45  ;;  %v4813_v50 = vld [vmem:[#allocation3 + $0x3c] sm:$0xf]  ;;  %v3214_v26 = vadd.f32 1.0, %v10683_v24  ;;  %v10237_v61 = vld [vmem:[#allocation5 + $0x1b0] ss:$8 sps:$4 sm:$0xff]   ;;  %v10685_v46 = vpop.eup %10684  ;;  %v14259_v45 = vrot.slane %v12389_v31, 6 }
 0x22c   :  { %v12668_v2 = vsel %vm3347_vm5, 0.0, %v14256_v25  ;;  %14257 = vst [vmem:[#allocation13_spill] sm:$0xff] %v12675_v20  ;;  %v12684_v42 = vsel %vm3347_vm5, %v14192_v53, %v14193_v33  ;;  %v12686_v25 = vadd.f32 %v9522_v63, %v2927_v21  ;;  %4831 = vst [vmem:[#allocation4 + $0x1b4] sm:$0xf] %v4813_v50  ;;  %v10236_v8 = vld [vmem:[#allocation5 + $0x264] ss:$8 sps:$4 sm:$0xff]   ;;  %7083 = vmatmul.mubr.bf16.gmra.mxu1 %v10219_v4  ;;  %v10687_v21 = vpop.eup %10686 }
 0x22d   :  { %v12691_v49 = vsel %vm3347_vm5, 0.0, %v14259_v45  ;;  %v12693_v16 = vadd.f32 %v3079_v56, %v2919_v62  ;;  %v14261_v58 = vrot.slane %v12365_v32, 1  ;;  %v3605_v53 = vsel %vm196_vm1, %v3516_v12, 0.0  ;;  %v10239_v63 = vld [vmem:[#allocation5 + $0x1b4] ss:$8 sps:$4 sm:$0xff]   ;;  %7268 = vmatprep.subr.bf16.mxu1 %v10236_v8  ;;  %v10689_v45 = vpop.eup %10688 }
 0x22e   :  { %14260 = vst [vmem:[#allocation15_spill] sm:$0xff] %v12691_v49  ;;  %10694 = vrcp.f32 %v3214_v26  ;;  %v8363_v50 = vmul.f32 -1.442695, %v12686_v25  ;;  %v14262_v62 = vrot.slane %v12404_v11, 6  ;;  %v3630_v4 = vsel %vm3620_vm7, %v3627_v0, %v3629_v9  ;;  %7167 = vmatprep.subr.bf16.mxu0 %v10239_v63  ;;  %7269 = vmatpush1.bf16.msra.mxu1 %v10234_v41  ;;  %v10242_v8 = vld [vmem:[#allocation5 + $0x254] ss:$8 sps:$4 sm:$0xff]  }
 0x22f   :  { %v3517_v13 = vsel %vm196_vm1, %v14261_v58, %v3516_v12  ;;  %v3212_v58 = vadd.f32 1.0, %v10687_v21  ;;  %v10240_v12 = vld [vmem:[#allocation5 + $0x250] ss:$8 sps:$4 sm:$0xff]   ;;  %v8361_v11 = vmul.f32 -1.442695, %v12693_v16  ;;  %7168 = vmatpush2.bf16.msra.mxu0 %v10237_v61  ;;  %v3718_v21 = vsel %vm3620_vm7, %v3629_v9, 0.0  ;;  %7270 = vmatprep.subr.bf16.mxu1 %v10242_v8 }
 0x230   :  { %v9576_v31 = vpack.i.bf16 %v3605_v53, %v3517_v13  ;;  %v12705_v33 = vsel %vm3347_vm5, %v14262_v62, 0.0  ;;  %v3518_v13 = vrot.slane %v12691_v49, 1  ;;  %v12713_v53 = vmul.f32 %v10685_v46, %v12463_v54  ;;  %v10243_v63 = vld [vmem:[#allocation5 + $0x1a0] ss:$8 sps:$4 sm:$0xff]   ;;  %v10245_v46 = vld [vmem:[#allocation5 + $0x1a4] ss:$8 sps:$4 sm:$0xff]  }
 0x231   :  { %10696 = vrcp.f32 %v3212_v58  ;;  %v3742_v0 = vrot.slane %v12642_v47, 3  ;;  %v3519_v41 = vrot.slane %v12426_v39, 1  ;;  %v3631_v62 = vrot.slane %v12691_v49, 2  ;;  %7169 = vmatprep.subr.bf16.mxu0 %v10245_v46  ;;  %v10249_v46 = vld [vmem:[#allocation5 + $0x240] ss:$8 sps:$4 sm:$0xff]  }
 0x232   :  { %9577 = vrot.lane.b32.xlu0 %v9576_v31, %s10979_s3  ;;  %10698 = vpow2.f32 %v8363_v50  ;;  %v9581_v35 = vpack.i.bf16 %v3718_v21, %v3630_v4  ;;  %v3521_v54 = vrot.slane %v12705_v33, 1  ;;  %v3744_v31 = vrot.slane %v12691_v49, 3  ;;  %7271 = vmatpush1.bf16.msra.mxu1 %v10240_v12  ;;  %v4777_v12 = vld [vmem:[#allocation3 + $0x28] sm:$0xf]  ;;  %v4814_v4 = vld [vmem:[#allocation3 + $0x40] sm:$0xf] }
 0x233   :  { %v14263_v61 = vrot.slane %v12392_v43, 6  ;;  %v14264_v9 = vrot.slane %v12450_v7, 6  ;;  %v12734_v56 = vmul.f32 %v10689_v45, %v12479_v36  ;;  %v10691_v50 = vpop.eup %10690  ;;  %10700 = vpow2.f32 %v8361_v11  ;;  %v10231_v7 = vld [vmem:[#allocation4 + $0x180] ss:$48 sps:$4 sm:$0xff]   ;;  %v10233_v21 = vld [vmem:[#allocation4 + $0x184] ss:$48 sps:$4 sm:$0xff]   ;;  %7170 = vmatpush2.bf16.msra.mxu0 %v10243_v63 }
 0x234   :  { %9582 = vrot.lane.b32.xlu1 %v9581_v35, %s10980_s25  ;;  %v3743_v43 = vsel %vm3733_vm6, %v3740_v1, %v3742_v0  ;;  %v3831_v8 = vsel %vm3733_vm6, %v3742_v0, 0.0  ;;  %v3520_v36 = vsel %vm196_vm1, %v3518_v13, %v3519_v41  ;;  %v3522_v45 = vsel %vm196_vm1, %v3519_v41, %v3521_v54  ;;  %v4778_v11 = vld [vmem:[#allocation3 + $0x2c] sm:$0xf]  ;;  %7092 = vmatprep.mubr.bf16.mxu1 %v10233_v21  ;;  %v4815_v0 = vld [vmem:[#allocation3 + $0x44] sm:$0xf] }
 0x235   :  { %v12726_v58 = vsel %vm3347_vm5, %v14263_v61, 0.0  ;;  %v12731_v26 = vsel %vm3347_vm5, %v14264_v9, 0.0  ;;  %v10693_v61 = vpop.eup %10692  ;;  %v9586_v9 = vpack.i.bf16 %v3831_v8, %v3743_v43  ;;  %v9591_v35 = vpack.i.bf16 %v3522_v45, %v3520_v36  ;;  %4795 = vst [vmem:[#allocation4 + $0x1e0] sm:$0xf] %v4777_v12  ;;  %4796 = vst [vmem:[#allocation4 + $0x210] sm:$0xf] %v4778_v11  ;;  %7093 = vmatmul.mubr.bf16.gmra.mxu1 %v10231_v7 }
 0x236   :  { %v3632_v24 = vrot.slane %v12426_v39, 2  ;;  %v3634_v1 = vrot.slane %v12705_v33, 2  ;;  %4832 = vst [vmem:[#allocation4 + $0x1e4] sm:$0xf] %v4814_v4  ;;  %v3217_v13 = vadd.f32 1.0, %v10691_v50  ;;  %v3745_v41 = vrot.slane %v12426_v39, 3 }
 0x237   :  { %9587 = vrot.lane.b32.xlu0 %v9586_v9, %s10978_s2  ;;  %v14196_v63 = vrot.slane %v12705_v33, 3  ;;  %4833 = vst [vmem:[#allocation4 + $0x214] sm:$0xf] %v4815_v0  ;;  %v10251_v8 = vld [vmem:[#allocation5 + $0x244] ss:$8 sps:$4 sm:$0xff]   ;;  %v3215_v36 = vadd.f32 1.0, %v10693_v61 }
 0x238   :  { %9592 = vrot.lane.b32.xlu1 %v9591_v35, %s10979_s3  ;;  %v3633_v21 = vsel %vm3620_vm7, %v3631_v62, %v3632_v24  ;;  %v3635_v4 = vsel %vm3620_vm7, %v3632_v24, %v3634_v1  ;;  %v3524_v45 = vrot.slane %v12416_v37, 1  ;;  %v10252_v12 = vld [vmem:[#allocation5 + $0x190] ss:$8 sps:$4 sm:$0xff]   ;;  %v10254_v50 = vld [vmem:[#allocation5 + $0x194] ss:$8 sps:$4 sm:$0xff]   ;;  %v3746_v9 = vsel %vm3733_vm6, %v3744_v31, %v3745_v41  ;;  %7272 = vmatprep.subr.bf16.mxu1 %v10251_v8 }
 0x239   :  { %v9596_v11 = vpack.i.bf16 %v3635_v4, %v3633_v21  ;;  %v3748_v7 = vsel %vm3733_vm6, %v3745_v41, %v14196_v63  ;;  %v3637_v0 = vrot.slane %v12416_v37, 2  ;;  %v10255_v61 = vld [vmem:[#allocation5 + $0x230] ss:$8 sps:$4 sm:$0xff]   ;;  %v10257_v35 = vld [vmem:[#allocation5 + $0x234] ss:$8 sps:$4 sm:$0xff]   ;;  %v3606_v62 = vsel %vm196_vm1, %v3521_v54, 0.0  ;;  %7171 = vmatprep.subr.bf16.mxu0 %v10254_v50  ;;  %7273 = vmatpush1.bf16.msra.mxu1 %v10249_v46 }
 0x23a   :  { %v9601_v43 = vpack.i.bf16 %v3748_v7, %v3746_v9  ;;  %v3639_v24 = vrot.slane %v12726_v58, 2  ;;  %v10260_v49 = vld [vmem:[#allocation5 + $0x184] ss:$8 sps:$4 sm:$0xff]   ;;  %v4779_v21 = vld [vmem:[#allocation3 + $0x30] sm:$0xf]  ;;  %10702 = vrcp.f32 %v3217_v13  ;;  %v3719_v31 = vsel %vm3620_vm7, %v3634_v1, 0.0  ;;  %7172 = vmatpush2.bf16.msra.mxu0 %v10252_v12  ;;  %7274 = vmatprep.subr.bf16.mxu1 %v10257_v35 }
 0x23b   :  { %v10695_v4 = vpop.eup %10694  ;;  %9597 = vrot.lane.b32.xlu0 %v9596_v11, %s10980_s25  ;;  %v3526_v41 = vrot.slane %v12726_v58, 1  ;;  %v10258_v8 = vld [vmem:[#allocation5 + $0x180] ss:$8 sps:$4 sm:$0xff]   ;;  %v4780_v63 = vld [vmem:[#allocation3 + $0x34] sm:$0xf]  ;;  %v14265_v46 = vrot.slane %v12668_v2, 1  ;;  %7173 = vmatprep.subr.bf16.mxu0 %v10260_v49  ;;  %10704 = vrcp.f32 %v3215_v36 }
 0x23c   :  { %4797 = vst [vmem:[#allocation4 + $0x240] sm:$0xf] %v4779_v21  ;;  %v12765_v54 = vmul.f32 %v10695_v4, %v12570_v27  ;;  %9602 = vrot.lane.b32.xlu1 %v9601_v43, %s10978_s2  ;;  %v3720_v13 = vsel %vm3620_vm7, %v3639_v24, 0.0  ;;  %v3750_v11 = vrot.slane %v12416_v37, 3  ;;  %4798 = vst [vmem:[#allocation4 + $0x270] sm:$0xf] %v4780_v63  ;;  %v3640_v21 = vsel %vm3620_vm7, %v3637_v0, %v3639_v24 }
 0x23d   :  { %v3525_v50 = vsel %vm196_vm1, %v14265_v46, %v3524_v45  ;;  %v4841_v1 = vld [vmem:[#allocation3 + $0x30] sm:$0xf]  ;;  %v4842_v12 = vld [vmem:[#allocation3 + $0x34] sm:$0xf]  ;;  %v14266_v7 = vrot.slane %v12668_v2, 2  ;;  %v3752_v43 = vrot.slane %v12726_v58, 3  ;;  %7275 = vmatpush1.bf16.msra.mxu1 %v10255_v61  ;;  %v3527_v49 = vsel %vm196_vm1, %v3524_v45, %v3526_v41 }
 0x23e   :  { %v9606_v9 = vpack.i.bf16 %v3525_v50, %v3606_v62  ;;  %4859 = vst [vmem:[#allocation4 + $0x8] sm:$0xf] %v4841_v1  ;;  %4860 = vst [vmem:[#allocation4 + $0x38] sm:$0xf] %v4842_v12  ;;  %v10267_v4 = vld [vmem:[#allocation5 + $0x220] ss:$8 sps:$4 sm:$0xff]   ;;  %v10697_v39 = vpop.eup %10696  ;;  %7174 = vmatpush2.bf16.msra.mxu0 %v10258_v8 }
 0x23f   :  { %v3638_v27 = vsel %vm3620_vm7, %v14266_v7, %v3637_v0  ;;  %v10269_v46 = vld [vmem:[#allocation5 + $0x224] ss:$8 sps:$4 sm:$0xff]   ;;  %v14200_v35 = vrot.slane %v12765_v54, 6  ;;  %v10246_v37 = vld [vmem:[#allocation4 + $0x1e0] ss:$48 sps:$4 sm:$0xff]   ;;  %v10699_v62 = vpop.eup %10698  ;;  %v12780_v50 = vmul.f32 %v10697_v39, %v12576_v3  ;;  %v3607_v0 = vsel %vm196_vm1, %v3526_v41, 0.0 }
 0x240   :  { %v9611_v63 = vpack.i.bf16 %v3638_v27, %v3719_v31  ;;  %v10248_v32 = vld [vmem:[#allocation4 + $0x1e4] ss:$48 sps:$4 sm:$0xff]   ;;  %9607 = vrot.lane.b32.xlu0 %v9606_v9, %s10979_s3  ;;  %v14267_v24 = vrot.slane %v12734_v56, 6  ;;  %v3218_v61 = vadd.f32 1.0, %v10699_v62  ;;  %v9621_v39 = vpack.i.bf16 %v3720_v13, %v3640_v21  ;;  %v4781_v1 = vld [vmem:[#allocation3 + $0x38] sm:$0xf]  ;;  %v10701_v41 = vpop.eup %10700  ;;  %7276 = vmatprep.subr.bf16.mxu1 %v10269_v46 }
 0x241   :  { %v14269_v3 = vrot.slane %v12705_v33, 3  ;;  %7102 = vmatprep.mubr.bf16.mxu1 %v10248_v32  ;;  %v10272_v45 = vld [vmem:[#allocation5 + $0x374] ss:$8 sps:$4 sm:$0xff]   ;;  %v14201_v8 = vrot.slane %v12780_v50, 6  ;;  %v14270_v12 = vrot.slane %v12668_v2, 3  ;;  %v3534_v7 = vrot.slane %v12471_v57, 1  ;;  %7277 = vmatpush1.bf16.msra.mxu1 %v10267_v4 }
 0x242   :  { %v12790_v31 = vsel %vm3347_vm5, %v14267_v24, %v14200_v35  ;;  %9612 = vrot.lane.b32.xlu1 %v9611_v63, %s10980_s25  ;;  %v3536_v27 = vrot.slane %v12731_v26, 1  ;;  %7103 = vmatmul.mubr.bf16.gmra.mxu1 %v10246_v37  ;;  %v4782_v13 = vld [vmem:[#allocation3 + $0x3c] sm:$0xf]  ;;  %4799 = vst [vmem:[#allocation4 + $0x2a0] sm:$0xf] %v4781_v1  ;;  %10706 = vrcp.f32 %v3218_v61  ;;  %v3216_v21 = vadd.f32 1.0, %v10701_v41 }
 0x243   :  { %14268 = vst [vmem:[#allocation16_spill] sm:$0xff] %v12790_v31  ;;  %v3832_v36 = vsel %vm3733_vm6, %v14269_v3, 0.0  ;;  %v3751_v9 = vsel %vm3733_vm6, %v14270_v12, %v3750_v11  ;;  %v9616_v32 = vpack.i.bf16 %v3607_v0, %v3527_v49  ;;  %v3833_v63 = vsel %vm3733_vm6, %v3752_v43, 0.0  ;;  %7389 = vmatprep.subr.bf16.mxu0 %v10272_v45  ;;  %4800 = vst [vmem:[#allocation4 + $0x2d0] sm:$0xf] %v4782_v13 }
 0x244   :  { %v4843_v62 = vld [vmem:[#allocation3 + $0x38] sm:$0xf]  ;;  %v4844_v24 = vld [vmem:[#allocation3 + $0x3c] sm:$0xf]  ;;  %v14271_v3 = vrot.slane %v12713_v53, 6  ;;  %9622 = vrot.lane.b32.xlu0 %v9621_v39, %s10980_s25  ;;  %v3753_v37 = vsel %vm3733_vm6, %v3750_v11, %v3752_v43  ;;  %v14202_v46 = vrot.slane %v12471_v57, 2  ;;  %10708 = vrcp.f32 %v3216_v21 }
 0x245   :  { %v3649_v49 = vrot.slane %v12731_v26, 2  ;;  %4861 = vst [vmem:[#allocation4 + $0x68] sm:$0xf] %v4843_v62  ;;  %4862 = vst [vmem:[#allocation4 + $0x98] sm:$0xf] %v4844_v24  ;;  %v14273_v61 = vrot.slane %v12447_v55, 6  ;;  %v9631_v11 = vpack.i.bf16 %v3751_v9, %v3832_v36  ;;  %v3537_v43 = vsel %vm196_vm1, %v3534_v7, %v3536_v27 }
 0x246   :  { %v12808_v12 = vsel %vm3347_vm5, %v14271_v3, %v14201_v8  ;;  %v10279_v4 = vld [vmem:[#allocation5 + $0x210] ss:$8 sps:$4 sm:$0xff]   ;;  %v10281_v0 = vld [vmem:[#allocation5 + $0x214] ss:$8 sps:$4 sm:$0xff]   ;;  %v14274_v1 = vrot.slane %v12460_v17, 6  ;;  %9617 = vrot.lane.b32.xlu1 %v9616_v32, %s10979_s3  ;;  %v3609_v39 = vsel %vm196_vm1, %v3536_v27, 0.0  ;;  %v9626_v62 = vpack.i.bf16 %v3833_v63, %v3753_v37 }
 0x247   :  { %14272 = vst [vmem:[#allocation14_spill] sm:$0xff] %v12808_v12  ;;  %v12817_v45 = vsel %vm3347_vm5, 0.0, %v14273_v61  ;;  %v3760_v55 = vrot.slane %v12471_v57, 3  ;;  %v3762_v13 = vrot.slane %v12731_v26, 3  ;;  %7278 = vmatprep.subr.bf16.mxu1 %v10281_v0  ;;  %v10285_v17 = vld [vmem:[#allocation5 + $0x200] ss:$8 sps:$4 sm:$0xff]   ;;  %v3650_v36 = vsel %vm3620_vm7, %v14202_v46, %v3649_v49  ;;  %v10703_v32 = vpop.eup %10702 }
 0x248   :  { %v12822_v41 = vsel %vm3347_vm5, %v14274_v1, 0.0  ;;  %7279 = vmatpush1.bf16.msra.mxu1 %v10279_v4  ;;  %v10287_v24 = vld [vmem:[#allocation5 + $0x204] ss:$8 sps:$4 sm:$0xff]   ;;  %9632 = vrot.lane.b32.xlu0 %v9631_v11, %s10978_s2  ;;  %v3722_v9 = vsel %vm3620_vm7, %v3649_v49, 0.0  ;;  %v3642_v21 = vrot.slane %v12487_v28, 2  ;;  %v3641_v3 = vrot.slane %v12817_v45, 2 }
 0x249   :  { %v3644_v27 = vrot.slane %v12822_v41, 2  ;;  %v9636_v63 = vpack.i.bf16 %v3609_v39, %v3537_v43  ;;  %7280 = vmatprep.subr.bf16.mxu1 %v10287_v24  ;;  %v4783_v37 = vld [vmem:[#allocation3 + $0x40] sm:$0xf]  ;;  %v4784_v4 = vld [vmem:[#allocation3 + $0x44] sm:$0xf]  ;;  %v3763_v0 = vsel %vm3733_vm6, %v3760_v55, %v3762_v13  ;;  %v3835_v61 = vsel %vm3733_vm6, %v3762_v13, 0.0 }
 0x24a   :  { %9627 = vrot.lane.b32.xlu1 %v9626_v62, %s10978_s2  ;;  %v3529_v49 = vrot.slane %v12487_v28, 1  ;;  %v3531_v1 = vrot.slane %v12822_v41, 1  ;;  %4801 = vst [vmem:[#allocation4 + $0x300] sm:$0xf] %v4783_v37  ;;  %4802 = vst [vmem:[#allocation4 + $0x330] sm:$0xf] %v4784_v4  ;;  %v9641_v35 = vpack.i.bf16 %v3722_v9, %v3650_v36  ;;  %v3643_v13 = vsel %vm3620_vm7, %v3641_v3, %v3642_v21  ;;  %v10705_v36 = vpop.eup %10704 }
 0x24b   :  { %v4845_v11 = vld [vmem:[#allocation3 + $0x40] sm:$0xf]  ;;  %v4846_v62 = vld [vmem:[#allocation3 + $0x44] sm:$0xf]  ;;  %v14275_v39 = vrot.slane %v12442_v34, 6  ;;  %v3528_v8 = vrot.slane %v12817_v45, 1  ;;  %v3645_v37 = vsel %vm3620_vm7, %v3642_v21, %v3644_v27  ;;  %v12858_v9 = vmul.f32 %v10703_v32, %v12600_v19 }
 0x24c   :  { %7281 = vmatpush1.bf16.msra.mxu1 %v10285_v17  ;;  %4863 = vst [vmem:[#allocation4 + $0xc8] sm:$0xf] %v4845_v11  ;;  %v10297_v43 = vld [vmem:[#allocation5 + $0x2f0] ss:$8 sps:$4 sm:$0xff]   ;;  %9637 = vrot.lane.b32.xlu0 %v9636_v63, %s10979_s3  ;;  %4864 = vst [vmem:[#allocation4 + $0xf8] sm:$0xf] %v4846_v62  ;;  %v9646_v34 = vpack.i.bf16 %v3835_v61, %v3763_v0  ;;  %v3532_v11 = vsel %vm196_vm1, %v3529_v49, %v3531_v1 }
 0x24d   :  { %v12849_v24 = vsel %vm3347_vm5, 0.0, %v14275_v39  ;;  %v10299_v17 = vld [vmem:[#allocation5 + $0x2f4] ss:$8 sps:$4 sm:$0xff]   ;;  %v3530_v4 = vsel %vm196_vm1, %v3528_v8, %v3529_v49  ;;  %v3755_v63 = vrot.slane %v12487_v28, 3  ;;  %v3757_v3 = vrot.slane %v12822_v41, 3 }
 0x24e   :  { %9642 = vrot.lane.b32.xlu1 %v9641_v35, %s10980_s25  ;;  %7282 = vmatprep.subr.bf16.mxu1 %v10299_v17  ;;  %v10305_v39 = vld [vmem:[#allocation5 + $0x2e4] ss:$8 sps:$4 sm:$0xff]   ;;  %v3533_v21 = vrot.slane %v12849_v24, 1  ;;  %v9656_v62 = vpack.i.bf16 %v3645_v37, %v3643_v13  ;;  %v3608_v46 = vsel %vm196_vm1, %v3531_v1, 0.0  ;;  %v10303_v19 = vld [vmem:[#allocation5 + $0x2e0] ss:$8 sps:$4 sm:$0xff]   ;;  %v12875_v49 = vmul.f32 %v10705_v36, %v12602_v5 }
 0x24f   :  { %v10707_v32 = vpop.eup %10706  ;;  %v3759_v35 = vrot.slane %v12849_v24, 3  ;;  %v3754_v8 = vrot.slane %v12817_v45, 3  ;;  %v14276_v0 = vrot.slane %v12490_v15, 6  ;;  %v14204_v1 = vrot.slane %v12858_v9, 6  ;;  %v10314_v37 = vld [vmem:[#allocation5 + $0x2d4] ss:$8 sps:$4 sm:$0xff]  }
 0x250   :  { %7283 = vmatpush2.bf16.msra.mxu1 %v10297_v43  ;;  %9647 = vrot.lane.b32.xlu0 %v9646_v34, %s10978_s2  ;;  %v12880_v43 = vmul.f32 %v10707_v32, %v12686_v25  ;;  %v9651_v13 = vpack.i.bf16 %v3532_v11, %v3530_v4  ;;  %v3535_v15 = vsel %vm196_vm1, %v3533_v21, %v3534_v7  ;;  %v14208_v34 = vrot.slane %v12524_v6, 1  ;;  %v10312_v7 = vld [vmem:[#allocation5 + $0x2d0] ss:$8 sps:$4 sm:$0xff]  }
 0x251   :  { %v12872_v61 = vsel %vm3347_vm5, %v14276_v0, 0.0  ;;  %7284 = vmatprep.subr.bf16.mxu1 %v10305_v39  ;;  %v10709_v17 = vpop.eup %10708  ;;  %v9666_v0 = vpack.i.bf16 %v3535_v15, %v3608_v46  ;;  %v3756_v5 = vsel %vm3733_vm6, %v3754_v8, %v3755_v63  ;;  %v3758_v36 = vsel %vm3733_vm6, %v3755_v63, %v3757_v3  ;;  %v10317_v8 = vld [vmem:[#allocation5 + $0x2c4] ss:$8 sps:$4 sm:$0xff]  }
 0x252   :  { %9657 = vrot.lane.b32.xlu1 %v9656_v62, %s10980_s25  ;;  %v14203_v39 = vrot.slane %v12880_v43, 6  ;;  %v12891_v25 = vmul.f32 %v10709_v17, %v12693_v16  ;;  %v3834_v4 = vsel %vm3733_vm6, %v3757_v3, 0.0  ;;  %v3546_v11 = vrot.slane %v12872_v61, 1 }
 0x253   :  { %v3646_v21 = vrot.slane %v12849_v24, 2  ;;  %v14277_v46 = vrot.slane %v12504_v40, 6  ;;  %v14278_v63 = vrot.slane %v12517_v51, 6  ;;  %v14279_v16 = vrot.slane %v12593_v38, 6 }
 0x254   :  { %7285 = vmatpush2.bf16.msra.mxu1 %v10303_v19  ;;  %9652 = vrot.lane.b32.xlu0 %v9651_v13, %s10979_s3  ;;  %v14206_v19 = vrot.slane %v12875_v49, 6  ;;  %v12918_v40 = vsel %vm3347_vm5, %v14204_v1, %v14203_v39  ;;  %v14205_v51 = vrot.slane %v12891_v25, 6  ;;  %v3761_v38 = vsel %vm3733_vm6, %v3759_v35, %v3760_v55 }
 0x255   :  { %v12899_v62 = vsel %vm3347_vm5, 0.0, %v14277_v46  ;;  %v12904_v32 = vsel %vm3347_vm5, %v14278_v63, 0.0  ;;  %v12909_v3 = vsel %vm3347_vm5, %v14279_v16, 0.0  ;;  %7286 = vmatprep.subr.bf16.mxu1 %v10314_v37  ;;  %v9661_v13 = vpack.i.bf16 %v3758_v36, %v3756_v5  ;;  %v10315_v5 = vld [vmem:[#allocation5 + $0x2c0] ss:$8 sps:$4 sm:$0xff]  }
 0x256   :  { %9667 = vrot.lane.b32.xlu1 %v9666_v0, %s10979_s3  ;;  %v9676_v15 = vpack.i.bf16 %v3761_v38, %v3834_v4  ;;  %v3721_v37 = vsel %vm3620_vm7, %v3644_v27, 0.0  ;;  %v14207_v17 = vrot.slane %v12623_v10, 1  ;;  %v12934_v46 = vsel %vm3347_vm5, %v14206_v19, %v14205_v51  ;;  %v10326_v16 = vld [vmem:[#allocation5 + $0x2b4] ss:$8 sps:$4 sm:$0xff]  }
 0x257   :  { %v3547_v55 = vsel %vm196_vm1, %v14208_v34, %v3546_v11  ;;  %v3611_v35 = vsel %vm196_vm1, %v3546_v11, 0.0  ;;  %v3556_v0 = vrot.slane %v12909_v3, 1  ;;  %v14280_v27 = vrot.slane %v12597_v23, 6 }
 0x258   :  { %7287 = vmatpush2.bf16.msra.mxu1 %v10312_v7  ;;  %9662 = vrot.lane.b32.xlu0 %v9661_v13, %s10978_s2  ;;  %v3539_v4 = vrot.slane %v12540_v14, 1  ;;  %v14210_v63 = vrot.slane %v12904_v32, 1  ;;  %v14281_v11 = vrot.slane %v12471_v57, 2  ;;  %v3538_v38 = vrot.slane %v12899_v62, 1 }
 0x259   :  { %v12944_v36 = vsel %vm3347_vm5, %v14280_v27, 0.0  ;;  %7288 = vmatprep.subr.bf16.mxu1 %v10317_v8  ;;  %v14282_v23 = vrot.slane %v12562_v60, 6  ;;  %v9681_v39 = vpack.i.bf16 %v3611_v35, %v3547_v55  ;;  %v3557_v8 = vsel %vm196_vm1, %v14207_v17, %v3556_v0  ;;  %v10330_v17 = vld [vmem:[#allocation5 + $0x2a0] ss:$8 sps:$4 sm:$0xff]  }
 0x25a   :  { %9677 = vrot.lane.b32.xlu1 %v9676_v15, %s10978_s2  ;;  %v3648_v7 = vsel %vm3620_vm7, %v3646_v21, %v14281_v11  ;;  %v3613_v1 = vsel %vm196_vm1, %v3556_v0, 0.0  ;;  %v3549_v15 = vrot.slane %v12634_v30, 1  ;;  %v14209_v51 = vrot.slane %v12944_v36, 1  ;;  %v10324_v21 = vld [vmem:[#allocation5 + $0x2b0] ss:$8 sps:$4 sm:$0xff]  }
 0x25b   :  { %v12957_v27 = vsel %vm3347_vm5, 0.0, %v14282_v23  ;;  %v9671_v13 = vpack.i.bf16 %v3648_v7, %v3721_v37  ;;  %v3540_v60 = vsel %vm196_vm1, %v3538_v38, %v3539_v4  ;;  %v3542_v37 = vsel %vm196_vm1, %v3539_v4, %v14210_v63  ;;  %v10332_v11 = vld [vmem:[#allocation5 + $0x2a4] ss:$8 sps:$4 sm:$0xff]  }
 0x25c   :  { %7289 = vmatpush2.bf16.msra.mxu1 %v10315_v5  ;;  %v3652_v55 = vrot.slane %v12540_v14, 2  ;;  %v3654_v35 = vrot.slane %v12904_v32, 2  ;;  %v3548_v0 = vrot.slane %v12957_v27, 1  ;;  %v3651_v5 = vrot.slane %v12899_v62, 2  ;;  %v10347_v63 = vld [vmem:[#allocation5 + $0x284] ss:$8 sps:$4 sm:$0xff]  }
 0x25d   :  { %9672 = vrot.lane.b32.xlu0 %v9671_v13, %s10980_s25  ;;  %7290 = vmatprep.subr.bf16.mxu1 %v10326_v16  ;;  %v3661_v7 = vrot.slane %v12957_v27, 2  ;;  %v9721_v23 = vpack.i.bf16 %v3613_v1, %v3557_v8  ;;  %v3662_v38 = vrot.slane %v12634_v30, 2  ;;  %v9686_v13 = vpack.i.bf16 %v3542_v37, %v3540_v60  ;;  %v10341_v60 = vld [vmem:[#allocation5 + $0x294] ss:$8 sps:$4 sm:$0xff]  }
 0x25e   :  { %9682 = vrot.lane.b32.xlu1 %v9681_v39, %s10979_s3  ;;  %v3550_v4 = vsel %vm196_vm1, %v3548_v0, %v3549_v15  ;;  %v3552_v19 = vsel %vm196_vm1, %v3549_v15, %v14209_v51  ;;  %v3664_v16 = vrot.slane %v12944_v36, 2  ;;  %v3653_v39 = vsel %vm3620_vm7, %v3651_v5, %v3652_v55  ;;  %v10339_v51 = vld [vmem:[#allocation5 + $0x290] ss:$8 sps:$4 sm:$0xff]  }
 0x25f   :  { %v3655_v34 = vsel %vm3620_vm7, %v3652_v55, %v3654_v35  ;;  %v3765_v1 = vrot.slane %v12540_v14, 3  ;;  %v3767_v8 = vrot.slane %v12904_v32, 3  ;;  %v3764_v15 = vrot.slane %v12899_v62, 3 }
 0x260   :  { %7291 = vmatpush2.bf16.msra.mxu1 %v10324_v21  ;;  %v9726_v37 = vpack.i.bf16 %v3552_v19, %v3550_v4  ;;  %v3663_v21 = vsel %vm3620_vm7, %v3661_v7, %v3662_v38  ;;  %v9691_v0 = vpack.i.bf16 %v3655_v34, %v3653_v39  ;;  %v3775_v5 = vrot.slane %v12634_v30, 3  ;;  %v14283_v19 = vld [vmem:[#allocation12_spill] sm:$0xff] }
 0x261   :  { %9722 = vrot.lane.b32.xlu0 %v9721_v23, %s10979_s3  ;;  %7292 = vmatprep.subr.bf16.mxu1 %v10332_v11  ;;  %v3665_v23 = vsel %vm3620_vm7, %v3662_v38, %v3664_v16  ;;  %v3777_v55 = vrot.slane %v12944_v36, 3  ;;  %v3768_v11 = vsel %vm3733_vm6, %v3765_v1, %v3767_v8  ;;  %v14284_v4 = vrot.slane %v14283_v19, 6 }
 0x262   :  { %9687 = vrot.lane.b32.xlu1 %v9686_v13, %s10979_s3  ;;  %v3766_v13 = vsel %vm3733_vm6, %v3764_v15, %v3765_v1  ;;  %v3774_v7 = vrot.slane %v12957_v27, 3  ;;  %v9731_v38 = vpack.i.bf16 %v3665_v23, %v3663_v21  ;;  %v10345_v15 = vld [vmem:[#allocation5 + $0x280] ss:$8 sps:$4 sm:$0xff]  }
 0x263   :  { %v12999_v34 = vsel %vm3347_vm5, 0.0, %v14284_v4  ;;  %v14286_v4 = vrot.slane %v12904_v32, 1 }
 0x264   :  { %7293 = vmatpush2.bf16.msra.mxu1 %v10330_v17  ;;  %v9696_v17 = vpack.i.bf16 %v3768_v11, %v3766_v13  ;;  %v3776_v39 = vsel %vm3733_vm6, %v3774_v7, %v3775_v5  ;;  %v3543_v1 = vrot.slane %v12999_v34, 1  ;;  %v14288_v11 = vrot.slane %v12944_v36, 1 }
 0x265   :  { %9727 = vrot.lane.b32.xlu0 %v9726_v37, %s10979_s3  ;;  %7294 = vmatprep.subr.bf16.mxu1 %v10341_v60  ;;  %v3778_v37 = vsel %vm3733_vm6, %v3775_v5, %v3777_v55  ;;  %v14285_v60 = vrot.slane %v12548_v44, 6  ;;  %v3610_v21 = vsel %vm196_vm1, %v14286_v4, 0.0  ;;  %v3657_v5 = vrot.slane %v12524_v6, 2 }
 0x266   :  { %9692 = vrot.lane.b32.xlu1 %v9691_v0, %s10980_s25  ;;  %v9736_v0 = vpack.i.bf16 %v3778_v37, %v3776_v39  ;;  %v3612_v7 = vsel %vm196_vm1, %v14288_v11, 0.0  ;;  %v3667_v37 = vrot.slane %v12623_v10, 2  ;;  %v3770_v4 = vrot.slane %v12524_v6, 3 }
 0x267   :  { %v13009_v19 = vsel %vm3347_vm5, 0.0, %v14285_v60  ;;  %v3780_v11 = vrot.slane %v12623_v10, 3 }
 0x268   :  { %7295 = vmatpush2.bf16.msra.mxu1 %v10339_v51  ;;  %v14287_v51 = vrot.slane %v12524_v6, 1  ;;  %v3553_v44 = vrot.slane %v13009_v19, 1 }
 0x269   :  { %9732 = vrot.lane.b32.xlu0 %v9731_v38, %s10980_s25  ;;  %7296 = vmatprep.subr.bf16.mxu1 %v10347_v63  ;;  %v3656_v38 = vrot.slane %v12999_v34, 2  ;;  %v3723_v63 = vsel %vm3620_vm7, %v3654_v35, 0.0  ;;  %v3769_v35 = vrot.slane %v12999_v34, 3 }
 0x26a   :  { %9697 = vrot.lane.b32.xlu1 %v9696_v17, %s10978_s2  ;;  %v3545_v23 = vsel %vm196_vm1, %v3543_v1, %v14287_v51  ;;  %v14289_v17 = vrot.slane %v12623_v10, 1  ;;  %v3836_v51 = vsel %vm3733_vm6, %v3767_v8, 0.0  ;;  %v3669_v8 = vrot.slane %v12909_v3, 2 }
 0x26b   :  { %v9701_v13 = vpack.i.bf16 %v3545_v23, %v3610_v21  ;;  %v3658_v60 = vsel %vm3620_vm7, %v3656_v38, %v3657_v5  ;;  %v3659_v23 = vrot.slane %v12872_v61, 2  ;;  %v3771_v38 = vsel %vm3733_vm6, %v3769_v35, %v3770_v4 }
 0x26c   :  { %7297 = vmatpush2.bf16.msra.mxu1 %v10345_v15  ;;  %v3555_v39 = vsel %vm196_vm1, %v3553_v44, %v14289_v17  ;;  %v3666_v15 = vrot.slane %v13009_v19, 2  ;;  %v9706_v21 = vpack.i.bf16 %v3658_v60, %v3723_v63  ;;  %v10371_v44 = vld [vmem:[#allocation5 + $0x474] ss:$8 sps:$4 sm:$0xff]   ;;  %v9711_v63 = vpack.i.bf16 %v3771_v38, %v3836_v51 }
 0x26d   :  { %9737 = vrot.lane.b32.xlu0 %v9736_v0, %s10978_s2  ;;  %v9741_v1 = vpack.i.bf16 %v3555_v39, %v3612_v7  ;;  %v3725_v0 = vsel %vm3620_vm7, %v3664_v16, 0.0  ;;  %7512 = vmatprep.subr.bf16.mxu1 %v10371_v44  ;;  %v3779_v16 = vrot.slane %v13009_v19, 3  ;;  %v3838_v17 = vsel %vm3733_vm6, %v3777_v55, 0.0 }
 0x26e   :  { %9702 = vrot.lane.b32.xlu1 %v9701_v13, %s10979_s3  ;;  %v3668_v13 = vsel %vm3620_vm7, %v3666_v15, %v3667_v37  ;;  %v3660_v39 = vsel %vm3620_vm7, %v3657_v5, %v3659_v23  ;;  %v3772_v60 = vrot.slane %v12872_v61, 3  ;;  %v14290_v15 = vrot.slane %v12656_v52, 6 }
 0x26f   :  { %v9746_v7 = vpack.i.bf16 %v3668_v13, %v3725_v0  ;;  %v3781_v0 = vsel %vm3733_vm6, %v3779_v16, %v3780_v11  ;;  %v14292_v55 = vrot.slane %v12637_v48, 6  ;;  %v3726_v44 = vsel %vm3620_vm7, %v3669_v8, 0.0 }
 0x270   :  { %v9751_v51 = vpack.i.bf16 %v3781_v0, %v3838_v17  ;;  %v3782_v52 = vrot.slane %v12909_v3, 3  ;;  %v3773_v13 = vsel %vm3733_vm6, %v3770_v4, %v3772_v60  ;;  %v3559_v38 = vrot.slane %v12684_v42, 1 }
 0x271   :  { %9742 = vrot.lane.b32.xlu0 %v9741_v1, %s10979_s3  ;;  %v3724_v1 = vsel %vm3620_vm7, %v3659_v23, 0.0  ;;  %v13061_v35 = vsel %vm3347_vm5, 0.0, %v14292_v55  ;;  %v3670_v23 = vsel %vm3620_vm7, %v3667_v37, %v3669_v8  ;;  %v3672_v37 = vrot.slane %v12684_v42, 2 }
 0x272   :  { %9707 = vrot.lane.b32.xlu1 %v9706_v21, %s10980_s25  ;;  %v13054_v21 = vsel %vm3347_vm5, %v14290_v15, 0.0  ;;  %v9716_v5 = vpack.i.bf16 %v3724_v1, %v3660_v39  ;;  %v3558_v16 = vrot.slane %v13061_v35, 1  ;;  %v3783_v8 = vsel %vm3733_vm6, %v3780_v11, %v3782_v52 }
 0x273   :  { %14291 = vst [vmem:[#allocation17_spill] sm:$0xff] %v13054_v21  ;;  %v3561_v48 = vrot.slane %v13054_v21, 1  ;;  %v3839_v39 = vsel %vm3733_vm6, %v3782_v52, 0.0  ;;  %v3674_v4 = vrot.slane %v13054_v21, 2  ;;  %v3785_v15 = vrot.slane %v12684_v42, 3 }
 0x274   :  { %v3560_v1 = vsel %vm196_vm1, %v3558_v16, %v3559_v38  ;;  %v3787_v0 = vrot.slane %v13054_v21, 3  ;;  %v3671_v55 = vrot.slane %v13061_v35, 2  ;;  %v3784_v11 = vrot.slane %v13061_v35, 3 }
 0x275   :  { %9747 = vrot.lane.b32.xlu0 %v9746_v7, %s10980_s25  ;;  %v3837_v7 = vsel %vm3733_vm6, %v3772_v60, 0.0  ;;  %v3562_v60 = vsel %vm196_vm1, %v3559_v38, %v3561_v48  ;;  %v14293_v52 = vrot.slane %v12626_v18, 6  ;;  %v14294_v16 = vrot.slane %v12645_v22, 6 }
 0x276   :  { %9712 = vrot.lane.b32.xlu1 %v9711_v63, %s10978_s2  ;;  %v9756_v63 = vpack.i.bf16 %v3726_v44, %v3670_v23  ;;  %v9761_v17 = vpack.i.bf16 %v3837_v7, %v3773_v13  ;;  %v3673_v23 = vsel %vm3620_vm7, %v3671_v55, %v3672_v37  ;;  %v3675_v44 = vsel %vm3620_vm7, %v3672_v37, %v3674_v4 }
 0x277   :  { %v13090_v13 = vsel %vm3347_vm5, 0.0, %v14293_v52  ;;  %v3786_v7 = vsel %vm3733_vm6, %v3784_v11, %v3785_v15  ;;  %v3788_v38 = vsel %vm3733_vm6, %v3785_v15, %v3787_v0  ;;  %v3564_v37 = vrot.slane %v12675_v20, 1 }
 0x278   :  { %v3677_v18 = vrot.slane %v12675_v20, 2  ;;  %v3727_v22 = vsel %vm3620_vm7, %v3674_v4, 0.0  ;;  %v3789_v55 = vrot.slane %v13090_v13, 3 }
 0x279   :  { %9752 = vrot.lane.b32.xlu0 %v9751_v51, %s10978_s2  ;;  %v9766_v51 = vpack.i.bf16 %v3839_v39, %v3783_v8  ;;  %v3563_v8 = vrot.slane %v13090_v13, 1  ;;  %v9781_v39 = vpack.i.bf16 %v3788_v38, %v3786_v7  ;;  %v3840_v38 = vsel %vm3733_vm6, %v3787_v0, 0.0 }
 0x27a   :  { %9717 = vrot.lane.b32.xlu1 %v9716_v5, %s10980_s25  ;;  %v9771_v5 = vpack.i.bf16 %v3562_v60, %v3560_v1  ;;  %v3614_v1 = vsel %vm196_vm1, %v3561_v48, 0.0  ;;  %v3676_v60 = vrot.slane %v13090_v13, 2 }
 0x27b   :  { %v3565_v11 = vsel %vm196_vm1, %v3563_v8, %v3564_v37 }
 0x27c   :  { %v9786_v4 = vpack.i.bf16 %v3565_v11, %v3614_v1  ;;  %v3678_v52 = vsel %vm3620_vm7, %v3676_v60, %v3677_v18  ;;  %v3569_v11 = vrot.slane %v12808_v12, 1 }
 0x27d   :  { %9757 = vrot.lane.b32.xlu0 %v9756_v63, %s10980_s25  ;;  %v13098_v63 = vsel %vm3347_vm5, %v14294_v16, 0.0  ;;  %v9791_v7 = vpack.i.bf16 %v3678_v52, %v3727_v22 }
 0x27e   :  { %9762 = vrot.lane.b32.xlu1 %v9761_v17, %s10978_s2  ;;  %14295 = vst [vmem:[#allocation18_spill] sm:$0xff] %v13098_v63  ;;  %v9776_v17 = vpack.i.bf16 %v3675_v44, %v3673_v23  ;;  %v3566_v15 = vrot.slane %v13098_v63, 1  ;;  %v14298_v23 = vrot.slane %v12780_v50, 6  ;;  %v3679_v16 = vrot.slane %v13098_v63, 2 }
 0x27f   :  { %v14300_v50 = vrot.slane %v12734_v56, 6 }
 0x280   :  { %v13121_v44 = vsel %vm3347_vm5, %v14298_v23, 0.0  ;;  %v3615_v8 = vsel %vm196_vm1, %v3566_v15, 0.0  ;;  %v3680_v56 = vsel %vm3620_vm7, %v3677_v18, %v3679_v16  ;;  %v3728_v23 = vsel %vm3620_vm7, %v3679_v16, 0.0 }
 0x281   :  { %9767 = vrot.lane.b32.xlu0 %v9766_v51, %s10978_s2  ;;  %v3790_v51 = vrot.slane %v12675_v20, 3  ;;  %14299 = vst [vmem:[#allocation20_spill] sm:$0xff] %v13121_v44  ;;  %v14302_v16 = vrot.slane %v12875_v49, 6 }
 0x282   :  { %9772 = vrot.lane.b32.xlu1 %v9771_v5, %s10979_s3  ;;  %v14296_v5 = vrot.slane %v12713_v53, 6  ;;  %v3567_v53 = vsel %vm196_vm1, %v3564_v37, %v3566_v15  ;;  %v3571_v37 = vrot.slane %v13121_v44, 1  ;;  %v3682_v15 = vrot.slane %v12808_v12, 2 }
 0x283   :  { %v3791_v0 = vsel %vm3733_vm6, %v3789_v55, %v3790_v51  ;;  %v3684_v55 = vrot.slane %v13121_v44, 2 }
 0x284   :  { %v13116_v48 = vsel %vm3347_vm5, 0.0, %v14296_v5  ;;  %v9796_v22 = vpack.i.bf16 %v3791_v0, %v3840_v38  ;;  %v9801_v5 = vpack.i.bf16 %v3615_v8, %v3567_v53  ;;  %v3797_v38 = vrot.slane %v13121_v44, 3 }
 0x285   :  { %9777 = vrot.lane.b32.xlu0 %v9776_v17, %s10980_s25  ;;  %14297 = vst [vmem:[#allocation12_spill] sm:$0xff] %v13116_v48  ;;  %v3792_v17 = vrot.slane %v13098_v63, 3  ;;  %v3568_v1 = vrot.slane %v13116_v48, 1  ;;  %v3681_v60 = vrot.slane %v13116_v48, 2  ;;  %v3794_v18 = vrot.slane %v13116_v48, 3 }
 0x286   :  { %9782 = vrot.lane.b32.xlu1 %v9781_v39, %s10978_s2  ;;  %v13133_v39 = vsel %vm3347_vm5, 0.0, %v14300_v50  ;;  %v3572_v0 = vsel %vm196_vm1, %v3569_v11, %v3571_v37 }
 0x287   :  { %14301 = vst [vmem:[#allocation21_spill] sm:$0xff] %v13133_v39  ;;  %v3841_v52 = vsel %vm3733_vm6, %v3792_v17, 0.0  ;;  %v3573_v50 = vrot.slane %v13133_v39, 1  ;;  %v3686_v53 = vrot.slane %v13133_v39, 2  ;;  %v3570_v8 = vsel %vm196_vm1, %v3568_v1, %v3569_v11 }
 0x288   :  { %v3799_v44 = vrot.slane %v13133_v39, 3 }
 0x289   :  { %9787 = vrot.lane.b32.xlu0 %v9786_v4, %s10979_s3  ;;  %v3793_v4 = vsel %vm3733_vm6, %v3790_v51, %v3792_v17  ;;  %v13156_v51 = vsel %vm3347_vm5, 0.0, %v14302_v16  ;;  %v9806_v17 = vpack.i.bf16 %v3728_v23, %v3680_v56  ;;  %v3683_v16 = vsel %vm3620_vm7, %v3681_v60, %v3682_v15 }
 0x28a   :  { %9792 = vrot.lane.b32.xlu1 %v9791_v7, %s10980_s25  ;;  %v3795_v7 = vrot.slane %v12808_v12, 3  ;;  %v14303_v12 = vrot.slane %v12765_v54, 6  ;;  %v9811_v49 = vpack.i.bf16 %v3841_v52, %v3793_v4  ;;  %v9558_v20 = vpop.permute.xlu1 %9557  ;;  %v3616_v56 = vsel %vm196_vm1, %v3571_v37, 0.0 }
 0x28b   :  { %v9816_v60 = vpack.i.bf16 %v3572_v0, %v3570_v8  ;;  %v3729_v54 = vsel %vm3620_vm7, %v3684_v55, 0.0 }
 0x28c   :  { %v13166_v48 = vsel %vm3347_vm5, %v14303_v12, 0.0  ;;  %v3796_v1 = vsel %vm3733_vm6, %v3794_v18, %v3795_v7  ;;  %v3798_v11 = vsel %vm3733_vm6, %v3795_v7, %v3797_v38  ;;  %v14304_v12 = vrot.slane %v12891_v25, 6 }
 0x28d   :  { %9797 = vrot.lane.b32.xlu0 %v9796_v22, %s10978_s2  ;;  %v3574_v22 = vrot.slane %v12790_v31, 1  ;;  %v3687_v7 = vrot.slane %v12790_v31, 2  ;;  %v9826_v37 = vpack.i.bf16 %v3798_v11, %v3796_v1  ;;  %v3800_v25 = vrot.slane %v12790_v31, 3  ;;  %v14305_v11 = vld [vmem:[#allocation8_spill] sm:$0xff] }
 0x28e   :  { %9802 = vrot.lane.b32.xlu1 %v9801_v5, %s10979_s3  ;;  %v3685_v5 = vsel %vm3620_vm7, %v3682_v15, %v3684_v55  ;;  %v9548_v23 = vpop.permute.xlu0 %9547  ;;  %v13178_v4 = vsel %vm3347_vm5, %v14304_v12, 0.0  ;;  %v3842_v12 = vsel %vm3733_vm6, %v3797_v38, 0.0  ;;  %v9560_v1 = vunpack.i.h.bf16 %v9558_v20 }
 0x28f   :  { %v3575_v15 = vsel %vm196_vm1, %v3573_v50, %v3574_v22  ;;  %v9550_v52 = vunpack.i.h.bf16 %v9548_v23  ;;  %v9549_v18 = vunpack.i.l.bf16 %v9548_v23  ;;  %v9559_v55 = vunpack.i.l.bf16 %v9558_v20  ;;  %v14306_v23 = vld [vmem:[#allocation10_spill] sm:$0xff] }
 0x290   :  { %v9831_v39 = vpack.i.bf16 %v3575_v15, %v3616_v56  ;;  %v3801_v63 = vsel %vm3733_vm6, %v3799_v44, %v3800_v25 }
 0x291   :  { %9807 = vrot.lane.b32.xlu0 %v9806_v17, %s10980_s25  ;;  %v9821_v17 = vpack.i.bf16 %v3685_v5, %v3683_v16  ;;  %v3576_v16 = vrot.slane %v13166_v48, 1  ;;  %v3689_v5 = vrot.slane %v13166_v48, 2  ;;  %v4328_v56 = vsel %vm4326_vm8, %v14305_v11, %v9550_v52 }
 0x292   :  { %9812 = vrot.lane.b32.xlu1 %v9811_v49, %s10978_s2  ;;  %v9553_v8 = vpop.permute.xlu0 %9552  ;;  %v4327_v38 = vsel %vm4326_vm8, %v14306_v23, %v9549_v18  ;;  %v9841_v18 = vpack.i.bf16 %v3801_v63, %v3842_v12  ;;  %v3581_v63 = vrot.slane %v13178_v4, 1  ;;  %v3692_v23 = vrot.slane %v12934_v46, 2 }
 0x293   :  { %v9555_v50 = vunpack.i.h.bf16 %v9553_v8  ;;  %v9554_v0 = vunpack.i.l.bf16 %v9553_v8  ;;  %v3688_v8 = vsel %vm3620_vm7, %v3686_v53, %v3687_v7 }
 0x294   :  { %v9836_v52 = vpack.i.bf16 %v3688_v8, %v3729_v54 }
 0x295   :  { %9817 = vrot.lane.b32.xlu0 %v9816_v60, %s10979_s3  ;;  %v9563_v49 = vpop.permute.xlu1 %9562  ;;  %v4376_v60 = vsel %vm4375_vm9, %v4327_v38, %v9554_v0  ;;  %v4377_v15 = vsel %vm4375_vm9, %v4328_v56, %v9555_v50  ;;  %v3802_v50 = vrot.slane %v13166_v48, 3  ;;  %v3805_v38 = vrot.slane %v12934_v46, 3 }
 0x296   :  { %9822 = vrot.lane.b32.xlu1 %v9821_v17, %s10980_s25  ;;  %v9565_v17 = vunpack.i.h.bf16 %v9563_v49  ;;  %v9564_v31 = vunpack.i.l.bf16 %v9563_v49  ;;  %v4425_v20 = vsel %vm4424_vm10, %v4376_v60, %v9559_v55  ;;  %v4426_v21 = vsel %vm4424_vm10, %v4377_v15, %v9560_v1 }
 0x297   :  { %v8863_v11 = vpack.c.bf16 %v4426_v21, %v4425_v20  ;;  %v3577_v49 = vsel %vm196_vm1, %v3574_v22, %v3576_v16  ;;  %v3730_v21 = vsel %vm3620_vm7, %v3689_v5, 0.0  ;;  %v3807_v55 = vrot.slane %v13178_v4, 3 }
 0x298   :  { %v9568_v0 = vpop.permute.xlu0 %9567  ;;  %v4330_v44 = vsel %vm4326_vm8, %v12496_v29, %v9565_v17  ;;  %v4329_v1 = vsel %vm4326_vm8, %v12511_v59, %v9564_v31  ;;  %v3694_v29 = vrot.slane %v13178_v4, 2  ;;  %v3803_v17 = vsel %vm3733_vm6, %v3800_v25, %v3802_v50 }
 0x299   :  { %9827 = vrot.lane.b32.xlu0 %v9826_v37, %s10978_s2  ;;  %v3617_v37 = vsel %vm196_vm1, %v3576_v16, 0.0  ;;  %v9570_v56 = vunpack.i.h.bf16 %v9568_v0  ;;  %v9569_v53 = vunpack.i.l.bf16 %v9568_v0  ;;  %8864 = vst [vmem:[#allocation3 + $0x48] sm:$0xff] %v8863_v11   ;;  %v3579_v16 = vrot.slane %v12934_v46, 1 }
 0x29a   :  { %9832 = vrot.lane.b32.xlu1 %v9831_v39, %s10979_s3  ;;  %v3690_v39 = vsel %vm3620_vm7, %v3687_v7, %v3689_v5  ;;  %v9846_v7 = vpack.i.bf16 %v3617_v37, %v3577_v49  ;;  %v3843_v8 = vsel %vm3733_vm6, %v3802_v50, 0.0  ;;  %v3691_v20 = vrot.slane %v13156_v51, 2 }
 0x29b   :  { %v4378_v22 = vsel %vm4375_vm9, %v4329_v1, %v9569_v53  ;;  %v4379_v54 = vsel %vm4375_vm9, %v4330_v44, %v9570_v56  ;;  %v9851_v5 = vpack.i.bf16 %v3730_v21, %v3690_v39  ;;  %v3582_v0 = vsel %vm196_vm1, %v3579_v16, %v3581_v63 }
 0x29c   :  { %v14308_v49 = vrot.slane %v12858_v9, 6  ;;  %v3804_v25 = vrot.slane %v13156_v51, 3  ;;  %v3584_v50 = vrot.slane %v12918_v40, 1  ;;  %v3697_v56 = vrot.slane %v12918_v40, 2 }
 0x29d   :  { %9837 = vrot.lane.b32.xlu0 %v9836_v52, %s10980_s25  ;;  %v9573_v12 = vpop.permute.xlu1 %9572  ;;  %v9856_v53 = vpack.i.bf16 %v3843_v8, %v3803_v17  ;;  %v3693_v44 = vsel %vm3620_vm7, %v3691_v20, %v3692_v23 }
 0x29e   :  { %9842 = vrot.lane.b32.xlu1 %v9841_v18, %s10978_s2  ;;  %v9575_v59 = vunpack.i.h.bf16 %v9573_v12  ;;  %v9574_v31 = vunpack.i.l.bf16 %v9573_v12  ;;  %v14307_v18 = vrot.slane %v13156_v51, 1  ;;  %v13234_v37 = vsel %vm3347_vm5, 0.0, %v14308_v49 }
 0x29f   :  { %v3806_v12 = vsel %vm3733_vm6, %v3804_v25, %v3805_v38  ;;  %v3696_v17 = vrot.slane %v13234_v37, 2  ;;  %v3731_v49 = vsel %vm3620_vm7, %v3694_v29, 0.0 }
 0x2a0   :  { %v4427_v60 = vsel %vm4424_vm10, %v4378_v22, %v9574_v31  ;;  %v4428_v15 = vsel %vm4424_vm10, %v4379_v54, %v9575_v59  ;;  %v3580_v11 = vsel %vm196_vm1, %v14307_v18, %v3579_v16  ;;  %v4816_v1 = vld [vmem:[#allocation3 + $0x48] sm:$0xf]  ;;  %v4817_v39 = vld [vmem:[#allocation3 + $0x4c] sm:$0xf]  ;;  %v3695_v54 = vsel %vm3620_vm7, %v3692_v23, %v3694_v29 }
 0x2a1   :  { %9847 = vrot.lane.b32.xlu0 %v9846_v7, %s10979_s3  ;;  %v8868_v52 = vpack.c.bf16 %v4428_v15, %v4427_v60  ;;  %v4877_v21 = vld [vmem:[#allocation3 + $0x48] sm:$0xf]  ;;  %v9861_v22 = vpack.i.bf16 %v3582_v0, %v3580_v11  ;;  %v3808_v16 = vsel %vm3733_vm6, %v3805_v38, %v3807_v55  ;;  %4834 = vst [vmem:[#allocation4 + $0x244] sm:$0xf] %v4816_v1  ;;  %4835 = vst [vmem:[#allocation4 + $0x274] sm:$0xf] %v4817_v39 }
 0x2a2   :  { %9852 = vrot.lane.b32.xlu1 %v9851_v5, %s10980_s25  ;;  %v4878_v59 = vld [vmem:[#allocation3 + $0x4c] sm:$0xf]  ;;  %4895 = vst [vmem:[#allocation4 + $0xc] sm:$0xf] %v4877_v21  ;;  %v4847_v31 = vld [vmem:[#allocation3 + $0x48] sm:$0xf]  ;;  %v9866_v8 = vpack.i.bf16 %v3695_v54, %v3693_v44  ;;  %v9871_v20 = vpack.i.bf16 %v3808_v16, %v3806_v12  ;;  %v3698_v0 = vsel %vm3620_vm7, %v3696_v17, %v3697_v56 }
 0x2a3   :  { %8980 = vst [vmem:[#allocation3 + $0x50] sm:$0xff] %v8868_v52   ;;  %v4848_v7 = vld [vmem:[#allocation3 + $0x4c] sm:$0xf]  ;;  %v14309_v5 = vrot.slane %v12880_v43, 6  ;;  %v3583_v15 = vrot.slane %v13234_v37, 1  ;;  %v3810_v52 = vrot.slane %v12918_v40, 3 }
 0x2a4   :  { %v9578_v9 = vpop.permute.xlu0 %9577  ;;  %4896 = vst [vmem:[#allocation4 + $0x3c] sm:$0xf] %v4878_v59  ;;  %4865 = vst [vmem:[#allocation4 + $0x128] sm:$0xf] %v4847_v31  ;;  %v3618_v11 = vsel %vm196_vm1, %v3581_v63, 0.0  ;;  %v3809_v1 = vrot.slane %v13234_v37, 3  ;;  %v9881_v59 = vpack.i.bf16 %v3698_v0, %v3731_v49 }
 0x2a5   :  { %v13247_v60 = vsel %vm3347_vm5, %v14309_v5, 0.0  ;;  %9857 = vrot.lane.b32.xlu0 %v9856_v53, %s10978_s2  ;;  %4866 = vst [vmem:[#allocation4 + $0x158] sm:$0xf] %v4848_v7  ;;  %v9580_v23 = vunpack.i.h.bf16 %v9578_v9  ;;  %v9579_v38 = vunpack.i.l.bf16 %v9578_v9  ;;  %v3585_v43 = vsel %vm196_vm1, %v3583_v15, %v3584_v50  ;;  %v14310_v63 = vld [vmem:[#allocation19_spill] sm:$0xff] }
 0x2a6   :  { %9862 = vrot.lane.b32.xlu1 %v9861_v22, %s10979_s3  ;;  %v9583_v18 = vpop.permute.xlu1 %9582  ;;  %v3586_v25 = vrot.slane %v13247_v60, 1  ;;  %v3844_v39 = vsel %vm3733_vm6, %v3807_v55, 0.0  ;;  %v9876_v9 = vpack.i.bf16 %v3585_v43, %v3618_v11  ;;  %v3811_v31 = vsel %vm3733_vm6, %v3809_v1, %v3810_v52  ;;  %v10270_v5 = vld [vmem:[#allocation5 + $0x370] ss:$8 sps:$4 sm:$0xff]  }
 0x2a7   :  { %v9585_v53 = vunpack.i.h.bf16 %v9583_v18  ;;  %v9584_v44 = vunpack.i.l.bf16 %v9583_v18  ;;  %v4332_v21 = vsel %vm4326_vm8, %v12642_v47, %v9580_v23  ;;  %v4331_v22 = vsel %vm4326_vm8, %v14310_v63, %v9579_v38  ;;  %v10261_v47 = vld [vmem:[#allocation4 + $0x240] ss:$48 sps:$4 sm:$0xff]   ;;  %v10264_v49 = vld [vmem:[#allocation4 + $0x8] ss:$48 sps:$4 sm:$0xff]  }
 0x2a8   :  { %v3699_v55 = vrot.slane %v13247_v60, 2  ;;  %v3812_v7 = vrot.slane %v13247_v60, 3  ;;  %v3587_v17 = vsel %vm196_vm1, %v3584_v50, %v3586_v25  ;;  %v9886_v50 = vpack.i.bf16 %v3811_v31, %v3844_v39 }
 0x2a9   :  { %9867 = vrot.lane.b32.xlu0 %v9866_v8, %s10980_s25  ;;  %v9588_v16 = vpop.permute.xlu0 %9587  ;;  %v3619_v8 = vsel %vm196_vm1, %v3586_v25, 0.0  ;;  %v4381_v43 = vsel %vm4375_vm9, %v4332_v21, %v9585_v53  ;;  %v4380_v18 = vsel %vm4375_vm9, %v4331_v22, %v9584_v44  ;;  %v10284_v25 = vld [vmem:[#allocation5 + $0x364] ss:$8 sps:$4 sm:$0xff]  }
 0x2aa   :  { %9872 = vrot.lane.b32.xlu1 %v9871_v20, %s10978_s2  ;;  %v4818_v29 = vld [vmem:[#allocation3 + $0x50] sm:$0xf]  ;;  %v4819_v54 = vld [vmem:[#allocation3 + $0x54] sm:$0xf]  ;;  %v9590_v15 = vunpack.i.h.bf16 %v9588_v16  ;;  %v9589_v23 = vunpack.i.l.bf16 %v9588_v16  ;;  %v9593_v38 = vpop.permute.xlu1 %9592  ;;  %v3732_v16 = vsel %vm3620_vm7, %v3699_v55, 0.0 }
 0x2ab   :  { %v4879_v12 = vld [vmem:[#allocation3 + $0x50] sm:$0xf]  ;;  %4836 = vst [vmem:[#allocation4 + $0x2a4] sm:$0xf] %v4818_v29  ;;  %4837 = vst [vmem:[#allocation4 + $0x2d4] sm:$0xf] %v4819_v54  ;;  %v9595_v11 = vunpack.i.h.bf16 %v9593_v38  ;;  %v9594_v0 = vunpack.i.l.bf16 %v9593_v38 }
 0x2ac   :  { %4897 = vst [vmem:[#allocation4 + $0x6c] sm:$0xf] %v4879_v12  ;;  %v10263_v20 = vld [vmem:[#allocation4 + $0x244] ss:$48 sps:$4 sm:$0xff]   ;;  %v10266_v1 = vld [vmem:[#allocation4 + $0xc] ss:$48 sps:$4 sm:$0xff]   ;;  %v4429_v29 = vsel %vm4424_vm10, %v4380_v18, %v9589_v23  ;;  %v4430_v54 = vsel %vm4424_vm10, %v4381_v43, %v9590_v15  ;;  %v9891_v12 = vpack.i.bf16 %v3619_v8, %v3587_v17  ;;  %v3813_v15 = vsel %vm3733_vm6, %v3810_v52, %v3812_v7 }
 0x2ad   :  { %9877 = vrot.lane.b32.xlu0 %v9876_v9, %s10979_s3  ;;  %v4880_v63 = vld [vmem:[#allocation3 + $0x54] sm:$0xf]  ;;  %7112 = vmatprep.mubr.bf16.mxu1 %v10263_v20  ;;  %v4849_v53 = vld [vmem:[#allocation3 + $0x50] sm:$0xf]  ;;  %v8873_v44 = vpack.c.bf16 %v4430_v54, %v4429_v29  ;;  %v9598_v22 = vpop.permute.xlu0 %9597  ;;  %v3700_v9 = vsel %vm3620_vm7, %v3697_v56, %v3699_v55  ;;  %v3845_v23 = vsel %vm3733_vm6, %v3812_v7, 0.0  ;;  %v14311_v38 = vld [vmem:[#allocation9_spill] sm:$0xff] }
 0x2ae   :  { %9882 = vrot.lane.b32.xlu1 %v9881_v59, %s10980_s25  ;;  %4898 = vst [vmem:[#allocation4 + $0x9c] sm:$0xf] %v4880_v63  ;;  %v4850_v21 = vld [vmem:[#allocation3 + $0x54] sm:$0xf]  ;;  %7175 = vmatprep.mubr.bf16.mxu0 %v10266_v1  ;;  %4867 = vst [vmem:[#allocation4 + $0x188] sm:$0xf] %v4849_v53  ;;  %v9600_v59 = vunpack.i.h.bf16 %v9598_v22  ;;  %v9599_v39 = vunpack.i.l.bf16 %v9598_v22  ;;  %v9603_v31 = vpop.permute.xlu1 %9602  ;;  %v4334_v56 = vsel %vm4326_vm8, %v14311_v38, %v9595_v11 }
 0x2af   :  { %7113 = vmatmul.mubr.bf16.gmra.mxu1 %v10261_v47  ;;  %4868 = vst [vmem:[#allocation4 + $0x1b8] sm:$0xf] %v4850_v21  ;;  %7176 = vmatmul.mubr.bf16.vlgmr.msra.gmra.mxu0 %v10264_v49  ;;  %8981 = vst [vmem:[#allocation3 + $0x58] sm:$0xff] %v8873_v44   ;;  %v14312_v17 = vld [vmem:[#allocation15_spill] sm:$0xff]  ;;  %v9605_v47 = vunpack.i.h.bf16 %v9603_v31  ;;  %v9604_v8 = vunpack.i.l.bf16 %v9603_v31  ;;  %v10282_v52 = vld [vmem:[#allocation5 + $0x360] ss:$8 sps:$4 sm:$0xff]   ;;  %v9896_v49 = vpack.i.bf16 %v3732_v16, %v3700_v9 }
 0x2b0   :  { %v4333_v55 = vsel %vm4326_vm8, %v14312_v17, %v9594_v0  ;;  %7390 = vmatpush1.bf16.msra.mxu0 %v10270_v5  ;;  %v4383_v43 = vsel %vm4375_vm9, %v4334_v56, %v9600_v59  ;;  %v9901_v29 = vpack.i.bf16 %v3845_v23, %v3813_v15  ;;  %v10290_v54 = vld [vmem:[#allocation5 + $0x354] ss:$8 sps:$4 sm:$0xff]   ;;  %v10273_v5 = vld [vmem:[#allocation4 + $0x2a0] ss:$48 sps:$4 sm:$0xff]  }
 0x2b1   :  { %9887 = vrot.lane.b32.xlu0 %v9886_v50, %s10978_s2  ;;  %v4382_v20 = vsel %vm4375_vm9, %v4333_v55, %v9599_v39  ;;  %7391 = vmatprep.subr.bf16.mxu0 %v10284_v25  ;;  %v4432_v18 = vsel %vm4424_vm10, %v4383_v43, %v9605_v47  ;;  %v10276_v25 = vld [vmem:[#allocation4 + $0x68] ss:$48 sps:$4 sm:$0xff]  }
 0x2b2   :  { %9892 = vrot.lane.b32.xlu1 %v9891_v12, %s10979_s3  ;;  %v4431_v7 = vsel %vm4424_vm10, %v4382_v20, %v9604_v8  ;;  %v9608_v11 = vpop.permute.xlu0 %9607  ;;  %v10275_v0 = vld [vmem:[#allocation4 + $0x2a4] ss:$48 sps:$4 sm:$0xff]   ;;  %v10288_v44 = vld [vmem:[#allocation5 + $0x350] ss:$8 sps:$4 sm:$0xff]  }
 0x2b3   :  { %v8878_v1 = vpack.c.bf16 %v4432_v18, %v4431_v7  ;;  %7122 = vmatprep.mubr.bf16.mxu1 %v10275_v0  ;;  %v9610_v53 = vunpack.i.h.bf16 %v9608_v11  ;;  %v9609_v21 = vunpack.i.l.bf16 %v9608_v11  ;;  %v10302_v12 = vld [vmem:[#allocation5 + $0x344] ss:$8 sps:$4 sm:$0xff]   ;;  %v14313_v18 = vld [vmem:[#allocation11_spill] sm:$0xff] }
 0x2b4   :  { %v9613_v63 = vpop.permute.xlu1 %9612  ;;  %7392 = vmatpush1.bf16.msra.mxu0 %v10282_v52  ;;  %v10300_v52 = vld [vmem:[#allocation5 + $0x340] ss:$8 sps:$4 sm:$0xff]   ;;  %v10311_v0 = vld [vmem:[#allocation5 + $0x334] ss:$8 sps:$4 sm:$0xff]  }
 0x2b5   :  { %9897 = vrot.lane.b32.xlu0 %v9896_v49, %s10980_s25  ;;  %v10278_v50 = vld [vmem:[#allocation4 + $0x6c] ss:$48 sps:$4 sm:$0xff]   ;;  %8982 = vst [vmem:[#allocation3 + $0x60] sm:$0xff] %v8878_v1   ;;  %7393 = vmatprep.subr.bf16.mxu0 %v10290_v54  ;;  %v9615_v31 = vunpack.i.h.bf16 %v9613_v63  ;;  %v9614_v15 = vunpack.i.l.bf16 %v9613_v63  ;;  %v4336_v47 = vsel %vm4326_vm8, %v12668_v2, %v9610_v53  ;;  %v4335_v8 = vsel %vm4326_vm8, %v12705_v33, %v9609_v21  ;;  %v10309_v33 = vld [vmem:[#allocation5 + $0x330] ss:$8 sps:$4 sm:$0xff]  }
 0x2b6   :  { %9902 = vrot.lane.b32.xlu1 %v9901_v29, %s10978_s2  ;;  %v9623_v22 = vpop.permute.xlu0 %9622  ;;  %7185 = vmatprep.mubr.bf16.mxu0 %v10278_v50  ;;  %v4820_v16 = vld [vmem:[#allocation3 + $0x58] sm:$0xf]  ;;  %v4821_v59 = vld [vmem:[#allocation3 + $0x5c] sm:$0xf] }
 0x2b7   :  { %7123 = vmatmul.mubr.bf16.gmra.mxu1 %v10273_v5  ;;  %7186 = vmatmul.mubr.bf16.gmra.mxu0 %v10276_v25  ;;  %v4881_v39 = vld [vmem:[#allocation3 + $0x58] sm:$0xf]  ;;  %4838 = vst [vmem:[#allocation4 + $0x304] sm:$0xf] %v4820_v16  ;;  %4839 = vst [vmem:[#allocation4 + $0x334] sm:$0xf] %v4821_v59  ;;  %v9625_v20 = vunpack.i.h.bf16 %v9623_v22  ;;  %v9624_v43 = vunpack.i.l.bf16 %v9623_v22  ;;  %v4385_v29 = vsel %vm4375_vm9, %v4336_v47, %v9615_v31 }
 0x2b8   :  { %v9618_v9 = vpop.permute.xlu1 %9617  ;;  %v4882_v56 = vld [vmem:[#allocation3 + $0x5c] sm:$0xf]  ;;  %4899 = vst [vmem:[#allocation4 + $0xcc] sm:$0xf] %v4881_v39  ;;  %v4851_v17 = vld [vmem:[#allocation3 + $0x58] sm:$0xf]  ;;  %7394 = vmatpush1.bf16.msra.mxu0 %v10288_v44  ;;  %v4384_v54 = vsel %vm4375_vm9, %v4335_v8, %v9614_v15 }
 0x2b9   :  { %v9620_v23 = vunpack.i.h.bf16 %v9618_v9  ;;  %v9619_v38 = vunpack.i.l.bf16 %v9618_v9  ;;  %v4852_v55 = vld [vmem:[#allocation3 + $0x5c] sm:$0xf]  ;;  %4900 = vst [vmem:[#allocation4 + $0xfc] sm:$0xf] %v4882_v56  ;;  %4869 = vst [vmem:[#allocation4 + $0x1e8] sm:$0xf] %v4851_v17  ;;  %7395 = vmatprep.subr.bf16.mxu0 %v10302_v12 }
 0x2ba   :  { %4870 = vst [vmem:[#allocation4 + $0x218] sm:$0xf] %v4852_v55  ;;  %v9633_v49 = vpop.permute.xlu0 %9632  ;;  %v10318_v8 = vld [vmem:[#allocation5 + $0x320] ss:$8 sps:$4 sm:$0xff]  }
 0x2bb   :  { %v4338_v7 = vsel %vm4326_vm8, %v12726_v58, %v9620_v23  ;;  %v4337_v11 = vsel %vm4326_vm8, %v14313_v18, %v9619_v38  ;;  %v9635_v2 = vunpack.i.h.bf16 %v9633_v49  ;;  %v9634_v1 = vunpack.i.l.bf16 %v9633_v49  ;;  %v10320_v38 = vld [vmem:[#allocation5 + $0x324] ss:$8 sps:$4 sm:$0xff]  }
 0x2bc   :  { %v9628_v63 = vpop.permute.xlu1 %9627  ;;  %v4883_v53 = vld [vmem:[#allocation3 + $0x60] sm:$0xf]  ;;  %v4884_v21 = vld [vmem:[#allocation3 + $0x64] sm:$0xf]  ;;  %v4386_v22 = vsel %vm4375_vm9, %v4337_v11, %v9624_v43  ;;  %v4387_v12 = vsel %vm4375_vm9, %v4338_v7, %v9625_v20  ;;  %7396 = vmatpush1.bf16.msra.mxu0 %v10300_v52 }
 0x2bd   :  { %v9630_v5 = vunpack.i.h.bf16 %v9628_v63  ;;  %v9629_v50 = vunpack.i.l.bf16 %v9628_v63  ;;  %v4853_v25 = vld [vmem:[#allocation3 + $0x60] sm:$0xf]  ;;  %v4433_v58 = vsel %vm4424_vm10, %v4384_v54, %v9634_v1  ;;  %v4434_v44 = vsel %vm4424_vm10, %v4385_v29, %v9635_v2  ;;  %4901 = vst [vmem:[#allocation4 + $0x12c] sm:$0xf] %v4883_v53  ;;  %4902 = vst [vmem:[#allocation4 + $0x15c] sm:$0xf] %v4884_v21  ;;  %7397 = vmatprep.subr.bf16.mxu0 %v10311_v0 }
 0x2be   :  { %v4854_v9 = vld [vmem:[#allocation3 + $0x64] sm:$0xf]  ;;  %4871 = vst [vmem:[#allocation4 + $0x248] sm:$0xf] %v4853_v25  ;;  %v4914_v16 = vld [vmem:[#allocation3 + $0x60] sm:$0xf]  ;;  %v8883_v39 = vpack.c.bf16 %v4434_v44, %v4433_v58  ;;  %v9638_v23 = vpop.permute.xlu0 %9637 }
 0x2bf   :  { %v4915_v59 = vld [vmem:[#allocation3 + $0x64] sm:$0xf]  ;;  %v4435_v31 = vsel %vm4424_vm10, %v4386_v22, %v9629_v50  ;;  %v4436_v15 = vsel %vm4424_vm10, %v4387_v12, %v9630_v5  ;;  %4872 = vst [vmem:[#allocation4 + $0x278] sm:$0xf] %v4854_v9  ;;  %4932 = vst [vmem:[#allocation4 + $0x10] sm:$0xf] %v4914_v16  ;;  %v9640_v17 = vunpack.i.h.bf16 %v9638_v23  ;;  %v9639_v55 = vunpack.i.l.bf16 %v9638_v23 }
 0x2c0   :  { %4933 = vst [vmem:[#allocation4 + $0x40] sm:$0xf] %v4915_v59  ;;  %v8888_v56 = vpack.c.bf16 %v4436_v15, %v4435_v31  ;;  %v9643_v47 = vpop.permute.xlu1 %9642  ;;  %8983 = vst [vmem:[#allocation3 + $0x68] sm:$0xff] %v8883_v39   ;;  %v10293_v52 = vld [vmem:[#allocation4 + $0x304] ss:$48 sps:$4 sm:$0xff]   ;;  %7398 = vmatpush1.bf16.msra.mxu0 %v10309_v33 }
 0x2c1   :  { %v9645_v20 = vunpack.i.h.bf16 %v9643_v47  ;;  %v9644_v43 = vunpack.i.l.bf16 %v9643_v47  ;;  %v4344_v7 = vsel %vm4326_vm8, %v12731_v26, %v9640_v17  ;;  %v4343_v18 = vsel %vm4326_vm8, %v12471_v57, %v9639_v55  ;;  %v10291_v11 = vld [vmem:[#allocation4 + $0x300] ss:$48 sps:$4 sm:$0xff]   ;;  %v10296_v49 = vld [vmem:[#allocation4 + $0xcc] ss:$48 sps:$4 sm:$0xff]   ;;  %7132 = vmatprep.mubr.bf16.mxu1 %v10293_v52  ;;  %v10294_v1 = vld [vmem:[#allocation4 + $0xc8] ss:$48 sps:$4 sm:$0xff]   ;;  %7399 = vmatprep.subr.bf16.mxu0 %v10320_v38 }
 0x2c2   :  { %8984 = vst [vmem:[#allocation3 + $0x70] sm:$0xff] %v8888_v56   ;;  %v10329_v0 = vld [vmem:[#allocation5 + $0x314] ss:$8 sps:$4 sm:$0xff]   ;;  %v9648_v2 = vpop.permute.xlu0 %9647  ;;  %v5172_v63 = vld [vmem:[#allocation3 + $0x108] sm:$0xf]  ;;  %7195 = vmatprep.mubr.bf16.mxu0 %v10296_v49  ;;  %7133 = vmatmul.mubr.bf16.gmra.mxu1 %v10291_v11 }
 0x2c3   :  { %v5173_v29 = vld [vmem:[#allocation3 + $0x10c] sm:$0xf]  ;;  %v9650_v54 = vunpack.i.h.bf16 %v9648_v2  ;;  %v9649_v5 = vunpack.i.l.bf16 %v9648_v2  ;;  %5190 = vst [vmem:[#allocation4 + $0x2c] sm:$0xf] %v5172_v63  ;;  %v4393_v57 = vsel %vm4375_vm9, %v4344_v7, %v9645_v20  ;;  %v4392_v26 = vsel %vm4375_vm9, %v4343_v18, %v9644_v43  ;;  %7196 = vmatmul.mubr.bf16.gmra.mxu0 %v10294_v1  ;;  %v10327_v25 = vld [vmem:[#allocation5 + $0x310] ss:$8 sps:$4 sm:$0xff]  }
 0x2c4   :  { %v13326_v50 = vpop.permute.xlu1 %9657  ;;  %5191 = vst [vmem:[#allocation4 + $0x5c] sm:$0xf] %v5173_v29  ;;  %v10308_v21 = vld [vmem:[#allocation4 + $0x12c] ss:$48 sps:$4 sm:$0xff]   ;;  %7400 = vmatpush1.bf16.msra.mxu0 %v10318_v8  ;;  %v5174_v12 = vld [vmem:[#allocation3 + $0x110] sm:$0xf] }
 0x2c5   :  { %v4441_v33 = vsel %vm4424_vm10, %v4392_v26, %v9649_v5  ;;  %v4442_v53 = vsel %vm4424_vm10, %v4393_v57, %v9650_v54  ;;  %7401 = vmatprep.subr.bf16.mxu0 %v10329_v0  ;;  %v10335_v22 = vld [vmem:[#allocation5 + $0x304] ss:$8 sps:$4 sm:$0xff]   ;;  %7205 = vmatprep.mubr.bf16.mxu0 %v10308_v21  ;;  %v10333_v23 = vld [vmem:[#allocation5 + $0x300] ss:$8 sps:$4 sm:$0xff]   ;;  %5192 = vst [vmem:[#allocation4 + $0x8c] sm:$0xf] %v5174_v12  ;;  %v9660_v11 = vunpack.i.h.bf16 %v13326_v50  ;;  %v9659_v49 = vunpack.i.l.bf16 %v13326_v50 }
 0x2c6   :  { %v8903_v58 = vpack.c.bf16 %v4442_v53, %v4441_v33  ;;  %v9653_v44 = vpop.permute.xlu0 %9652  ;;  %v5175_v9 = vld [vmem:[#allocation3 + $0x114] sm:$0xf]  ;;  %v10306_v56 = vld [vmem:[#allocation4 + $0x128] ss:$48 sps:$4 sm:$0xff]   ;;  %v10344_v47 = vld [vmem:[#allocation5 + $0x3f4] ss:$8 sps:$4 sm:$0xff]  }
 0x2c7   :  { %v9655_v16 = vunpack.i.h.bf16 %v9653_v44  ;;  %v9654_v59 = vunpack.i.l.bf16 %v9653_v44  ;;  %v4885_v31 = vld [vmem:[#allocation3 + $0x68] sm:$0xf]  ;;  %v4886_v15 = vld [vmem:[#allocation3 + $0x6c] sm:$0xf]  ;;  %5193 = vst [vmem:[#allocation4 + $0xbc] sm:$0xf] %v5175_v9 }
 0x2c8   :  { %v13332_v39 = vpop.permute.xlu1 %9667  ;;  %v4916_v38 = vld [vmem:[#allocation3 + $0x68] sm:$0xf]  ;;  %8987 = vst [vmem:[#allocation3 + $0x88] sm:$0xff] %v8903_v58   ;;  %4903 = vst [vmem:[#allocation4 + $0x18c] sm:$0xf] %v4885_v31  ;;  %7402 = vmatpush1.bf16.msra.mxu0 %v10327_v25 }
 0x2c9   :  { %4904 = vst [vmem:[#allocation4 + $0x1bc] sm:$0xf] %v4886_v15  ;;  %v4887_v17 = vld [vmem:[#allocation3 + $0x70] sm:$0xf]  ;;  %v4888_v55 = vld [vmem:[#allocation3 + $0x74] sm:$0xf]  ;;  %v4340_v20 = vsel %vm4326_vm8, %v12487_v28, %v9655_v16  ;;  %v4339_v43 = vsel %vm4326_vm8, %v12817_v45, %v9654_v59  ;;  %7403 = vmatprep.subr.bf16.mxu0 %v10335_v22  ;;  %v9670_v54 = vunpack.i.h.bf16 %v13332_v39  ;;  %v9669_v5 = vunpack.i.l.bf16 %v13332_v39 }
 0x2ca   :  { %v4917_v8 = vld [vmem:[#allocation3 + $0x6c] sm:$0xf]  ;;  %4934 = vst [vmem:[#allocation4 + $0x70] sm:$0xf] %v4916_v38  ;;  %4905 = vst [vmem:[#allocation4 + $0x1ec] sm:$0xf] %v4887_v17  ;;  %v9663_v0 = vpop.permute.xlu0 %9662  ;;  %v4388_v50 = vsel %vm4375_vm9, %v4339_v43, %v9659_v49  ;;  %v4389_v57 = vsel %vm4375_vm9, %v4340_v20, %v9660_v11 }
 0x2cb   :  { %4906 = vst [vmem:[#allocation4 + $0x21c] sm:$0xf] %v4888_v55  ;;  %4935 = vst [vmem:[#allocation4 + $0xa0] sm:$0xf] %v4917_v8  ;;  %v4855_v52 = vld [vmem:[#allocation3 + $0x68] sm:$0xf]  ;;  %v9665_v45 = vunpack.i.h.bf16 %v9663_v0  ;;  %v9664_v63 = vunpack.i.l.bf16 %v9663_v0  ;;  %7206 = vmatmul.mubr.bf16.gmra.mxu0 %v10306_v56  ;;  %v4342_v39 = vsel %vm4326_vm8, %v12849_v24, %v9670_v54  ;;  %v4341_v31 = vsel %vm4326_vm8, %v12822_v41, %v9669_v5 }
 0x2cc   :  { %v4856_v7 = vld [vmem:[#allocation3 + $0x6c] sm:$0xf]  ;;  %v4918_v18 = vld [vmem:[#allocation3 + $0x70] sm:$0xf]  ;;  %4873 = vst [vmem:[#allocation4 + $0x2a8] sm:$0xf] %v4855_v52  ;;  %v9678_v29 = vpop.permute.xlu1 %9677  ;;  %7404 = vmatpush1.bf16.msra.mxu0 %v10333_v23 }
 0x2cd   :  { %4874 = vst [vmem:[#allocation4 + $0x2d8] sm:$0xf] %v4856_v7  ;;  %v4919_v2 = vld [vmem:[#allocation3 + $0x74] sm:$0xf]  ;;  %4936 = vst [vmem:[#allocation4 + $0xd0] sm:$0xf] %v4918_v18  ;;  %v4437_v26 = vsel %vm4424_vm10, %v4388_v50, %v9664_v63  ;;  %v4438_v33 = vsel %vm4424_vm10, %v4389_v57, %v9665_v45  ;;  %7405 = vmatprep.subr.bf16.mxu0 %v10344_v47  ;;  %v9680_v15 = vunpack.i.h.bf16 %v9678_v29  ;;  %v9679_v23 = vunpack.i.l.bf16 %v9678_v29 }
 0x2ce   :  { %v4857_v28 = vld [vmem:[#allocation3 + $0x70] sm:$0xf]  ;;  %v4858_v1 = vld [vmem:[#allocation3 + $0x74] sm:$0xf]  ;;  %4937 = vst [vmem:[#allocation4 + $0x100] sm:$0xf] %v4919_v2  ;;  %v8893_v58 = vpack.c.bf16 %v4438_v33, %v4437_v26 }
 0x2cf   :  { %4875 = vst [vmem:[#allocation4 + $0x308] sm:$0xf] %v4857_v28  ;;  %4876 = vst [vmem:[#allocation4 + $0x338] sm:$0xf] %v4858_v1  ;;  %v10342_v53 = vld [vmem:[#allocation5 + $0x3f0] ss:$8 sps:$4 sm:$0xff]   ;;  %v9673_v44 = vpop.permute.xlu0 %9672 }
 0x2d0   :  { %v5176_v21 = vld [vmem:[#allocation3 + $0x118] sm:$0xf]  ;;  %v5177_v25 = vld [vmem:[#allocation3 + $0x11c] sm:$0xf]  ;;  %v9675_v22 = vunpack.i.h.bf16 %v9673_v44  ;;  %v9674_v12 = vunpack.i.l.bf16 %v9673_v44  ;;  %v13346_v9 = vpop.permute.xlu1 %9682  ;;  %8985 = vst [vmem:[#allocation3 + $0x78] sm:$0xff] %v8893_v58   ;;  %7406 = vmatpush2.bf16.msra.mxu0 %v10342_v53 }
 0x2d1   :  { %5194 = vst [vmem:[#allocation4 + $0xec] sm:$0xf] %v5176_v21  ;;  %5195 = vst [vmem:[#allocation4 + $0x11c] sm:$0xf] %v5177_v25  ;;  %v10348_v16 = vld [vmem:[#allocation5 + $0x3e0] ss:$8 sps:$4 sm:$0xff]  }
 0x2d2   :  { %v10350_v59 = vld [vmem:[#allocation5 + $0x3e4] ss:$8 sps:$4 sm:$0xff]   ;;  %v10359_v56 = vld [vmem:[#allocation5 + $0x3d4] ss:$8 sps:$4 sm:$0xff]   ;;  %v4390_v17 = vsel %vm4375_vm9, %v4341_v31, %v9674_v12  ;;  %v4391_v55 = vsel %vm4375_vm9, %v4342_v39, %v9675_v22  ;;  %v10321_v47 = vld [vmem:[#allocation4 + $0x188] ss:$48 sps:$4 sm:$0xff]  }
 0x2d3   :  { %v10323_v38 = vld [vmem:[#allocation4 + $0x18c] ss:$48 sps:$4 sm:$0xff]   ;;  %v4955_v20 = vld [vmem:[#allocation3 + $0x88] sm:$0xf]  ;;  %v4439_v43 = vsel %vm4424_vm10, %v4390_v17, %v9679_v23  ;;  %v4440_v24 = vsel %vm4424_vm10, %v4391_v55, %v9680_v15  ;;  %v13356_v52 = vpop.permute.xlu0 %9722  ;;  %7407 = vmatprep.subr.bf16.mxu0 %v10350_v59  ;;  %v10366_v53 = vld [vmem:[#allocation5 + $0x3c0] ss:$8 sps:$4 sm:$0xff]  }
 0x2d4   :  { %v10338_v8 = vld [vmem:[#allocation4 + $0x1ec] ss:$48 sps:$4 sm:$0xff]   ;;  %7215 = vmatprep.mubr.bf16.mxu0 %v10323_v38  ;;  %4973 = vst [vmem:[#allocation4 + $0xd4] sm:$0xf] %v4955_v20  ;;  %v4893_v7 = vld [vmem:[#allocation3 + $0x88] sm:$0xf]  ;;  %v8898_v11 = vpack.c.bf16 %v4440_v24, %v4439_v43  ;;  %v9688_v49 = vpop.permute.xlu1 %9687  ;;  %7408 = vmatpush2.bf16.msra.mxu0 %v10348_v16 }
 0x2d5   :  { %v4956_v41 = vld [vmem:[#allocation3 + $0x8c] sm:$0xf]  ;;  %4911 = vst [vmem:[#allocation4 + $0x30c] sm:$0xf] %v4893_v7  ;;  %v4924_v0 = vld [vmem:[#allocation3 + $0x88] sm:$0xf]  ;;  %7216 = vmatmul.mubr.bf16.gmra.mxu0 %v10321_v47  ;;  %7409 = vmatprep.subr.bf16.mxu0 %v10359_v56  ;;  %v9690_v54 = vunpack.i.h.bf16 %v9688_v49  ;;  %v9689_v5 = vunpack.i.l.bf16 %v9688_v49 }
 0x2d6   :  { %v4894_v18 = vld [vmem:[#allocation3 + $0x8c] sm:$0xf]  ;;  %4974 = vst [vmem:[#allocation4 + $0x104] sm:$0xf] %v4956_v41  ;;  %v5111_v28 = vld [vmem:[#allocation3 + $0x108] sm:$0xf]  ;;  %7225 = vmatprep.mubr.bf16.mxu0 %v10338_v8 }
 0x2d7   :  { %4912 = vst [vmem:[#allocation4 + $0x33c] sm:$0xf] %v4894_v18  ;;  %v4925_v2 = vld [vmem:[#allocation3 + $0x8c] sm:$0xf]  ;;  %4942 = vst [vmem:[#allocation4 + $0x1f0] sm:$0xf] %v4924_v0  ;;  %v13358_v63 = vpop.permute.xlu0 %9727  ;;  %v4346_v23 = vsel %vm4326_vm8, %v12540_v14, %v9690_v54  ;;  %v4345_v38 = vsel %vm4326_vm8, %v12899_v62, %v9689_v5 }
 0x2d8   :  { %4943 = vst [vmem:[#allocation4 + $0x220] sm:$0xf] %v4925_v2  ;;  %v5112_v1 = vld [vmem:[#allocation3 + $0x10c] sm:$0xf]  ;;  %5129 = vst [vmem:[#allocation4 + $0x264] sm:$0xf] %v5111_v28  ;;  %v9693_v50 = vpop.permute.xlu1 %9692  ;;  %v9730_v59 = vunpack.i.h.bf16 %v13358_v63  ;;  %v9729_v56 = vunpack.i.l.bf16 %v13358_v63 }
 0x2d9   :  { %8986 = vst [vmem:[#allocation3 + $0x80] sm:$0xff] %v8898_v11   ;;  %v10357_v45 = vld [vmem:[#allocation5 + $0x3d0] ss:$8 sps:$4 sm:$0xff]   ;;  %5130 = vst [vmem:[#allocation4 + $0x294] sm:$0xf] %v5112_v1  ;;  %v9695_v44 = vunpack.i.h.bf16 %v9693_v50  ;;  %v9694_v22 = vunpack.i.l.bf16 %v9693_v50 }
 0x2da   :  { %v10368_v29 = vld [vmem:[#allocation5 + $0x3c4] ss:$8 sps:$4 sm:$0xff]   ;;  %v4889_v57 = vld [vmem:[#allocation3 + $0x78] sm:$0xf]  ;;  %7410 = vmatpush2.bf16.msra.mxu0 %v10357_v45  ;;  %v5113_v12 = vld [vmem:[#allocation3 + $0x110] sm:$0xf]  ;;  %v4352_v0 = vsel %vm4326_vm8, %v12634_v30, %v9730_v59  ;;  %v4351_v54 = vsel %vm4326_vm8, %v12957_v27, %v9729_v56 }
 0x2db   :  { %v4890_v26 = vld [vmem:[#allocation3 + $0x7c] sm:$0xf]  ;;  %v4951_v33 = vld [vmem:[#allocation3 + $0x78] sm:$0xf]  ;;  %4907 = vst [vmem:[#allocation4 + $0x24c] sm:$0xf] %v4889_v57  ;;  %v9733_v31 = vpop.permute.xlu0 %9732  ;;  %7411 = vmatprep.subr.bf16.mxu0 %v10368_v29  ;;  %v4394_v18 = vsel %vm4375_vm9, %v4345_v38, %v9694_v22  ;;  %v4395_v11 = vsel %vm4375_vm9, %v4346_v23, %v9695_v44 }
 0x2dc   :  { %4908 = vst [vmem:[#allocation4 + $0x27c] sm:$0xf] %v4890_v26  ;;  %v4952_v21 = vld [vmem:[#allocation3 + $0x7c] sm:$0xf]  ;;  %4969 = vst [vmem:[#allocation4 + $0x14] sm:$0xf] %v4951_v33  ;;  %v9698_v17 = vpop.permute.xlu1 %9697  ;;  %v9735_v47 = vunpack.i.h.bf16 %v9733_v31  ;;  %v9734_v8 = vunpack.i.l.bf16 %v9733_v31 }
 0x2dd   :  { %v4920_v25 = vld [vmem:[#allocation3 + $0x78] sm:$0xf]  ;;  %v4921_v58 = vld [vmem:[#allocation3 + $0x7c] sm:$0xf]  ;;  %4970 = vst [vmem:[#allocation4 + $0x44] sm:$0xf] %v4952_v21  ;;  %v9700_v20 = vunpack.i.h.bf16 %v9698_v17  ;;  %v9699_v43 = vunpack.i.l.bf16 %v9698_v17 }
 0x2de   :  { %4938 = vst [vmem:[#allocation4 + $0x130] sm:$0xf] %v4920_v25  ;;  %4939 = vst [vmem:[#allocation4 + $0x160] sm:$0xf] %v4921_v58  ;;  %v5114_v16 = vld [vmem:[#allocation3 + $0x114] sm:$0xf]  ;;  %7412 = vmatpush2.bf16.msra.mxu0 %v10366_v53  ;;  %v4400_v53 = vsel %vm4375_vm9, %v4351_v54, %v9734_v8  ;;  %v4401_v21 = vsel %vm4375_vm9, %v4352_v0, %v9735_v47 }
 0x2df   :  { %v10336_v39 = vld [vmem:[#allocation4 + $0x1e8] ss:$48 sps:$4 sm:$0xff]   ;;  %v10377_v15 = vld [vmem:[#allocation5 + $0x3b4] ss:$8 sps:$4 sm:$0xff]   ;;  %5131 = vst [vmem:[#allocation4 + $0x2c4] sm:$0xf] %v5113_v12  ;;  %v4443_v2 = vsel %vm4424_vm10, %v4394_v18, %v9699_v43  ;;  %v4444_v28 = vsel %vm4424_vm10, %v4395_v11, %v9700_v20  ;;  %v9738_v1 = vpop.permute.xlu0 %9737 }
 0x2e0   :  { %5132 = vst [vmem:[#allocation4 + $0x2f4] sm:$0xf] %v5114_v16  ;;  %v10375_v55 = vld [vmem:[#allocation5 + $0x3b0] ss:$8 sps:$4 sm:$0xff]   ;;  %7226 = vmatmul.mubr.bf16.gmra.mxu0 %v10336_v39  ;;  %v4954_v41 = vld [vmem:[#allocation3 + $0x84] sm:$0xf]  ;;  %7413 = vmatprep.subr.bf16.mxu0 %v10377_v15  ;;  %v8908_v5 = vpack.c.bf16 %v4444_v28, %v4443_v2  ;;  %v9740_v50 = vunpack.i.h.bf16 %v9738_v1  ;;  %v9739_v57 = vunpack.i.l.bf16 %v9738_v1  ;;  %v9703_v26 = vpop.permute.xlu1 %9702 }
 0x2e1   :  { %v4953_v24 = vld [vmem:[#allocation3 + $0x80] sm:$0xf]  ;;  %4972 = vst [vmem:[#allocation4 + $0xa4] sm:$0xf] %v4954_v41  ;;  %v4892_v14 = vld [vmem:[#allocation3 + $0x84] sm:$0xf]  ;;  %v9705_v17 = vunpack.i.h.bf16 %v9703_v26  ;;  %v9704_v47 = vunpack.i.l.bf16 %v9703_v26 }
 0x2e2   :  { %v4891_v7 = vld [vmem:[#allocation3 + $0x80] sm:$0xf]  ;;  %4971 = vst [vmem:[#allocation4 + $0x74] sm:$0xf] %v4953_v24  ;;  %v10386_v62 = vld [vmem:[#allocation5 + $0x3a4] ss:$8 sps:$4 sm:$0xff]   ;;  %v4449_v27 = vsel %vm4424_vm10, %v4400_v53, %v9739_v57  ;;  %v4450_v12 = vsel %vm4424_vm10, %v4401_v21, %v9740_v50  ;;  %7414 = vmatpush2.bf16.msra.mxu0 %v10375_v55  ;;  %v9685_v21 = vunpack.i.h.bf16 %v13346_v9 }
 0x2e3   :  { %4909 = vst [vmem:[#allocation4 + $0x2ac] sm:$0xf] %v4891_v7  ;;  %v4922_v49 = vld [vmem:[#allocation3 + $0x80] sm:$0xf]  ;;  %4910 = vst [vmem:[#allocation4 + $0x2dc] sm:$0xf] %v4892_v14  ;;  %v8923_v31 = vpack.c.bf16 %v4450_v12, %v4449_v27  ;;  %v13378_v15 = vpop.permute.xlu0 %9742  ;;  %7415 = vmatprep.subr.bf16.mxu0 %v10386_v62  ;;  %v4348_v0 = vsel %vm4326_vm8, %v12999_v34, %v9705_v17  ;;  %v4347_v2 = vsel %vm4326_vm8, %v12904_v32, %v9704_v47 }
 0x2e4   :  { %v4923_v45 = vld [vmem:[#allocation3 + $0x84] sm:$0xf]  ;;  %4940 = vst [vmem:[#allocation4 + $0x190] sm:$0xf] %v4922_v49  ;;  %v5142_v63 = vld [vmem:[#allocation3 + $0x108] sm:$0xf]  ;;  %v9708_v8 = vpop.permute.xlu1 %9707  ;;  %v9745_v18 = vunpack.i.h.bf16 %v13378_v15  ;;  %v9744_v28 = vunpack.i.l.bf16 %v13378_v15 }
 0x2e5   :  { %v5143_v29 = vld [vmem:[#allocation3 + $0x10c] sm:$0xf]  ;;  %v10369_v33 = vld [vmem:[#allocation5 + $0x470] ss:$8 sps:$4 sm:$0xff]   ;;  %v10384_v30 = vld [vmem:[#allocation5 + $0x3a0] ss:$8 sps:$4 sm:$0xff]   ;;  %v9710_v24 = vunpack.i.h.bf16 %v9708_v8  ;;  %v9709_v41 = vunpack.i.l.bf16 %v9708_v8 }
 0x2e6   :  { %4941 = vst [vmem:[#allocation4 + $0x1c0] sm:$0xf] %v4923_v45  ;;  %5160 = vst [vmem:[#allocation4 + $0x148] sm:$0xf] %v5142_v63  ;;  %v10351_v25 = vld [vmem:[#allocation4 + $0x248] ss:$48 sps:$4 sm:$0xff]   ;;  %7416 = vmatpush2.bf16.msra.mxu0 %v10384_v30  ;;  %v4354_v15 = vsel %vm4326_vm8, %v13009_v19, %v9745_v18  ;;  %v4353_v47 = vsel %vm4326_vm8, %v12944_v36, %v9744_v28 }
 0x2e7   :  { %5161 = vst [vmem:[#allocation4 + $0x178] sm:$0xf] %v5143_v29  ;;  %v10353_v58 = vld [vmem:[#allocation4 + $0x24c] ss:$48 sps:$4 sm:$0xff]   ;;  %8988 = vst [vmem:[#allocation3 + $0x90] sm:$0xff] %v8908_v5   ;;  %v13381_v11 = vpop.permute.xlu0 %9747 }
 0x2e8   :  { %v10380_v44 = vld [vmem:[#allocation5 + $0x464] ss:$8 sps:$4 sm:$0xff]   ;;  %v10395_v22 = vld [vmem:[#allocation5 + $0x394] ss:$8 sps:$4 sm:$0xff]   ;;  %v10354_v16 = vld [vmem:[#allocation4 + $0x10] ss:$48 sps:$4 sm:$0xff]   ;;  %7235 = vmatprep.mubr.bf16.mxu0 %v10353_v58  ;;  %v9713_v1 = vpop.permute.xlu1 %9712  ;;  %v9750_v54 = vunpack.i.h.bf16 %v13381_v11  ;;  %v9749_v5 = vunpack.i.l.bf16 %v13381_v11  ;;  %v4397_v58 = vsel %vm4375_vm9, %v4348_v0, %v9710_v24 }
 0x2e9   :  { %v10356_v59 = vld [vmem:[#allocation4 + $0x14] ss:$48 sps:$4 sm:$0xff]   ;;  %v5178_v39 = vld [vmem:[#allocation3 + $0x120] sm:$0xf]  ;;  %v5115_v38 = vld [vmem:[#allocation3 + $0x118] sm:$0xf]  ;;  %7236 = vmatmul.mubr.bf16.gmra.mxu0 %v10351_v25  ;;  %7417 = vmatprep.subr.bf16.mxu0 %v10395_v22  ;;  %v9715_v50 = vunpack.i.h.bf16 %v9713_v1  ;;  %v9714_v57 = vunpack.i.l.bf16 %v9713_v1  ;;  %v4396_v25 = vsel %vm4375_vm9, %v4347_v2, %v9709_v41 }
 0x2ea   :  { %v5179_v23 = vld [vmem:[#allocation3 + $0x124] sm:$0xf]  ;;  %5196 = vst [vmem:[#allocation4 + $0x14c] sm:$0xf] %v5178_v39  ;;  %v5116_v56 = vld [vmem:[#allocation3 + $0x11c] sm:$0xf]  ;;  %7298 = vmatprep.mubr.bf16.mxu1 %v10356_v59  ;;  %v4402_v18 = vsel %vm4375_vm9, %v4353_v47, %v9749_v5  ;;  %v4403_v11 = vsel %vm4375_vm9, %v4354_v15, %v9750_v54 }
 0x2eb   :  { %v10378_v20 = vld [vmem:[#allocation5 + $0x460] ss:$8 sps:$4 sm:$0xff]   ;;  %5197 = vst [vmem:[#allocation4 + $0x17c] sm:$0xf] %v5179_v23  ;;  %5133 = vst [vmem:[#allocation4 + $0x324] sm:$0xf] %v5115_v38  ;;  %7299 = vmatmul.mubr.bf16.vlgmr.msra.gmra.mxu1 %v10354_v16  ;;  %v4445_v23 = vsel %vm4424_vm10, %v4396_v25, %v9714_v57  ;;  %v4446_v38 = vsel %vm4424_vm10, %v4397_v58, %v9715_v50  ;;  %v9753_v17 = vpop.permute.xlu0 %9752 }
 0x2ec   :  { %5134 = vst [vmem:[#allocation4 + $0x354] sm:$0xf] %v5116_v56  ;;  %8991 = vst [vmem:[#allocation3 + $0xa8] sm:$0xff] %v8923_v31   ;;  %v10389_v55 = vld [vmem:[#allocation5 + $0x454] ss:$8 sps:$4 sm:$0xff]   ;;  %7513 = vmatpush1.bf16.msra.mxu1 %v10369_v33  ;;  %v9684_v31 = vunpack.i.l.bf16 %v13346_v9  ;;  %v8913_v8 = vpack.c.bf16 %v4446_v38, %v4445_v23  ;;  %v9718_v24 = vpop.permute.xlu1 %9717 }
 0x2ed   :  { %v10393_v43 = vld [vmem:[#allocation5 + $0x390] ss:$8 sps:$4 sm:$0xff]   ;;  %v10362_v7 = vld [vmem:[#allocation4 + $0x74] ss:$48 sps:$4 sm:$0xff]   ;;  %v10365_v14 = vld [vmem:[#allocation4 + $0x2ac] ss:$48 sps:$4 sm:$0xff]   ;;  %7514 = vmatprep.subr.bf16.mxu1 %v10380_v44  ;;  %v9720_v0 = vunpack.i.h.bf16 %v9718_v24  ;;  %v9719_v2 = vunpack.i.l.bf16 %v9718_v24 }
 0x2ee   :  { %v10407_v62 = vld [vmem:[#allocation5 + $0x384] ss:$8 sps:$4 sm:$0xff]   ;;  %v5144_v49 = vld [vmem:[#allocation3 + $0x110] sm:$0xf]  ;;  %7308 = vmatprep.mubr.bf16.mxu1 %v10362_v7  ;;  %v5180_v63 = vld [vmem:[#allocation3 + $0x128] sm:$0xf]  ;;  %7245 = vmatprep.mubr.bf16.mxu0 %v10365_v14 }
 0x2ef   :  { %v5145_v45 = vld [vmem:[#allocation3 + $0x114] sm:$0xf]  ;;  %5162 = vst [vmem:[#allocation4 + $0x1a8] sm:$0xf] %v5144_v49  ;;  %v5181_v29 = vld [vmem:[#allocation3 + $0x12c] sm:$0xf]  ;;  %7418 = vmatpush2.bf16.msra.mxu0 %v10393_v43  ;;  %v9754_v43 = vunpack.i.l.bf16 %v9753_v17  ;;  %v9758_v54 = vpop.permute.xlu0 %9757 }
 0x2f0   :  { %v10360_v26 = vld [vmem:[#allocation4 + $0x70] ss:$48 sps:$4 sm:$0xff]   ;;  %v4958_v32 = vld [vmem:[#allocation3 + $0x94] sm:$0xf]  ;;  %5163 = vst [vmem:[#allocation4 + $0x1d8] sm:$0xf] %v5145_v45  ;;  %7515 = vmatpush1.bf16.msra.mxu1 %v10378_v20  ;;  %7419 = vmatprep.subr.bf16.mxu0 %v10407_v62  ;;  %v9755_v20 = vunpack.i.h.bf16 %v9753_v17  ;;  %v9759_v25 = vunpack.i.l.bf16 %v9758_v54 }
 0x2f1   :  { %v13390_v34 = vld [vmem:[#allocation5 + $0x450] ss:$8 sps:$4 sm:$0xff]   ;;  %v4957_v33 = vld [vmem:[#allocation3 + $0x90] sm:$0xf]  ;;  %5198 = vst [vmem:[#allocation4 + $0x1ac] sm:$0xf] %v5180_v63  ;;  %7516 = vmatprep.subr.bf16.mxu1 %v10389_v55  ;;  %v4451_v36 = vsel %vm4424_vm10, %v4402_v18, %v9754_v43  ;;  %v9725_v63 = vunpack.i.h.bf16 %v13356_v52 }
 0x2f2   :  { %v4988_v30 = vld [vmem:[#allocation3 + $0x90] sm:$0xf]  ;;  %5199 = vst [vmem:[#allocation4 + $0x1dc] sm:$0xf] %v5181_v29  ;;  %v10374_v44 = vld [vmem:[#allocation4 + $0xd4] ss:$48 sps:$4 sm:$0xff]   ;;  %v4452_v49 = vsel %vm4424_vm10, %v4403_v11, %v9755_v20 }
 0x2f3   :  { %v13392_v53 = vld [vmem:[#allocation5 + $0x380] ss:$8 sps:$4 sm:$0xff]   ;;  %v10383_v22 = vld [vmem:[#allocation4 + $0x30c] ss:$48 sps:$4 sm:$0xff]   ;;  %4975 = vst [vmem:[#allocation4 + $0x134] sm:$0xf] %v4957_v33  ;;  %7309 = vmatmul.mubr.bf16.gmra.mxu1 %v10360_v26  ;;  %v8928_v29 = vpack.c.bf16 %v4452_v49, %v4451_v36  ;;  %v4350_v26 = vsel %vm4326_vm8, %v12872_v61, %v9685_v21  ;;  %v4349_v33 = vsel %vm4326_vm8, %v12524_v6, %v9684_v31 }
 0x2f4   :  { %4976 = vst [vmem:[#allocation4 + $0x164] sm:$0xf] %v4958_v32  ;;  %v10398_v27 = vld [vmem:[#allocation5 + $0x444] ss:$8 sps:$4 sm:$0xff]   ;;  %5006 = vst [vmem:[#allocation4 + $0x18] sm:$0xf] %v4988_v30  ;;  %7318 = vmatprep.mubr.bf16.mxu1 %v10374_v44  ;;  %7517 = vmatpush1.bf16.msra.mxu1 %v13390_v34  ;;  %v9724_v32 = vunpack.i.l.bf16 %v13356_v52  ;;  %v9763_v30 = vpop.permute.xlu1 %9762  ;;  %v4398_v61 = vsel %vm4375_vm9, %v4349_v33, %v9719_v2  ;;  %v4399_v21 = vsel %vm4375_vm9, %v4350_v26, %v9720_v0 }
 0x2f5   :  { %v4989_v12 = vld [vmem:[#allocation3 + $0x94] sm:$0xf]  ;;  %v10416_v16 = vld [vmem:[#allocation5 + $0x574] ss:$8 sps:$4 sm:$0xff]   ;;  %v4926_v59 = vld [vmem:[#allocation3 + $0x90] sm:$0xf]  ;;  %7420 = vmatpush2.bf16.msra.mxu0 %v13392_v53  ;;  %7518 = vmatprep.subr.bf16.mxu1 %v10398_v27  ;;  %v9760_v53 = vunpack.i.h.bf16 %v9758_v54  ;;  %v9765_v58 = vunpack.i.h.bf16 %v9763_v30  ;;  %v9764_v9 = vunpack.i.l.bf16 %v9763_v30  ;;  %v4356_v27 = vsel %vm4326_vm8, %v12909_v3, %v9725_v63 }
 0x2f6   :  { %v4927_v39 = vld [vmem:[#allocation3 + $0x94] sm:$0xf]  ;;  %v10363_v56 = vld [vmem:[#allocation4 + $0x2a8] ss:$48 sps:$4 sm:$0xff]   ;;  %5007 = vst [vmem:[#allocation4 + $0x48] sm:$0xf] %v4989_v12  ;;  %7635 = vmatprep.subr.bf16.mxu0 %v10416_v16  ;;  %v4355_v23 = vsel %vm4326_vm8, %v12623_v10, %v9724_v32 }
 0x2f7   :  { %4944 = vst [vmem:[#allocation4 + $0x250] sm:$0xf] %v4926_v59  ;;  %4945 = vst [vmem:[#allocation4 + $0x280] sm:$0xf] %v4927_v39  ;;  %v5025_v41 = vld [vmem:[#allocation3 + $0xa8] sm:$0xf]  ;;  %7246 = vmatmul.mubr.bf16.gmra.mxu0 %v10363_v56  ;;  %v4447_v12 = vsel %vm4424_vm10, %v4398_v61, %v9764_v9  ;;  %v4448_v16 = vsel %vm4424_vm10, %v4399_v21, %v9765_v58  ;;  %v9768_v39 = vpop.permute.xlu0 %9767  ;;  %v4404_v3 = vsel %vm4375_vm9, %v4355_v23, %v9759_v25 }
 0x2f8   :  { %v5026_v19 = vld [vmem:[#allocation3 + $0xac] sm:$0xf]  ;;  %v4963_v7 = vld [vmem:[#allocation3 + $0xa8] sm:$0xf]  ;;  %5043 = vst [vmem:[#allocation4 + $0x1c] sm:$0xf] %v5025_v41  ;;  %7255 = vmatprep.mubr.bf16.mxu0 %v10383_v22  ;;  %v8918_v38 = vpack.c.bf16 %v4448_v16, %v4447_v12  ;;  %v9770_v56 = vunpack.i.h.bf16 %v9768_v39  ;;  %v9769_v17 = vunpack.i.l.bf16 %v9768_v39  ;;  %v9773_v47 = vpop.permute.xlu1 %9772  ;;  %v4405_v20 = vsel %vm4375_vm9, %v4356_v27, %v9760_v53 }
 0x2f9   :  { %5044 = vst [vmem:[#allocation4 + $0x4c] sm:$0xf] %v5026_v19  ;;  %v4964_v55 = vld [vmem:[#allocation3 + $0xac] sm:$0xf]  ;;  %4981 = vst [vmem:[#allocation4 + $0x254] sm:$0xf] %v4963_v7  ;;  %v9775_v43 = vunpack.i.h.bf16 %v9773_v47  ;;  %v9774_v24 = vunpack.i.l.bf16 %v9773_v47 }
 0x2fa   :  { %v4994_v14 = vld [vmem:[#allocation3 + $0xa8] sm:$0xf]  ;;  %v4995_v62 = vld [vmem:[#allocation3 + $0xac] sm:$0xf]  ;;  %8989 = vst [vmem:[#allocation3 + $0x98] sm:$0xff] %v8913_v8   ;;  %8992 = vst [vmem:[#allocation3 + $0xb0] sm:$0xff] %v8928_v29   ;;  %v4453_v10 = vsel %vm4424_vm10, %v4404_v3, %v9769_v17  ;;  %v4454_v18 = vsel %vm4424_vm10, %v4405_v20, %v9770_v56 }
 0x2fb   :  { %v10396_v28 = vld [vmem:[#allocation5 + $0x440] ss:$8 sps:$4 sm:$0xff]   ;;  %4982 = vst [vmem:[#allocation4 + $0x284] sm:$0xf] %v4964_v55  ;;  %5012 = vst [vmem:[#allocation4 + $0x138] sm:$0xf] %v4994_v14  ;;  %v8933_v14 = vpack.c.bf16 %v4454_v18, %v4453_v10  ;;  %v4358_v54 = vsel %vm4326_vm8, %v12684_v42, %v9775_v43 }
 0x2fc   :  { %5013 = vst [vmem:[#allocation4 + $0x168] sm:$0xf] %v4995_v62  ;;  %v5146_v1 = vld [vmem:[#allocation3 + $0x118] sm:$0xf]  ;;  %v5147_v45 = vld [vmem:[#allocation3 + $0x11c] sm:$0xf]  ;;  %7519 = vmatpush1.bf16.msra.mxu1 %v10396_v28  ;;  %v9778_v62 = vpop.permute.xlu0 %9777  ;;  %v9783_v28 = vpop.permute.xlu1 %9782 }
 0x2fd   :  { %5164 = vst [vmem:[#allocation4 + $0x208] sm:$0xf] %v5146_v1  ;;  %5165 = vst [vmem:[#allocation4 + $0x238] sm:$0xf] %v5147_v45  ;;  %v5182_v5 = vld [vmem:[#allocation3 + $0x130] sm:$0xf]  ;;  %v9780_v0 = vunpack.i.h.bf16 %v9778_v62  ;;  %v9779_v2 = vunpack.i.l.bf16 %v9778_v62 }
 0x2fe   :  { %v5183_v50 = vld [vmem:[#allocation3 + $0x134] sm:$0xf]  ;;  %v5148_v57 = vld [vmem:[#allocation3 + $0x120] sm:$0xf]  ;;  %v10404_v34 = vld [vmem:[#allocation5 + $0x434] ss:$8 sps:$4 sm:$0xff]  }
 0x2ff   :  { %5200 = vst [vmem:[#allocation4 + $0x20c] sm:$0xf] %v5182_v5  ;;  %5201 = vst [vmem:[#allocation4 + $0x23c] sm:$0xf] %v5183_v50  ;;  %v10402_v44 = vld [vmem:[#allocation5 + $0x430] ss:$8 sps:$4 sm:$0xff]   ;;  %7520 = vmatprep.subr.bf16.mxu1 %v10404_v34  ;;  %v4357_v5 = vsel %vm4326_vm8, %v13061_v35, %v9774_v24  ;;  %v9785_v50 = vunpack.i.h.bf16 %v9783_v28  ;;  %v4407_v25 = vsel %vm4375_vm9, %v4358_v54, %v9780_v0 }
 0x300   :  { %5166 = vst [vmem:[#allocation4 + $0x268] sm:$0xf] %v5148_v57  ;;  %v10372_v6 = vld [vmem:[#allocation4 + $0xd0] ss:$48 sps:$4 sm:$0xff]   ;;  %v10413_v22 = vld [vmem:[#allocation5 + $0x424] ss:$8 sps:$4 sm:$0xff]   ;;  %7521 = vmatpush1.bf16.msra.mxu1 %v10402_v44  ;;  %v9784_v57 = vunpack.i.l.bf16 %v9783_v28  ;;  %v4406_v53 = vsel %vm4375_vm9, %v4357_v5, %v9779_v2  ;;  %v9788_v21 = vpop.permute.xlu0 %9787  ;;  %v9793_v27 = vpop.permute.xlu1 %9792 }
 0x301   :  { %v5149_v52 = vld [vmem:[#allocation3 + $0x124] sm:$0xf]  ;;  %v10381_v59 = vld [vmem:[#allocation4 + $0x308] ss:$48 sps:$4 sm:$0xff]   ;;  %v5185_v15 = vld [vmem:[#allocation3 + $0x13c] sm:$0xf]  ;;  %7319 = vmatmul.mubr.bf16.gmra.mxu1 %v10372_v6  ;;  %7522 = vmatprep.subr.bf16.mxu1 %v10413_v22  ;;  %v4456_v44 = vsel %vm4424_vm10, %v4407_v25, %v9785_v50  ;;  %v9790_v22 = vunpack.i.h.bf16 %v9788_v21  ;;  %v9794_v39 = vunpack.i.l.bf16 %v9793_v27 }
 0x302   :  { %5167 = vst [vmem:[#allocation4 + $0x298] sm:$0xf] %v5149_v52  ;;  %v5184_v31 = vld [vmem:[#allocation3 + $0x138] sm:$0xf]  ;;  %v10392_v8 = vld [vmem:[#allocation4 + $0x134] ss:$48 sps:$4 sm:$0xff]   ;;  %7256 = vmatmul.mubr.bf16.gmra.mxu0 %v10381_v59  ;;  %v4455_v9 = vsel %vm4424_vm10, %v4406_v53, %v9784_v57  ;;  %v9789_v52 = vunpack.i.l.bf16 %v9788_v21  ;;  %v9795_v59 = vunpack.i.h.bf16 %v9793_v27 }
 0x303   :  { %5202 = vst [vmem:[#allocation4 + $0x26c] sm:$0xf] %v5184_v31  ;;  %5203 = vst [vmem:[#allocation4 + $0x29c] sm:$0xf] %v5185_v15  ;;  %v10401_v41 = vld [vmem:[#allocation4 + $0x1c] ss:$48 sps:$4 sm:$0xff]   ;;  %7328 = vmatprep.mubr.bf16.mxu1 %v10392_v8  ;;  %v8938_v6 = vpack.c.bf16 %v4456_v44, %v4455_v9  ;;  %v4360_v15 = vsel %vm4326_vm8, %v13090_v13, %v9790_v22 }
 0x304   :  { %v4959_v19 = vld [vmem:[#allocation3 + $0x98] sm:$0xf]  ;;  %v4960_v7 = vld [vmem:[#allocation3 + $0x9c] sm:$0xf]  ;;  %8990 = vst [vmem:[#allocation3 + $0xa0] sm:$0xff] %v8918_v38   ;;  %7421 = vmatprep.mubr.bf16.mxu0 %v10401_v41  ;;  %8993 = vst [vmem:[#allocation3 + $0xb8] sm:$0xff] %v8933_v14   ;;  %v9798_v3 = vpop.permute.xlu0 %9797  ;;  %v4409_v18 = vsel %vm4375_vm9, %v4360_v15, %v9795_v59 }
 0x305   :  { %4977 = vst [vmem:[#allocation4 + $0x194] sm:$0xf] %v4959_v19  ;;  %4978 = vst [vmem:[#allocation4 + $0x1c4] sm:$0xf] %v4960_v7  ;;  %v4990_v11 = vld [vmem:[#allocation3 + $0x98] sm:$0xf]  ;;  %v9800_v41 = vunpack.i.h.bf16 %v9798_v3  ;;  %v9799_v19 = vunpack.i.l.bf16 %v9798_v3  ;;  %v9803_v7 = vpop.permute.xlu1 %9802 }
 0x306   :  { %v4991_v55 = vld [vmem:[#allocation3 + $0x9c] sm:$0xf]  ;;  %v10411_v36 = vld [vmem:[#allocation5 + $0x420] ss:$8 sps:$4 sm:$0xff]   ;;  %5008 = vst [vmem:[#allocation4 + $0x78] sm:$0xf] %v4990_v11  ;;  %v9804_v14 = vunpack.i.l.bf16 %v9803_v7 }
 0x307   :  { %5009 = vst [vmem:[#allocation4 + $0xa8] sm:$0xf] %v4991_v55  ;;  %v10422_v49 = vld [vmem:[#allocation5 + $0x414] ss:$8 sps:$4 sm:$0xff]   ;;  %v10414_v1 = vld [vmem:[#allocation5 + $0x570] ss:$8 sps:$4 sm:$0xff]   ;;  %7523 = vmatpush1.bf16.msra.mxu1 %v10411_v36  ;;  %v9805_v55 = vunpack.i.h.bf16 %v9803_v7 }
 0x308   :  { %v5027_v45 = vld [vmem:[#allocation3 + $0xb0] sm:$0xf]  ;;  %v5028_v63 = vld [vmem:[#allocation3 + $0xb4] sm:$0xf]  ;;  %v4928_v29 = vld [vmem:[#allocation3 + $0x98] sm:$0xf]  ;;  %7524 = vmatprep.subr.bf16.mxu1 %v10422_v49  ;;  %v9808_v54 = vpop.permute.xlu0 %9807 }
 0x309   :  { %5045 = vst [vmem:[#allocation4 + $0x7c] sm:$0xf] %v5027_v45  ;;  %5046 = vst [vmem:[#allocation4 + $0xac] sm:$0xf] %v5028_v63  ;;  %v10420_v26 = vld [vmem:[#allocation5 + $0x410] ss:$8 sps:$4 sm:$0xff]  }
 0x30a   :  { %v10425_v33 = vld [vmem:[#allocation5 + $0x564] ss:$8 sps:$4 sm:$0xff]   ;;  %4946 = vst [vmem:[#allocation4 + $0x2b0] sm:$0xf] %v4928_v29  ;;  %v4965_v30 = vld [vmem:[#allocation3 + $0xb0] sm:$0xf] }
 0x30b   :  { %v4929_v32 = vld [vmem:[#allocation3 + $0x9c] sm:$0xf]  ;;  %v4966_v34 = vld [vmem:[#allocation3 + $0xb4] sm:$0xf]  ;;  %4983 = vst [vmem:[#allocation4 + $0x2b4] sm:$0xf] %v4965_v30  ;;  %7525 = vmatpush1.bf16.msra.mxu1 %v10420_v26  ;;  %v9810_v26 = vunpack.i.h.bf16 %v9808_v54 }
 0x30c   :  { %4947 = vst [vmem:[#allocation4 + $0x2e0] sm:$0xf] %v4929_v32  ;;  %4984 = vst [vmem:[#allocation4 + $0x2e4] sm:$0xf] %v4966_v34  ;;  %v4996_v42 = vld [vmem:[#allocation3 + $0xb0] sm:$0xf]  ;;  %v9813_v32 = vpop.permute.xlu1 %9812 }
 0x30d   :  { %v4997_v58 = vld [vmem:[#allocation3 + $0xb4] sm:$0xf]  ;;  %v10390_v35 = vld [vmem:[#allocation4 + $0x130] ss:$48 sps:$4 sm:$0xff]   ;;  %v10399_v61 = vld [vmem:[#allocation4 + $0x18] ss:$48 sps:$4 sm:$0xff]   ;;  %v9815_v44 = vunpack.i.h.bf16 %v9813_v32 }
 0x30e   :  { %5014 = vst [vmem:[#allocation4 + $0x198] sm:$0xf] %v4996_v42  ;;  %5015 = vst [vmem:[#allocation4 + $0x1c8] sm:$0xf] %v4997_v58  ;;  %v10423_v12 = vld [vmem:[#allocation5 + $0x560] ss:$8 sps:$4 sm:$0xff]   ;;  %7329 = vmatmul.mubr.bf16.gmra.mxu1 %v10390_v35  ;;  %7422 = vmatmul.mubr.bf16.vlgmr.msra.gmra.mxu0 %v10399_v61  ;;  %v9814_v61 = vunpack.i.l.bf16 %v9813_v32 }
 0x30f   :  { %v10431_v16 = vld [vmem:[#allocation5 + $0x404] ss:$8 sps:$4 sm:$0xff]   ;;  %v10429_v31 = vld [vmem:[#allocation5 + $0x400] ss:$8 sps:$4 sm:$0xff]   ;;  %8994 = vst [vmem:[#allocation3 + $0xc0] sm:$0xff] %v8938_v6   ;;  %7636 = vmatpush1.bf16.msra.mxu0 %v10414_v1  ;;  %v4458_v1 = vsel %vm4424_vm10, %v4409_v18, %v9800_v41  ;;  %v14315_v42 = vld [vmem:[#allocation18_spill] sm:$0xff] }
 0x310   :  { %v14314_v23 = vld [vmem:[#allocation17_spill] sm:$0xff]  ;;  %v10410_v56 = vld [vmem:[#allocation4 + $0x194] ss:$48 sps:$4 sm:$0xff]   ;;  %v4961_v17 = vld [vmem:[#allocation3 + $0xa0] sm:$0xf]  ;;  %7637 = vmatprep.subr.bf16.mxu0 %v10425_v33  ;;  %7526 = vmatprep.subr.bf16.mxu1 %v10431_v16  ;;  %v9809_v33 = vunpack.i.l.bf16 %v9808_v54  ;;  %v4362_v58 = vsel %vm4326_vm8, %v14315_v42, %v9805_v55 }
 0x311   :  { %v4359_v38 = vsel %vm4326_vm8, %v14314_v23, %v9789_v52  ;;  %v4962_v47 = vld [vmem:[#allocation3 + $0xa4] sm:$0xf]  ;;  %4979 = vst [vmem:[#allocation4 + $0x1f4] sm:$0xf] %v4961_v17  ;;  %v4992_v20 = vld [vmem:[#allocation3 + $0xa0] sm:$0xf]  ;;  %7338 = vmatprep.mubr.bf16.mxu1 %v10410_v56  ;;  %7527 = vmatpush1.bf16.msra.mxu1 %v10429_v31  ;;  %v9818_v31 = vpop.permute.xlu0 %9817 }
 0x312   :  { %v10434_v8 = vld [vmem:[#allocation5 + $0x554] ss:$8 sps:$4 sm:$0xff]   ;;  %4980 = vst [vmem:[#allocation4 + $0x224] sm:$0xf] %v4962_v47  ;;  %v4930_v24 = vld [vmem:[#allocation3 + $0xa0] sm:$0xf]  ;;  %v4408_v11 = vsel %vm4375_vm9, %v4359_v38, %v9794_v39  ;;  %v9820_v17 = vunpack.i.h.bf16 %v9818_v31  ;;  %v9819_v47 = vunpack.i.l.bf16 %v9818_v31 }
 0x313   :  { %v4993_v43 = vld [vmem:[#allocation3 + $0xa4] sm:$0xf]  ;;  %v10432_v13 = vld [vmem:[#allocation5 + $0x550] ss:$8 sps:$4 sm:$0xff]   ;;  %5010 = vst [vmem:[#allocation4 + $0xd8] sm:$0xf] %v4992_v20  ;;  %v4457_v28 = vsel %vm4424_vm10, %v4408_v11, %v9799_v19  ;;  %7638 = vmatpush1.bf16.msra.mxu0 %v10423_v12  ;;  %v4411_v12 = vsel %vm4375_vm9, %v4362_v58, %v9810_v26 }
 0x314   :  { %5011 = vst [vmem:[#allocation4 + $0x108] sm:$0xf] %v4993_v43  ;;  %v10440_v10 = vld [vmem:[#allocation5 + $0x4f4] ss:$8 sps:$4 sm:$0xff]   ;;  %4948 = vst [vmem:[#allocation4 + $0x310] sm:$0xf] %v4930_v24  ;;  %v8943_v29 = vpack.c.bf16 %v4458_v1, %v4457_v28  ;;  %7639 = vmatprep.subr.bf16.mxu0 %v10434_v8  ;;  %v4460_v39 = vsel %vm4424_vm10, %v4411_v12, %v9815_v44  ;;  %v9823_v8 = vpop.permute.xlu1 %9822 }
 0x315   :  { %v10419_v62 = vld [vmem:[#allocation4 + $0x7c] ss:$48 sps:$4 sm:$0xff]   ;;  %v5029_v36 = vld [vmem:[#allocation3 + $0xb8] sm:$0xf]  ;;  %v10438_v0 = vld [vmem:[#allocation5 + $0x4f0] ss:$8 sps:$4 sm:$0xff]   ;;  %7528 = vmatprep.subr.bf16.mxu1 %v10440_v10  ;;  %v9825_v41 = vunpack.i.h.bf16 %v9823_v8  ;;  %v9824_v19 = vunpack.i.l.bf16 %v9823_v8  ;;  %v9828_v1 = vpop.permute.xlu0 %9827 }
 0x316   :  { %v5030_v49 = vld [vmem:[#allocation3 + $0xbc] sm:$0xf]  ;;  %v10408_v45 = vld [vmem:[#allocation4 + $0x190] ss:$48 sps:$4 sm:$0xff]   ;;  %5047 = vst [vmem:[#allocation4 + $0xdc] sm:$0xf] %v5029_v36  ;;  %7431 = vmatprep.mubr.bf16.mxu0 %v10419_v62  ;;  %7529 = vmatpush2.bf16.msra.mxu1 %v10438_v0  ;;  %v9829_v54 = vunpack.i.l.bf16 %v9828_v1 }
 0x317   :  { %v10446_v2 = vld [vmem:[#allocation5 + $0x544] ss:$8 sps:$4 sm:$0xff]   ;;  %5048 = vst [vmem:[#allocation4 + $0x10c] sm:$0xf] %v5030_v49  ;;  %v10417_v5 = vld [vmem:[#allocation4 + $0x78] ss:$48 sps:$4 sm:$0xff]   ;;  %7339 = vmatmul.mubr.bf16.gmra.mxu1 %v10408_v45  ;;  %7640 = vmatpush1.bf16.msra.mxu0 %v10432_v13 }
 0x318   :  { %v10449_v63 = vld [vmem:[#allocation5 + $0x4e4] ss:$8 sps:$4 sm:$0xff]   ;;  %v4931_v50 = vld [vmem:[#allocation3 + $0xa4] sm:$0xf]  ;;  %v4967_v57 = vld [vmem:[#allocation3 + $0xb8] sm:$0xf]  ;;  %7432 = vmatmul.mubr.bf16.gmra.mxu0 %v10417_v5  ;;  %7641 = vmatprep.subr.bf16.mxu0 %v10446_v2  ;;  %v9833_v5 = vpop.permute.xlu1 %9832 }
 0x319   :  { %v10444_v30 = vld [vmem:[#allocation5 + $0x540] ss:$8 sps:$4 sm:$0xff]   ;;  %4949 = vst [vmem:[#allocation4 + $0x340] sm:$0xf] %v4931_v50  ;;  %v4968_v34 = vld [vmem:[#allocation3 + $0xbc] sm:$0xf]  ;;  %7530 = vmatprep.subr.bf16.mxu1 %v10449_v63  ;;  %v9835_v32 = vunpack.i.h.bf16 %v9833_v5 }
 0x31a   :  { %4985 = vst [vmem:[#allocation4 + $0x314] sm:$0xf] %v4967_v57  ;;  %v4998_v53 = vld [vmem:[#allocation3 + $0xb8] sm:$0xf]  ;;  %v4999_v25 = vld [vmem:[#allocation3 + $0xbc] sm:$0xf] }
 0x31b   :  { %8995 = vst [vmem:[#allocation3 + $0xc8] sm:$0xff] %v8943_v29   ;;  %v14316_v35 = vld [vmem:[#allocation13_spill] sm:$0xff]  ;;  %v5031_v6 = vld [vmem:[#allocation3 + $0xc0] sm:$0xf]  ;;  %v5032_v22 = vld [vmem:[#allocation3 + $0xc4] sm:$0xf]  ;;  %7642 = vmatpush1.bf16.msra.mxu0 %v10444_v30  ;;  %v9830_v29 = vunpack.i.h.bf16 %v9828_v1  ;;  %v9834_v30 = vunpack.i.l.bf16 %v9833_v5 }
 0x31c   :  { %v4361_v9 = vsel %vm4326_vm8, %v14316_v35, %v9804_v14  ;;  %v10447_v21 = vld [vmem:[#allocation5 + $0x4e0] ss:$8 sps:$4 sm:$0xff]   ;;  %4986 = vst [vmem:[#allocation4 + $0x344] sm:$0xf] %v4968_v34  ;;  %5016 = vst [vmem:[#allocation4 + $0x1f8] sm:$0xf] %v4998_v53  ;;  %v9843_v12 = vpop.permute.xlu1 %9842 }
 0x31d   :  { %5017 = vst [vmem:[#allocation4 + $0x228] sm:$0xf] %v4999_v25  ;;  %v5062_v52 = vld [vmem:[#allocation3 + $0xc0] sm:$0xf]  ;;  %v4410_v27 = vsel %vm4375_vm9, %v4361_v9, %v9809_v33  ;;  %5049 = vst [vmem:[#allocation4 + $0x13c] sm:$0xf] %v5031_v6  ;;  %7531 = vmatpush2.bf16.msra.mxu1 %v10447_v21  ;;  %v9844_v8 = vunpack.i.l.bf16 %v9843_v12 }
 0x31e   :  { %5050 = vst [vmem:[#allocation4 + $0x16c] sm:$0xf] %v5032_v22  ;;  %v10455_v16 = vld [vmem:[#allocation5 + $0x534] ss:$8 sps:$4 sm:$0xff]   ;;  %5080 = vst [vmem:[#allocation4 + $0x20] sm:$0xf] %v5062_v52  ;;  %v4459_v59 = vsel %vm4424_vm10, %v4410_v27, %v9814_v61  ;;  %v9838_v61 = vpop.permute.xlu0 %9837 }
 0x31f   :  { %v10428_v15 = vld [vmem:[#allocation4 + $0x1f4] ss:$48 sps:$4 sm:$0xff]   ;;  %v5000_v38 = vld [vmem:[#allocation3 + $0xc0] sm:$0xf]  ;;  %v8948_v56 = vpack.c.bf16 %v4460_v39, %v4459_v59  ;;  %v5150_v24 = vld [vmem:[#allocation3 + $0x128] sm:$0xf]  ;;  %7643 = vmatprep.subr.bf16.mxu0 %v10455_v16  ;;  %v9840_v52 = vunpack.i.h.bf16 %v9838_v61  ;;  %v9839_v27 = vunpack.i.l.bf16 %v9838_v61 }
 0x320   :  { %v5063_v23 = vld [vmem:[#allocation3 + $0xc4] sm:$0xf]  ;;  %v10453_v3 = vld [vmem:[#allocation5 + $0x530] ss:$8 sps:$4 sm:$0xff]   ;;  %5018 = vst [vmem:[#allocation4 + $0x258] sm:$0xf] %v5000_v38  ;;  %7348 = vmatprep.mubr.bf16.mxu1 %v10428_v15 }
 0x321   :  { %v10458_v20 = vld [vmem:[#allocation5 + $0x4d4] ss:$8 sps:$4 sm:$0xff]   ;;  %5081 = vst [vmem:[#allocation4 + $0x50] sm:$0xf] %v5063_v23  ;;  %v10426_v7 = vld [vmem:[#allocation4 + $0x1f0] ss:$48 sps:$4 sm:$0xff]   ;;  %7644 = vmatpush1.bf16.msra.mxu0 %v10453_v3 }
 0x322   :  { %v5001_v43 = vld [vmem:[#allocation3 + $0xc4] sm:$0xf]  ;;  %v10435_v13 = vld [vmem:[#allocation4 + $0xd8] ss:$48 sps:$4 sm:$0xff]   ;;  %v10467_v18 = vld [vmem:[#allocation5 + $0x524] ss:$8 sps:$4 sm:$0xff]   ;;  %7532 = vmatprep.subr.bf16.mxu1 %v10458_v20  ;;  %7349 = vmatmul.mubr.bf16.gmra.mxu1 %v10426_v7 }
 0x323   :  { %v10456_v10 = vld [vmem:[#allocation5 + $0x4d0] ss:$8 sps:$4 sm:$0xff]   ;;  %5019 = vst [vmem:[#allocation4 + $0x288] sm:$0xf] %v5001_v43  ;;  %5168 = vst [vmem:[#allocation4 + $0x2c8] sm:$0xf] %v5150_v24  ;;  %7645 = vmatprep.subr.bf16.mxu0 %v10467_v18 }
 0x324   :  { %8996 = vst [vmem:[#allocation3 + $0xd0] sm:$0xff] %v8948_v56   ;;  %v14317_v11 = vld [vmem:[#allocation14_spill] sm:$0xff]  ;;  %v14318_v14 = vld [vmem:[#allocation12_spill] sm:$0xff]  ;;  %v10437_v36 = vld [vmem:[#allocation4 + $0xdc] ss:$48 sps:$4 sm:$0xff]   ;;  %7533 = vmatpush2.bf16.msra.mxu1 %v10456_v10 }
 0x325   :  { %v4364_v55 = vsel %vm4326_vm8, %v14317_v11, %v9820_v17  ;;  %v4363_v62 = vsel %vm4326_vm8, %v14318_v14, %v9819_v47  ;;  %v10443_v49 = vld [vmem:[#allocation4 + $0x254] ss:$48 sps:$4 sm:$0xff]   ;;  %v5151_v2 = vld [vmem:[#allocation3 + $0x12c] sm:$0xf]  ;;  %v5186_v28 = vld [vmem:[#allocation3 + $0x140] sm:$0xf]  ;;  %7441 = vmatprep.mubr.bf16.mxu0 %v10437_v36  ;;  %v9845_v47 = vunpack.i.h.bf16 %v9843_v12  ;;  %v9848_v36 = vpop.permute.xlu0 %9847 }
 0x326   :  { %v10464_v0 = vld [vmem:[#allocation5 + $0x4c4] ss:$8 sps:$4 sm:$0xff]   ;;  %5169 = vst [vmem:[#allocation4 + $0x2f8] sm:$0xf] %v5151_v2  ;;  %v5187_v45 = vld [vmem:[#allocation3 + $0x144] sm:$0xf]  ;;  %v4413_v26 = vsel %vm4375_vm9, %v4364_v55, %v9825_v41  ;;  %v4412_v33 = vsel %vm4375_vm9, %v4363_v62, %v9824_v19  ;;  %7442 = vmatmul.mubr.bf16.gmra.mxu0 %v10435_v13  ;;  %7358 = vmatprep.mubr.bf16.mxu1 %v10443_v49  ;;  %v9849_v2 = vunpack.i.l.bf16 %v9848_v36 }
 0x327   :  { %5204 = vst [vmem:[#allocation4 + $0x2cc] sm:$0xf] %v5186_v28  ;;  %v5152_v63 = vld [vmem:[#allocation3 + $0x130] sm:$0xf]  ;;  %v5033_v50 = vld [vmem:[#allocation3 + $0xc8] sm:$0xf]  ;;  %v4461_v25 = vsel %vm4424_vm10, %v4412_v33, %v9829_v54  ;;  %v4462_v42 = vsel %vm4424_vm10, %v4413_v26, %v9830_v29  ;;  %7534 = vmatprep.subr.bf16.mxu1 %v10464_v0  ;;  %v9850_v0 = vunpack.i.h.bf16 %v9848_v36  ;;  %v9853_v28 = vpop.permute.xlu1 %9852 }
 0x328   :  { %v5034_v57 = vld [vmem:[#allocation3 + $0xcc] sm:$0xf]  ;;  %5205 = vst [vmem:[#allocation4 + $0x2fc] sm:$0xf] %v5187_v45  ;;  %5170 = vst [vmem:[#allocation4 + $0x328] sm:$0xf] %v5152_v63  ;;  %v8953_v44 = vpack.c.bf16 %v4462_v42, %v4461_v25  ;;  %v9855_v45 = vunpack.i.h.bf16 %v9853_v28  ;;  %v9854_v63 = vunpack.i.l.bf16 %v9853_v28 }
 0x329   :  { %v10462_v34 = vld [vmem:[#allocation5 + $0x4c0] ss:$8 sps:$4 sm:$0xff]   ;;  %5051 = vst [vmem:[#allocation4 + $0x19c] sm:$0xf] %v5033_v50  ;;  %5052 = vst [vmem:[#allocation4 + $0x1cc] sm:$0xf] %v5034_v57  ;;  %v4368_v5 = vsel %vm4326_vm8, %v13166_v48, %v9850_v0  ;;  %v9858_v33 = vpop.permute.xlu0 %9857 }
 0x32a   :  { %v10465_v53 = vld [vmem:[#allocation5 + $0x520] ss:$8 sps:$4 sm:$0xff]   ;;  %v10452_v58 = vld [vmem:[#allocation4 + $0x13c] ss:$48 sps:$4 sm:$0xff]   ;;  %v5064_v21 = vld [vmem:[#allocation3 + $0xc8] sm:$0xf]  ;;  %7535 = vmatpush2.bf16.msra.mxu1 %v10462_v34  ;;  %v9860_v25 = vunpack.i.h.bf16 %v9858_v33  ;;  %v9859_v42 = vunpack.i.l.bf16 %v9858_v33 }
 0x32b   :  { %v10473_v35 = vld [vmem:[#allocation5 + $0x4b4] ss:$8 sps:$4 sm:$0xff]   ;;  %v5002_v22 = vld [vmem:[#allocation3 + $0xc8] sm:$0xf]  ;;  %7451 = vmatprep.mubr.bf16.mxu0 %v10452_v58  ;;  %5082 = vst [vmem:[#allocation4 + $0x80] sm:$0xf] %v5064_v21  ;;  %7646 = vmatpush1.bf16.msra.mxu0 %v10465_v53  ;;  %v13474_v53 = vpop.f32.mrf.mxu1  ;;  %v9863_v58 = vpop.permute.xlu1 %9862 }
 0x32c   :  { %v10476_v9 = vld [vmem:[#allocation5 + $0x514] ss:$8 sps:$4 sm:$0xff]   ;;  %v10474_v16 = vld [vmem:[#allocation5 + $0x510] ss:$8 sps:$4 sm:$0xff]   ;;  %5020 = vst [vmem:[#allocation4 + $0x2b8] sm:$0xf] %v5002_v22  ;;  %7536 = vmatprep.subr.bf16.mxu1 %v10473_v35  ;;  %v9865_v21 = vunpack.i.h.bf16 %v9863_v58 }
 0x32d   :  { %v5065_v6 = vld [vmem:[#allocation3 + $0xcc] sm:$0xf]  ;;  %v5153_v39 = vld [vmem:[#allocation3 + $0x134] sm:$0xf]  ;;  %v5188_v31 = vld [vmem:[#allocation3 + $0x148] sm:$0xf]  ;;  %7647 = vmatprep.subr.bf16.mxu0 %v10476_v9 }
 0x32e   :  { %5083 = vst [vmem:[#allocation4 + $0xb0] sm:$0xf] %v5065_v6  ;;  %v5003_v59 = vld [vmem:[#allocation3 + $0xcc] sm:$0xf]  ;;  %8997 = vst [vmem:[#allocation3 + $0xd8] sm:$0xff] %v8953_v44   ;;  %v14319_v15 = vld [vmem:[#allocation21_spill] sm:$0xff]  ;;  %v4417_v44 = vsel %vm4375_vm9, %v4368_v5, %v9855_v45  ;;  %v9864_v6 = vunpack.i.l.bf16 %v9863_v58 }
 0x32f   :  { %v4366_v23 = vsel %vm4326_vm8, %v14319_v15, %v9835_v32  ;;  %v14320_v38 = vld [vmem:[#allocation20_spill] sm:$0xff]  ;;  %v10471_v3 = vld [vmem:[#allocation5 + $0x4b0] ss:$8 sps:$4 sm:$0xff]   ;;  %5021 = vst [vmem:[#allocation4 + $0x2e8] sm:$0xf] %v5003_v59  ;;  %7648 = vmatpush1.bf16.msra.mxu0 %v10474_v16  ;;  %v4466_v16 = vsel %vm4424_vm10, %v4417_v44, %v9860_v25 }
 0x330   :  { %v4365_v56 = vsel %vm4326_vm8, %v14320_v38, %v9834_v30  ;;  %v10441_v17 = vld [vmem:[#allocation4 + $0x250] ss:$48 sps:$4 sm:$0xff]   ;;  %v5036_v43 = vld [vmem:[#allocation3 + $0xd4] sm:$0xf]  ;;  %5171 = vst [vmem:[#allocation4 + $0x358] sm:$0xf] %v5153_v39  ;;  %v4415_v19 = vsel %vm4375_vm9, %v4366_v23, %v9840_v52  ;;  %7537 = vmatpush2.bf16.msra.mxu1 %v10471_v3  ;;  %v9868_v38 = vpop.permute.xlu0 %9867  ;;  %v9873_v3 = vpop.permute.xlu1 %9872 }
 0x331   :  { %v5035_v20 = vld [vmem:[#allocation3 + $0xd0] sm:$0xf]  ;;  %5206 = vst [vmem:[#allocation4 + $0x32c] sm:$0xf] %v5188_v31  ;;  %v4414_v41 = vsel %vm4375_vm9, %v4365_v56, %v9839_v27  ;;  %v10482_v7 = vld [vmem:[#allocation5 + $0x4a4] ss:$8 sps:$4 sm:$0xff]   ;;  %v4464_v14 = vsel %vm4424_vm10, %v4415_v19, %v9845_v47  ;;  %7359 = vmatmul.mubr.bf16.gmra.mxu1 %v10441_v17  ;;  %v13480_v17 = vpop.f32.mrf.mxu1  ;;  %v9870_v47 = vunpack.i.h.bf16 %v9868_v38  ;;  %v4369_v19 = vsel %vm4326_vm8, %v13156_v51, %v9864_v6 }
 0x332   :  { %v5066_v24 = vld [vmem:[#allocation3 + $0xd0] sm:$0xf]  ;;  %v10485_v13 = vld [vmem:[#allocation5 + $0x504] ss:$8 sps:$4 sm:$0xff]   ;;  %5053 = vst [vmem:[#allocation4 + $0x1fc] sm:$0xf] %v5035_v20  ;;  %v4463_v55 = vsel %vm4424_vm10, %v4414_v41, %v9844_v8  ;;  %7538 = vmatprep.subr.bf16.mxu1 %v10482_v7  ;;  %v9869_v8 = vunpack.i.l.bf16 %v9868_v38  ;;  %v4370_v41 = vsel %vm4326_vm8, %v12934_v46, %v9865_v21  ;;  %v9875_v7 = vunpack.i.h.bf16 %v9873_v3 }
 0x333   :  { %5054 = vst [vmem:[#allocation4 + $0x22c] sm:$0xf] %v5036_v43  ;;  %v5067_v10 = vld [vmem:[#allocation3 + $0xd4] sm:$0xf]  ;;  %5084 = vst [vmem:[#allocation4 + $0xe0] sm:$0xf] %v5066_v24  ;;  %v8958_v49 = vpack.c.bf16 %v4464_v14, %v4463_v55  ;;  %7649 = vmatprep.subr.bf16.mxu0 %v10485_v13  ;;  %v9874_v13 = vunpack.i.l.bf16 %v9873_v3  ;;  %v4419_v14 = vsel %vm4375_vm9, %v4370_v41, %v9870_v47 }
 0x334   :  { %v5004_v18 = vld [vmem:[#allocation3 + $0xd0] sm:$0xf]  ;;  %v5005_v11 = vld [vmem:[#allocation3 + $0xd4] sm:$0xf]  ;;  %v10450_v62 = vld [vmem:[#allocation4 + $0x138] ss:$48 sps:$4 sm:$0xff]   ;;  %v4418_v55 = vsel %vm4375_vm9, %v4369_v19, %v9869_v8  ;;  %v9878_v0 = vpop.permute.xlu0 %9877 }
 0x335   :  { %5085 = vst [vmem:[#allocation4 + $0x110] sm:$0xf] %v5067_v10  ;;  %5022 = vst [vmem:[#allocation4 + $0x318] sm:$0xf] %v5004_v18  ;;  %v10461_v1 = vld [vmem:[#allocation4 + $0x2b4] ss:$48 sps:$4 sm:$0xff]   ;;  %7452 = vmatmul.mubr.bf16.gmra.mxu0 %v10450_v62  ;;  %v4467_v51 = vsel %vm4424_vm10, %v4418_v55, %v9874_v13 }
 0x336   :  { %5023 = vst [vmem:[#allocation4 + $0x348] sm:$0xf] %v5005_v11  ;;  %v10470_v29 = vld [vmem:[#allocation4 + $0x19c] ss:$48 sps:$4 sm:$0xff]   ;;  %8998 = vst [vmem:[#allocation3 + $0xe0] sm:$0xff] %v8958_v49   ;;  %v14321_v50 = vld [vmem:[#allocation16_spill] sm:$0xff]  ;;  %7368 = vmatprep.mubr.bf16.mxu1 %v10461_v1  ;;  %v4468_v49 = vsel %vm4424_vm10, %v4419_v14, %v9875_v7  ;;  %v13490_v1 = vpop.f32.mrf.mxu1 }
 0x337   :  { %v5189_v54 = vld [vmem:[#allocation3 + $0x14c] sm:$0xf]  ;;  %v4367_v57 = vsel %vm4326_vm8, %v14321_v50, %v9849_v2  ;;  %v10483_v26 = vld [vmem:[#allocation5 + $0x500] ss:$8 sps:$4 sm:$0xff]   ;;  %7461 = vmatprep.mubr.bf16.mxu0 %v10470_v29  ;;  %v5100_v35 = vld [vmem:[#allocation3 + $0xdc] sm:$0xf]  ;;  %v8968_v45 = vpack.c.bf16 %v4468_v49, %v4467_v51  ;;  %v9879_v29 = vunpack.i.l.bf16 %v9878_v0 }
 0x338   :  { %5207 = vst [vmem:[#allocation4 + $0x35c] sm:$0xf] %v5189_v54  ;;  %v10480_v32 = vld [vmem:[#allocation5 + $0x4a0] ss:$8 sps:$4 sm:$0xff]   ;;  %v10491_v30 = vld [vmem:[#allocation5 + $0x494] ss:$8 sps:$4 sm:$0xff]   ;;  %v4416_v61 = vsel %vm4375_vm9, %v4367_v57, %v9854_v63  ;;  %7650 = vmatpush1.bf16.msra.mxu0 %v10483_v26  ;;  %v9880_v63 = vunpack.i.h.bf16 %v9878_v0  ;;  %v9883_v54 = vpop.permute.xlu1 %9882 }
 0x339   :  { %v10497_v34 = vld [vmem:[#allocation5 + $0x5f4] ss:$8 sps:$4 sm:$0xff]   ;;  %v5099_v48 = vld [vmem:[#allocation3 + $0xd8] sm:$0xf]  ;;  %v10489_v22 = vld [vmem:[#allocation5 + $0x490] ss:$8 sps:$4 sm:$0xff]   ;;  %v4465_v12 = vsel %vm4424_vm10, %v4416_v61, %v9859_v42  ;;  %7539 = vmatpush2.bf16.msra.mxu1 %v10480_v32  ;;  %v9885_v50 = vunpack.i.h.bf16 %v9883_v54  ;;  %v9884_v57 = vunpack.i.l.bf16 %v9883_v54  ;;  %v9888_v42 = vpop.permute.xlu0 %9887 }
 0x33a   :  { %v5037_v9 = vld [vmem:[#allocation3 + $0xd8] sm:$0xf]  ;;  %5117 = vst [vmem:[#allocation4 + $0x24] sm:$0xf] %v5099_v48  ;;  %5118 = vst [vmem:[#allocation4 + $0x54] sm:$0xf] %v5100_v35  ;;  %v8963_v15 = vpack.c.bf16 %v4466_v16, %v4465_v12  ;;  %7651 = vmatprep.subr.bf16.mxu0 %v10497_v34  ;;  %7540 = vmatprep.subr.bf16.mxu1 %v10491_v30  ;;  %v4372_v32 = vsel %vm4326_vm8, %v13234_v37, %v9880_v63  ;;  %v13496_v35 = vpop.f32.mrf.mxu1  ;;  %v9889_v44 = vunpack.i.l.bf16 %v9888_v42 }
 0x33b   :  { %v10495_v52 = vld [vmem:[#allocation5 + $0x5f0] ss:$8 sps:$4 sm:$0xff]   ;;  %5055 = vst [vmem:[#allocation4 + $0x25c] sm:$0xf] %v5037_v9  ;;  %v10500_v59 = vld [vmem:[#allocation5 + $0x484] ss:$8 sps:$4 sm:$0xff]   ;;  %v4371_v30 = vsel %vm4326_vm8, %v13178_v4, %v9879_v29  ;;  %v9890_v9 = vunpack.i.h.bf16 %v9888_v42  ;;  %v4421_v37 = vsel %vm4375_vm9, %v4372_v32, %v9885_v50 }
 0x33c   :  { %v10459_v27 = vld [vmem:[#allocation4 + $0x2b0] ss:$48 sps:$4 sm:$0xff]   ;;  %v5038_v39 = vld [vmem:[#allocation3 + $0xdc] sm:$0xf]  ;;  %v5068_v31 = vld [vmem:[#allocation3 + $0xd8] sm:$0xf]  ;;  %7652 = vmatpush2.bf16.msra.mxu0 %v10495_v52  ;;  %v9893_v61 = vpop.permute.xlu1 %9892  ;;  %v4420_v4 = vsel %vm4375_vm9, %v4371_v30, %v9884_v57 }
 0x33d   :  { %v10468_v23 = vld [vmem:[#allocation4 + $0x198] ss:$48 sps:$4 sm:$0xff]   ;;  %5056 = vst [vmem:[#allocation4 + $0x28c] sm:$0xf] %v5038_v39  ;;  %v5069_v56 = vld [vmem:[#allocation3 + $0xdc] sm:$0xf]  ;;  %7369 = vmatmul.mubr.bf16.gmra.mxu1 %v10459_v27  ;;  %v9895_v52 = vunpack.i.h.bf16 %v9893_v61  ;;  %v9894_v27 = vunpack.i.l.bf16 %v9893_v61  ;;  %v4469_v12 = vsel %vm4424_vm10, %v4420_v4, %v9889_v44  ;;  %v4470_v16 = vsel %vm4424_vm10, %v4421_v37, %v9890_v9  ;;  %v9898_v39 = vpop.permute.xlu0 %9897 }
 0x33e   :  { %5086 = vst [vmem:[#allocation4 + $0x140] sm:$0xf] %v5068_v31  ;;  %v10479_v20 = vld [vmem:[#allocation4 + $0x314] ss:$48 sps:$4 sm:$0xff]   ;;  %v10488_v43 = vld [vmem:[#allocation4 + $0x1fc] ss:$48 sps:$4 sm:$0xff]   ;;  %7462 = vmatmul.mubr.bf16.gmra.mxu0 %v10468_v23  ;;  %7541 = vmatpush2.bf16.msra.mxu1 %v10489_v22  ;;  %v13502_v23 = vpop.f32.mrf.mxu1  ;;  %v9900_v38 = vunpack.i.h.bf16 %v9898_v39 }
 0x33f   :  { %v10506_v24 = vld [vmem:[#allocation5 + $0x5e4] ss:$8 sps:$4 sm:$0xff]   ;;  %5087 = vst [vmem:[#allocation4 + $0x170] sm:$0xf] %v5069_v56  ;;  %8999 = vst [vmem:[#allocation3 + $0xe8] sm:$0xff] %v8963_v15   ;;  %7378 = vmatprep.mubr.bf16.mxu1 %v10479_v20  ;;  %7471 = vmatprep.mubr.bf16.mxu0 %v10488_v43  ;;  %v9899_v56 = vunpack.i.l.bf16 %v9898_v39  ;;  %v4374_v43 = vsel %vm4326_vm8, %v13247_v60, %v9895_v52 }
 0x340   :  { %v5101_v10 = vld [vmem:[#allocation3 + $0xe0] sm:$0xf]  ;;  %v5102_v18 = vld [vmem:[#allocation3 + $0xe4] sm:$0xf]  ;;  %v10498_v2 = vld [vmem:[#allocation5 + $0x480] ss:$8 sps:$4 sm:$0xff]   ;;  %7542 = vmatprep.subr.bf16.mxu1 %v10500_v59  ;;  %7653 = vmatprep.subr.bf16.mxu0 %v10506_v24  ;;  %v8973_v59 = vpack.c.bf16 %v4470_v16, %v4469_v12  ;;  %v9903_v47 = vpop.permute.xlu1 %9902  ;;  %v4373_v24 = vsel %vm4326_vm8, %v12918_v40, %v9894_v27  ;;  %v4423_v55 = vsel %vm4375_vm9, %v4374_v43, %v9900_v38 }
 0x341   :  { %v5039_v11 = vld [vmem:[#allocation3 + $0xe0] sm:$0xf]  ;;  %5119 = vst [vmem:[#allocation4 + $0x84] sm:$0xf] %v5101_v10  ;;  %5120 = vst [vmem:[#allocation4 + $0xb4] sm:$0xf] %v5102_v18  ;;  %v9905_v41 = vunpack.i.h.bf16 %v9903_v47  ;;  %v9904_v19 = vunpack.i.l.bf16 %v9903_v47 }
 0x342   :  { %v5040_v62 = vld [vmem:[#allocation3 + $0xe4] sm:$0xf]  ;;  %5057 = vst [vmem:[#allocation4 + $0x2bc] sm:$0xf] %v5039_v11  ;;  %v5070_v46 = vld [vmem:[#allocation3 + $0xe0] sm:$0xf]  ;;  %7543 = vmatpush2.bf16.msra.mxu1 %v10498_v2  ;;  %v4422_v11 = vsel %vm4375_vm9, %v4373_v24, %v9899_v56  ;;  %v13512_v2 = vpop.f32.mrf.mxu1 }
 0x343   :  { %v5071_v36 = vld [vmem:[#allocation3 + $0xe4] sm:$0xf]  ;;  %v10504_v28 = vld [vmem:[#allocation5 + $0x5e0] ss:$8 sps:$4 sm:$0xff]   ;;  %5058 = vst [vmem:[#allocation4 + $0x2ec] sm:$0xf] %v5040_v62  ;;  %v4472_v51 = vsel %vm4424_vm10, %v4423_v55, %v9905_v41 }
 0x344   :  { %5088 = vst [vmem:[#allocation4 + $0x1a0] sm:$0xf] %v5070_v46  ;;  %5089 = vst [vmem:[#allocation4 + $0x1d0] sm:$0xf] %v5071_v36  ;;  %v10512_v5 = vld [vmem:[#allocation5 + $0x5d4] ss:$8 sps:$4 sm:$0xff]   ;;  %7654 = vmatpush2.bf16.msra.mxu0 %v10504_v28  ;;  %v4471_v36 = vsel %vm4424_vm10, %v4422_v11, %v9904_v19  ;;  %v13514_v54 = vpop.f32.mrf.mxu1 }
 0x345   :  { %v10510_v26 = vld [vmem:[#allocation5 + $0x5d0] ss:$8 sps:$4 sm:$0xff]   ;;  %9000 = vst [vmem:[#allocation3 + $0xf0] sm:$0xff] %v8968_v45   ;;  %v10518_v34 = vld [vmem:[#allocation5 + $0x5c4] ss:$8 sps:$4 sm:$0xff]   ;;  %7655 = vmatprep.subr.bf16.mxu0 %v10512_v5  ;;  %9001 = vst [vmem:[#allocation3 + $0xf8] sm:$0xff] %v8973_v59   ;;  %v8978_v28 = vpack.c.bf16 %v4472_v51, %v4471_v36  ;;  %v5510_v51 = vlaneseq }
 0x346   :  { %v10477_v33 = vld [vmem:[#allocation4 + $0x310] ss:$48 sps:$4 sm:$0xff]   ;;  %v10486_v25 = vld [vmem:[#allocation4 + $0x1f8] ss:$48 sps:$4 sm:$0xff]   ;;  %v10494_v58 = vld [vmem:[#allocation4 + $0x24] ss:$48 sps:$4 sm:$0xff]   ;;  %v13516_v42 = vpop.f32.mrf.mxu1 }
 0x347   :  { %v10503_v48 = vld [vmem:[#allocation4 + $0x25c] ss:$48 sps:$4 sm:$0xff]   ;;  %v5103_v21 = vld [vmem:[#allocation3 + $0xe8] sm:$0xf]  ;;  %7379 = vmatmul.mubr.bf16.gmra.mxu1 %v10477_v33  ;;  %7472 = vmatmul.mubr.bf16.gmra.mxu0 %v10486_v25  ;;  %v10516_v31 = vld [vmem:[#allocation5 + $0x5c0] ss:$8 sps:$4 sm:$0xff]  }
 0x348   :  { %v5104_v6 = vld [vmem:[#allocation3 + $0xec] sm:$0xf]  ;;  %v5041_v22 = vld [vmem:[#allocation3 + $0xe8] sm:$0xf]  ;;  %5121 = vst [vmem:[#allocation4 + $0xe4] sm:$0xf] %v5103_v21  ;;  %7544 = vmatprep.mubr.bf16.mxu1 %v10494_v58  ;;  %7481 = vmatprep.mubr.bf16.mxu0 %v10503_v48 }
 0x349   :  { %5122 = vst [vmem:[#allocation4 + $0x114] sm:$0xf] %v5104_v6  ;;  %5059 = vst [vmem:[#allocation4 + $0x31c] sm:$0xf] %v5041_v22  ;;  %7656 = vmatpush2.bf16.msra.mxu0 %v10510_v26  ;;  %v5042_v15 = vld [vmem:[#allocation3 + $0xec] sm:$0xf]  ;;  %v13518_v22 = vpop.f32.mrf.mxu1 }
 0x34a   :  { %7657 = vmatprep.subr.bf16.mxu0 %v10518_v34  ;;  %v10524_v8 = vld [vmem:[#allocation5 + $0x5b4] ss:$8 sps:$4 sm:$0xff]   ;;  %5060 = vst [vmem:[#allocation4 + $0x34c] sm:$0xf] %v5042_v15  ;;  %v5072_v3 = vld [vmem:[#allocation3 + $0xe8] sm:$0xf] }
 0x34b   :  { %v5073_v20 = vld [vmem:[#allocation3 + $0xec] sm:$0xf]  ;;  %v10522_v7 = vld [vmem:[#allocation5 + $0x5b0] ss:$8 sps:$4 sm:$0xff]   ;;  %5090 = vst [vmem:[#allocation4 + $0x200] sm:$0xf] %v5072_v3  ;;  %v13520_v16 = vpop.f32.mrf.mxu1 }
 0x34c   :  { %v5105_v13 = vld [vmem:[#allocation3 + $0xf0] sm:$0xf]  ;;  %v5106_v10 = vld [vmem:[#allocation3 + $0xf4] sm:$0xf]  ;;  %5091 = vst [vmem:[#allocation4 + $0x230] sm:$0xf] %v5073_v20 }
 0x34d   :  { %v5136_v18 = vld [vmem:[#allocation3 + $0xf0] sm:$0xf]  ;;  %v10530_v14 = vld [vmem:[#allocation5 + $0x5a4] ss:$8 sps:$4 sm:$0xff]   ;;  %5123 = vst [vmem:[#allocation4 + $0x144] sm:$0xf] %v5105_v13  ;;  %7658 = vmatpush2.bf16.msra.mxu0 %v10516_v31  ;;  %v13522_v31 = vpop.f32.mrf.mxu1 }
 0x34e   :  { %5124 = vst [vmem:[#allocation4 + $0x174] sm:$0xf] %v5106_v10  ;;  %v5137_v62 = vld [vmem:[#allocation3 + $0xf4] sm:$0xf]  ;;  %5154 = vst [vmem:[#allocation4 + $0x28] sm:$0xf] %v5136_v18  ;;  %7659 = vmatprep.subr.bf16.mxu0 %v10524_v8 }
 0x34f   :  { %v5074_v60 = vld [vmem:[#allocation3 + $0xf0] sm:$0xf]  ;;  %v5075_v46 = vld [vmem:[#allocation3 + $0xf4] sm:$0xf]  ;;  %v10501_v49 = vld [vmem:[#allocation4 + $0x258] ss:$48 sps:$4 sm:$0xff]   ;;  %v13524_v56 = vpop.f32.mrf.mxu1 }
 0x350   :  { %v10492_v40 = vld [vmem:[#allocation4 + $0x20] ss:$48 sps:$4 sm:$0xff]   ;;  %v10509_v0 = vld [vmem:[#allocation4 + $0x84] ss:$48 sps:$4 sm:$0xff]   ;;  %5155 = vst [vmem:[#allocation4 + $0x58] sm:$0xf] %v5137_v62  ;;  %7482 = vmatmul.mubr.bf16.gmra.mxu0 %v10501_v49 }
 0x351   :  { %5092 = vst [vmem:[#allocation4 + $0x260] sm:$0xf] %v5074_v60  ;;  %5093 = vst [vmem:[#allocation4 + $0x290] sm:$0xf] %v5075_v46  ;;  %v10515_v45 = vld [vmem:[#allocation4 + $0x2bc] ss:$48 sps:$4 sm:$0xff]   ;;  %7545 = vmatmul.mubr.bf16.vlgmr.msra.gmra.mxu1 %v10492_v40  ;;  %7660 = vmatpush2.bf16.msra.mxu0 %v10522_v7  ;;  %v13526_v3 = vpop.f32.mrf.mxu1 }
 0x352   :  { %9002 = vst [vmem:[#allocation3 + $0x100] sm:$0xff] %v8978_v28   ;;  %7554 = vmatprep.mubr.bf16.mxu1 %v10509_v0  ;;  %7491 = vmatprep.mubr.bf16.mxu0 %v10515_v45  ;;  %v10528_v63 = vld [vmem:[#allocation5 + $0x5a0] ss:$8 sps:$4 sm:$0xff]   ;;  %v10536_v29 = vld [vmem:[#allocation5 + $0x594] ss:$8 sps:$4 sm:$0xff]   ;;  %v5511_v0 = vshrl.u32 %v5510_v51, 7 }
 0x353   :  { %7661 = vmatprep.subr.bf16.mxu0 %v10530_v14  ;;  %v5107_v5 = vld [vmem:[#allocation3 + $0xf8] sm:$0xf]  ;;  %v5108_v50 = vld [vmem:[#allocation3 + $0xfc] sm:$0xf]  ;;  %v10534_v26 = vld [vmem:[#allocation5 + $0x590] ss:$8 sps:$4 sm:$0xff]   ;;  %v13528_v24 = vpop.f32.mrf.mxu1 }
 0x354   :  { %v5138_v57 = vld [vmem:[#allocation3 + $0xf8] sm:$0xf]  ;;  %5125 = vst [vmem:[#allocation4 + $0x1a4] sm:$0xf] %v5107_v5  ;;  %5126 = vst [vmem:[#allocation4 + $0x1d4] sm:$0xf] %v5108_v50 }
 0x355   :  { %5156 = vst [vmem:[#allocation4 + $0x88] sm:$0xf] %v5138_v57  ;;  %v10507_v33 = vld [vmem:[#allocation4 + $0x80] ss:$48 sps:$4 sm:$0xff]   ;;  %v10545_v32 = vld [vmem:[#allocation5 + $0x584] ss:$8 sps:$4 sm:$0xff]   ;;  %7662 = vmatpush2.bf16.msra.mxu0 %v10528_v63  ;;  %v13530_v7 = vpop.f32.mrf.mxu1 }
 0x356   :  { %v10513_v30 = vld [vmem:[#allocation4 + $0x2b8] ss:$48 sps:$4 sm:$0xff]   ;;  %v10521_v34 = vld [vmem:[#allocation4 + $0xe4] ss:$48 sps:$4 sm:$0xff]   ;;  %v5139_v25 = vld [vmem:[#allocation3 + $0xfc] sm:$0xf]  ;;  %7663 = vmatprep.subr.bf16.mxu0 %v10536_v29 }
 0x357   :  { %v10527_v58 = vld [vmem:[#allocation4 + $0x31c] ss:$48 sps:$4 sm:$0xff]   ;;  %5157 = vst [vmem:[#allocation4 + $0xb8] sm:$0xf] %v5139_v25  ;;  %v10543_v61 = vld [vmem:[#allocation5 + $0x580] ss:$8 sps:$4 sm:$0xff]   ;;  %v13532_v11 = vpop.f32.mrf.mxu1 }
 0x358   :  { %7492 = vmatmul.mubr.bf16.gmra.mxu0 %v10513_v30  ;;  %v5076_v6 = vld [vmem:[#allocation3 + $0xf8] sm:$0xf]  ;;  %v5077_v37 = vld [vmem:[#allocation3 + $0xfc] sm:$0xf]  ;;  %v10519_v27 = vld [vmem:[#allocation4 + $0xe0] ss:$48 sps:$4 sm:$0xff]  }
 0x359   :  { %7555 = vmatmul.mubr.bf16.gmra.mxu1 %v10507_v33  ;;  %v5109_v48 = vld [vmem:[#allocation3 + $0x100] sm:$0xf]  ;;  %v5110_v9 = vld [vmem:[#allocation3 + $0x104] sm:$0xf]  ;;  %7501 = vmatprep.mubr.bf16.mxu0 %v10527_v58  ;;  %5094 = vst [vmem:[#allocation4 + $0x2c0] sm:$0xf] %v5076_v6  ;;  %v13534_v14 = vpop.f32.mrf.mxu1 }
 0x35a   :  { %v5140_v44 = vld [vmem:[#allocation3 + $0x100] sm:$0xf]  ;;  %7564 = vmatprep.mubr.bf16.mxu1 %v10521_v34  ;;  %5127 = vst [vmem:[#allocation4 + $0x204] sm:$0xf] %v5109_v48  ;;  %5128 = vst [vmem:[#allocation4 + $0x234] sm:$0xf] %v5110_v9  ;;  %7664 = vmatpush2.bf16.msra.mxu0 %v10534_v26 }
 0x35b   :  { %v5141_v21 = vld [vmem:[#allocation3 + $0x104] sm:$0xf]  ;;  %5158 = vst [vmem:[#allocation4 + $0xe8] sm:$0xf] %v5140_v44  ;;  %v5078_v4 = vld [vmem:[#allocation3 + $0x100] sm:$0xf]  ;;  %7665 = vmatprep.subr.bf16.mxu0 %v10545_v32  ;;  %v13536_v40 = vpop.f32.mrf.mxu1 }
 0x35c   :  { %5159 = vst [vmem:[#allocation4 + $0x118] sm:$0xf] %v5141_v21  ;;  %v5079_v52 = vld [vmem:[#allocation3 + $0x104] sm:$0xf]  ;;  %5095 = vst [vmem:[#allocation4 + $0x2f0] sm:$0xf] %v5077_v37 }
 0x35d   :  { %5096 = vst [vmem:[#allocation4 + $0x320] sm:$0xf] %v5078_v4  ;;  %5097 = vst [vmem:[#allocation4 + $0x350] sm:$0xf] %v5079_v52  ;;  %v10525_v12 = vld [vmem:[#allocation4 + $0x318] ss:$48 sps:$4 sm:$0xff]   ;;  %v13538_v49 = vpop.f32.mrf.mxu1 }
 0x35e   :  { %7666 = vmatpush2.bf16.msra.mxu0 %v10543_v61  ;;  %v10533_v59 = vld [vmem:[#allocation4 + $0x144] ss:$48 sps:$4 sm:$0xff]   ;;  %v10539_v39 = vld [vmem:[#allocation4 + $0x2c] ss:$48 sps:$4 sm:$0xff]   ;;  %v10531_v15 = vld [vmem:[#allocation4 + $0x140] ss:$48 sps:$4 sm:$0xff]  }
 0x35f   :  { %v10537_v38 = vld [vmem:[#allocation4 + $0x28] ss:$48 sps:$4 sm:$0xff]   ;;  %v10542_v47 = vld [vmem:[#allocation4 + $0x1a4] ss:$48 sps:$4 sm:$0xff]   ;;  %v10548_v8 = vld [vmem:[#allocation4 + $0x8c] ss:$48 sps:$4 sm:$0xff]   ;;  %v13540_v29 = vpop.f32.mrf.mxu1 }
 0x360   :  { %7502 = vmatmul.mubr.bf16.gmra.mxu0 %v10525_v12  ;;  %v10540_v20 = vld [vmem:[#allocation4 + $0x1a0] ss:$48 sps:$4 sm:$0xff]   ;;  %v10546_v43 = vld [vmem:[#allocation4 + $0x88] ss:$48 sps:$4 sm:$0xff]   ;;  %v10554_v19 = vld [vmem:[#allocation4 + $0xec] ss:$48 sps:$4 sm:$0xff]  }
 0x361   :  { %7565 = vmatmul.mubr.bf16.gmra.mxu1 %v10519_v27  ;;  %7667 = vmatprep.mubr.bf16.mxu0 %v10539_v39  ;;  %v10551_v41 = vld [vmem:[#allocation4 + $0x204] ss:$48 sps:$4 sm:$0xff]   ;;  %v10563_v13 = vld [vmem:[#allocation4 + $0x14c] ss:$48 sps:$4 sm:$0xff]   ;;  %v10549_v10 = vld [vmem:[#allocation4 + $0x200] ss:$48 sps:$4 sm:$0xff]   ;;  %v13545_v26 = vpop.f32.mrf.mxu1 }
 0x362   :  { %7574 = vmatprep.mubr.bf16.mxu1 %v10533_v59  ;;  %v10557_v55 = vld [vmem:[#allocation4 + $0x264] ss:$48 sps:$4 sm:$0xff]   ;;  %v10561_v62 = vld [vmem:[#allocation4 + $0x148] ss:$48 sps:$4 sm:$0xff]   ;;  %v10569_v60 = vld [vmem:[#allocation4 + $0x1ac] ss:$48 sps:$4 sm:$0xff]  }
 0x363   :  { %v10552_v18 = vld [vmem:[#allocation4 + $0xe8] ss:$48 sps:$4 sm:$0xff]   ;;  %v10555_v46 = vld [vmem:[#allocation4 + $0x260] ss:$48 sps:$4 sm:$0xff]   ;;  %v10560_v36 = vld [vmem:[#allocation4 + $0x2c4] ss:$48 sps:$4 sm:$0xff]   ;;  %v13549_v58 = vpop.f32.mrf.mxu1 }
 0x364   :  { %v10567_v28 = vld [vmem:[#allocation4 + $0x1a8] ss:$48 sps:$4 sm:$0xff]   ;;  %v10572_v45 = vld [vmem:[#allocation4 + $0x20c] ss:$48 sps:$4 sm:$0xff]   ;;  %v10558_v63 = vld [vmem:[#allocation4 + $0x2c0] ss:$48 sps:$4 sm:$0xff]  }
 0x365   :  { %v10566_v5 = vld [vmem:[#allocation4 + $0x324] ss:$48 sps:$4 sm:$0xff]   ;;  %v5512_v50 = vsub.s32 0, %v5511_v0  ;;  %v5508_v57 = vld [vmem:[%s14170_s4] sm:$0x3]  ;;  %v5516_v32 = vsub.s32 1, %v5511_v0  ;;  %v13555_v44 = vpop.f32.mrf.mxu1 }
 0x366   :  { %v10570_v30 = vld [vmem:[#allocation4 + $0x208] ss:$48 sps:$4 sm:$0xff]   ;;  %v10575_v34 = vld [vmem:[#allocation4 + $0x26c] ss:$48 sps:$4 sm:$0xff]   ;;  %v10564_v25 = vld [vmem:[#allocation4 + $0x320] ss:$48 sps:$4 sm:$0xff]  }
 0x367   :  { %v13547_v33 = vrot.slane %v5508_v57, %v5512_v50  ;;  %v13553_v9 = vrot.slane %v5508_v57, %v5516_v32  ;;  %v10573_v6 = vld [vmem:[#allocation4 + $0x268] ss:$48 sps:$4 sm:$0xff]   ;;  %v10578_v52 = vld [vmem:[#allocation4 + $0x2cc] ss:$48 sps:$4 sm:$0xff]  }
 0x368   :  { %7668 = vmatmul.mubr.bf16.vlgmr.msra.gmra.mxu0 %v10537_v38 }
 0x369   :  { %7575 = vmatmul.mubr.bf16.gmra.mxu1 %v10531_v15  ;;  %7677 = vmatprep.mubr.bf16.mxu0 %v10548_v8  ;;  %v7055_v48 = vadd.f32 %v13474_v53, %v13547_v33  ;;  %v7057_v21 = vadd.f32 %v13480_v17, %v13553_v9  ;;  %v7059_v27 = vadd.f32 %v13490_v1, %v13547_v33  ;;  %v13563_v53 = vpop.f32.mrf.mxu1 }
 0x36a   :  { %7584 = vmatprep.mubr.bf16.mxu1 %v10542_v47  ;;  %v7061_v39 = vadd.f32 %v13496_v35, %v13553_v9  ;;  %v7065_v15 = vadd.f32 %v13502_v23, %v13547_v33  ;;  %v7069_v23 = vadd.f32 %v13514_v54, %v13547_v33  ;;  %v7075_v54 = vadd.f32 %v13518_v22, %v13547_v33 }
 0x36b   :  { %v7081_v22 = vadd.f32 %v13524_v56, %v13553_v9  ;;  %v7085_v32 = vadd.f32 %v13526_v3, %v13547_v33  ;;  %v7089_v56 = vadd.f32 %v13530_v7, %v13547_v33 }
 0x36f   :  { %v7177_v61 = vpop.f32.mrf.mxu0  ;;  %v13573_v47 = vpop.f32.mrf.mxu1 }
 0x370   :  { %7678 = vmatmul.mubr.bf16.gmra.mxu0 %v10546_v43  ;;  %v13559_v37 = vadd.f32 %v7177_v61, %v7055_v48  ;;  %v10576_v43 = vld [vmem:[#allocation4 + $0x2c8] ss:$48 sps:$4 sm:$0xff]  }
 0x371   :  { %7585 = vmatmul.mubr.bf16.gmra.mxu1 %v10540_v20  ;;  %7687 = vmatprep.mubr.bf16.mxu0 %v10554_v19  ;;  %v7179_v4 = vpop.f32.mrf.mxu0  ;;  %v7067_v20 = vadd.f32 %v13512_v2, %v13553_v9  ;;  %v10581_v19 = vld [vmem:[#allocation4 + $0x32c] ss:$48 sps:$4 sm:$0xff]  }
 0x372   :  { %7594 = vmatprep.mubr.bf16.mxu1 %v10551_v41  ;;  %v13565_v12 = vadd.f32 %v7179_v4, %v7057_v21 }
 0x373   :  { %v7181_v59 = vpop.f32.mrf.mxu0 }
 0x374   :  { %v13571_v17 = vadd.f32 %v7181_v59, %v7059_v27  ;;  %v7095_v27 = vadd.f32 %v13534_v14, %v13547_v33 }
 0x375   :  { %v7183_v38 = vpop.f32.mrf.mxu0 }
 0x376   :  { %v13575_v8 = vadd.f32 %v7183_v38, %v7061_v39 }
 0x377   :  { %v7187_v1 = vpop.f32.mrf.mxu0 }
 0x378   :  { %7688 = vmatmul.mubr.bf16.gmra.mxu0 %v10552_v18  ;;  %v13579_v41 = vadd.f32 %v7187_v1, %v7065_v15  ;;  %v7097_v1 = vadd.f32 %v13536_v40, %v13553_v9 }
 0x379   :  { %7595 = vmatmul.mubr.bf16.gmra.mxu1 %v10549_v10  ;;  %7697 = vmatprep.mubr.bf16.mxu0 %v10563_v13  ;;  %v7189_v35 = vpop.f32.mrf.mxu0  ;;  %v13583_v13 = vpop.f32.mrf.mxu1 }
 0x37a   :  { %7604 = vmatprep.mubr.bf16.mxu1 %v10557_v55  ;;  %v13585_v10 = vadd.f32 %v7189_v35, %v7067_v20  ;;  %v7071_v55 = vadd.f32 %v13516_v42, %v13553_v9  ;;  %v7077_v42 = vadd.f32 %v13520_v16, %v13553_v9 }
 0x37b   :  { %v7191_v18 = vpop.f32.mrf.mxu0 }
 0x37d   :  { %v7193_v2 = vpop.f32.mrf.mxu0 }
 0x380   :  { %7698 = vmatmul.mubr.bf16.gmra.mxu0 %v10561_v62  ;;  %v13589_v62 = vadd.f32 %v7191_v18, %v7069_v23  ;;  %v7105_v23 = vadd.f32 %v13545_v26, %v13547_v33 }
 0x381   :  { %7605 = vmatmul.mubr.bf16.gmra.mxu1 %v10555_v46  ;;  %7707 = vmatprep.mubr.bf16.mxu0 %v10569_v60  ;;  %v13591_v60 = vpop.f32.mrf.mxu1  ;;  %v13593_v46 = vadd.f32 %v7193_v2, %v7071_v55 }
 0x382   :  { %7614 = vmatprep.mubr.bf16.mxu1 %v10560_v36  ;;  %v10579_v36 = vld [vmem:[#allocation4 + $0x328] ss:$48 sps:$4 sm:$0xff]  }
 0x383   :  { %v13597_v51 = vpop.f32.mrf.mxu1  ;;  %v7197_v0 = vpop.f32.mrf.mxu0 }
 0x388   :  { %7708 = vmatmul.mubr.bf16.gmra.mxu0 %v10567_v28  ;;  %v13601_v28 = vadd.f32 %v7197_v0, %v7075_v54  ;;  %v7107_v54 = vadd.f32 %v13549_v58, %v13553_v9 }
 0x389   :  { %7615 = vmatmul.mubr.bf16.gmra.mxu1 %v10558_v63  ;;  %7717 = vmatprep.mubr.bf16.mxu0 %v10572_v45  ;;  %v13603_v45 = vpop.f32.mrf.mxu1  ;;  %v7199_v63 = vpop.f32.mrf.mxu0 }
 0x38a   :  { %7624 = vmatprep.mubr.bf16.mxu1 %v10566_v5  ;;  %v7079_v5 = vadd.f32 %v13522_v31, %v13547_v33  ;;  %v13607_v50 = vadd.f32 %v7199_v63, %v7077_v42  ;;  %v7087_v31 = vadd.f32 %v13528_v24, %v13553_v9 }
 0x38b   :  { %v7201_v57 = vpop.f32.mrf.mxu0  ;;  %v13615_v16 = vpop.f32.mrf.mxu1 }
 0x38d   :  { %v13623_v21 = vpop.f32.mrf.mxu1 }
 0x38f   :  { %v7130_v24 = vpop.f32.mrf.mxu1 }
 0x390   :  { %7718 = vmatmul.mubr.bf16.gmra.mxu0 %v10570_v30  ;;  %v13613_v30 = vadd.f32 %v7201_v57, %v7079_v5 }
 0x391   :  { %7625 = vmatmul.mubr.bf16.gmra.mxu1 %v10564_v25  ;;  %7727 = vmatprep.mubr.bf16.mxu0 %v10575_v34  ;;  %v7203_v34 = vpop.f32.mrf.mxu0  ;;  %v7134_v20 = vpop.f32.mrf.mxu1 }
 0x392   :  { %v13617_v25 = vadd.f32 %v7203_v34, %v7081_v22 }
 0x393   :  { %v7207_v48 = vpop.f32.mrf.mxu0  ;;  %v7136_v55 = vpop.f32.mrf.mxu1 }
 0x394   :  { %v13621_v61 = vadd.f32 %v7207_v48, %v7085_v32  ;;  %v7115_v32 = vadd.f32 %v13573_v47, %v13547_v33  ;;  %v7117_v48 = vadd.f32 %v13583_v13, %v13553_v9 }
 0x395   :  { %v7138_v0 = vpop.f32.mrf.mxu1 }
 0x397   :  { %v7140_v57 = vpop.f32.mrf.mxu1 }
 0x398   :  { %7728 = vmatmul.mubr.bf16.gmra.mxu0 %v10573_v6  ;;  %v7209_v6 = vpop.f32.mrf.mxu0 }
 0x399   :  { %7737 = vmatprep.mubr.bf16.mxu0 %v10578_v52  ;;  %v13627_v3 = vadd.f32 %v7209_v6, %v7087_v31  ;;  %v7091_v52 = vadd.f32 %v13532_v11, %v13553_v9  ;;  %v7099_v11 = vadd.f32 %v13538_v49, %v13547_v33 }
 0x39a   :  { %v7211_v4 = vpop.f32.mrf.mxu0 }
 0x39b   :  { %v13633_v59 = vadd.f32 %v7211_v4, %v7089_v56  ;;  %v7119_v4 = vadd.f32 %v13591_v60, %v13547_v33 }
 0x39c   :  { %v7213_v39 = vpop.f32.mrf.mxu0 }
 0x39d   :  { %v13635_v15 = vadd.f32 %v7213_v39, %v7091_v52 }
 0x39e   :  { %v7217_v38 = vpop.f32.mrf.mxu0 }
 0x39f   :  { %v13639_v7 = vadd.f32 %v7217_v38, %v7095_v27  ;;  %v7121_v38 = vadd.f32 %v13597_v51, %v13553_v9 }
 0x3a0   :  { %7738 = vmatmul.mubr.bf16.gmra.mxu0 %v10576_v43  ;;  %v7219_v43 = vpop.f32.mrf.mxu0 }
 0x3a1   :  { %7747 = vmatprep.mubr.bf16.mxu0 %v10581_v19  ;;  %v13643_v35 = vadd.f32 %v7219_v43, %v7097_v1  ;;  %v7101_v19 = vadd.f32 %v13540_v29, %v13553_v9  ;;  %v7109_v29 = vadd.f32 %v13555_v44, %v13547_v33 }
 0x3a2   :  { %v7221_v14 = vpop.f32.mrf.mxu0 }
 0x3a3   :  { %v13649_v18 = vadd.f32 %v7221_v14, %v7099_v11  ;;  %v7125_v11 = vadd.f32 %v13603_v45, %v13547_v33 }
 0x3a4   :  { %v7223_v40 = vpop.f32.mrf.mxu0 }
 0x3a5   :  { %v13651_v2 = vadd.f32 %v7223_v40, %v7101_v19 }
 0x3a8   :  { %7748 = vmatmul.mubr.bf16.gmra.mxu0 %v10579_v36  ;;  %v7227_v36 = vpop.f32.mrf.mxu0 }
 0x3a9   :  { %v13655_v49 = vadd.f32 %v7227_v36, %v7105_v23  ;;  %v7127_v23 = vadd.f32 %v13615_v16, %v13553_v9 }
 0x3aa   :  { %v7229_v42 = vpop.f32.mrf.mxu0 }
 0x3ab   :  { %v13659_v63 = vadd.f32 %v7229_v42, %v7107_v54  ;;  %v7300_v34 = vpop.f32.mrf.mxu1  ;;  %v7129_v54 = vadd.f32 %v13623_v21, %v13547_v33 }
 0x3ac   :  { %v7231_v26 = vpop.f32.mrf.mxu0  ;;  %v7301_v31 = vadd.f32 %v7300_v34, %v13559_v37 }
 0x3ad   :  { %v13661_v5 = vadd.f32 %v7231_v26, %v7109_v29  ;;  %v7302_v44 = vpop.f32.mrf.mxu1  ;;  %v7131_v26 = vadd.f32 %v7130_v24, %v13553_v9 }
 0x3ae   :  { %v13663_v22 = vpop.f32.mrf.mxu0  ;;  %v7303_v52 = vadd.f32 %v7302_v44, %v13565_v12 }
 0x3af   :  { %v7304_v39 = vpop.f32.mrf.mxu1 }
 0x3b0   :  { %v7237_v58 = vpop.f32.mrf.mxu0  ;;  %v7305_v13 = vadd.f32 %v7304_v39, %v13571_v17 }
 0x3b1   :  { %v13670_v6 = vadd.f32 %v7237_v58, %v7115_v32  ;;  %v7306_v37 = vpop.f32.mrf.mxu1  ;;  %v7135_v58 = vadd.f32 %v7134_v20, %v13547_v33 }
 0x3b2   :  { %v7239_v56 = vpop.f32.mrf.mxu0  ;;  %v7307_v60 = vadd.f32 %v7306_v37, %v13575_v8 }
 0x3b3   :  { %v13675_v27 = vadd.f32 %v7239_v56, %v7117_v48  ;;  %v7310_v12 = vpop.f32.mrf.mxu1  ;;  %v7137_v56 = vadd.f32 %v7136_v55, %v13553_v9 }
 0x3b4   :  { %v7241_v47 = vpop.f32.mrf.mxu0  ;;  %v7311_v51 = vadd.f32 %v7310_v12, %v13579_v41 }
 0x3b5   :  { %v13680_v1 = vadd.f32 %v7241_v47, %v7119_v4  ;;  %v7312_v17 = vpop.f32.mrf.mxu1  ;;  %v7139_v47 = vadd.f32 %v7138_v0, %v13547_v33 }
 0x3b6   :  { %v7243_v43 = vpop.f32.mrf.mxu0  ;;  %v7313_v45 = vadd.f32 %v7312_v17, %v13585_v10 }
 0x3b7   :  { %v13685_v14 = vadd.f32 %v7243_v43, %v7121_v38  ;;  %v7314_v8 = vpop.f32.mrf.mxu1  ;;  %v7141_v43 = vadd.f32 %v7140_v57, %v13553_v9 }
 0x3b8   :  { %v7247_v19 = vpop.f32.mrf.mxu0  ;;  %v7315_v32 = vadd.f32 %v7314_v8, %v13589_v62 }
 0x3b9   :  { %v13690_v40 = vadd.f32 %v7247_v19, %v7125_v11  ;;  %v7316_v41 = vpop.f32.mrf.mxu1 }
 0x3ba   :  { %v7249_v36 = vpop.f32.mrf.mxu0  ;;  %v7317_v48 = vadd.f32 %v7316_v41, %v13593_v46 }
 0x3bb   :  { %v13695_v42 = vadd.f32 %v7249_v36, %v7127_v23 }
 0x3bc   :  { %v7251_v29 = vpop.f32.mrf.mxu0 }
 0x3bd   :  { %v13699_v16 = vadd.f32 %v7251_v29, %v7129_v54 }
 0x3be   :  { %v7253_v34 = vpop.f32.mrf.mxu0 }
 0x3bf   :  { %v13703_v44 = vadd.f32 %v7253_v34, %v7131_v26 }
 0x3c1   :  { %v7320_v21 = vpop.f32.mrf.mxu1 }
 0x3c2   :  { %v7257_v10 = vpop.f32.mrf.mxu0  ;;  %v7321_v4 = vadd.f32 %v7320_v21, %v13601_v28 }
 0x3c3   :  { %v13707_v39 = vadd.f32 %v7257_v10, %v7135_v58  ;;  %v7322_v24 = vpop.f32.mrf.mxu1 }
 0x3c4   :  { %v7259_v62 = vpop.f32.mrf.mxu0  ;;  %v7323_v38 = vadd.f32 %v7322_v24, %v13607_v50 }
 0x3c5   :  { %v13711_v37 = vadd.f32 %v7259_v62, %v7137_v56  ;;  %v7324_v20 = vpop.f32.mrf.mxu1 }
 0x3c6   :  { %v7261_v46 = vpop.f32.mrf.mxu0  ;;  %v7325_v11 = vadd.f32 %v7324_v20, %v13613_v30 }
 0x3c7   :  { %v13715_v12 = vadd.f32 %v7261_v46, %v7139_v47  ;;  %v7326_v55 = vpop.f32.mrf.mxu1 }
 0x3c8   :  { %v7263_v28 = vpop.f32.mrf.mxu0  ;;  %v7327_v19 = vadd.f32 %v7326_v55, %v13617_v25 }
 0x3c9   :  { %v13718_v23 = vadd.f32 %v7263_v28, %v7141_v43 }
 0x3ce   :  { %v7330_v17 = vpop.f32.mrf.mxu1  ;;  %v7423_v33 = vpop.f32.mrf.mxu0 }
 0x3cf   :  { %v7331_v50 = vadd.f32 %v7330_v17, %v13621_v61  ;;  %v13721_v0 = vadd.f32 %v7423_v33, %v7301_v31  ;;  %v7111_v17 = vadd.f32 %v13563_v53, %v13553_v9 }
 0x3d0   :  { %v7332_v36 = vpop.f32.mrf.mxu1  ;;  %v7425_v54 = vpop.f32.mrf.mxu0 }
 0x3d1   :  { %v7333_v57 = vadd.f32 %v7332_v36, %v13627_v3  ;;  %v13724_v8 = vadd.f32 %v7425_v54, %v7303_v52 }
 0x3d2   :  { %v7334_v30 = vpop.f32.mrf.mxu1  ;;  %v7427_v29 = vpop.f32.mrf.mxu0 }
 0x3d3   :  { %v7335_v26 = vadd.f32 %v7334_v30, %v13633_v59  ;;  %v13727_v41 = vadd.f32 %v7427_v29, %v7305_v13 }
 0x3d4   :  { %v7336_v25 = vpop.f32.mrf.mxu1  ;;  %v7429_v34 = vpop.f32.mrf.mxu0 }
 0x3d5   :  { %v7337_v58 = vadd.f32 %v7336_v25, %v13635_v15  ;;  %v13730_v21 = vadd.f32 %v7429_v34, %v7307_v60 }
 0x3d7   :  { %v7340_v61 = vpop.f32.mrf.mxu1 }
 0x3d8   :  { %v7433_v31 = vpop.f32.mrf.mxu0  ;;  %v7341_v10 = vadd.f32 %v7340_v61, %v13639_v7 }
 0x3d9   :  { %v13733_v56 = vadd.f32 %v7433_v31, %v7311_v51  ;;  %v7342_v3 = vpop.f32.mrf.mxu1 }
 0x3da   :  { %v7435_v52 = vpop.f32.mrf.mxu0  ;;  %v7343_v24 = vadd.f32 %v7342_v3, %v13643_v35 }
 0x3db   :  { %v13736_v62 = vadd.f32 %v7435_v52, %v7313_v45  ;;  %v7344_v59 = vpop.f32.mrf.mxu1 }
 0x3dc   :  { %v7437_v13 = vpop.f32.mrf.mxu0  ;;  %v7345_v47 = vadd.f32 %v7344_v59, %v13649_v18 }
 0x3dd   :  { %v13739_v20 = vadd.f32 %v7437_v13, %v7315_v32  ;;  %v7346_v15 = vpop.f32.mrf.mxu1 }
 0x3de   :  { %v7439_v60 = vpop.f32.mrf.mxu0  ;;  %v7347_v46 = vadd.f32 %v7346_v15, %v13651_v2  ;;  %v7234_v2 = vadd.f32 %v13663_v22, %v7111_v17 }
 0x3df   :  { %v13742_v43 = vadd.f32 %v7439_v60, %v7317_v48 }
 0x3e2   :  { %v7350_v7 = vpop.f32.mrf.mxu1 }
 0x3e3   :  { %v7351_v55 = vadd.f32 %v7350_v7, %v13655_v49 }
 0x3e4   :  { %v7352_v35 = vpop.f32.mrf.mxu1 }
 0x3e5   :  { %v7353_v18 = vadd.f32 %v7352_v35, %v13659_v63 }
 0x3e6   :  { %v7443_v51 = vpop.f32.mrf.mxu0  ;;  %v7354_v33 = vpop.f32.mrf.mxu1 }
 0x3e7   :  { %v13745_v28 = vadd.f32 %v7443_v51, %v7321_v4  ;;  %v7355_v48 = vadd.f32 %v7354_v33, %v13661_v5 }
 0x3e8   :  { %v7445_v45 = vpop.f32.mrf.mxu0  ;;  %v7356_v49 = vpop.f32.mrf.mxu1 }
 0x3e9   :  { %v13750_v32 = vadd.f32 %v7445_v45, %v7323_v38  ;;  %v7357_v30 = vadd.f32 %v7356_v49, %v7234_v2 }
 0x3ea   :  { %v7447_v36 = vpop.f32.mrf.mxu0 }
 0x3eb   :  { %v13754_v54 = vadd.f32 %v7447_v36, %v7325_v11 }
 0x3ec   :  { %v7449_v4 = vpop.f32.mrf.mxu0 }
 0x3ed   :  { %v13756_v29 = vadd.f32 %v7449_v4, %v7327_v19 }
 0x3f1   :  { %v7360_v25 = vpop.f32.mrf.mxu1 }
 0x3f2   :  { %v7361_v9 = vadd.f32 %v7360_v25, %v13670_v6 }
 0x3f3   :  { %v7362_v63 = vpop.f32.mrf.mxu1 }
 0x3f4   :  { %v7363_v61 = vadd.f32 %v7362_v63, %v13675_v27 }
 0x3f5   :  { %v7453_v34 = vpop.f32.mrf.mxu0  ;;  %v7364_v5 = vpop.f32.mrf.mxu1 }
 0x3f6   :  { %v13759_v53 = vadd.f32 %v7453_v34, %v7331_v50  ;;  %v7365_v31 = vadd.f32 %v7364_v5, %v13680_v1 }
 0x3f7   :  { %v7455_v38 = vpop.f32.mrf.mxu0  ;;  %v7366_v19 = vpop.f32.mrf.mxu1 }
 0x3f8   :  { %v13762_v22 = vadd.f32 %v7455_v38, %v7333_v57  ;;  %v7367_v59 = vadd.f32 %v7366_v19, %v13685_v14 }
 0x3f9   :  { %v7457_v11 = vpop.f32.mrf.mxu0 }
 0x3fa   :  { %v13765_v3 = vadd.f32 %v7457_v11, %v7335_v26 }
 0x3fb   :  { %v7459_v52 = vpop.f32.mrf.mxu0 }
 0x3fc   :  { %v13768_v13 = vadd.f32 %v7459_v52, %v7337_v58 }
 0x3fd   :  { %v7370_v6 = vpop.f32.mrf.mxu1 }
 0x3fe   :  { %v7463_v50 = vpop.f32.mrf.mxu0  ;;  %v7371_v15 = vadd.f32 %v7370_v6, %v13690_v40 }
 0x3ff   :  { %v13771_v60 = vadd.f32 %v7463_v50, %v7341_v10  ;;  %v7372_v27 = vpop.f32.mrf.mxu1 }
 0x400   :  { %v7465_v57 = vpop.f32.mrf.mxu0  ;;  %v7373_v7 = vadd.f32 %v7372_v27, %v13695_v42 }
 0x401   :  { %v13774_v51 = vadd.f32 %v7465_v57, %v7343_v24  ;;  %v7374_v1 = vpop.f32.mrf.mxu1 }
 0x402   :  { %v7467_v26 = vpop.f32.mrf.mxu0  ;;  %v7375_v35 = vadd.f32 %v7374_v1, %v13699_v16 }
 0x403   :  { %v13777_v45 = vadd.f32 %v7467_v26, %v7345_v47  ;;  %v7376_v14 = vpop.f32.mrf.mxu1 }
 0x404   :  { %v7469_v58 = vpop.f32.mrf.mxu0  ;;  %v7377_v17 = vadd.f32 %v7376_v14, %v13703_v44 }
 0x405   :  { %v13780_v33 = vadd.f32 %v7469_v58, %v7347_v46 }
 0x407   :  { %v7380_v40 = vpop.f32.mrf.mxu1  ;;  %v7473_v10 = vpop.f32.mrf.mxu0 }
 0x408   :  { %v7381_v36 = vadd.f32 %v7380_v40, %v13707_v39  ;;  %v13783_v2 = vadd.f32 %v7473_v10, %v7351_v55 }
 0x409   :  { %v7382_v42 = vpop.f32.mrf.mxu1  ;;  %v7475_v24 = vpop.f32.mrf.mxu0 }
 0x40a   :  { %v7383_v49 = vadd.f32 %v7382_v42, %v13711_v37  ;;  %v13786_v4 = vadd.f32 %v7475_v24, %v7353_v18 }
 0x40b   :  { %v7384_v16 = vpop.f32.mrf.mxu1  ;;  %v7477_v47 = vpop.f32.mrf.mxu0 }
 0x40c   :  { %v7385_v25 = vadd.f32 %v7384_v16, %v13715_v12  ;;  %v13789_v34 = vadd.f32 %v7477_v47, %v7355_v48 }
 0x40d   :  { %v7386_v44 = vpop.f32.mrf.mxu1  ;;  %v7479_v46 = vpop.f32.mrf.mxu0 }
 0x40e   :  { %v7387_v63 = vadd.f32 %v7386_v44, %v13718_v23  ;;  %v13792_v38 = vadd.f32 %v7479_v46, %v7357_v30 }
 0x410   :  { %v7483_v55 = vpop.f32.mrf.mxu0 }
 0x411   :  { %v7546_v39 = vpop.f32.mrf.mxu1  ;;  %v13794_v5 = vadd.f32 %v7483_v55, %v7361_v9 }
 0x412   :  { %v7485_v37 = vpop.f32.mrf.mxu0  ;;  %v7547_v55 = vadd.f32 %v7546_v39, %v13721_v0 }
 0x413   :  { %v7548_v11 = vpop.f32.mrf.mxu1  ;;  %v13796_v18 = vadd.f32 %v7485_v37, %v7363_v61 }
 0x414   :  { %v7487_v52 = vpop.f32.mrf.mxu0 }
 0x415   :  { %v7550_v19 = vpop.f32.mrf.mxu1  ;;  %v13798_v6 = vadd.f32 %v7487_v52, %v7365_v31 }
 0x416   :  { %v7489_v48 = vpop.f32.mrf.mxu0 }
 0x417   :  { %v7552_v12 = vpop.f32.mrf.mxu1  ;;  %v13800_v50 = vadd.f32 %v7489_v48, %v7367_v59 }
 0x418   :  { %v7493_v23 = vpop.f32.mrf.mxu0 }
 0x419   :  { %v7556_v27 = vpop.f32.mrf.mxu1  ;;  %v13802_v30 = vadd.f32 %v7493_v23, %v7371_v15 }
 0x41a   :  { %v7495_v1 = vpop.f32.mrf.mxu0 }
 0x41b   :  { %v7558_v57 = vpop.f32.mrf.mxu1  ;;  %v13804_v9 = vadd.f32 %v7495_v1, %v7373_v7 }
 0x41c   :  { %v7497_v14 = vpop.f32.mrf.mxu0 }
 0x41d   :  { %v7560_v26 = vpop.f32.mrf.mxu1  ;;  %v13806_v61 = vadd.f32 %v7497_v14, %v7375_v35 }
 0x41e   :  { %v7499_v40 = vpop.f32.mrf.mxu0 }
 0x41f   :  { %v7562_v58 = vpop.f32.mrf.mxu1  ;;  %v13808_v31 = vadd.f32 %v7499_v40, %v7377_v17 }
 0x420   :  { %v7503_v42 = vpop.f32.mrf.mxu0 }
 0x421   :  { %v7566_v10 = vpop.f32.mrf.mxu1  ;;  %v13810_v59 = vadd.f32 %v7503_v42, %v7381_v36  ;;  %v7549_v36 = vadd.f32 %v7548_v11, %v13724_v8 }
 0x422   :  { %v7505_v16 = vpop.f32.mrf.mxu0 }
 0x423   :  { %v7568_v24 = vpop.f32.mrf.mxu1  ;;  %v13812_v15 = vadd.f32 %v7505_v16, %v7383_v49  ;;  %v7557_v16 = vadd.f32 %v7556_v27, %v13733_v56  ;;  %v7561_v56 = vadd.f32 %v7560_v26, %v13739_v20  ;;  %v7567_v20 = vadd.f32 %v7566_v10, %v13745_v28 }
 0x424   :  { %v7507_v44 = vpop.f32.mrf.mxu0 }
 0x425   :  { %v7570_v47 = vpop.f32.mrf.mxu1  ;;  %v13814_v7 = vadd.f32 %v7507_v44, %v7385_v25  ;;  %v7551_v25 = vadd.f32 %v7550_v19, %v13727_v41 }
 0x426   :  { %v7509_v35 = vpop.f32.mrf.mxu0  ;;  %v7571_v28 = vadd.f32 %v7570_v47, %v13754_v54 }
 0x427   :  { %v13816_v46 = vpop.f32.mrf.mxu1  ;;  %v13819_v37 = vadd.f32 %v7509_v35, %v7387_v63  ;;  %v7553_v63 = vadd.f32 %v7552_v12, %v13730_v21  ;;  %v7559_v21 = vadd.f32 %v7558_v57, %v13736_v62  ;;  %v7563_v62 = vadd.f32 %v7562_v58, %v13742_v43 }
 0x428   :  { %v7669_v52 = vpop.f32.mrf.mxu0 }
 0x429   :  { %v13821_v17 = vpop.f32.mrf.mxu1  ;;  %v13824_v48 = vadd.f32 %v7669_v52, %v7547_v55 }
 0x42a   :  { %v7671_v23 = vpop.f32.mrf.mxu0 }
 0x42b   :  { %v13826_v49 = vpop.f32.mrf.mxu1  ;;  %v8712_v1 = vmul.f32 -1.442695, %v13824_v48  ;;  %v13830_v14 = vadd.f32 %v7671_v23, %v7549_v36 }
 0x42c   :  { %v7673_v0 = vpop.f32.mrf.mxu0 }
 0x42d   :  { %v13832_v40 = vpop.f32.mrf.mxu1  ;;  %10710 = vpow2.f32 %v8712_v1  ;;  %v8713_v39 = vmul.f32 -1.442695, %v13830_v14  ;;  %v13836_v8 = vadd.f32 %v7673_v0, %v7551_v25 }
 0x42e   :  { %v7675_v42 = vpop.f32.mrf.mxu0 }
 0x42f   :  { %v13838_v11 = vpop.f32.mrf.mxu1  ;;  %10712 = vpow2.f32 %v8713_v39  ;;  %v8714_v41 = vmul.f32 -1.442695, %v13836_v8  ;;  %v13842_v19 = vadd.f32 %v7675_v42, %v7553_v63 }
 0x430   :  { %v7679_v35 = vpop.f32.mrf.mxu0 }
 0x431   :  { %v13844_v44 = vpop.f32.mrf.mxu1  ;;  %10714 = vpow2.f32 %v8714_v41  ;;  %v8715_v12 = vmul.f32 -1.442695, %v13842_v19  ;;  %v13848_v55 = vadd.f32 %v7679_v35, %v7557_v16 }
 0x432   :  { %v7681_v36 = vpop.f32.mrf.mxu0 }
 0x433   :  { %v13850_v52 = vpop.f32.mrf.mxu1  ;;  %10716 = vpow2.f32 %v8715_v12  ;;  %v8716_v27 = vmul.f32 -1.442695, %v13848_v55  ;;  %v13854_v23 = vadd.f32 %v7681_v36, %v7559_v21  ;;  %v7569_v21 = vadd.f32 %v7568_v24, %v13750_v32 }
 0x434   :  { %v7683_v1 = vpop.f32.mrf.mxu0  ;;  %v7573_v24 = vadd.f32 %v13816_v46, %v13756_v29 }
 0x435   :  { %v13856_v25 = vpop.f32.mrf.mxu1  ;;  %10718 = vpow2.f32 %v8716_v27  ;;  %v8717_v57 = vmul.f32 -1.442695, %v13854_v23  ;;  %v13860_v0 = vadd.f32 %v7683_v1, %v7561_v56 }
 0x436   :  { %v7685_v39 = vpop.f32.mrf.mxu0 }
 0x437   :  { %v13862_v63 = vpop.f32.mrf.mxu1  ;;  %10720 = vpow2.f32 %v8717_v57  ;;  %v8718_v26 = vmul.f32 -1.442695, %v13860_v0  ;;  %v13866_v42 = vadd.f32 %v7685_v39, %v7563_v62 }
 0x438   :  { %v7689_v41 = vpop.f32.mrf.mxu0 }
 0x439   :  { %v13868_v16 = vpop.f32.mrf.mxu1  ;;  %10722 = vpow2.f32 %v8718_v26  ;;  %v8719_v43 = vmul.f32 -1.442695, %v13866_v42  ;;  %v13871_v58 = vadd.f32 %v7689_v41, %v7567_v20  ;;  %v7577_v41 = vadd.f32 %v13821_v17, %v13759_v53 }
 0x43a   :  { %v10711_v35 = vpop.eup %10710  ;;  %v7691_v36 = vpop.f32.mrf.mxu0 }
 0x43b   :  { %v13874_v12 = vpop.f32.mrf.mxu1  ;;  %v7866_v10 = vadd.f32 1.0, %v10711_v35  ;;  %10724 = vpow2.f32 %v8719_v43  ;;  %v8720_v56 = vmul.f32 -1.442695, %v13871_v58  ;;  %v13880_v62 = vadd.f32 %v7691_v36, %v7569_v21 }
 0x43c   :  { %v10713_v27 = vpop.eup %10712  ;;  %v7693_v57 = vpop.f32.mrf.mxu0 }
 0x43d   :  { %v13878_v1 = vpop.f32.mrf.mxu1  ;;  %10726 = vrcp.f32 %v7866_v10  ;;  %v7867_v39 = vadd.f32 1.0, %v10713_v27  ;;  %v13882_v20 = vadd.f32 %v7693_v57, %v7571_v28  ;;  %v8721_v47 = vmul.f32 -1.442695, %v13880_v62 }
 0x43e   :  { %v10715_v32 = vpop.eup %10714  ;;  %10728 = vpow2.f32 %v8720_v56  ;;  %v7695_v26 = vpop.f32.mrf.mxu0  ;;  %v7579_v27 = vadd.f32 %v13826_v49, %v13762_v22 }
 0x43f   :  { %v13886_v54 = vpop.f32.mrf.mxu1  ;;  %10730 = vrcp.f32 %v7867_v39  ;;  %v7868_v43 = vadd.f32 1.0, %v10715_v32  ;;  %v8722_v35 = vmul.f32 -1.442695, %v13882_v20  ;;  %v13894_v28 = vadd.f32 %v7695_v26, %v7573_v24 }
 0x440   :  { %v10717_v21 = vpop.eup %10716  ;;  %10732 = vpow2.f32 %v8721_v47  ;;  %v7699_v29 = vpop.f32.mrf.mxu0  ;;  %v7581_v39 = vadd.f32 %v13832_v40, %v13765_v3 }
 0x441   :  { %v13892_v36 = vpop.f32.mrf.mxu1  ;;  %10734 = vrcp.f32 %v7868_v43  ;;  %v7869_v46 = vadd.f32 1.0, %v10717_v21  ;;  %v13896_v10 = vadd.f32 %v7699_v29, %v7577_v41  ;;  %v8723_v17 = vmul.f32 -1.442695, %v13894_v28 }
 0x442   :  { %v10719_v56 = vpop.eup %10718  ;;  %10736 = vpow2.f32 %v8722_v35  ;;  %v7701_v57 = vpop.f32.mrf.mxu0  ;;  %v7583_v21 = vadd.f32 %v13838_v11, %v13768_v13  ;;  %v7587_v29 = vadd.f32 %v13844_v44, %v13771_v60 }
 0x443   :  { %v13900_v53 = vpop.f32.mrf.mxu1  ;;  %10738 = vrcp.f32 %v7869_v46  ;;  %v7870_v32 = vadd.f32 1.0, %v10719_v56  ;;  %v8724_v24 = vmul.f32 -1.442695, %v13896_v10  ;;  %v13906_v26 = vadd.f32 %v7701_v57, %v7579_v27 }
 0x444   :  { %v10721_v47 = vpop.eup %10720  ;;  %10740 = vpow2.f32 %v8723_v17  ;;  %v7703_v41 = vpop.f32.mrf.mxu0 }
 0x445   :  { %10742 = vrcp.f32 %v7870_v32  ;;  %v7871_v22 = vadd.f32 1.0, %v10721_v47  ;;  %v13908_v49 = vpop.f32.mrf.mxu1  ;;  %v13910_v43 = vadd.f32 %v7703_v41, %v7581_v39  ;;  %v8725_v3 = vmul.f32 -1.442695, %v13906_v26 }
 0x446   :  { %v10723_v35 = vpop.eup %10722  ;;  %10744 = vpow2.f32 %v8724_v24  ;;  %v7705_v40 = vpop.f32.mrf.mxu0  ;;  %v7589_v24 = vadd.f32 %v13850_v52, %v13774_v51 }
 0x447   :  { %10746 = vrcp.f32 %v7871_v22  ;;  %v7872_v46 = vadd.f32 1.0, %v10723_v35  ;;  %v8726_v56 = vmul.f32 -1.442695, %v13910_v43  ;;  %v13918_v17 = vadd.f32 %v7705_v40, %v7583_v21  ;;  %v13920_v32 = vpop.f32.mrf.mxu1 }
 0x448   :  { %v10725_v27 = vpop.eup %10724  ;;  %10748 = vpow2.f32 %v8725_v3  ;;  %v7709_v57 = vpop.f32.mrf.mxu0  ;;  %v7591_v22 = vadd.f32 %v13856_v25, %v13777_v45 }
 0x449   :  { %10750 = vrcp.f32 %v7872_v46  ;;  %v7873_v39 = vadd.f32 1.0, %v10725_v27  ;;  %v13922_v13 = vadd.f32 %v7709_v57, %v7587_v29  ;;  %v8727_v60 = vmul.f32 -1.442695, %v13918_v17  ;;  %v13939_v45 = vpop.f32.mrf.mxu1 }
 0x44a   :  { %v10727_v11 = vpop.eup %10726  ;;  %10752 = vpow2.f32 %v8726_v56  ;;  %v7711_v44 = vpop.f32.mrf.mxu0 }
 0x44b   :  { %v10729_v47 = vpop.eup %10728  ;;  %v7974_v41 = vmul.f32 %v10727_v11, %v13824_v48  ;;  %10754 = vrcp.f32 %v7873_v39  ;;  %v8728_v35 = vmul.f32 -1.442695, %v13922_v13  ;;  %v13931_v40 = vadd.f32 %v7711_v44, %v7589_v24 }
 0x44c   :  { %v10731_v21 = vpop.eup %10730  ;;  %v7874_v3 = vadd.f32 1.0, %v10729_v47  ;;  %10756 = vpow2.f32 %v8727_v60  ;;  %v7713_v29 = vpop.f32.mrf.mxu0  ;;  %v7593_v48 = vadd.f32 %v13862_v63, %v13780_v33  ;;  %v7597_v24 = vadd.f32 %v13868_v16, %v13783_v2 }
 0x44d   :  { %v10733_v51 = vpop.eup %10732  ;;  %8010 = vst [vmem:[%s14171_s5] sm:$0xff] %v7974_v41  ;;  %v7975_v52 = vmul.f32 %v10731_v21, %v13830_v14  ;;  %10758 = vpow2.f32 %v8728_v35  ;;  %v13941_v25 = vadd.f32 %v7713_v29, %v7591_v22  ;;  %v8729_v27 = vmul.f32 -1.442695, %v13931_v40  ;;  %v13959_v22 = vpop.f32.mrf.mxu1 }
 0x44e   :  { %v10735_v46 = vpop.eup %10734  ;;  %10760 = vrcp.f32 %v7874_v3  ;;  %v7875_v56 = vadd.f32 1.0, %v10733_v51  ;;  %v7715_v57 = vpop.f32.mrf.mxu0  ;;  %v7601_v51 = vadd.f32 %v13878_v1, %v13789_v34 }
 0x44f   :  { %v10737_v39 = vpop.eup %10736  ;;  %8011 = vst [vmem:[%s14171_s5 + $0x8] sm:$0xff] %v7975_v52  ;;  %v7976_v14 = vmul.f32 %v10735_v46, %v13836_v8  ;;  %v8730_v33 = vmul.f32 -1.442695, %v13941_v25  ;;  %v13949_v63 = vadd.f32 %v7715_v57, %v7593_v48  ;;  %v7599_v8 = vadd.f32 %v13874_v12, %v13786_v4  ;;  %v13979_v57 = vpop.f32.mrf.mxu1 }
 0x450   :  { %v10739_v11 = vpop.eup %10738  ;;  %10762 = vrcp.f32 %v7875_v56  ;;  %v7876_v60 = vadd.f32 1.0, %v10737_v39  ;;  %v7719_v44 = vpop.f32.mrf.mxu0 }
 0x451   :  { %v10741_v47 = vpop.eup %10740  ;;  %8012 = vst [vmem:[%s14171_s5 + $0x10] sm:$0xff] %v7976_v14  ;;  %v7977_v41 = vmul.f32 %v10739_v11, %v13842_v19  ;;  %10764 = vpow2.f32 %v8729_v27  ;;  %v8731_v35 = vmul.f32 -1.442695, %v13949_v63  ;;  %v13962_v16 = vadd.f32 %v7719_v44, %v7597_v24 }
 0x452   :  { %v10743_v21 = vpop.eup %10742  ;;  %10766 = vrcp.f32 %v7876_v60  ;;  %v7877_v2 = vadd.f32 1.0, %v10741_v47  ;;  %v7721_v3 = vpop.f32.mrf.mxu0 }
 0x453   :  { %v10745_v29 = vpop.eup %10744  ;;  %8013 = vst [vmem:[%s14171_s5 + $0x18] sm:$0xff] %v7977_v41  ;;  %v7978_v19 = vmul.f32 %v10743_v21, %v13848_v55  ;;  %10768 = vpow2.f32 %v8730_v33  ;;  %v13968_v4 = vadd.f32 %v7721_v3, %v7599_v8  ;;  %v8732_v48 = vmul.f32 -1.442695, %v13962_v16 }
 0x454   :  { %v10747_v12 = vpop.eup %10746  ;;  %10770 = vrcp.f32 %v7877_v2  ;;  %v7878_v52 = vadd.f32 1.0, %v10745_v29  ;;  %v7723_v46 = vpop.f32.mrf.mxu0  ;;  %v7603_v55 = vadd.f32 %v13886_v54, %v13792_v38  ;;  %v7607_v38 = vadd.f32 %v13892_v36, %v13794_v5 }
 0x455   :  { %v10749_v56 = vpop.eup %10748  ;;  %8014 = vst [vmem:[%s14171_s5 + $0x20] sm:$0xff] %v7978_v19  ;;  %v7979_v27 = vmul.f32 %v10747_v12, %v13854_v23  ;;  %10772 = vpow2.f32 %v8731_v35  ;;  %v8733_v34 = vmul.f32 -1.442695, %v13968_v4  ;;  %v13982_v14 = vadd.f32 %v7723_v46, %v7601_v51  ;;  %v7622_v5 = vpop.f32.mrf.mxu1 }
 0x456   :  { %v10751_v1 = vpop.eup %10750  ;;  %10774 = vrcp.f32 %v7878_v52  ;;  %v7879_v39 = vadd.f32 1.0, %v10749_v56  ;;  %v7725_v33 = vpop.f32.mrf.mxu0  ;;  %v7611_v21 = vadd.f32 %v13908_v49, %v13798_v6  ;;  %v7613_v51 = vadd.f32 %v13920_v32, %v13800_v50 }
 0x457   :  { %v10753_v11 = vpop.eup %10752  ;;  %8015 = vst [vmem:[%s14171_s5 + $0x28] sm:$0xff] %v7979_v27  ;;  %v7980_v23 = vmul.f32 %v10751_v1, %v13860_v0  ;;  %10776 = vpow2.f32 %v8732_v48  ;;  %v13990_v54 = vadd.f32 %v7725_v33, %v7603_v55  ;;  %v8734_v44 = vmul.f32 -1.442695, %v13982_v14  ;;  %v7626_v52 = vpop.f32.mrf.mxu1 }
 0x458   :  { %v10755_v24 = vpop.eup %10754  ;;  %10778 = vrcp.f32 %v7879_v39  ;;  %v7880_v60 = vadd.f32 1.0, %v10753_v11  ;;  %v7729_v47 = vpop.f32.mrf.mxu0  ;;  %v7609_v0 = vadd.f32 %v13900_v53, %v13796_v18 }
 0x459   :  { %v10757_v41 = vpop.eup %10756  ;;  %8016 = vst [vmem:[%s14171_s5 + $0x30] sm:$0xff] %v7980_v23  ;;  %v7981_v8 = vmul.f32 %v10755_v24, %v13866_v42  ;;  %10780 = vpow2.f32 %v8733_v34  ;;  %v13999_v36 = vadd.f32 %v7729_v47, %v7607_v38  ;;  %v8735_v3 = vmul.f32 -1.442695, %v13990_v54  ;;  %v7628_v23 = vpop.f32.mrf.mxu1 }
 0x45a   :  { %v10759_v35 = vpop.eup %10758  ;;  %10782 = vrcp.f32 %v7880_v60  ;;  %v7881_v2 = vadd.f32 1.0, %v10757_v41  ;;  %v7731_v29 = vpop.f32.mrf.mxu0 }
 0x45b   :  { %v10761_v19 = vpop.eup %10760  ;;  %8017 = vst [vmem:[%s14171_s5 + $0x38] sm:$0xff] %v7981_v8  ;;  %v7882_v42 = vadd.f32 1.0, %v10759_v35  ;;  %10784 = vpow2.f32 %v8734_v44  ;;  %v8736_v18 = vmul.f32 -1.442695, %v13999_v36  ;;  %v14008_v53 = vadd.f32 %v7731_v29, %v7609_v0 }
 0x45c   :  { %v7982_v12 = vmul.f32 %v10761_v19, %v13871_v58  ;;  %10786 = vrcp.f32 %v7881_v2  ;;  %v7733_v6 = vpop.f32.mrf.mxu0  ;;  %v7617_v58 = vadd.f32 %v13939_v45, %v13802_v30 }
 0x45d   :  { %v10763_v49 = vpop.eup %10762  ;;  %10788 = vrcp.f32 %v7882_v42  ;;  %v8737_v48 = vmul.f32 -1.442695, %v14008_v53  ;;  %v14014_v46 = vadd.f32 %v7733_v6, %v7611_v21  ;;  %v7630_v21 = vpop.f32.mrf.mxu1 }
 0x45e   :  { %v10765_v56 = vpop.eup %10764  ;;  %8018 = vst [vmem:[%s14171_s5 + $0x40] sm:$0xff] %v7982_v12  ;;  %v7983_v27 = vmul.f32 %v10763_v49, %v13880_v62  ;;  %10790 = vpow2.f32 %v8735_v3  ;;  %v7735_v55 = vpop.f32.mrf.mxu0  ;;  %v7619_v62 = vadd.f32 %v13959_v22, %v13804_v9  ;;  %v7621_v9 = vadd.f32 %v13979_v57, %v13806_v61 }
 0x45f   :  { %v10767_v34 = vpop.eup %10766  ;;  %v7883_v50 = vadd.f32 1.0, %v10765_v56  ;;  %10792 = vpow2.f32 %v8736_v18  ;;  %v8738_v32 = vmul.f32 -1.442695, %v14014_v46  ;;  %v14023_v1 = vadd.f32 %v7735_v55, %v7613_v51 }
 0x460   :  { %v10769_v39 = vpop.eup %10768  ;;  %8019 = vst [vmem:[%s14171_s5 + $0x48] sm:$0xff] %v7983_v27  ;;  %v7984_v33 = vmul.f32 %v10767_v34, %v13882_v20  ;;  %10794 = vpow2.f32 %v8737_v48  ;;  %v7739_v30 = vpop.f32.mrf.mxu0 }
 0x461   :  { %v10771_v45 = vpop.eup %10770  ;;  %10796 = vrcp.f32 %v7883_v50  ;;  %v7884_v11 = vadd.f32 1.0, %v10769_v39  ;;  %v8739_v38 = vmul.f32 -1.442695, %v14023_v1  ;;  %v14032_v24 = vadd.f32 %v7739_v30, %v7617_v58  ;;  %v7632_v48 = vpop.f32.mrf.mxu1 }
 0x462   :  { %v10773_v60 = vpop.eup %10772  ;;  %8020 = vst [vmem:[%s14171_s5 + $0x50] sm:$0xff] %v7984_v33  ;;  %v7985_v20 = vmul.f32 %v10771_v45, %v13894_v28  ;;  %10798 = vpow2.f32 %v8738_v32  ;;  %v7741_v22 = vpop.f32.mrf.mxu0  ;;  %v7623_v28 = vadd.f32 %v7622_v5, %v13808_v31  ;;  %v7633_v30 = vadd.f32 %v7632_v48, %v13819_v37 }
 0x463   :  { %v10775_v44 = vpop.eup %10774  ;;  %10800 = vrcp.f32 %v7884_v11  ;;  %v7885_v47 = vadd.f32 1.0, %v10773_v60  ;;  %v8740_v41 = vmul.f32 -1.442695, %v14032_v24  ;;  %v14041_v8 = vadd.f32 %v7741_v22, %v7619_v62 }
 0x464   :  { %v10777_v0 = vpop.eup %10776  ;;  %8021 = vst [vmem:[%s14171_s5 + $0x58] sm:$0xff] %v7985_v20  ;;  %v7986_v35 = vmul.f32 %v10775_v44, %v13896_v10  ;;  %10802 = vpow2.f32 %v8739_v38  ;;  %v7743_v61 = vpop.f32.mrf.mxu0  ;;  %v7627_v10 = vadd.f32 %v7626_v52, %v13810_v59 }
 0x465   :  { %v10779_v57 = vpop.eup %10778  ;;  %10804 = vrcp.f32 %v7885_v47  ;;  %v7886_v2 = vadd.f32 1.0, %v10777_v0  ;;  %v8741_v3 = vmul.f32 -1.442695, %v14041_v8  ;;  %v14049_v29 = vadd.f32 %v7743_v61, %v7621_v9 }
 0x466   :  { %v10781_v19 = vpop.eup %10780  ;;  %8022 = vst [vmem:[%s14171_s5 + $0x60] sm:$0xff] %v7986_v35  ;;  %v7987_v42 = vmul.f32 %v10779_v57, %v13906_v26  ;;  %10806 = vpow2.f32 %v8740_v41  ;;  %v7745_v31 = vpop.f32.mrf.mxu0  ;;  %v7629_v26 = vadd.f32 %v7628_v23, %v13812_v15 }
 0x467   :  { %v10783_v5 = vpop.eup %10782  ;;  %10808 = vrcp.f32 %v7886_v2  ;;  %v7887_v18 = vadd.f32 1.0, %v10781_v19  ;;  %v8742_v12 = vmul.f32 -1.442695, %v14049_v29  ;;  %v14057_v6 = vadd.f32 %v7745_v31, %v7623_v28 }
 0x468   :  { %v10785_v49 = vpop.eup %10784  ;;  %8023 = vst [vmem:[%s14171_s5 + $0x68] sm:$0xff] %v7987_v42  ;;  %v7988_v51 = vmul.f32 %v10783_v5, %v13910_v43  ;;  %10810 = vpow2.f32 %v8741_v3  ;;  %v7749_v59 = vpop.f32.mrf.mxu0  ;;  %v7631_v43 = vadd.f32 %v7630_v21, %v13814_v7 }
 0x469   :  { %v10787_v52 = vpop.eup %10786  ;;  %10812 = vrcp.f32 %v7887_v18  ;;  %v7888_v56 = vadd.f32 1.0, %v10785_v49  ;;  %v8743_v27 = vmul.f32 -1.442695, %v14057_v6  ;;  %v14065_v58 = vadd.f32 %v7749_v59, %v7627_v10 }
 0x46a   :  { %v10789_v55 = vpop.eup %10788  ;;  %8024 = vst [vmem:[%s14171_s5 + $0x70] sm:$0xff] %v7988_v51  ;;  %v7989_v34 = vmul.f32 %v10787_v52, %v13918_v17  ;;  %10814 = vpow2.f32 %v8742_v12  ;;  %v7751_v15 = vpop.f32.mrf.mxu0 }
 0x46b   :  { %v10791_v50 = vpop.eup %10790  ;;  %v7990_v32 = vmul.f32 %v10789_v55, %v13922_v13  ;;  %10816 = vrcp.f32 %v7888_v56  ;;  %v8744_v39 = vmul.f32 -1.442695, %v14065_v58  ;;  %v14074_v33 = vadd.f32 %v7751_v15, %v7629_v26 }
 0x46c   :  { %v10793_v62 = vpop.eup %10792  ;;  %8025 = vst [vmem:[%s14171_s5 + $0x78] sm:$0xff] %v7989_v34  ;;  %v7889_v17 = vadd.f32 1.0, %v10791_v50  ;;  %10818 = vpow2.f32 %v8743_v27  ;;  %v7753_v7 = vpop.f32.mrf.mxu0 }
 0x46d   :  { %v10795_v45 = vpop.eup %10794  ;;  %8026 = vst [vmem:[%s14171_s5 + $0x80] sm:$0xff] %v7990_v32  ;;  %v7890_v13 = vadd.f32 1.0, %v10793_v62  ;;  %10820 = vpow2.f32 %v8744_v39  ;;  %v8745_v11 = vmul.f32 -1.442695, %v14074_v33  ;;  %v14084_v23 = vadd.f32 %v7753_v7, %v7631_v43 }
 0x46e   :  { %v10797_v38 = vpop.eup %10796  ;;  %10822 = vrcp.f32 %v7889_v17  ;;  %v7891_v60 = vadd.f32 1.0, %v10795_v45  ;;  %v7755_v20 = vpop.f32.mrf.mxu0 }
 0x46f   :  { %v10799_v9 = vpop.eup %10798  ;;  %v7991_v37 = vmul.f32 %v10797_v38, %v13931_v40  ;;  %10824 = vrcp.f32 %v7890_v13  ;;  %v8746_v22 = vmul.f32 -1.442695, %v14084_v23  ;;  %v14088_v44 = vadd.f32 %v7755_v20, %v7633_v30 }
 0x470   :  { %v10801_v47 = vpop.eup %10800  ;;  %10826 = vrcp.f32 %v7891_v60  ;;  %v7892_v41 = vadd.f32 1.0, %v10799_v9 }
 0x471   :  { %v10803_v0 = vpop.eup %10802  ;;  %8027 = vst [vmem:[%s14171_s5 + $0x88] sm:$0xff] %v7991_v37  ;;  %v7992_v35 = vmul.f32 %v10801_v47, %v13941_v25  ;;  %10828 = vpow2.f32 %v8745_v11  ;;  %v8747_v28 = vmul.f32 -1.442695, %v14088_v44 }
 0x472   :  { %v10805_v61 = vpop.eup %10804  ;;  %10830 = vrcp.f32 %v7892_v41  ;;  %v7893_v40 = vadd.f32 1.0, %v10803_v0 }
 0x473   :  { %v10807_v57 = vpop.eup %10806  ;;  %8028 = vst [vmem:[%s14171_s5 + $0x90] sm:$0xff] %v7992_v35  ;;  %v7993_v21 = vmul.f32 %v10805_v61, %v13949_v63  ;;  %10832 = vpow2.f32 %v8746_v22 }
 0x474   :  { %v10809_v2 = vpop.eup %10808  ;;  %10834 = vrcp.f32 %v7893_v40  ;;  %v7894_v3 = vadd.f32 1.0, %v10807_v57 }
 0x475   :  { %v10811_v19 = vpop.eup %10810  ;;  %8029 = vst [vmem:[%s14171_s5 + $0x98] sm:$0xff] %v7993_v21  ;;  %v7994_v25 = vmul.f32 %v10809_v2, %v13962_v16  ;;  %10836 = vpow2.f32 %v8747_v28 }
 0x476   :  { %v10813_v42 = vpop.eup %10812  ;;  %10838 = vrcp.f32 %v7894_v3  ;;  %v7895_v10 = vadd.f32 1.0, %v10811_v19 }
 0x477   :  { %v10815_v31 = vpop.eup %10814  ;;  %8030 = vst [vmem:[%s14171_s5 + $0xa0] sm:$0xff] %v7994_v25  ;;  %v7995_v63 = vmul.f32 %v10813_v42, %v13968_v4 }
 0x478   :  { %v10817_v5 = vpop.eup %10816  ;;  %10840 = vrcp.f32 %v7895_v10  ;;  %v7896_v18 = vadd.f32 1.0, %v10815_v31 }
 0x479   :  { %v10819_v12 = vpop.eup %10818  ;;  %8031 = vst [vmem:[%s14171_s5 + $0xa8] sm:$0xff] %v7995_v63  ;;  %v7996_v16 = vmul.f32 %v10817_v5, %v13982_v14 }
 0x47a   :  { %v10821_v49 = vpop.eup %10820  ;;  %10842 = vrcp.f32 %v7896_v18  ;;  %v7897_v51 = vadd.f32 1.0, %v10819_v12 }
 0x47b   :  { %v10823_v26 = vpop.eup %10822  ;;  %8032 = vst [vmem:[%s14171_s5 + $0xb0] sm:$0xff] %v7996_v16  ;;  %v7898_v59 = vadd.f32 1.0, %v10821_v49 }
 0x47c   :  { %v10825_v4 = vpop.eup %10824  ;;  %v7997_v52 = vmul.f32 %v10823_v26, %v13990_v54  ;;  %10844 = vrcp.f32 %v7897_v51 }
 0x47d   :  { %v10827_v48 = vpop.eup %10826  ;;  %v7998_v56 = vmul.f32 %v10825_v4, %v13999_v36  ;;  %10846 = vrcp.f32 %v7898_v59 }
 0x47e   :  { %v10829_v27 = vpop.eup %10828  ;;  %8033 = vst [vmem:[%s14171_s5 + $0xb8] sm:$0xff] %v7997_v52  ;;  %v7999_v14 = vmul.f32 %v10827_v48, %v14008_v53 }
 0x47f   :  { %v10831_v55 = vpop.eup %10830  ;;  %8034 = vst [vmem:[%s14171_s5 + $0xc0] sm:$0xff] %v7998_v56  ;;  %v7899_v34 = vadd.f32 1.0, %v10829_v27 }
 0x480   :  { %v10833_v43 = vpop.eup %10832  ;;  %8035 = vst [vmem:[%s14171_s5 + $0xc8] sm:$0xff] %v7999_v14  ;;  %v8000_v54 = vmul.f32 %v10831_v55, %v14014_v46 }
 0x481   :  { %v10835_v36 = vpop.eup %10834  ;;  %10848 = vrcp.f32 %v7899_v34  ;;  %v7900_v15 = vadd.f32 1.0, %v10833_v43 }
 0x482   :  { %v10837_v50 = vpop.eup %10836  ;;  %8036 = vst [vmem:[%s14171_s5 + $0xd0] sm:$0xff] %v8000_v54  ;;  %v8001_v53 = vmul.f32 %v10835_v36, %v14023_v1 }
 0x483   :  { %v10839_v32 = vpop.eup %10838  ;;  %10850 = vrcp.f32 %v7900_v15  ;;  %v7901_v39 = vadd.f32 1.0, %v10837_v50 }
 0x484   :  { %8037 = vst [vmem:[%s14171_s5 + $0xd8] sm:$0xff] %v8001_v53  ;;  %v8002_v62 = vmul.f32 %v10839_v32, %v14032_v24 }
 0x485   :  { %v10841_v46 = vpop.eup %10840  ;;  %10852 = vrcp.f32 %v7901_v39 }
 0x486   :  { %8038 = vst [vmem:[%s14171_s5 + $0xe0] sm:$0xff] %v8002_v62  ;;  %v8003_v30 = vmul.f32 %v10841_v46, %v14041_v8 }
 0x487   :  { %v10843_v17 = vpop.eup %10842 }
 0x488   :  { %8039 = vst [vmem:[%s14171_s5 + $0xe8] sm:$0xff] %v8003_v30  ;;  %v8004_v1 = vmul.f32 %v10843_v17, %v14049_v29 }
 0x489   :  { %v10845_v7 = vpop.eup %10844 }
 0x48a   :  { %v10847_v45 = vpop.eup %10846  ;;  %8040 = vst [vmem:[%s14171_s5 + $0xf0] sm:$0xff] %v8004_v1  ;;  %v8005_v24 = vmul.f32 %v10845_v7, %v14057_v6 }
 0x48b   :  { %v8006_v13 = vmul.f32 %v10847_v45, %v14065_v58 }
 0x48c   :  { %8041 = vst [vmem:[%s14171_s5 + $0xf8] sm:$0xff] %v8005_v24 }
 0x48d   :  { %8042 = vst [vmem:[%s14171_s5 + $0x100] sm:$0xff] %v8006_v13 }
 0x48e   :  { %v10849_v8 = vpop.eup %10848 }
 0x48f   :  { %v8007_v29 = vmul.f32 %v10849_v8, %v14074_v33 }
 0x490   :  { %v10851_v11 = vpop.eup %10850 }
 0x491   :  { %8043 = vst [vmem:[%s14171_s5 + $0x108] sm:$0xff] %v8007_v29  ;;  %v8008_v6 = vmul.f32 %v10851_v11, %v14084_v23 }
 0x492   :  { %v10853_v38 = vpop.eup %10852 }
 0x493   :  { %8044 = vst [vmem:[%s14171_s5 + $0x110] sm:$0xff] %v8008_v6  ;;  %v8009_v58 = vmul.f32 %v10853_v38, %v14088_v44 }
 0x495   :  { %8045 = vst [vmem:[%s14171_s5 + $0x118] sm:$0xff] %v8009_v58 }
 0x496   :  { %8050 = vsyncpa [#allocation6], 1 }

</bundles_post_ra>
